<compile_context>
chip_gen: v5e
topology: v5e:2x2
jax: 0.10.0
libtpu: 0.0.40
codegen_flags: <defaults>
</compile_context>

<pallas_src>
import functools

import numpy as np
import jax
import jax.numpy as jnp
from jax import lax
from jax.experimental import pallas as pl
from jax.experimental.pallas import tpu as pltpu

RADIUS = 25          # number of radius bands (matches the module)
RMAX = RADIUS - 1    # largest kernel radius -> max |du|, |dv| shift
RB = 8               # image rows (B*3 channels) per grid block (f32 sublane tile)


# -----------------------------------------------------------------------------
# Deterministic parameter construction (mirrors GemorestructNet.__init__).
# -----------------------------------------------------------------------------
def make_radius_set(radius):
    """radius_set[i]: (2i+1, 2i+1) normalized kernel; radius_set[0] = [[1.0]]."""
    kernels = [np.array([[1.0]], dtype=np.float32)]
    order, cut_off_factor = 3.0, 2.5          # first entry of bw_para_list
    for i in range(1, radius):
        s = 2 * i + 1
        yy, xx = np.meshgrid(np.arange(s) - i, np.arange(s) - i, indexing="ij")
        r = np.sqrt(xx.astype(np.float64) ** 2 + yy.astype(np.float64) ** 2)
        cutoff = max(i / cut_off_factor, 1e-3)
        k = 1.0 / (1.0 + (r / cutoff) ** (2.0 * order))
        k = k / k.sum()
        kernels.append(k.astype(np.float32))
    return kernels


def build_tap_tables(kernels):
    """Flat tap-weight table (SMEM resident) + per-radius start offsets.

    weight_pos_set[i] and weight_neg_set[i] hold the same data (radius_set[i]),
    so a single shared table is used.  The i == 0 mask half-scaling is folded
    into the radius-0 tap (exact).
    """
    offs, taps, off = [], [], 0
    for i, k in enumerate(kernels):
        offs.append(off)
        k = k.astype(np.float32)
        if i == 0:
            k = k * 0.5
        taps.append(k.ravel())
        off += k.size
    return np.asarray(offs, np.int32), np.concatenate(taps).astype(np.float32)


# -----------------------------------------------------------------------------
# Pallas kernel.  Grid = (row blocks [parallel], radius bands [arbitrary]).
# -----------------------------------------------------------------------------
def gemo_kernel(off_ref, w_ref, bm_ref, x_ref, out_ref, xpad_ref, conv_ref,
                *, H, W_pad, RPAD):
    r = pl.program_id(1)                        # radius band (reduction axis)

    @pl.when(r == 0)
    def _init():
        # New row block: zero the resident output block and (re)build the
        # row-padded image scratch (zero rows absorb every row shift).
        out_ref[...] = jnp.zeros_like(out_ref)
        xpad_ref[...] = jnp.zeros_like(xpad_ref)
        xpad_ref[RPAD:RPAD + H, :, :] = x_ref[...]

    fr = r.astype(jnp.float32)
    bm = bm_ref[...].reshape(H * RB, W_pad)
    # Exact hat-function rewrite of the four compare/ramp mask pairs; the pos
    # and neg convolutions share weights, so their bands are summed.
    band = (jnp.maximum(1.0 - jnp.abs(bm - fr), 0.0)
            + jnp.maximum(1.0 - jnp.abs(bm + fr), 0.0))

    # On-device analogue of PyTorch's `if pos_mask.sum()+neg_mask.sum() > 0:`
    # (per row block): skips all tap work for inactive radii, no host sync.
    @pl.when(jnp.sum(band) > 0.0)
    def _active():
        conv_ref[...] = jnp.zeros_like(conv_ref)
        s = 2 * r + 1                           # kernel side length
        base = off_ref[r]                       # flat tap-table offset

        def du_body(iu, carry):
            du = iu - r                         # row shift in [-r, r]
            rows = xpad_ref[pl.ds(RPAD + du, H), :, :].reshape(H * RB, W_pad)
            row_base = base + iu * s + r        # + r so signed dv indexes taps
            for dv in range(-RMAX, RMAX + 1):   # static column shifts
                @pl.when(r >= abs(dv))
                def _tap(dv=dv):
                    w = w_ref[row_base + dv]
                    shifted = rows if dv == 0 else pltpu.roll(
                        rows, (-dv) % W_pad, axis=1)
                    conv_ref[...] = conv_ref[...] + w * shifted
            return carry

        lax.fori_loop(0, s, du_body, 0)
        out_ref[...] = out_ref[...] + (band * conv_ref[...]).reshape(H, RB, W_pad)


def gemorestruct_forward(blur_map, singledp_aof, tap_off, tap_w):
    """SingleDP_gemo = compute_gemoS(blur_map, SingleDPAoF)  (NCHW, f32)."""
    B, C, H, W = blur_map.shape
    assert C == 3, "blur_map must have 3 channels"
    N = B * 3
    N_pad = -(-N // RB) * RB
    # Lane padding absorbs the largest column shift so every out-of-image read
    # lands in zeros (no edge masks needed inside the kernel).
    W_pad = -(-(W + RMAX) // 128) * 128
    RPAD = RMAX                                  # row padding above / below

    out_of_band = np.float32(2 * RADIUS + 10)    # padded pixels hit no band

    bm = blur_map.astype(jnp.float32).reshape(N, H, W)
    x3 = singledp_aof[:, :3].astype(jnp.float32).reshape(N, H, W)
    # (H, N, W) layout: H is the leading (untiled) axis so dynamic row shifts
    # are pure addressing; (rows=N, lanes=W_pad) are the (8, 128)-tiled dims.
    bm = jnp.pad(jnp.transpose(bm, (1, 0, 2)),
                 ((0, 0), (0, N_pad - N), (0, W_pad - W)),
                 constant_values=out_of_band)
    x3 = jnp.pad(jnp.transpose(x3, (1, 0, 2)),
                 ((0, 0), (0, N_pad - N), (0, W_pad - W)))

    n_row = N_pad // RB
    kernel = functools.partial(gemo_kernel, H=H, W_pad=W_pad, RPAD=RPAD)

    out = pl.pallas_call(
        kernel,
        out_shape=jax.ShapeDtypeStruct((H, N_pad, W_pad), jnp.float32),
        grid=(n_row, RADIUS),
        in_specs=[
            pl.BlockSpec(memory_space=pltpu.MemorySpace.SMEM),      # tap offsets
            pl.BlockSpec(memory_space=pltpu.MemorySpace.SMEM),      # tap weights
            pl.BlockSpec((H, RB, W_pad), lambda i, r: (0, i, 0)),   # blur map
            pl.BlockSpec((H, RB, W_pad), lambda i, r: (0, i, 0)),   # image
        ],
        out_specs=pl.BlockSpec((H, RB, W_pad), lambda i, r: (0, i, 0)),
        scratch_shapes=[
            pltpu.VMEM((H + 2 * RPAD, RB, W_pad), jnp.float32),     # padded image
            pltpu.VMEM((H * RB, W_pad), jnp.float32),               # conv accum
        ],
        compiler_params=pltpu.CompilerParams(
            dimension_semantics=("parallel", "arbitrary")),
    )(tap_off, tap_w, bm, x3)

    out = jnp.transpose(out[:, :N, :W], (1, 0, 2))   # (N, H, W)
    return out.reshape(B, 3, H, W)


# -----------------------------------------------------------------------------
# Pure-JAX reference (faithful f32 computation, for a correctness check).
# -----------------------------------------------------------------------------
def reference_forward(blur_map, x, kernels):
    B, _, H, W = blur_map.shape
    x3 = x[:, :3].astype(jnp.float32)
    out = jnp.zeros_like(blur_map)
    for i, K in enumerate(kernels):
        fi = float(i)
        bm = blur_map
        lpos = ((fi - 1 < bm) & (bm <= fi)).astype(jnp.float32)
        rpos = ((fi < bm) & (bm < fi + 1)).astype(jnp.float32)
        lneg = ((-(fi + 1) < bm) & (bm <= -fi)).astype(jnp.float32)
        rneg = ((-fi < bm) & (bm < -(fi - 1))).astype(jnp.float32)
        pos = (bm - fi + 1) * lpos + (fi + 1 - bm) * rpos
        neg = (bm + fi + 1) * lneg + (-bm - fi + 1) * rneg
        if i == 0:
            pos, neg = pos * 0.5, neg * 0.5
        Kj = jnp.asarray(K)[None, None]
        conv = lax.conv_general_dilated(
            x3.reshape(B * 3, 1, H, W), Kj, (1, 1),
            padding=[(i, i), (i, i)],
            dimension_numbers=("NCHW", "OIHW", "NCHW"),
            precision=lax.Precision.HIGHEST,
        ).reshape(B, 3, H, W)
        out = out + conv * pos + conv * neg
    return out


if __name__ == "__main__":
    B, C, H, W = 2, 4, 16, 16
    key = jax.random.PRNGKey(0)
    k1, k2 = jax.random.split(key)
    blur_map = jax.random.uniform(k1, (B, 3, H, W), jnp.float32,
                                  minval=-4.0, maxval=4.0)
    singledp_aof = jax.random.normal(k2, (B, C, H, W), jnp.float32)

    kernels = make_radius_set(RADIUS)
    tap_off_np, tap_w_np = build_tap_tables(kernels)
    tap_off = jnp.asarray(tap_off_np)
    tap_w = jnp.asarray(tap_w_np)

    fwd = jax.jit(gemorestruct_forward)
    out = fwd(blur_map, singledp_aof, tap_off, tap_w)
    out = jax.block_until_ready(out)

    ref = reference_forward(blur_map, singledp_aof, kernels)
    np.testing.assert_allclose(np.asarray(out), np.asarray(ref),
                               atol=1e-3, rtol=1e-3)
    print("KERNEL_OK")
</pallas_src>

<mosaic_0001>
module attributes {stable_mosaic.version = 11 : i64} {
  func.func @gemo_kernel(%arg0: i32, %arg1: i32, %arg2: memref<25xi32, #tpu.memory_space<smem>>, %arg3: memref<20825xf32, #tpu.memory_space<smem>>, %arg4: memref<16x8x128xf32, #tpu.memory_space<vmem>>, %arg5: memref<16x8x128xf32, #tpu.memory_space<vmem>>, %arg6: memref<16x8x128xf32, #tpu.memory_space<vmem>>, %arg7: memref<64x8x128xf32, #tpu.memory_space<vmem>>, %arg8: memref<128x128xf32, #tpu.memory_space<vmem>>) attributes {dimension_semantics = [#tpu.dimension_semantics<parallel>, #tpu.dimension_semantics<arbitrary>], iteration_bounds = array<i64: 1, 25>, scalar_prefetch = 0 : i64, scratch_operands = 2 : i64, tpu.core_type = #tpu.core_type<tc>, window_params = [{transform_indices = @transform_0, window_bounds = array<i64: 25>}, {transform_indices = @transform_1, window_bounds = array<i64: 20825>}, {transform_indices = @transform_2, window_bounds = array<i64: 16, 8, 128>}, {transform_indices = @transform_3, window_bounds = array<i64: 16, 8, 128>}, {transform_indices = @transform_4, window_bounds = array<i64: 16, 8, 128>}]} {
    %c0_i32 = arith.constant 0 : i32
    %0 = arith.cmpi eq, %arg1, %c0_i32 : i32
    %1 = arith.extui %0 : i1 to i32
    %c0_i32_0 = arith.constant 0 : i32
    %2 = arith.cmpi ne, %1, %c0_i32_0 : i32
    scf.if %2 {
      %cst_9 = arith.constant 0.000000e+00 : f32
      %28 = vector.broadcast %cst_9 : f32 to vector<16x8x128xf32>
      %c0_10 = arith.constant 0 : index
      %c0_11 = arith.constant 0 : index
      %c0_12 = arith.constant 0 : index
      %29 = vector.load %arg6[%c0_10, %c0_11, %c0_12] : memref<16x8x128xf32, #tpu.memory_space<vmem>>, vector<16x8x128xf32>
      tpu.vector_store %arg6[%c0_10, %c0_11, %c0_12], %28 {strides = array<i32>} : memref<16x8x128xf32, #tpu.memory_space<vmem>>, vector<16x8x128xf32>,
      %cst_13 = arith.constant 0.000000e+00 : f32
      %30 = vector.broadcast %cst_13 : f32 to vector<64x8x128xf32>
      %c0_14 = arith.constant 0 : index
      %c0_15 = arith.constant 0 : index
      %c0_16 = arith.constant 0 : index
      %31 = vector.load %arg7[%c0_14, %c0_15, %c0_16] : memref<64x8x128xf32, #tpu.memory_space<vmem>>, vector<64x8x128xf32>
      tpu.vector_store %arg7[%c0_14, %c0_15, %c0_16], %30 {strides = array<i32>} : memref<64x8x128xf32, #tpu.memory_space<vmem>>, vector<64x8x128xf32>,
      %c0_17 = arith.constant 0 : index
      %c0_18 = arith.constant 0 : index
      %c0_19 = arith.constant 0 : index
      %32 = vector.load %arg5[%c0_17, %c0_18, %c0_19] : memref<16x8x128xf32, #tpu.memory_space<vmem>>, vector<16x8x128xf32>
      %c24 = arith.constant 24 : index
      %c0_20 = arith.constant 0 : index
      %c0_21 = arith.constant 0 : index
      %33 = vector.load %arg7[%c24, %c0_20, %c0_21] : memref<64x8x128xf32, #tpu.memory_space<vmem>>, vector<16x8x128xf32>
      tpu.vector_store %arg7[%c24, %c0_20, %c0_21], %32 {strides = array<i32>} : memref<64x8x128xf32, #tpu.memory_space<vmem>>, vector<16x8x128xf32>,
    } else {
    }
    %3 = arith.sitofp %arg1 : i32 to f32
    %c0 = arith.constant 0 : index
    %c0_1 = arith.constant 0 : index
    %c0_2 = arith.constant 0 : index
    %4 = vector.load %arg4[%c0, %c0_1, %c0_2] : memref<16x8x128xf32, #tpu.memory_space<vmem>>, vector<16x8x128xf32>
    %5 = vector.shape_cast %4 : vector<16x8x128xf32> to vector<128x128xf32>
    %6 = vector.broadcast %3 : f32 to vector<128x128xf32>
    %7 = arith.subf %5, %6 : vector<128x128xf32>
    %8 = math.absf %7 : vector<128x128xf32>
    %cst = arith.constant 1.000000e+00 : f32
    %9 = vector.broadcast %cst : f32 to vector<128x128xf32>
    %10 = arith.subf %9, %8 : vector<128x128xf32>
    %cst_3 = arith.constant 0.000000e+00 : f32
    %11 = vector.broadcast %cst_3 : f32 to vector<128x128xf32>
    %12 = arith.maximumf %10, %11 : vector<128x128xf32>
    %13 = vector.broadcast %3 : f32 to vector<128x128xf32>
    %14 = arith.addf %5, %13 : vector<128x128xf32>
    %15 = math.absf %14 : vector<128x128xf32>
    %cst_4 = arith.constant 1.000000e+00 : f32
    %16 = vector.broadcast %cst_4 : f32 to vector<128x128xf32>
    %17 = arith.subf %16, %15 : vector<128x128xf32>
    %cst_5 = arith.constant 0.000000e+00 : f32
    %18 = vector.broadcast %cst_5 : f32 to vector<128x128xf32>
    %19 = arith.maximumf %17, %18 : vector<128x128xf32>
    %20 = arith.addf %12, %19 : vector<128x128xf32>
    %21 = vector.shape_cast %20 : vector<128x128xf32> to vector<1x128x128xf32>
    %cst_6 = arith.constant dense<0.000000e+00> : vector<1xf32>
    %22 = vector.multi_reduction <add>, %21, %cst_6 [1, 2] : vector<1x128x128xf32> to vector<1xf32>
    %23 = vector.shape_cast %22 : vector<1xf32> to vector<1x1x1xf32>
    %24 = vector.extract %23[0, 0, 0] : f32 from vector<1x1x1xf32>
    %cst_7 = arith.constant 0.000000e+00 : f32
    %25 = arith.cmpf ogt, %24, %cst_7 : f32
    %26 = arith.extui %25 : i1 to i32
    %c0_i32_8 = arith.constant 0 : i32
    %27 = arith.cmpi ne, %26, %c0_i32_8 : i32
    scf.if %27 {
      %cst_9 = arith.constant 0.000000e+00 : f32
      %28 = vector.broadcast %cst_9 : f32 to vector<128x128xf32>
      %c0_10 = arith.constant 0 : index
      %c0_11 = arith.constant 0 : index
      %29 = vector.load %arg8[%c0_10, %c0_11] : memref<128x128xf32, #tpu.memory_space<vmem>>, vector<128x128xf32>
      tpu.vector_store %arg8[%c0_10, %c0_11], %28 {strides = array<i32>} : memref<128x128xf32, #tpu.memory_space<vmem>>, vector<128x128xf32>,
      %c2_i32 = arith.constant 2 : i32
      %30 = arith.muli %c2_i32, %arg1 : i32
      %c1_i32 = arith.constant 1 : i32
      %31 = arith.addi %30, %c1_i32 : i32
      %32 = arith.index_cast %arg1 : i32 to index
      %33 = memref.load %arg2[%32] : memref<25xi32, #tpu.memory_space<smem>>
      %c0_i32_12 = arith.constant 0 : i32
      %c0_i32_13 = arith.constant 0 : i32
      %34 = arith.subi %31, %c0_i32_13 : i32
      %35 = arith.addi %c0_i32_13, %34 : i32
      %c1_i32_14 = arith.constant 1 : i32
      scf.for %arg9 = %c0_i32_13 to %35 step %c1_i32_14  : i32 {
        %42 = arith.subi %arg9, %arg1 : i32
        %c24_i32 = arith.constant 24 : i32
        %43 = arith.addi %c24_i32, %42 : i32
        %44 = arith.index_cast %43 : i32 to index
        %c0_23 = arith.constant 0 : index
        %c0_24 = arith.constant 0 : index
        %45 = vector.load %arg7[%44, %c0_23, %c0_24] : memref<64x8x128xf32, #tpu.memory_space<vmem>>, vector<16x8x128xf32>
        %46 = vector.shape_cast %45 : vector<16x8x128xf32> to vector<128x128xf32>
        %47 = arith.muli %arg9, %31 : i32
        %48 = arith.addi %33, %47 : i32
        %49 = arith.addi %48, %arg1 : i32
        %c24_i32_25 = arith.constant 24 : i32
        %50 = arith.cmpi sge, %arg1, %c24_i32_25 : i32
        %51 = arith.extui %50 : i1 to i32
        %c0_i32_26 = arith.constant 0 : i32
        %52 = arith.cmpi ne, %51, %c0_i32_26 : i32
        scf.if %52 {
          %c-24_i32 = arith.constant -24 : i32
          %197 = arith.addi %49, %c-24_i32 : i32
          %198 = arith.index_cast %197 : i32 to index
          %199 = memref.load %arg3[%198] : memref<20825xf32, #tpu.memory_space<smem>>
          %c24_i32_102 = arith.constant 24 : i32
          %200 = tpu.dynamic_rotate %46 by %c24_i32_102 dim 1 : vector<128x128xf32>, i32 -> vector<128x128xf32>
          %c0_103 = arith.constant 0 : index
          %c0_104 = arith.constant 0 : index
          %201 = vector.load %arg8[%c0_103, %c0_104] : memref<128x128xf32, #tpu.memory_space<vmem>>, vector<128x128xf32>
          %202 = vector.broadcast %199 : f32 to vector<128x128xf32>
          %203 = arith.mulf %202, %200 : vector<128x128xf32>
          %204 = arith.addf %201, %203 : vector<128x128xf32>
          %c0_105 = arith.constant 0 : index
          %c0_106 = arith.constant 0 : index
          %205 = vector.load %arg8[%c0_105, %c0_106] : memref<128x128xf32, #tpu.memory_space<vmem>>, vector<128x128xf32>
          tpu.vector_store %arg8[%c0_105, %c0_106], %204 {strides = array<i32>} : memref<128x128xf32, #tpu.memory_space<vmem>>, vector<128x128xf32>,
        } else {
        }
        %c23_i32 = arith.constant 23 : i32
        %53 = arith.cmpi sge, %arg1, %c23_i32 : i32
        %54 = arith.extui %53 : i1 to i32
        %c0_i32_27 = arith.constant 0 : i32
        %55 = arith.cmpi ne, %54, %c0_i32_27 : i32
        scf.if %55 {
          %c-23_i32 = arith.constant -23 : i32
          %197 = arith.addi %49, %c-23_i32 : i32
          %198 = arith.index_cast %197 : i32 to index
          %199 = memref.load %arg3[%198] : memref<20825xf32, #tpu.memory_space<smem>>
          %c23_i32_102 = arith.constant 23 : i32
          %200 = tpu.dynamic_rotate %46 by %c23_i32_102 dim 1 : vector<128x128xf32>, i32 -> vector<128x128xf32>
          %c0_103 = arith.constant 0 : index
          %c0_104 = arith.constant 0 : index
          %201 = vector.load %arg8[%c0_103, %c0_104] : memref<128x128xf32, #tpu.memory_space<vmem>>, vector<128x128xf32>
          %202 = vector.broadcast %199 : f32 to vector<128x128xf32>
          %203 = arith.mulf %202, %200 : vector<128x128xf32>
          %204 = arith.addf %201, %203 : vector<128x128xf32>
          %c0_105 = arith.constant 0 : index
          %c0_106 = arith.constant 0 : index
          %205 = vector.load %arg8[%c0_105, %c0_106] : memref<128x128xf32, #tpu.memory_space<vmem>>, vector<128x128xf32>
          tpu.vector_store %arg8[%c0_105, %c0_106], %204 {strides = array<i32>} : memref<128x128xf32, #tpu.memory_space<vmem>>, vector<128x128xf32>,
        } else {
        }
        %c22_i32 = arith.constant 22 : i32
        %56 = arith.cmpi sge, %arg1, %c22_i32 : i32
        %57 = arith.extui %56 : i1 to i32
        %c0_i32_28 = arith.constant 0 : i32
        %58 = arith.cmpi ne, %57, %c0_i32_28 : i32
        scf.if %58 {
          %c-22_i32 = arith.constant -22 : i32
          %197 = arith.addi %49, %c-22_i32 : i32
          %198 = arith.index_cast %197 : i32 to index
          %199 = memref.load %arg3[%198] : memref<20825xf32, #tpu.memory_space<smem>>
          %c22_i32_102 = arith.constant 22 : i32
          %200 = tpu.dynamic_rotate %46 by %c22_i32_102 dim 1 : vector<128x128xf32>, i32 -> vector<128x128xf32>
          %c0_103 = arith.constant 0 : index
          %c0_104 = arith.constant 0 : index
          %201 = vector.load %arg8[%c0_103, %c0_104] : memref<128x128xf32, #tpu.memory_space<vmem>>, vector<128x128xf32>
          %202 = vector.broadcast %199 : f32 to vector<128x128xf32>
          %203 = arith.mulf %202, %200 : vector<128x128xf32>
          %204 = arith.addf %201, %203 : vector<128x128xf32>
          %c0_105 = arith.constant 0 : index
          %c0_106 = arith.constant 0 : index
          %205 = vector.load %arg8[%c0_105, %c0_106] : memref<128x128xf32, #tpu.memory_space<vmem>>, vector<128x128xf32>
          tpu.vector_store %arg8[%c0_105, %c0_106], %204 {strides = array<i32>} : memref<128x128xf32, #tpu.memory_space<vmem>>, vector<128x128xf32>,
        } else {
        }
        %c21_i32 = arith.constant 21 : i32
        %59 = arith.cmpi sge, %arg1, %c21_i32 : i32
        %60 = arith.extui %59 : i1 to i32
        %c0_i32_29 = arith.constant 0 : i32
        %61 = arith.cmpi ne, %60, %c0_i32_29 : i32
        scf.if %61 {
          %c-21_i32 = arith.constant -21 : i32
          %197 = arith.addi %49, %c-21_i32 : i32
          %198 = arith.index_cast %197 : i32 to index
          %199 = memref.load %arg3[%198] : memref<20825xf32, #tpu.memory_space<smem>>
          %c21_i32_102 = arith.constant 21 : i32
          %200 = tpu.dynamic_rotate %46 by %c21_i32_102 dim 1 : vector<128x128xf32>, i32 -> vector<128x128xf32>
          %c0_103 = arith.constant 0 : index
          %c0_104 = arith.constant 0 : index
          %201 = vector.load %arg8[%c0_103, %c0_104] : memref<128x128xf32, #tpu.memory_space<vmem>>, vector<128x128xf32>
          %202 = vector.broadcast %199 : f32 to vector<128x128xf32>
          %203 = arith.mulf %202, %200 : vector<128x128xf32>
          %204 = arith.addf %201, %203 : vector<128x128xf32>
          %c0_105 = arith.constant 0 : index
          %c0_106 = arith.constant 0 : index
          %205 = vector.load %arg8[%c0_105, %c0_106] : memref<128x128xf32, #tpu.memory_space<vmem>>, vector<128x128xf32>
          tpu.vector_store %arg8[%c0_105, %c0_106], %204 {strides = array<i32>} : memref<128x128xf32, #tpu.memory_space<vmem>>, vector<128x128xf32>,
        } else {
        }
        %c20_i32 = arith.constant 20 : i32
        %62 = arith.cmpi sge, %arg1, %c20_i32 : i32
        %63 = arith.extui %62 : i1 to i32
        %c0_i32_30 = arith.constant 0 : i32
        %64 = arith.cmpi ne, %63, %c0_i32_30 : i32
        scf.if %64 {
          %c-20_i32 = arith.constant -20 : i32
          %197 = arith.addi %49, %c-20_i32 : i32
          %198 = arith.index_cast %197 : i32 to index
          %199 = memref.load %arg3[%198] : memref<20825xf32, #tpu.memory_space<smem>>
          %c20_i32_102 = arith.constant 20 : i32
          %200 = tpu.dynamic_rotate %46 by %c20_i32_102 dim 1 : vector<128x128xf32>, i32 -> vector<128x128xf32>
          %c0_103 = arith.constant 0 : index
          %c0_104 = arith.constant 0 : index
          %201 = vector.load %arg8[%c0_103, %c0_104] : memref<128x128xf32, #tpu.memory_space<vmem>>, vector<128x128xf32>
          %202 = vector.broadcast %199 : f32 to vector<128x128xf32>
          %203 = arith.mulf %202, %200 : vector<128x128xf32>
          %204 = arith.addf %201, %203 : vector<128x128xf32>
          %c0_105 = arith.constant 0 : index
          %c0_106 = arith.constant 0 : index
          %205 = vector.load %arg8[%c0_105, %c0_106] : memref<128x128xf32, #tpu.memory_space<vmem>>, vector<128x128xf32>
          tpu.vector_store %arg8[%c0_105, %c0_106], %204 {strides = array<i32>} : memref<128x128xf32, #tpu.memory_space<vmem>>, vector<128x128xf32>,
        } else {
        }
        %c19_i32 = arith.constant 19 : i32
        %65 = arith.cmpi sge, %arg1, %c19_i32 : i32
        %66 = arith.extui %65 : i1 to i32
        %c0_i32_31 = arith.constant 0 : i32
        %67 = arith.cmpi ne, %66, %c0_i32_31 : i32
        scf.if %67 {
          %c-19_i32 = arith.constant -19 : i32
          %197 = arith.addi %49, %c-19_i32 : i32
          %198 = arith.index_cast %197 : i32 to index
          %199 = memref.load %arg3[%198] : memref<20825xf32, #tpu.memory_space<smem>>
          %c19_i32_102 = arith.constant 19 : i32
          %200 = tpu.dynamic_rotate %46 by %c19_i32_102 dim 1 : vector<128x128xf32>, i32 -> vector<128x128xf32>
          %c0_103 = arith.constant 0 : index
          %c0_104 = arith.constant 0 : index
          %201 = vector.load %arg8[%c0_103, %c0_104] : memref<128x128xf32, #tpu.memory_space<vmem>>, vector<128x128xf32>
          %202 = vector.broadcast %199 : f32 to vector<128x128xf32>
          %203 = arith.mulf %202, %200 : vector<128x128xf32>
          %204 = arith.addf %201, %203 : vector<128x128xf32>
          %c0_105 = arith.constant 0 : index
          %c0_106 = arith.constant 0 : index
          %205 = vector.load %arg8[%c0_105, %c0_106] : memref<128x128xf32, #tpu.memory_space<vmem>>, vector<128x128xf32>
          tpu.vector_store %arg8[%c0_105, %c0_106], %204 {strides = array<i32>} : memref<128x128xf32, #tpu.memory_space<vmem>>, vector<128x128xf32>,
        } else {
        }
        %c18_i32 = arith.constant 18 : i32
        %68 = arith.cmpi sge, %arg1, %c18_i32 : i32
        %69 = arith.extui %68 : i1 to i32
        %c0_i32_32 = arith.constant 0 : i32
        %70 = arith.cmpi ne, %69, %c0_i32_32 : i32
        scf.if %70 {
          %c-18_i32 = arith.constant -18 : i32
          %197 = arith.addi %49, %c-18_i32 : i32
          %198 = arith.index_cast %197 : i32 to index
          %199 = memref.load %arg3[%198] : memref<20825xf32, #tpu.memory_space<smem>>
          %c18_i32_102 = arith.constant 18 : i32
          %200 = tpu.dynamic_rotate %46 by %c18_i32_102 dim 1 : vector<128x128xf32>, i32 -> vector<128x128xf32>
          %c0_103 = arith.constant 0 : index
          %c0_104 = arith.constant 0 : index
          %201 = vector.load %arg8[%c0_103, %c0_104] : memref<128x128xf32, #tpu.memory_space<vmem>>, vector<128x128xf32>
          %202 = vector.broadcast %199 : f32 to vector<128x128xf32>
          %203 = arith.mulf %202, %200 : vector<128x128xf32>
          %204 = arith.addf %201, %203 : vector<128x128xf32>
          %c0_105 = arith.constant 0 : index
          %c0_106 = arith.constant 0 : index
          %205 = vector.load %arg8[%c0_105, %c0_106] : memref<128x128xf32, #tpu.memory_space<vmem>>, vector<128x128xf32>
          tpu.vector_store %arg8[%c0_105, %c0_106], %204 {strides = array<i32>} : memref<128x128xf32, #tpu.memory_space<vmem>>, vector<128x128xf32>,
        } else {
        }
        %c17_i32 = arith.constant 17 : i32
        %71 = arith.cmpi sge, %arg1, %c17_i32 : i32
        %72 = arith.extui %71 : i1 to i32
        %c0_i32_33 = arith.constant 0 : i32
        %73 = arith.cmpi ne, %72, %c0_i32_33 : i32
        scf.if %73 {
          %c-17_i32 = arith.constant -17 : i32
          %197 = arith.addi %49, %c-17_i32 : i32
          %198 = arith.index_cast %197 : i32 to index
          %199 = memref.load %arg3[%198] : memref<20825xf32, #tpu.memory_space<smem>>
          %c17_i32_102 = arith.constant 17 : i32
          %200 = tpu.dynamic_rotate %46 by %c17_i32_102 dim 1 : vector<128x128xf32>, i32 -> vector<128x128xf32>
          %c0_103 = arith.constant 0 : index
          %c0_104 = arith.constant 0 : index
          %201 = vector.load %arg8[%c0_103, %c0_104] : memref<128x128xf32, #tpu.memory_space<vmem>>, vector<128x128xf32>
          %202 = vector.broadcast %199 : f32 to vector<128x128xf32>
          %203 = arith.mulf %202, %200 : vector<128x128xf32>
          %204 = arith.addf %201, %203 : vector<128x128xf32>
          %c0_105 = arith.constant 0 : index
          %c0_106 = arith.constant 0 : index
          %205 = vector.load %arg8[%c0_105, %c0_106] : memref<128x128xf32, #tpu.memory_space<vmem>>, vector<128x128xf32>
          tpu.vector_store %arg8[%c0_105, %c0_106], %204 {strides = array<i32>} : memref<128x128xf32, #tpu.memory_space<vmem>>, vector<128x128xf32>,
        } else {
        }
        %c16_i32 = arith.constant 16 : i32
        %74 = arith.cmpi sge, %arg1, %c16_i32 : i32
        %75 = arith.extui %74 : i1 to i32
        %c0_i32_34 = arith.constant 0 : i32
        %76 = arith.cmpi ne, %75, %c0_i32_34 : i32
        scf.if %76 {
          %c-16_i32 = arith.constant -16 : i32
          %197 = arith.addi %49, %c-16_i32 : i32
          %198 = arith.index_cast %197 : i32 to index
          %199 = memref.load %arg3[%198] : memref<20825xf32, #tpu.memory_space<smem>>
          %c16_i32_102 = arith.constant 16 : i32
          %200 = tpu.dynamic_rotate %46 by %c16_i32_102 dim 1 : vector<128x128xf32>, i32 -> vector<128x128xf32>
          %c0_103 = arith.constant 0 : index
          %c0_104 = arith.constant 0 : index
          %201 = vector.load %arg8[%c0_103, %c0_104] : memref<128x128xf32, #tpu.memory_space<vmem>>, vector<128x128xf32>
          %202 = vector.broadcast %199 : f32 to vector<128x128xf32>
          %203 = arith.mulf %202, %200 : vector<128x128xf32>
          %204 = arith.addf %201, %203 : vector<128x128xf32>
          %c0_105 = arith.constant 0 : index
          %c0_106 = arith.constant 0 : index
          %205 = vector.load %arg8[%c0_105, %c0_106] : memref<128x128xf32, #tpu.memory_space<vmem>>, vector<128x128xf32>
          tpu.vector_store %arg8[%c0_105, %c0_106], %204 {strides = array<i32>} : memref<128x128xf32, #tpu.memory_space<vmem>>, vector<128x128xf32>,
        } else {
        }
        %c15_i32 = arith.constant 15 : i32
        %77 = arith.cmpi sge, %arg1, %c15_i32 : i32
        %78 = arith.extui %77 : i1 to i32
        %c0_i32_35 = arith.constant 0 : i32
        %79 = arith.cmpi ne, %78, %c0_i32_35 : i32
        scf.if %79 {
          %c-15_i32 = arith.constant -15 : i32
          %197 = arith.addi %49, %c-15_i32 : i32
          %198 = arith.index_cast %197 : i32 to index
          %199 = memref.load %arg3[%198] : memref<20825xf32, #tpu.memory_space<smem>>
          %c15_i32_102 = arith.constant 15 : i32
          %200 = tpu.dynamic_rotate %46 by %c15_i32_102 dim 1 : vector<128x128xf32>, i32 -> vector<128x128xf32>
          %c0_103 = arith.constant 0 : index
          %c0_104 = arith.constant 0 : index
          %201 = vector.load %arg8[%c0_103, %c0_104] : memref<128x128xf32, #tpu.memory_space<vmem>>, vector<128x128xf32>
          %202 = vector.broadcast %199 : f32 to vector<128x128xf32>
          %203 = arith.mulf %202, %200 : vector<128x128xf32>
          %204 = arith.addf %201, %203 : vector<128x128xf32>
          %c0_105 = arith.constant 0 : index
          %c0_106 = arith.constant 0 : index
          %205 = vector.load %arg8[%c0_105, %c0_106] : memref<128x128xf32, #tpu.memory_space<vmem>>, vector<128x128xf32>
          tpu.vector_store %arg8[%c0_105, %c0_106], %204 {strides = array<i32>} : memref<128x128xf32, #tpu.memory_space<vmem>>, vector<128x128xf32>,
        } else {
        }
        %c14_i32 = arith.constant 14 : i32
        %80 = arith.cmpi sge, %arg1, %c14_i32 : i32
        %81 = arith.extui %80 : i1 to i32
        %c0_i32_36 = arith.constant 0 : i32
        %82 = arith.cmpi ne, %81, %c0_i32_36 : i32
        scf.if %82 {
          %c-14_i32 = arith.constant -14 : i32
          %197 = arith.addi %49, %c-14_i32 : i32
          %198 = arith.index_cast %197 : i32 to index
          %199 = memref.load %arg3[%198] : memref<20825xf32, #tpu.memory_space<smem>>
          %c14_i32_102 = arith.constant 14 : i32
          %200 = tpu.dynamic_rotate %46 by %c14_i32_102 dim 1 : vector<128x128xf32>, i32 -> vector<128x128xf32>
          %c0_103 = arith.constant 0 : index
          %c0_104 = arith.constant 0 : index
          %201 = vector.load %arg8[%c0_103, %c0_104] : memref<128x128xf32, #tpu.memory_space<vmem>>, vector<128x128xf32>
          %202 = vector.broadcast %199 : f32 to vector<128x128xf32>
          %203 = arith.mulf %202, %200 : vector<128x128xf32>
          %204 = arith.addf %201, %203 : vector<128x128xf32>
          %c0_105 = arith.constant 0 : index
          %c0_106 = arith.constant 0 : index
          %205 = vector.load %arg8[%c0_105, %c0_106] : memref<128x128xf32, #tpu.memory_space<vmem>>, vector<128x128xf32>
          tpu.vector_store %arg8[%c0_105, %c0_106], %204 {strides = array<i32>} : memref<128x128xf32, #tpu.memory_space<vmem>>, vector<128x128xf32>,
        } else {
        }
        %c13_i32 = arith.constant 13 : i32
        %83 = arith.cmpi sge, %arg1, %c13_i32 : i32
        %84 = arith.extui %83 : i1 to i32
        %c0_i32_37 = arith.constant 0 : i32
        %85 = arith.cmpi ne, %84, %c0_i32_37 : i32
        scf.if %85 {
          %c-13_i32 = arith.constant -13 : i32
          %197 = arith.addi %49, %c-13_i32 : i32
          %198 = arith.index_cast %197 : i32 to index
          %199 = memref.load %arg3[%198] : memref<20825xf32, #tpu.memory_space<smem>>
          %c13_i32_102 = arith.constant 13 : i32
          %200 = tpu.dynamic_rotate %46 by %c13_i32_102 dim 1 : vector<128x128xf32>, i32 -> vector<128x128xf32>
          %c0_103 = arith.constant 0 : index
          %c0_104 = arith.constant 0 : index
          %201 = vector.load %arg8[%c0_103, %c0_104] : memref<128x128xf32, #tpu.memory_space<vmem>>, vector<128x128xf32>
          %202 = vector.broadcast %199 : f32 to vector<128x128xf32>
          %203 = arith.mulf %202, %200 : vector<128x128xf32>
          %204 = arith.addf %201, %203 : vector<128x128xf32>
          %c0_105 = arith.constant 0 : index
          %c0_106 = arith.constant 0 : index
          %205 = vector.load %arg8[%c0_105, %c0_106] : memref<128x128xf32, #tpu.memory_space<vmem>>, vector<128x128xf32>
          tpu.vector_store %arg8[%c0_105, %c0_106], %204 {strides = array<i32>} : memref<128x128xf32, #tpu.memory_space<vmem>>, vector<128x128xf32>,
        } else {
        }
        %c12_i32 = arith.constant 12 : i32
        %86 = arith.cmpi sge, %arg1, %c12_i32 : i32
        %87 = arith.extui %86 : i1 to i32
        %c0_i32_38 = arith.constant 0 : i32
        %88 = arith.cmpi ne, %87, %c0_i32_38 : i32
        scf.if %88 {
          %c-12_i32 = arith.constant -12 : i32
          %197 = arith.addi %49, %c-12_i32 : i32
          %198 = arith.index_cast %197 : i32 to index
          %199 = memref.load %arg3[%198] : memref<20825xf32, #tpu.memory_space<smem>>
          %c12_i32_102 = arith.constant 12 : i32
          %200 = tpu.dynamic_rotate %46 by %c12_i32_102 dim 1 : vector<128x128xf32>, i32 -> vector<128x128xf32>
          %c0_103 = arith.constant 0 : index
          %c0_104 = arith.constant 0 : index
          %201 = vector.load %arg8[%c0_103, %c0_104] : memref<128x128xf32, #tpu.memory_space<vmem>>, vector<128x128xf32>
          %202 = vector.broadcast %199 : f32 to vector<128x128xf32>
          %203 = arith.mulf %202, %200 : vector<128x128xf32>
          %204 = arith.addf %201, %203 : vector<128x128xf32>
          %c0_105 = arith.constant 0 : index
          %c0_106 = arith.constant 0 : index
          %205 = vector.load %arg8[%c0_105, %c0_106] : memref<128x128xf32, #tpu.memory_space<vmem>>, vector<128x128xf32>
          tpu.vector_store %arg8[%c0_105, %c0_106], %204 {strides = array<i32>} : memref<128x128xf32, #tpu.memory_space<vmem>>, vector<128x128xf32>,
        } else {
        }
        %c11_i32 = arith.constant 11 : i32
        %89 = arith.cmpi sge, %arg1, %c11_i32 : i32
        %90 = arith.extui %89 : i1 to i32
        %c0_i32_39 = arith.constant 0 : i32
        %91 = arith.cmpi ne, %90, %c0_i32_39 : i32
        scf.if %91 {
          %c-11_i32 = arith.constant -11 : i32
          %197 = arith.addi %49, %c-11_i32 : i32
          %198 = arith.index_cast %197 : i32 to index
          %199 = memref.load %arg3[%198] : memref<20825xf32, #tpu.memory_space<smem>>
          %c11_i32_102 = arith.constant 11 : i32
          %200 = tpu.dynamic_rotate %46 by %c11_i32_102 dim 1 : vector<128x128xf32>, i32 -> vector<128x128xf32>
          %c0_103 = arith.constant 0 : index
          %c0_104 = arith.constant 0 : index
          %201 = vector.load %arg8[%c0_103, %c0_104] : memref<128x128xf32, #tpu.memory_space<vmem>>, vector<128x128xf32>
          %202 = vector.broadcast %199 : f32 to vector<128x128xf32>
          %203 = arith.mulf %202, %200 : vector<128x128xf32>
          %204 = arith.addf %201, %203 : vector<128x128xf32>
          %c0_105 = arith.constant 0 : index
          %c0_106 = arith.constant 0 : index
          %205 = vector.load %arg8[%c0_105, %c0_106] : memref<128x128xf32, #tpu.memory_space<vmem>>, vector<128x128xf32>
          tpu.vector_store %arg8[%c0_105, %c0_106], %204 {strides = array<i32>} : memref<128x128xf32, #tpu.memory_space<vmem>>, vector<128x128xf32>,
        } else {
        }
        %c10_i32 = arith.constant 10 : i32
        %92 = arith.cmpi sge, %arg1, %c10_i32 : i32
        %93 = arith.extui %92 : i1 to i32
        %c0_i32_40 = arith.constant 0 : i32
        %94 = arith.cmpi ne, %93, %c0_i32_40 : i32
        scf.if %94 {
          %c-10_i32 = arith.constant -10 : i32
          %197 = arith.addi %49, %c-10_i32 : i32
          %198 = arith.index_cast %197 : i32 to index
          %199 = memref.load %arg3[%198] : memref<20825xf32, #tpu.memory_space<smem>>
          %c10_i32_102 = arith.constant 10 : i32
          %200 = tpu.dynamic_rotate %46 by %c10_i32_102 dim 1 : vector<128x128xf32>, i32 -> vector<128x128xf32>
          %c0_103 = arith.constant 0 : index
          %c0_104 = arith.constant 0 : index
          %201 = vector.load %arg8[%c0_103, %c0_104] : memref<128x128xf32, #tpu.memory_space<vmem>>, vector<128x128xf32>
          %202 = vector.broadcast %199 : f32 to vector<128x128xf32>
          %203 = arith.mulf %202, %200 : vector<128x128xf32>
          %204 = arith.addf %201, %203 : vector<128x128xf32>
          %c0_105 = arith.constant 0 : index
          %c0_106 = arith.constant 0 : index
          %205 = vector.load %arg8[%c0_105, %c0_106] : memref<128x128xf32, #tpu.memory_space<vmem>>, vector<128x128xf32>
          tpu.vector_store %arg8[%c0_105, %c0_106], %204 {strides = array<i32>} : memref<128x128xf32, #tpu.memory_space<vmem>>, vector<128x128xf32>,
        } else {
        }
        %c9_i32 = arith.constant 9 : i32
        %95 = arith.cmpi sge, %arg1, %c9_i32 : i32
        %96 = arith.extui %95 : i1 to i32
        %c0_i32_41 = arith.constant 0 : i32
        %97 = arith.cmpi ne, %96, %c0_i32_41 : i32
        scf.if %97 {
          %c-9_i32 = arith.constant -9 : i32
          %197 = arith.addi %49, %c-9_i32 : i32
          %198 = arith.index_cast %197 : i32 to index
          %199 = memref.load %arg3[%198] : memref<20825xf32, #tpu.memory_space<smem>>
          %c9_i32_102 = arith.constant 9 : i32
          %200 = tpu.dynamic_rotate %46 by %c9_i32_102 dim 1 : vector<128x128xf32>, i32 -> vector<128x128xf32>
          %c0_103 = arith.constant 0 : index
          %c0_104 = arith.constant 0 : index
          %201 = vector.load %arg8[%c0_103, %c0_104] : memref<128x128xf32, #tpu.memory_space<vmem>>, vector<128x128xf32>
          %202 = vector.broadcast %199 : f32 to vector<128x128xf32>
          %203 = arith.mulf %202, %200 : vector<128x128xf32>
          %204 = arith.addf %201, %203 : vector<128x128xf32>
          %c0_105 = arith.constant 0 : index
          %c0_106 = arith.constant 0 : index
          %205 = vector.load %arg8[%c0_105, %c0_106] : memref<128x128xf32, #tpu.memory_space<vmem>>, vector<128x128xf32>
          tpu.vector_store %arg8[%c0_105, %c0_106], %204 {strides = array<i32>} : memref<128x128xf32, #tpu.memory_space<vmem>>, vector<128x128xf32>,
        } else {
        }
        %c8_i32 = arith.constant 8 : i32
        %98 = arith.cmpi sge, %arg1, %c8_i32 : i32
        %99 = arith.extui %98 : i1 to i32
        %c0_i32_42 = arith.constant 0 : i32
        %100 = arith.cmpi ne, %99, %c0_i32_42 : i32
        scf.if %100 {
          %c-8_i32 = arith.constant -8 : i32
          %197 = arith.addi %49, %c-8_i32 : i32
          %198 = arith.index_cast %197 : i32 to index
          %199 = memref.load %arg3[%198] : memref<20825xf32, #tpu.memory_space<smem>>
          %c8_i32_102 = arith.constant 8 : i32
          %200 = tpu.dynamic_rotate %46 by %c8_i32_102 dim 1 : vector<128x128xf32>, i32 -> vector<128x128xf32>
          %c0_103 = arith.constant 0 : index
          %c0_104 = arith.constant 0 : index
          %201 = vector.load %arg8[%c0_103, %c0_104] : memref<128x128xf32, #tpu.memory_space<vmem>>, vector<128x128xf32>
          %202 = vector.broadcast %199 : f32 to vector<128x128xf32>
          %203 = arith.mulf %202, %200 : vector<128x128xf32>
          %204 = arith.addf %201, %203 : vector<128x128xf32>
          %c0_105 = arith.constant 0 : index
          %c0_106 = arith.constant 0 : index
          %205 = vector.load %arg8[%c0_105, %c0_106] : memref<128x128xf32, #tpu.memory_space<vmem>>, vector<128x128xf32>
          tpu.vector_store %arg8[%c0_105, %c0_106], %204 {strides = array<i32>} : memref<128x128xf32, #tpu.memory_space<vmem>>, vector<128x128xf32>,
        } else {
        }
        %c7_i32 = arith.constant 7 : i32
        %101 = arith.cmpi sge, %arg1, %c7_i32 : i32
        %102 = arith.extui %101 : i1 to i32
        %c0_i32_43 = arith.constant 0 : i32
        %103 = arith.cmpi ne, %102, %c0_i32_43 : i32
        scf.if %103 {
          %c-7_i32 = arith.constant -7 : i32
          %197 = arith.addi %49, %c-7_i32 : i32
          %198 = arith.index_cast %197 : i32 to index
          %199 = memref.load %arg3[%198] : memref<20825xf32, #tpu.memory_space<smem>>
          %c7_i32_102 = arith.constant 7 : i32
          %200 = tpu.dynamic_rotate %46 by %c7_i32_102 dim 1 : vector<128x128xf32>, i32 -> vector<128x128xf32>
          %c0_103 = arith.constant 0 : index
          %c0_104 = arith.constant 0 : index
          %201 = vector.load %arg8[%c0_103, %c0_104] : memref<128x128xf32, #tpu.memory_space<vmem>>, vector<128x128xf32>
          %202 = vector.broadcast %199 : f32 to vector<128x128xf32>
          %203 = arith.mulf %202, %200 : vector<128x128xf32>
          %204 = arith.addf %201, %203 : vector<128x128xf32>
          %c0_105 = arith.constant 0 : index
          %c0_106 = arith.constant 0 : index
          %205 = vector.load %arg8[%c0_105, %c0_106] : memref<128x128xf32, #tpu.memory_space<vmem>>, vector<128x128xf32>
          tpu.vector_store %arg8[%c0_105, %c0_106], %204 {strides = array<i32>} : memref<128x128xf32, #tpu.memory_space<vmem>>, vector<128x128xf32>,
        } else {
        }
        %c6_i32 = arith.constant 6 : i32
        %104 = arith.cmpi sge, %arg1, %c6_i32 : i32
        %105 = arith.extui %104 : i1 to i32
        %c0_i32_44 = arith.constant 0 : i32
        %106 = arith.cmpi ne, %105, %c0_i32_44 : i32
        scf.if %106 {
          %c-6_i32 = arith.constant -6 : i32
          %197 = arith.addi %49, %c-6_i32 : i32
          %198 = arith.index_cast %197 : i32 to index
          %199 = memref.load %arg3[%198] : memref<20825xf32, #tpu.memory_space<smem>>
          %c6_i32_102 = arith.constant 6 : i32
          %200 = tpu.dynamic_rotate %46 by %c6_i32_102 dim 1 : vector<128x128xf32>, i32 -> vector<128x128xf32>
          %c0_103 = arith.constant 0 : index
          %c0_104 = arith.constant 0 : index
          %201 = vector.load %arg8[%c0_103, %c0_104] : memref<128x128xf32, #tpu.memory_space<vmem>>, vector<128x128xf32>
          %202 = vector.broadcast %199 : f32 to vector<128x128xf32>
          %203 = arith.mulf %202, %200 : vector<128x128xf32>
          %204 = arith.addf %201, %203 : vector<128x128xf32>
          %c0_105 = arith.constant 0 : index
          %c0_106 = arith.constant 0 : index
          %205 = vector.load %arg8[%c0_105, %c0_106] : memref<128x128xf32, #tpu.memory_space<vmem>>, vector<128x128xf32>
          tpu.vector_store %arg8[%c0_105, %c0_106], %204 {strides = array<i32>} : memref<128x128xf32, #tpu.memory_space<vmem>>, vector<128x128xf32>,
        } else {
        }
        %c5_i32 = arith.constant 5 : i32
        %107 = arith.cmpi sge, %arg1, %c5_i32 : i32
        %108 = arith.extui %107 : i1 to i32
        %c0_i32_45 = arith.constant 0 : i32
        %109 = arith.cmpi ne, %108, %c0_i32_45 : i32
        scf.if %109 {
          %c-5_i32 = arith.constant -5 : i32
          %197 = arith.addi %49, %c-5_i32 : i32
          %198 = arith.index_cast %197 : i32 to index
          %199 = memref.load %arg3[%198] : memref<20825xf32, #tpu.memory_space<smem>>
          %c5_i32_102 = arith.constant 5 : i32
          %200 = tpu.dynamic_rotate %46 by %c5_i32_102 dim 1 : vector<128x128xf32>, i32 -> vector<128x128xf32>
          %c0_103 = arith.constant 0 : index
          %c0_104 = arith.constant 0 : index
          %201 = vector.load %arg8[%c0_103, %c0_104] : memref<128x128xf32, #tpu.memory_space<vmem>>, vector<128x128xf32>
          %202 = vector.broadcast %199 : f32 to vector<128x128xf32>
          %203 = arith.mulf %202, %200 : vector<128x128xf32>
          %204 = arith.addf %201, %203 : vector<128x128xf32>
          %c0_105 = arith.constant 0 : index
          %c0_106 = arith.constant 0 : index
          %205 = vector.load %arg8[%c0_105, %c0_106] : memref<128x128xf32, #tpu.memory_space<vmem>>, vector<128x128xf32>
          tpu.vector_store %arg8[%c0_105, %c0_106], %204 {strides = array<i32>} : memref<128x128xf32, #tpu.memory_space<vmem>>, vector<128x128xf32>,
        } else {
        }
        %c4_i32 = arith.constant 4 : i32
        %110 = arith.cmpi sge, %arg1, %c4_i32 : i32
        %111 = arith.extui %110 : i1 to i32
        %c0_i32_46 = arith.constant 0 : i32
        %112 = arith.cmpi ne, %111, %c0_i32_46 : i32
        scf.if %112 {
          %c-4_i32 = arith.constant -4 : i32
          %197 = arith.addi %49, %c-4_i32 : i32
          %198 = arith.index_cast %197 : i32 to index
          %199 = memref.load %arg3[%198] : memref<20825xf32, #tpu.memory_space<smem>>
          %c4_i32_102 = arith.constant 4 : i32
          %200 = tpu.dynamic_rotate %46 by %c4_i32_102 dim 1 : vector<128x128xf32>, i32 -> vector<128x128xf32>
          %c0_103 = arith.constant 0 : index
          %c0_104 = arith.constant 0 : index
          %201 = vector.load %arg8[%c0_103, %c0_104] : memref<128x128xf32, #tpu.memory_space<vmem>>, vector<128x128xf32>
          %202 = vector.broadcast %199 : f32 to vector<128x128xf32>
          %203 = arith.mulf %202, %200 : vector<128x128xf32>
          %204 = arith.addf %201, %203 : vector<128x128xf32>
          %c0_105 = arith.constant 0 : index
          %c0_106 = arith.constant 0 : index
          %205 = vector.load %arg8[%c0_105, %c0_106] : memref<128x128xf32, #tpu.memory_space<vmem>>, vector<128x128xf32>
          tpu.vector_store %arg8[%c0_105, %c0_106], %204 {strides = array<i32>} : memref<128x128xf32, #tpu.memory_space<vmem>>, vector<128x128xf32>,
        } else {
        }
        %c3_i32 = arith.constant 3 : i32
        %113 = arith.cmpi sge, %arg1, %c3_i32 : i32
        %114 = arith.extui %113 : i1 to i32
        %c0_i32_47 = arith.constant 0 : i32
        %115 = arith.cmpi ne, %114, %c0_i32_47 : i32
        scf.if %115 {
          %c-3_i32 = arith.constant -3 : i32
          %197 = arith.addi %49, %c-3_i32 : i32
          %198 = arith.index_cast %197 : i32 to index
          %199 = memref.load %arg3[%198] : memref<20825xf32, #tpu.memory_space<smem>>
          %c3_i32_102 = arith.constant 3 : i32
          %200 = tpu.dynamic_rotate %46 by %c3_i32_102 dim 1 : vector<128x128xf32>, i32 -> vector<128x128xf32>
          %c0_103 = arith.constant 0 : index
          %c0_104 = arith.constant 0 : index
          %201 = vector.load %arg8[%c0_103, %c0_104] : memref<128x128xf32, #tpu.memory_space<vmem>>, vector<128x128xf32>
          %202 = vector.broadcast %199 : f32 to vector<128x128xf32>
          %203 = arith.mulf %202, %200 : vector<128x128xf32>
          %204 = arith.addf %201, %203 : vector<128x128xf32>
          %c0_105 = arith.constant 0 : index
          %c0_106 = arith.constant 0 : index
          %205 = vector.load %arg8[%c0_105, %c0_106] : memref<128x128xf32, #tpu.memory_space<vmem>>, vector<128x128xf32>
          tpu.vector_store %arg8[%c0_105, %c0_106], %204 {strides = array<i32>} : memref<128x128xf32, #tpu.memory_space<vmem>>, vector<128x128xf32>,
        } else {
        }
        %c2_i32_48 = arith.constant 2 : i32
        %116 = arith.cmpi sge, %arg1, %c2_i32_48 : i32
        %117 = arith.extui %116 : i1 to i32
        %c0_i32_49 = arith.constant 0 : i32
        %118 = arith.cmpi ne, %117, %c0_i32_49 : i32
        scf.if %118 {
          %c-2_i32 = arith.constant -2 : i32
          %197 = arith.addi %49, %c-2_i32 : i32
          %198 = arith.index_cast %197 : i32 to index
          %199 = memref.load %arg3[%198] : memref<20825xf32, #tpu.memory_space<smem>>
          %c2_i32_102 = arith.constant 2 : i32
          %200 = tpu.dynamic_rotate %46 by %c2_i32_102 dim 1 : vector<128x128xf32>, i32 -> vector<128x128xf32>
          %c0_103 = arith.constant 0 : index
          %c0_104 = arith.constant 0 : index
          %201 = vector.load %arg8[%c0_103, %c0_104] : memref<128x128xf32, #tpu.memory_space<vmem>>, vector<128x128xf32>
          %202 = vector.broadcast %199 : f32 to vector<128x128xf32>
          %203 = arith.mulf %202, %200 : vector<128x128xf32>
          %204 = arith.addf %201, %203 : vector<128x128xf32>
          %c0_105 = arith.constant 0 : index
          %c0_106 = arith.constant 0 : index
          %205 = vector.load %arg8[%c0_105, %c0_106] : memref<128x128xf32, #tpu.memory_space<vmem>>, vector<128x128xf32>
          tpu.vector_store %arg8[%c0_105, %c0_106], %204 {strides = array<i32>} : memref<128x128xf32, #tpu.memory_space<vmem>>, vector<128x128xf32>,
        } else {
        }
        %c1_i32_50 = arith.constant 1 : i32
        %119 = arith.cmpi sge, %arg1, %c1_i32_50 : i32
        %120 = arith.extui %119 : i1 to i32
        %c0_i32_51 = arith.constant 0 : i32
        %121 = arith.cmpi ne, %120, %c0_i32_51 : i32
        scf.if %121 {
          %c-1_i32 = arith.constant -1 : i32
          %197 = arith.addi %49, %c-1_i32 : i32
          %198 = arith.index_cast %197 : i32 to index
          %199 = memref.load %arg3[%198] : memref<20825xf32, #tpu.memory_space<smem>>
          %c1_i32_102 = arith.constant 1 : i32
          %200 = tpu.dynamic_rotate %46 by %c1_i32_102 dim 1 : vector<128x128xf32>, i32 -> vector<128x128xf32>
          %c0_103 = arith.constant 0 : index
          %c0_104 = arith.constant 0 : index
          %201 = vector.load %arg8[%c0_103, %c0_104] : memref<128x128xf32, #tpu.memory_space<vmem>>, vector<128x128xf32>
          %202 = vector.broadcast %199 : f32 to vector<128x128xf32>
          %203 = arith.mulf %202, %200 : vector<128x128xf32>
          %204 = arith.addf %201, %203 : vector<128x128xf32>
          %c0_105 = arith.constant 0 : index
          %c0_106 = arith.constant 0 : index
          %205 = vector.load %arg8[%c0_105, %c0_106] : memref<128x128xf32, #tpu.memory_space<vmem>>, vector<128x128xf32>
          tpu.vector_store %arg8[%c0_105, %c0_106], %204 {strides = array<i32>} : memref<128x128xf32, #tpu.memory_space<vmem>>, vector<128x128xf32>,
        } else {
        }
        %c0_i32_52 = arith.constant 0 : i32
        %122 = arith.cmpi sge, %arg1, %c0_i32_52 : i32
        %123 = arith.extui %122 : i1 to i32
        %c0_i32_53 = arith.constant 0 : i32
        %124 = arith.cmpi ne, %123, %c0_i32_53 : i32
        scf.if %124 {
          %c0_i32_102 = arith.constant 0 : i32
          %197 = arith.addi %49, %c0_i32_102 : i32
          %198 = arith.index_cast %197 : i32 to index
          %199 = memref.load %arg3[%198] : memref<20825xf32, #tpu.memory_space<smem>>
          %c0_103 = arith.constant 0 : index
          %c0_104 = arith.constant 0 : index
          %200 = vector.load %arg8[%c0_103, %c0_104] : memref<128x128xf32, #tpu.memory_space<vmem>>, vector<128x128xf32>
          %201 = vector.broadcast %199 : f32 to vector<128x128xf32>
          %202 = arith.mulf %201, %46 : vector<128x128xf32>
          %203 = arith.addf %200, %202 : vector<128x128xf32>
          %c0_105 = arith.constant 0 : index
          %c0_106 = arith.constant 0 : index
          %204 = vector.load %arg8[%c0_105, %c0_106] : memref<128x128xf32, #tpu.memory_space<vmem>>, vector<128x128xf32>
          tpu.vector_store %arg8[%c0_105, %c0_106], %203 {strides = array<i32>} : memref<128x128xf32, #tpu.memory_space<vmem>>, vector<128x128xf32>,
        } else {
        }
        %c1_i32_54 = arith.constant 1 : i32
        %125 = arith.cmpi sge, %arg1, %c1_i32_54 : i32
        %126 = arith.extui %125 : i1 to i32
        %c0_i32_55 = arith.constant 0 : i32
        %127 = arith.cmpi ne, %126, %c0_i32_55 : i32
        scf.if %127 {
          %c1_i32_102 = arith.constant 1 : i32
          %197 = arith.addi %49, %c1_i32_102 : i32
          %198 = arith.index_cast %197 : i32 to index
          %199 = memref.load %arg3[%198] : memref<20825xf32, #tpu.memory_space<smem>>
          %c127_i32 = arith.constant 127 : i32
          %200 = tpu.dynamic_rotate %46 by %c127_i32 dim 1 : vector<128x128xf32>, i32 -> vector<128x128xf32>
          %c0_103 = arith.constant 0 : index
          %c0_104 = arith.constant 0 : index
          %201 = vector.load %arg8[%c0_103, %c0_104] : memref<128x128xf32, #tpu.memory_space<vmem>>, vector<128x128xf32>
          %202 = vector.broadcast %199 : f32 to vector<128x128xf32>
          %203 = arith.mulf %202, %200 : vector<128x128xf32>
          %204 = arith.addf %201, %203 : vector<128x128xf32>
          %c0_105 = arith.constant 0 : index
          %c0_106 = arith.constant 0 : index
          %205 = vector.load %arg8[%c0_105, %c0_106] : memref<128x128xf32, #tpu.memory_space<vmem>>, vector<128x128xf32>
          tpu.vector_store %arg8[%c0_105, %c0_106], %204 {strides = array<i32>} : memref<128x128xf32, #tpu.memory_space<vmem>>, vector<128x128xf32>,
        } else {
        }
        %c2_i32_56 = arith.constant 2 : i32
        %128 = arith.cmpi sge, %arg1, %c2_i32_56 : i32
        %129 = arith.extui %128 : i1 to i32
        %c0_i32_57 = arith.constant 0 : i32
        %130 = arith.cmpi ne, %129, %c0_i32_57 : i32
        scf.if %130 {
          %c2_i32_102 = arith.constant 2 : i32
          %197 = arith.addi %49, %c2_i32_102 : i32
          %198 = arith.index_cast %197 : i32 to index
          %199 = memref.load %arg3[%198] : memref<20825xf32, #tpu.memory_space<smem>>
          %c126_i32 = arith.constant 126 : i32
          %200 = tpu.dynamic_rotate %46 by %c126_i32 dim 1 : vector<128x128xf32>, i32 -> vector<128x128xf32>
          %c0_103 = arith.constant 0 : index
          %c0_104 = arith.constant 0 : index
          %201 = vector.load %arg8[%c0_103, %c0_104] : memref<128x128xf32, #tpu.memory_space<vmem>>, vector<128x128xf32>
          %202 = vector.broadcast %199 : f32 to vector<128x128xf32>
          %203 = arith.mulf %202, %200 : vector<128x128xf32>
          %204 = arith.addf %201, %203 : vector<128x128xf32>
          %c0_105 = arith.constant 0 : index
          %c0_106 = arith.constant 0 : index
          %205 = vector.load %arg8[%c0_105, %c0_106] : memref<128x128xf32, #tpu.memory_space<vmem>>, vector<128x128xf32>
          tpu.vector_store %arg8[%c0_105, %c0_106], %204 {strides = array<i32>} : memref<128x128xf32, #tpu.memory_space<vmem>>, vector<128x128xf32>,
        } else {
        }
        %c3_i32_58 = arith.constant 3 : i32
        %131 = arith.cmpi sge, %arg1, %c3_i32_58 : i32
        %132 = arith.extui %131 : i1 to i32
        %c0_i32_59 = arith.constant 0 : i32
        %133 = arith.cmpi ne, %132, %c0_i32_59 : i32
        scf.if %133 {
          %c3_i32_102 = arith.constant 3 : i32
          %197 = arith.addi %49, %c3_i32_102 : i32
          %198 = arith.index_cast %197 : i32 to index
          %199 = memref.load %arg3[%198] : memref<20825xf32, #tpu.memory_space<smem>>
          %c125_i32 = arith.constant 125 : i32
          %200 = tpu.dynamic_rotate %46 by %c125_i32 dim 1 : vector<128x128xf32>, i32 -> vector<128x128xf32>
          %c0_103 = arith.constant 0 : index
          %c0_104 = arith.constant 0 : index
          %201 = vector.load %arg8[%c0_103, %c0_104] : memref<128x128xf32, #tpu.memory_space<vmem>>, vector<128x128xf32>
          %202 = vector.broadcast %199 : f32 to vector<128x128xf32>
          %203 = arith.mulf %202, %200 : vector<128x128xf32>
          %204 = arith.addf %201, %203 : vector<128x128xf32>
          %c0_105 = arith.constant 0 : index
          %c0_106 = arith.constant 0 : index
          %205 = vector.load %arg8[%c0_105, %c0_106] : memref<128x128xf32, #tpu.memory_space<vmem>>, vector<128x128xf32>
          tpu.vector_store %arg8[%c0_105, %c0_106], %204 {strides = array<i32>} : memref<128x128xf32, #tpu.memory_space<vmem>>, vector<128x128xf32>,
        } else {
        }
        %c4_i32_60 = arith.constant 4 : i32
        %134 = arith.cmpi sge, %arg1, %c4_i32_60 : i32
        %135 = arith.extui %134 : i1 to i32
        %c0_i32_61 = arith.constant 0 : i32
        %136 = arith.cmpi ne, %135, %c0_i32_61 : i32
        scf.if %136 {
          %c4_i32_102 = arith.constant 4 : i32
          %197 = arith.addi %49, %c4_i32_102 : i32
          %198 = arith.index_cast %197 : i32 to index
          %199 = memref.load %arg3[%198] : memref<20825xf32, #tpu.memory_space<smem>>
          %c124_i32 = arith.constant 124 : i32
          %200 = tpu.dynamic_rotate %46 by %c124_i32 dim 1 : vector<128x128xf32>, i32 -> vector<128x128xf32>
          %c0_103 = arith.constant 0 : index
          %c0_104 = arith.constant 0 : index
          %201 = vector.load %arg8[%c0_103, %c0_104] : memref<128x128xf32, #tpu.memory_space<vmem>>, vector<128x128xf32>
          %202 = vector.broadcast %199 : f32 to vector<128x128xf32>
          %203 = arith.mulf %202, %200 : vector<128x128xf32>
          %204 = arith.addf %201, %203 : vector<128x128xf32>
          %c0_105 = arith.constant 0 : index
          %c0_106 = arith.constant 0 : index
          %205 = vector.load %arg8[%c0_105, %c0_106] : memref<128x128xf32, #tpu.memory_space<vmem>>, vector<128x128xf32>
          tpu.vector_store %arg8[%c0_105, %c0_106], %204 {strides = array<i32>} : memref<128x128xf32, #tpu.memory_space<vmem>>, vector<128x128xf32>,
        } else {
        }
        %c5_i32_62 = arith.constant 5 : i32
        %137 = arith.cmpi sge, %arg1, %c5_i32_62 : i32
        %138 = arith.extui %137 : i1 to i32
        %c0_i32_63 = arith.constant 0 : i32
        %139 = arith.cmpi ne, %138, %c0_i32_63 : i32
        scf.if %139 {
          %c5_i32_102 = arith.constant 5 : i32
          %197 = arith.addi %49, %c5_i32_102 : i32
          %198 = arith.index_cast %197 : i32 to index
          %199 = memref.load %arg3[%198] : memref<20825xf32, #tpu.memory_space<smem>>
          %c123_i32 = arith.constant 123 : i32
          %200 = tpu.dynamic_rotate %46 by %c123_i32 dim 1 : vector<128x128xf32>, i32 -> vector<128x128xf32>
          %c0_103 = arith.constant 0 : index
          %c0_104 = arith.constant 0 : index
          %201 = vector.load %arg8[%c0_103, %c0_104] : memref<128x128xf32, #tpu.memory_space<vmem>>, vector<128x128xf32>
          %202 = vector.broadcast %199 : f32 to vector<128x128xf32>
          %203 = arith.mulf %202, %200 : vector<128x128xf32>
          %204 = arith.addf %201, %203 : vector<128x128xf32>
          %c0_105 = arith.constant 0 : index
          %c0_106 = arith.constant 0 : index
          %205 = vector.load %arg8[%c0_105, %c0_106] : memref<128x128xf32, #tpu.memory_space<vmem>>, vector<128x128xf32>
          tpu.vector_store %arg8[%c0_105, %c0_106], %204 {strides = array<i32>} : memref<128x128xf32, #tpu.memory_space<vmem>>, vector<128x128xf32>,
        } else {
        }
        %c6_i32_64 = arith.constant 6 : i32
        %140 = arith.cmpi sge, %arg1, %c6_i32_64 : i32
        %141 = arith.extui %140 : i1 to i32
        %c0_i32_65 = arith.constant 0 : i32
        %142 = arith.cmpi ne, %141, %c0_i32_65 : i32
        scf.if %142 {
          %c6_i32_102 = arith.constant 6 : i32
          %197 = arith.addi %49, %c6_i32_102 : i32
          %198 = arith.index_cast %197 : i32 to index
          %199 = memref.load %arg3[%198] : memref<20825xf32, #tpu.memory_space<smem>>
          %c122_i32 = arith.constant 122 : i32
          %200 = tpu.dynamic_rotate %46 by %c122_i32 dim 1 : vector<128x128xf32>, i32 -> vector<128x128xf32>
          %c0_103 = arith.constant 0 : index
          %c0_104 = arith.constant 0 : index
          %201 = vector.load %arg8[%c0_103, %c0_104] : memref<128x128xf32, #tpu.memory_space<vmem>>, vector<128x128xf32>
          %202 = vector.broadcast %199 : f32 to vector<128x128xf32>
          %203 = arith.mulf %202, %200 : vector<128x128xf32>
          %204 = arith.addf %201, %203 : vector<128x128xf32>
          %c0_105 = arith.constant 0 : index
          %c0_106 = arith.constant 0 : index
          %205 = vector.load %arg8[%c0_105, %c0_106] : memref<128x128xf32, #tpu.memory_space<vmem>>, vector<128x128xf32>
          tpu.vector_store %arg8[%c0_105, %c0_106], %204 {strides = array<i32>} : memref<128x128xf32, #tpu.memory_space<vmem>>, vector<128x128xf32>,
        } else {
        }
        %c7_i32_66 = arith.constant 7 : i32
        %143 = arith.cmpi sge, %arg1, %c7_i32_66 : i32
        %144 = arith.extui %143 : i1 to i32
        %c0_i32_67 = arith.constant 0 : i32
        %145 = arith.cmpi ne, %144, %c0_i32_67 : i32
        scf.if %145 {
          %c7_i32_102 = arith.constant 7 : i32
          %197 = arith.addi %49, %c7_i32_102 : i32
          %198 = arith.index_cast %197 : i32 to index
          %199 = memref.load %arg3[%198] : memref<20825xf32, #tpu.memory_space<smem>>
          %c121_i32 = arith.constant 121 : i32
          %200 = tpu.dynamic_rotate %46 by %c121_i32 dim 1 : vector<128x128xf32>, i32 -> vector<128x128xf32>
          %c0_103 = arith.constant 0 : index
          %c0_104 = arith.constant 0 : index
          %201 = vector.load %arg8[%c0_103, %c0_104] : memref<128x128xf32, #tpu.memory_space<vmem>>, vector<128x128xf32>
          %202 = vector.broadcast %199 : f32 to vector<128x128xf32>
          %203 = arith.mulf %202, %200 : vector<128x128xf32>
          %204 = arith.addf %201, %203 : vector<128x128xf32>
          %c0_105 = arith.constant 0 : index
          %c0_106 = arith.constant 0 : index
          %205 = vector.load %arg8[%c0_105, %c0_106] : memref<128x128xf32, #tpu.memory_space<vmem>>, vector<128x128xf32>
          tpu.vector_store %arg8[%c0_105, %c0_106], %204 {strides = array<i32>} : memref<128x128xf32, #tpu.memory_space<vmem>>, vector<128x128xf32>,
        } else {
        }
        %c8_i32_68 = arith.constant 8 : i32
        %146 = arith.cmpi sge, %arg1, %c8_i32_68 : i32
        %147 = arith.extui %146 : i1 to i32
        %c0_i32_69 = arith.constant 0 : i32
        %148 = arith.cmpi ne, %147, %c0_i32_69 : i32
        scf.if %148 {
          %c8_i32_102 = arith.constant 8 : i32
          %197 = arith.addi %49, %c8_i32_102 : i32
          %198 = arith.index_cast %197 : i32 to index
          %199 = memref.load %arg3[%198] : memref<20825xf32, #tpu.memory_space<smem>>
          %c120_i32 = arith.constant 120 : i32
          %200 = tpu.dynamic_rotate %46 by %c120_i32 dim 1 : vector<128x128xf32>, i32 -> vector<128x128xf32>
          %c0_103 = arith.constant 0 : index
          %c0_104 = arith.constant 0 : index
          %201 = vector.load %arg8[%c0_103, %c0_104] : memref<128x128xf32, #tpu.memory_space<vmem>>, vector<128x128xf32>
          %202 = vector.broadcast %199 : f32 to vector<128x128xf32>
          %203 = arith.mulf %202, %200 : vector<128x128xf32>
          %204 = arith.addf %201, %203 : vector<128x128xf32>
          %c0_105 = arith.constant 0 : index
          %c0_106 = arith.constant 0 : index
          %205 = vector.load %arg8[%c0_105, %c0_106] : memref<128x128xf32, #tpu.memory_space<vmem>>, vector<128x128xf32>
          tpu.vector_store %arg8[%c0_105, %c0_106], %204 {strides = array<i32>} : memref<128x128xf32, #tpu.memory_space<vmem>>, vector<128x128xf32>,
        } else {
        }
        %c9_i32_70 = arith.constant 9 : i32
        %149 = arith.cmpi sge, %arg1, %c9_i32_70 : i32
        %150 = arith.extui %149 : i1 to i32
        %c0_i32_71 = arith.constant 0 : i32
        %151 = arith.cmpi ne, %150, %c0_i32_71 : i32
        scf.if %151 {
          %c9_i32_102 = arith.constant 9 : i32
          %197 = arith.addi %49, %c9_i32_102 : i32
          %198 = arith.index_cast %197 : i32 to index
          %199 = memref.load %arg3[%198] : memref<20825xf32, #tpu.memory_space<smem>>
          %c119_i32 = arith.constant 119 : i32
          %200 = tpu.dynamic_rotate %46 by %c119_i32 dim 1 : vector<128x128xf32>, i32 -> vector<128x128xf32>
          %c0_103 = arith.constant 0 : index
          %c0_104 = arith.constant 0 : index
          %201 = vector.load %arg8[%c0_103, %c0_104] : memref<128x128xf32, #tpu.memory_space<vmem>>, vector<128x128xf32>
          %202 = vector.broadcast %199 : f32 to vector<128x128xf32>
          %203 = arith.mulf %202, %200 : vector<128x128xf32>
          %204 = arith.addf %201, %203 : vector<128x128xf32>
          %c0_105 = arith.constant 0 : index
          %c0_106 = arith.constant 0 : index
          %205 = vector.load %arg8[%c0_105, %c0_106] : memref<128x128xf32, #tpu.memory_space<vmem>>, vector<128x128xf32>
          tpu.vector_store %arg8[%c0_105, %c0_106], %204 {strides = array<i32>} : memref<128x128xf32, #tpu.memory_space<vmem>>, vector<128x128xf32>,
        } else {
        }
        %c10_i32_72 = arith.constant 10 : i32
        %152 = arith.cmpi sge, %arg1, %c10_i32_72 : i32
        %153 = arith.extui %152 : i1 to i32
        %c0_i32_73 = arith.constant 0 : i32
        %154 = arith.cmpi ne, %153, %c0_i32_73 : i32
        scf.if %154 {
          %c10_i32_102 = arith.constant 10 : i32
          %197 = arith.addi %49, %c10_i32_102 : i32
          %198 = arith.index_cast %197 : i32 to index
          %199 = memref.load %arg3[%198] : memref<20825xf32, #tpu.memory_space<smem>>
          %c118_i32 = arith.constant 118 : i32
          %200 = tpu.dynamic_rotate %46 by %c118_i32 dim 1 : vector<128x128xf32>, i32 -> vector<128x128xf32>
          %c0_103 = arith.constant 0 : index
          %c0_104 = arith.constant 0 : index
          %201 = vector.load %arg8[%c0_103, %c0_104] : memref<128x128xf32, #tpu.memory_space<vmem>>, vector<128x128xf32>
          %202 = vector.broadcast %199 : f32 to vector<128x128xf32>
          %203 = arith.mulf %202, %200 : vector<128x128xf32>
          %204 = arith.addf %201, %203 : vector<128x128xf32>
          %c0_105 = arith.constant 0 : index
          %c0_106 = arith.constant 0 : index
          %205 = vector.load %arg8[%c0_105, %c0_106] : memref<128x128xf32, #tpu.memory_space<vmem>>, vector<128x128xf32>
          tpu.vector_store %arg8[%c0_105, %c0_106], %204 {strides = array<i32>} : memref<128x128xf32, #tpu.memory_space<vmem>>, vector<128x128xf32>,
        } else {
        }
        %c11_i32_74 = arith.constant 11 : i32
        %155 = arith.cmpi sge, %arg1, %c11_i32_74 : i32
        %156 = arith.extui %155 : i1 to i32
        %c0_i32_75 = arith.constant 0 : i32
        %157 = arith.cmpi ne, %156, %c0_i32_75 : i32
        scf.if %157 {
          %c11_i32_102 = arith.constant 11 : i32
          %197 = arith.addi %49, %c11_i32_102 : i32
          %198 = arith.index_cast %197 : i32 to index
          %199 = memref.load %arg3[%198] : memref<20825xf32, #tpu.memory_space<smem>>
          %c117_i32 = arith.constant 117 : i32
          %200 = tpu.dynamic_rotate %46 by %c117_i32 dim 1 : vector<128x128xf32>, i32 -> vector<128x128xf32>
          %c0_103 = arith.constant 0 : index
          %c0_104 = arith.constant 0 : index
          %201 = vector.load %arg8[%c0_103, %c0_104] : memref<128x128xf32, #tpu.memory_space<vmem>>, vector<128x128xf32>
          %202 = vector.broadcast %199 : f32 to vector<128x128xf32>
          %203 = arith.mulf %202, %200 : vector<128x128xf32>
          %204 = arith.addf %201, %203 : vector<128x128xf32>
          %c0_105 = arith.constant 0 : index
          %c0_106 = arith.constant 0 : index
          %205 = vector.load %arg8[%c0_105, %c0_106] : memref<128x128xf32, #tpu.memory_space<vmem>>, vector<128x128xf32>
          tpu.vector_store %arg8[%c0_105, %c0_106], %204 {strides = array<i32>} : memref<128x128xf32, #tpu.memory_space<vmem>>, vector<128x128xf32>,
        } else {
        }
        %c12_i32_76 = arith.constant 12 : i32
        %158 = arith.cmpi sge, %arg1, %c12_i32_76 : i32
        %159 = arith.extui %158 : i1 to i32
        %c0_i32_77 = arith.constant 0 : i32
        %160 = arith.cmpi ne, %159, %c0_i32_77 : i32
        scf.if %160 {
          %c12_i32_102 = arith.constant 12 : i32
          %197 = arith.addi %49, %c12_i32_102 : i32
          %198 = arith.index_cast %197 : i32 to index
          %199 = memref.load %arg3[%198] : memref<20825xf32, #tpu.memory_space<smem>>
          %c116_i32 = arith.constant 116 : i32
          %200 = tpu.dynamic_rotate %46 by %c116_i32 dim 1 : vector<128x128xf32>, i32 -> vector<128x128xf32>
          %c0_103 = arith.constant 0 : index
          %c0_104 = arith.constant 0 : index
          %201 = vector.load %arg8[%c0_103, %c0_104] : memref<128x128xf32, #tpu.memory_space<vmem>>, vector<128x128xf32>
          %202 = vector.broadcast %199 : f32 to vector<128x128xf32>
          %203 = arith.mulf %202, %200 : vector<128x128xf32>
          %204 = arith.addf %201, %203 : vector<128x128xf32>
          %c0_105 = arith.constant 0 : index
          %c0_106 = arith.constant 0 : index
          %205 = vector.load %arg8[%c0_105, %c0_106] : memref<128x128xf32, #tpu.memory_space<vmem>>, vector<128x128xf32>
          tpu.vector_store %arg8[%c0_105, %c0_106], %204 {strides = array<i32>} : memref<128x128xf32, #tpu.memory_space<vmem>>, vector<128x128xf32>,
        } else {
        }
        %c13_i32_78 = arith.constant 13 : i32
        %161 = arith.cmpi sge, %arg1, %c13_i32_78 : i32
        %162 = arith.extui %161 : i1 to i32
        %c0_i32_79 = arith.constant 0 : i32
        %163 = arith.cmpi ne, %162, %c0_i32_79 : i32
        scf.if %163 {
          %c13_i32_102 = arith.constant 13 : i32
          %197 = arith.addi %49, %c13_i32_102 : i32
          %198 = arith.index_cast %197 : i32 to index
          %199 = memref.load %arg3[%198] : memref<20825xf32, #tpu.memory_space<smem>>
          %c115_i32 = arith.constant 115 : i32
          %200 = tpu.dynamic_rotate %46 by %c115_i32 dim 1 : vector<128x128xf32>, i32 -> vector<128x128xf32>
          %c0_103 = arith.constant 0 : index
          %c0_104 = arith.constant 0 : index
          %201 = vector.load %arg8[%c0_103, %c0_104] : memref<128x128xf32, #tpu.memory_space<vmem>>, vector<128x128xf32>
          %202 = vector.broadcast %199 : f32 to vector<128x128xf32>
          %203 = arith.mulf %202, %200 : vector<128x128xf32>
          %204 = arith.addf %201, %203 : vector<128x128xf32>
          %c0_105 = arith.constant 0 : index
          %c0_106 = arith.constant 0 : index
          %205 = vector.load %arg8[%c0_105, %c0_106] : memref<128x128xf32, #tpu.memory_space<vmem>>, vector<128x128xf32>
          tpu.vector_store %arg8[%c0_105, %c0_106], %204 {strides = array<i32>} : memref<128x128xf32, #tpu.memory_space<vmem>>, vector<128x128xf32>,
        } else {
        }
        %c14_i32_80 = arith.constant 14 : i32
        %164 = arith.cmpi sge, %arg1, %c14_i32_80 : i32
        %165 = arith.extui %164 : i1 to i32
        %c0_i32_81 = arith.constant 0 : i32
        %166 = arith.cmpi ne, %165, %c0_i32_81 : i32
        scf.if %166 {
          %c14_i32_102 = arith.constant 14 : i32
          %197 = arith.addi %49, %c14_i32_102 : i32
          %198 = arith.index_cast %197 : i32 to index
          %199 = memref.load %arg3[%198] : memref<20825xf32, #tpu.memory_space<smem>>
          %c114_i32 = arith.constant 114 : i32
          %200 = tpu.dynamic_rotate %46 by %c114_i32 dim 1 : vector<128x128xf32>, i32 -> vector<128x128xf32>
          %c0_103 = arith.constant 0 : index
          %c0_104 = arith.constant 0 : index
          %201 = vector.load %arg8[%c0_103, %c0_104] : memref<128x128xf32, #tpu.memory_space<vmem>>, vector<128x128xf32>
          %202 = vector.broadcast %199 : f32 to vector<128x128xf32>
          %203 = arith.mulf %202, %200 : vector<128x128xf32>
          %204 = arith.addf %201, %203 : vector<128x128xf32>
          %c0_105 = arith.constant 0 : index
          %c0_106 = arith.constant 0 : index
          %205 = vector.load %arg8[%c0_105, %c0_106] : memref<128x128xf32, #tpu.memory_space<vmem>>, vector<128x128xf32>
          tpu.vector_store %arg8[%c0_105, %c0_106], %204 {strides = array<i32>} : memref<128x128xf32, #tpu.memory_space<vmem>>, vector<128x128xf32>,
        } else {
        }
        %c15_i32_82 = arith.constant 15 : i32
        %167 = arith.cmpi sge, %arg1, %c15_i32_82 : i32
        %168 = arith.extui %167 : i1 to i32
        %c0_i32_83 = arith.constant 0 : i32
        %169 = arith.cmpi ne, %168, %c0_i32_83 : i32
        scf.if %169 {
          %c15_i32_102 = arith.constant 15 : i32
          %197 = arith.addi %49, %c15_i32_102 : i32
          %198 = arith.index_cast %197 : i32 to index
          %199 = memref.load %arg3[%198] : memref<20825xf32, #tpu.memory_space<smem>>
          %c113_i32 = arith.constant 113 : i32
          %200 = tpu.dynamic_rotate %46 by %c113_i32 dim 1 : vector<128x128xf32>, i32 -> vector<128x128xf32>
          %c0_103 = arith.constant 0 : index
          %c0_104 = arith.constant 0 : index
          %201 = vector.load %arg8[%c0_103, %c0_104] : memref<128x128xf32, #tpu.memory_space<vmem>>, vector<128x128xf32>
          %202 = vector.broadcast %199 : f32 to vector<128x128xf32>
          %203 = arith.mulf %202, %200 : vector<128x128xf32>
          %204 = arith.addf %201, %203 : vector<128x128xf32>
          %c0_105 = arith.constant 0 : index
          %c0_106 = arith.constant 0 : index
          %205 = vector.load %arg8[%c0_105, %c0_106] : memref<128x128xf32, #tpu.memory_space<vmem>>, vector<128x128xf32>
          tpu.vector_store %arg8[%c0_105, %c0_106], %204 {strides = array<i32>} : memref<128x128xf32, #tpu.memory_space<vmem>>, vector<128x128xf32>,
        } else {
        }
        %c16_i32_84 = arith.constant 16 : i32
        %170 = arith.cmpi sge, %arg1, %c16_i32_84 : i32
        %171 = arith.extui %170 : i1 to i32
        %c0_i32_85 = arith.constant 0 : i32
        %172 = arith.cmpi ne, %171, %c0_i32_85 : i32
        scf.if %172 {
          %c16_i32_102 = arith.constant 16 : i32
          %197 = arith.addi %49, %c16_i32_102 : i32
          %198 = arith.index_cast %197 : i32 to index
          %199 = memref.load %arg3[%198] : memref<20825xf32, #tpu.memory_space<smem>>
          %c112_i32 = arith.constant 112 : i32
          %200 = tpu.dynamic_rotate %46 by %c112_i32 dim 1 : vector<128x128xf32>, i32 -> vector<128x128xf32>
          %c0_103 = arith.constant 0 : index
          %c0_104 = arith.constant 0 : index
          %201 = vector.load %arg8[%c0_103, %c0_104] : memref<128x128xf32, #tpu.memory_space<vmem>>, vector<128x128xf32>
          %202 = vector.broadcast %199 : f32 to vector<128x128xf32>
          %203 = arith.mulf %202, %200 : vector<128x128xf32>
          %204 = arith.addf %201, %203 : vector<128x128xf32>
          %c0_105 = arith.constant 0 : index
          %c0_106 = arith.constant 0 : index
          %205 = vector.load %arg8[%c0_105, %c0_106] : memref<128x128xf32, #tpu.memory_space<vmem>>, vector<128x128xf32>
          tpu.vector_store %arg8[%c0_105, %c0_106], %204 {strides = array<i32>} : memref<128x128xf32, #tpu.memory_space<vmem>>, vector<128x128xf32>,
        } else {
        }
        %c17_i32_86 = arith.constant 17 : i32
        %173 = arith.cmpi sge, %arg1, %c17_i32_86 : i32
        %174 = arith.extui %173 : i1 to i32
        %c0_i32_87 = arith.constant 0 : i32
        %175 = arith.cmpi ne, %174, %c0_i32_87 : i32
        scf.if %175 {
          %c17_i32_102 = arith.constant 17 : i32
          %197 = arith.addi %49, %c17_i32_102 : i32
          %198 = arith.index_cast %197 : i32 to index
          %199 = memref.load %arg3[%198] : memref<20825xf32, #tpu.memory_space<smem>>
          %c111_i32 = arith.constant 111 : i32
          %200 = tpu.dynamic_rotate %46 by %c111_i32 dim 1 : vector<128x128xf32>, i32 -> vector<128x128xf32>
          %c0_103 = arith.constant 0 : index
          %c0_104 = arith.constant 0 : index
          %201 = vector.load %arg8[%c0_103, %c0_104] : memref<128x128xf32, #tpu.memory_space<vmem>>, vector<128x128xf32>
          %202 = vector.broadcast %199 : f32 to vector<128x128xf32>
          %203 = arith.mulf %202, %200 : vector<128x128xf32>
          %204 = arith.addf %201, %203 : vector<128x128xf32>
          %c0_105 = arith.constant 0 : index
          %c0_106 = arith.constant 0 : index
          %205 = vector.load %arg8[%c0_105, %c0_106] : memref<128x128xf32, #tpu.memory_space<vmem>>, vector<128x128xf32>
          tpu.vector_store %arg8[%c0_105, %c0_106], %204 {strides = array<i32>} : memref<128x128xf32, #tpu.memory_space<vmem>>, vector<128x128xf32>,
        } else {
        }
        %c18_i32_88 = arith.constant 18 : i32
        %176 = arith.cmpi sge, %arg1, %c18_i32_88 : i32
        %177 = arith.extui %176 : i1 to i32
        %c0_i32_89 = arith.constant 0 : i32
        %178 = arith.cmpi ne, %177, %c0_i32_89 : i32
        scf.if %178 {
          %c18_i32_102 = arith.constant 18 : i32
          %197 = arith.addi %49, %c18_i32_102 : i32
          %198 = arith.index_cast %197 : i32 to index
          %199 = memref.load %arg3[%198] : memref<20825xf32, #tpu.memory_space<smem>>
          %c110_i32 = arith.constant 110 : i32
          %200 = tpu.dynamic_rotate %46 by %c110_i32 dim 1 : vector<128x128xf32>, i32 -> vector<128x128xf32>
          %c0_103 = arith.constant 0 : index
          %c0_104 = arith.constant 0 : index
          %201 = vector.load %arg8[%c0_103, %c0_104] : memref<128x128xf32, #tpu.memory_space<vmem>>, vector<128x128xf32>
          %202 = vector.broadcast %199 : f32 to vector<128x128xf32>
          %203 = arith.mulf %202, %200 : vector<128x128xf32>
          %204 = arith.addf %201, %203 : vector<128x128xf32>
          %c0_105 = arith.constant 0 : index
          %c0_106 = arith.constant 0 : index
          %205 = vector.load %arg8[%c0_105, %c0_106] : memref<128x128xf32, #tpu.memory_space<vmem>>, vector<128x128xf32>
          tpu.vector_store %arg8[%c0_105, %c0_106], %204 {strides = array<i32>} : memref<128x128xf32, #tpu.memory_space<vmem>>, vector<128x128xf32>,
        } else {
        }
        %c19_i32_90 = arith.constant 19 : i32
        %179 = arith.cmpi sge, %arg1, %c19_i32_90 : i32
        %180 = arith.extui %179 : i1 to i32
        %c0_i32_91 = arith.constant 0 : i32
        %181 = arith.cmpi ne, %180, %c0_i32_91 : i32
        scf.if %181 {
          %c19_i32_102 = arith.constant 19 : i32
          %197 = arith.addi %49, %c19_i32_102 : i32
          %198 = arith.index_cast %197 : i32 to index
          %199 = memref.load %arg3[%198] : memref<20825xf32, #tpu.memory_space<smem>>
          %c109_i32 = arith.constant 109 : i32
          %200 = tpu.dynamic_rotate %46 by %c109_i32 dim 1 : vector<128x128xf32>, i32 -> vector<128x128xf32>
          %c0_103 = arith.constant 0 : index
          %c0_104 = arith.constant 0 : index
          %201 = vector.load %arg8[%c0_103, %c0_104] : memref<128x128xf32, #tpu.memory_space<vmem>>, vector<128x128xf32>
          %202 = vector.broadcast %199 : f32 to vector<128x128xf32>
          %203 = arith.mulf %202, %200 : vector<128x128xf32>
          %204 = arith.addf %201, %203 : vector<128x128xf32>
          %c0_105 = arith.constant 0 : index
          %c0_106 = arith.constant 0 : index
          %205 = vector.load %arg8[%c0_105, %c0_106] : memref<128x128xf32, #tpu.memory_space<vmem>>, vector<128x128xf32>
          tpu.vector_store %arg8[%c0_105, %c0_106], %204 {strides = array<i32>} : memref<128x128xf32, #tpu.memory_space<vmem>>, vector<128x128xf32>,
        } else {
        }
        %c20_i32_92 = arith.constant 20 : i32
        %182 = arith.cmpi sge, %arg1, %c20_i32_92 : i32
        %183 = arith.extui %182 : i1 to i32
        %c0_i32_93 = arith.constant 0 : i32
        %184 = arith.cmpi ne, %183, %c0_i32_93 : i32
        scf.if %184 {
          %c20_i32_102 = arith.constant 20 : i32
          %197 = arith.addi %49, %c20_i32_102 : i32
          %198 = arith.index_cast %197 : i32 to index
          %199 = memref.load %arg3[%198] : memref<20825xf32, #tpu.memory_space<smem>>
          %c108_i32 = arith.constant 108 : i32
          %200 = tpu.dynamic_rotate %46 by %c108_i32 dim 1 : vector<128x128xf32>, i32 -> vector<128x128xf32>
          %c0_103 = arith.constant 0 : index
          %c0_104 = arith.constant 0 : index
          %201 = vector.load %arg8[%c0_103, %c0_104] : memref<128x128xf32, #tpu.memory_space<vmem>>, vector<128x128xf32>
          %202 = vector.broadcast %199 : f32 to vector<128x128xf32>
          %203 = arith.mulf %202, %200 : vector<128x128xf32>
          %204 = arith.addf %201, %203 : vector<128x128xf32>
          %c0_105 = arith.constant 0 : index
          %c0_106 = arith.constant 0 : index
          %205 = vector.load %arg8[%c0_105, %c0_106] : memref<128x128xf32, #tpu.memory_space<vmem>>, vector<128x128xf32>
          tpu.vector_store %arg8[%c0_105, %c0_106], %204 {strides = array<i32>} : memref<128x128xf32, #tpu.memory_space<vmem>>, vector<128x128xf32>,
        } else {
        }
        %c21_i32_94 = arith.constant 21 : i32
        %185 = arith.cmpi sge, %arg1, %c21_i32_94 : i32
        %186 = arith.extui %185 : i1 to i32
        %c0_i32_95 = arith.constant 0 : i32
        %187 = arith.cmpi ne, %186, %c0_i32_95 : i32
        scf.if %187 {
          %c21_i32_102 = arith.constant 21 : i32
          %197 = arith.addi %49, %c21_i32_102 : i32
          %198 = arith.index_cast %197 : i32 to index
          %199 = memref.load %arg3[%198] : memref<20825xf32, #tpu.memory_space<smem>>
          %c107_i32 = arith.constant 107 : i32
          %200 = tpu.dynamic_rotate %46 by %c107_i32 dim 1 : vector<128x128xf32>, i32 -> vector<128x128xf32>
          %c0_103 = arith.constant 0 : index
          %c0_104 = arith.constant 0 : index
          %201 = vector.load %arg8[%c0_103, %c0_104] : memref<128x128xf32, #tpu.memory_space<vmem>>, vector<128x128xf32>
          %202 = vector.broadcast %199 : f32 to vector<128x128xf32>
          %203 = arith.mulf %202, %200 : vector<128x128xf32>
          %204 = arith.addf %201, %203 : vector<128x128xf32>
          %c0_105 = arith.constant 0 : index
          %c0_106 = arith.constant 0 : index
          %205 = vector.load %arg8[%c0_105, %c0_106] : memref<128x128xf32, #tpu.memory_space<vmem>>, vector<128x128xf32>
          tpu.vector_store %arg8[%c0_105, %c0_106], %204 {strides = array<i32>} : memref<128x128xf32, #tpu.memory_space<vmem>>, vector<128x128xf32>,
        } else {
        }
        %c22_i32_96 = arith.constant 22 : i32
        %188 = arith.cmpi sge, %arg1, %c22_i32_96 : i32
        %189 = arith.extui %188 : i1 to i32
        %c0_i32_97 = arith.constant 0 : i32
        %190 = arith.cmpi ne, %189, %c0_i32_97 : i32
        scf.if %190 {
          %c22_i32_102 = arith.constant 22 : i32
          %197 = arith.addi %49, %c22_i32_102 : i32
          %198 = arith.index_cast %197 : i32 to index
          %199 = memref.load %arg3[%198] : memref<20825xf32, #tpu.memory_space<smem>>
          %c106_i32 = arith.constant 106 : i32
          %200 = tpu.dynamic_rotate %46 by %c106_i32 dim 1 : vector<128x128xf32>, i32 -> vector<128x128xf32>
          %c0_103 = arith.constant 0 : index
          %c0_104 = arith.constant 0 : index
          %201 = vector.load %arg8[%c0_103, %c0_104] : memref<128x128xf32, #tpu.memory_space<vmem>>, vector<128x128xf32>
          %202 = vector.broadcast %199 : f32 to vector<128x128xf32>
          %203 = arith.mulf %202, %200 : vector<128x128xf32>
          %204 = arith.addf %201, %203 : vector<128x128xf32>
          %c0_105 = arith.constant 0 : index
          %c0_106 = arith.constant 0 : index
          %205 = vector.load %arg8[%c0_105, %c0_106] : memref<128x128xf32, #tpu.memory_space<vmem>>, vector<128x128xf32>
          tpu.vector_store %arg8[%c0_105, %c0_106], %204 {strides = array<i32>} : memref<128x128xf32, #tpu.memory_space<vmem>>, vector<128x128xf32>,
        } else {
        }
        %c23_i32_98 = arith.constant 23 : i32
        %191 = arith.cmpi sge, %arg1, %c23_i32_98 : i32
        %192 = arith.extui %191 : i1 to i32
        %c0_i32_99 = arith.constant 0 : i32
        %193 = arith.cmpi ne, %192, %c0_i32_99 : i32
        scf.if %193 {
          %c23_i32_102 = arith.constant 23 : i32
          %197 = arith.addi %49, %c23_i32_102 : i32
          %198 = arith.index_cast %197 : i32 to index
          %199 = memref.load %arg3[%198] : memref<20825xf32, #tpu.memory_space<smem>>
          %c105_i32 = arith.constant 105 : i32
          %200 = tpu.dynamic_rotate %46 by %c105_i32 dim 1 : vector<128x128xf32>, i32 -> vector<128x128xf32>
          %c0_103 = arith.constant 0 : index
          %c0_104 = arith.constant 0 : index
          %201 = vector.load %arg8[%c0_103, %c0_104] : memref<128x128xf32, #tpu.memory_space<vmem>>, vector<128x128xf32>
          %202 = vector.broadcast %199 : f32 to vector<128x128xf32>
          %203 = arith.mulf %202, %200 : vector<128x128xf32>
          %204 = arith.addf %201, %203 : vector<128x128xf32>
          %c0_105 = arith.constant 0 : index
          %c0_106 = arith.constant 0 : index
          %205 = vector.load %arg8[%c0_105, %c0_106] : memref<128x128xf32, #tpu.memory_space<vmem>>, vector<128x128xf32>
          tpu.vector_store %arg8[%c0_105, %c0_106], %204 {strides = array<i32>} : memref<128x128xf32, #tpu.memory_space<vmem>>, vector<128x128xf32>,
        } else {
        }
        %c24_i32_100 = arith.constant 24 : i32
        %194 = arith.cmpi sge, %arg1, %c24_i32_100 : i32
        %195 = arith.extui %194 : i1 to i32
        %c0_i32_101 = arith.constant 0 : i32
        %196 = arith.cmpi ne, %195, %c0_i32_101 : i32
        scf.if %196 {
          %c24_i32_102 = arith.constant 24 : i32
          %197 = arith.addi %49, %c24_i32_102 : i32
          %198 = arith.index_cast %197 : i32 to index
          %199 = memref.load %arg3[%198] : memref<20825xf32, #tpu.memory_space<smem>>
          %c104_i32 = arith.constant 104 : i32
          %200 = tpu.dynamic_rotate %46 by %c104_i32 dim 1 : vector<128x128xf32>, i32 -> vector<128x128xf32>
          %c0_103 = arith.constant 0 : index
          %c0_104 = arith.constant 0 : index
          %201 = vector.load %arg8[%c0_103, %c0_104] : memref<128x128xf32, #tpu.memory_space<vmem>>, vector<128x128xf32>
          %202 = vector.broadcast %199 : f32 to vector<128x128xf32>
          %203 = arith.mulf %202, %200 : vector<128x128xf32>
          %204 = arith.addf %201, %203 : vector<128x128xf32>
          %c0_105 = arith.constant 0 : index
          %c0_106 = arith.constant 0 : index
          %205 = vector.load %arg8[%c0_105, %c0_106] : memref<128x128xf32, #tpu.memory_space<vmem>>, vector<128x128xf32>
          tpu.vector_store %arg8[%c0_105, %c0_106], %204 {strides = array<i32>} : memref<128x128xf32, #tpu.memory_space<vmem>>, vector<128x128xf32>,
        } else {
        }
      }
      %c0_15 = arith.constant 0 : index
      %c0_16 = arith.constant 0 : index
      %c0_17 = arith.constant 0 : index
      %36 = vector.load %arg6[%c0_15, %c0_16, %c0_17] : memref<16x8x128xf32, #tpu.memory_space<vmem>>, vector<16x8x128xf32>
      %c0_18 = arith.constant 0 : index
      %c0_19 = arith.constant 0 : index
      %37 = vector.load %arg8[%c0_18, %c0_19] : memref<128x128xf32, #tpu.memory_space<vmem>>, vector<128x128xf32>
      %38 = arith.mulf %20, %37 : vector<128x128xf32>
      %39 = vector.shape_cast %38 : vector<128x128xf32> to vector<16x8x128xf32>
      %40 = arith.addf %36, %39 : vector<16x8x128xf32>
      %c0_20 = arith.constant 0 : index
      %c0_21 = arith.constant 0 : index
      %c0_22 = arith.constant 0 : index
      %41 = vector.load %arg6[%c0_20, %c0_21, %c0_22] : memref<16x8x128xf32, #tpu.memory_space<vmem>>, vector<16x8x128xf32>
      tpu.vector_store %arg6[%c0_20, %c0_21, %c0_22], %40 {strides = array<i32>} : memref<16x8x128xf32, #tpu.memory_space<vmem>>, vector<16x8x128xf32>,
    } else {
    }
    return
  }
  func.func @transform_0(%arg0: i32, %arg1: i32) -> i32 {
    %c0_i32 = arith.constant 0 : i32
    %c0_i32_0 = arith.constant 0 : i32
    return %c0_i32 : i32
  }
  func.func @transform_1(%arg0: i32, %arg1: i32) -> i32 {
    %c0_i32 = arith.constant 0 : i32
    %c0_i32_0 = arith.constant 0 : i32
    return %c0_i32 : i32
  }
  func.func @transform_2(%arg0: i32, %arg1: i32) -> (i32, i32, i32) {
    %c0_i32 = arith.constant 0 : i32
    %c0_i32_0 = arith.constant 0 : i32
    %c0_i32_1 = arith.constant 0 : i32
    return %c0_i32, %arg0, %c0_i32_0 : i32, i32, i32
  }
  func.func @transform_3(%arg0: i32, %arg1: i32) -> (i32, i32, i32) {
    %c0_i32 = arith.constant 0 : i32
    %c0_i32_0 = arith.constant 0 : i32
    %c0_i32_1 = arith.constant 0 : i32
    return %c0_i32, %arg0, %c0_i32_0 : i32, i32, i32
  }
  func.func @transform_4(%arg0: i32, %arg1: i32) -> (i32, i32, i32) {
    %c0_i32 = arith.constant 0 : i32
    %c0_i32_0 = arith.constant 0 : i32
    %c0_i32_1 = arith.constant 0 : i32
    return %c0_i32, %arg0, %c0_i32_0 : i32, i32, i32
  }
}

</mosaic_0001>

<bundles_post_ra>
// kernel: gemorestruct_forward.1
= control target key start
LH: loop header
LB: loop body
LE: loop exit
PB: predicated region body
PF: predicated region fallthrough
CT: control target
= control target key end

     0   :  { %9 = vsyncpa [#allocation5], 0  ;;  %s8501_s0 = inlined_call_operand.vmem [shape: s32[25], index: 0, kind: input, shape index: {}]   ;;  %s8502_s1 = inlined_call_operand.vmem [shape: f32[20825], index: 1, kind: input, shape index: {}]   ;;  %s8503_s2 = inlined_call_operand.vmem [shape: f32[16,8,128], index: 2, kind: input, shape index: {}]   ;;  %s8504_s3 = inlined_call_operand.vmem [shape: f32[16,8,128], index: 3, kind: input, shape index: {}]   ;;  %s8505_s4 = inlined_call_operand.vmem [shape: f32[16,8,128], index: 4, kind: output, shape index: {}]  }
   0x1   :  { %10 = vsyncpa [#allocation7], 0  ;;  %s6114_s15 = smov 0   ;;  %s6116_s16 = smov 0  }
   0x2   :  { %s6118_s17 = smov 0  }
   0x3 LB: > { %s5781_s18 = sadd.s32 4294967295, %s6031_s17   ;;  %s25_s19 = sadd.s32 1, %s6027_s16  ;;  %s6031_s17 = sphi %s6118_s17, %s16_s17   ;;  %s6027_s16 = sphi %s6116_s16, %s8530_s16   ;;  %s6023_s15 = sphi %s6114_s15, %s8529_s15  }
   0x4   : > { %p26_p0 = scmp.ge.s32.totalorder %s25_s19, 25  ;;  %p5782_p1 = scmp.ge.s32.totalorder %s6031_s17, 1 }
   0x5   : > { %p153_p2 = scmp.lt.s32.totalorder %s6031_s17, 26  ;;  %p6135_p4 = scmp.eq.s32.totalorder %s5781_s18, 0 }
   0x6   : > { %s8532_s19 = smov (%p26_p0, %s25_s19), 0  ;;  %s165_s23 = sshll.u32 %s8501_s0, 4  ;;  %s166_s23 = int_to_ptr.vmem [resolvable:$true] %s165_s23 }
   0x7   : > { %p154_p3 = pnand %p5782_p1, %p153_p2  ;;  %s175_s26 = sshll.u32 %s8502_s1, 4  ;;  %s176_s26 = int_to_ptr.vmem [resolvable:$true] %s175_s26 }
   0x8   : > { %s6037_s27 = smov [#allocation4]   ;;  %s6038_s28 = smov [#allocation6]  }
   0x9   : > { %p5872_p5 = pneg %p154_p3 }
   0xa   : > { %202 = sbr.rel (%p154_p3) target bundleno = 8407 (0x20d7), region = 36 }
   0xb   : > { %p5873_p6 = pnand %p6135_p4, %p5872_p5 }
   0xd   : > { %5875 = dma.vmem_to_smem (!%p5873_p6), %s166_s23, 16, %s6037_s27, [#allocation5]  }
   0xe   : > { %5878 = dma.vmem_to_smem (!%p5873_p6), %s176_s26, 2608, %s6038_s28, [#allocation7]  }
   0xf   : > { %6014 = dma.done.wait (%p6135_p4), [#allocation5], 16  }
  0x10   : > { %6016 = vsyncadd (%p6135_p4), [#allocation5], 4294967280 }
  0x11   : > { %6018 = dma.done.wait (%p6135_p4), [#allocation7], 2608  }
  0x12   : > { %6020 = vsyncadd (%p6135_p4), [#allocation7], 4294964688 }
  0x13   : > { %214 = sfence }
  0x14   : > { %p5790_p7 = scmp.ne.s32.totalorder %s6023_s15, 0 }
  0x16   : > { %252 = sbr.rel (%p5790_p7) target bundleno = 108 (0x6c), region = 48 }
  0x1b   : > { %v6039_v0 = vmov 0.0   ;;  %v333_v1 = vld [vmem:[%s8504_s3] sm:$0xff]  ;;  %v334_v2 = vld [vmem:[%s8504_s3 + $0x8] sm:$0xff]  ;;  %v335_v3 = vld [vmem:[%s8504_s3 + $0x10] sm:$0xff] }
  0x1c   : > { %253 = vst [vmem:[%s8505_s4] sm:$0xff] %v6039_v0  ;;  %v336_v4 = vld [vmem:[%s8504_s3 + $0x18] sm:$0xff]  ;;  %v337_v5 = vld [vmem:[%s8504_s3 + $0x20] sm:$0xff]  ;;  %v338_v6 = vld [vmem:[%s8504_s3 + $0x28] sm:$0xff] }
  0x1d   : > { %254 = vst [vmem:[%s8505_s4 + $0x8] sm:$0xff] %v6039_v0  ;;  %v339_v7 = vld [vmem:[%s8504_s3 + $0x30] sm:$0xff]  ;;  %v340_v8 = vld [vmem:[%s8504_s3 + $0x38] sm:$0xff]  ;;  %v341_v9 = vld [vmem:[%s8504_s3 + $0x40] sm:$0xff] }
  0x1e   : > { %255 = vst [vmem:[%s8505_s4 + $0x10] sm:$0xff] %v6039_v0  ;;  %v342_v10 = vld [vmem:[%s8504_s3 + $0x48] sm:$0xff]  ;;  %v343_v11 = vld [vmem:[%s8504_s3 + $0x50] sm:$0xff]  ;;  %v344_v12 = vld [vmem:[%s8504_s3 + $0x58] sm:$0xff] }
  0x1f   : > { %256 = vst [vmem:[%s8505_s4 + $0x18] sm:$0xff] %v6039_v0  ;;  %v345_v13 = vld [vmem:[%s8504_s3 + $0x60] sm:$0xff]  ;;  %v346_v14 = vld [vmem:[%s8504_s3 + $0x68] sm:$0xff]  ;;  %v347_v15 = vld [vmem:[%s8504_s3 + $0x70] sm:$0xff] }
  0x20   : > { %257 = vst [vmem:[%s8505_s4 + $0x20] sm:$0xff] %v6039_v0  ;;  %v348_v16 = vld [vmem:[%s8504_s3 + $0x78] sm:$0xff] }
  0x21   : > { %258 = vst [vmem:[%s8505_s4 + $0x28] sm:$0xff] %v6039_v0 }
  0x22   : > { %259 = vst [vmem:[%s8505_s4 + $0x30] sm:$0xff] %v6039_v0 }
  0x23   : > { %260 = vst [vmem:[%s8505_s4 + $0x38] sm:$0xff] %v6039_v0 }
  0x24   : > { %261 = vst [vmem:[%s8505_s4 + $0x40] sm:$0xff] %v6039_v0 }
  0x25   : > { %262 = vst [vmem:[%s8505_s4 + $0x48] sm:$0xff] %v6039_v0 }
  0x26   : > { %263 = vst [vmem:[%s8505_s4 + $0x50] sm:$0xff] %v6039_v0 }
  0x27   : > { %264 = vst [vmem:[%s8505_s4 + $0x58] sm:$0xff] %v6039_v0 }
  0x28   : > { %265 = vst [vmem:[%s8505_s4 + $0x60] sm:$0xff] %v6039_v0 }
  0x29   : > { %266 = vst [vmem:[%s8505_s4 + $0x68] sm:$0xff] %v6039_v0 }
  0x2a   : > { %267 = vst [vmem:[%s8505_s4 + $0x70] sm:$0xff] %v6039_v0 }
  0x2b   : > { %268 = vst [vmem:[%s8505_s4 + $0x78] sm:$0xff] %v6039_v0 }
  0x2c   : > { %269 = vst [vmem:[#allocation2] sm:$0xff] %v6039_v0 }
  0x2d   : > { %270 = vst [vmem:[#allocation2 + $0x8] sm:$0xff] %v6039_v0 }
  0x2e   : > { %271 = vst [vmem:[#allocation2 + $0x10] sm:$0xff] %v6039_v0 }
  0x2f   : > { %272 = vst [vmem:[#allocation2 + $0x18] sm:$0xff] %v6039_v0 }
  0x30   : > { %273 = vst [vmem:[#allocation2 + $0x20] sm:$0xff] %v6039_v0 }
  0x31   : > { %274 = vst [vmem:[#allocation2 + $0x28] sm:$0xff] %v6039_v0 }
  0x32   : > { %275 = vst [vmem:[#allocation2 + $0x30] sm:$0xff] %v6039_v0 }
  0x33   : > { %276 = vst [vmem:[#allocation2 + $0x38] sm:$0xff] %v6039_v0 }
  0x34   : > { %277 = vst [vmem:[#allocation2 + $0x40] sm:$0xff] %v6039_v0 }
  0x35   : > { %278 = vst [vmem:[#allocation2 + $0x48] sm:$0xff] %v6039_v0 }
  0x36   : > { %279 = vst [vmem:[#allocation2 + $0x50] sm:$0xff] %v6039_v0 }
  0x37   : > { %280 = vst [vmem:[#allocation2 + $0x58] sm:$0xff] %v6039_v0 }
  0x38   : > { %281 = vst [vmem:[#allocation2 + $0x60] sm:$0xff] %v6039_v0 }
  0x39   : > { %282 = vst [vmem:[#allocation2 + $0x68] sm:$0xff] %v6039_v0 }
  0x3a   : > { %283 = vst [vmem:[#allocation2 + $0x70] sm:$0xff] %v6039_v0 }
  0x3b   : > { %284 = vst [vmem:[#allocation2 + $0x78] sm:$0xff] %v6039_v0 }
  0x3c   : > { %285 = vst [vmem:[#allocation2 + $0x80] sm:$0xff] %v6039_v0 }
  0x3d   : > { %286 = vst [vmem:[#allocation2 + $0x88] sm:$0xff] %v6039_v0 }
  0x3e   : > { %287 = vst [vmem:[#allocation2 + $0x90] sm:$0xff] %v6039_v0 }
  0x3f   : > { %288 = vst [vmem:[#allocation2 + $0x98] sm:$0xff] %v6039_v0 }
  0x40   : > { %289 = vst [vmem:[#allocation2 + $0xa0] sm:$0xff] %v6039_v0 }
  0x41   : > { %290 = vst [vmem:[#allocation2 + $0xa8] sm:$0xff] %v6039_v0 }
  0x42   : > { %291 = vst [vmem:[#allocation2 + $0xb0] sm:$0xff] %v6039_v0 }
  0x43   : > { %292 = vst [vmem:[#allocation2 + $0xb8] sm:$0xff] %v6039_v0 }
  0x44   : > { %309 = vst [vmem:[#allocation2 + $0x140] sm:$0xff] %v6039_v0 }
  0x45   : > { %310 = vst [vmem:[#allocation2 + $0x148] sm:$0xff] %v6039_v0 }
  0x46   : > { %311 = vst [vmem:[#allocation2 + $0x150] sm:$0xff] %v6039_v0 }
  0x47   : > { %312 = vst [vmem:[#allocation2 + $0x158] sm:$0xff] %v6039_v0 }
  0x48   : > { %313 = vst [vmem:[#allocation2 + $0x160] sm:$0xff] %v6039_v0 }
  0x49   : > { %314 = vst [vmem:[#allocation2 + $0x168] sm:$0xff] %v6039_v0 }
  0x4a   : > { %315 = vst [vmem:[#allocation2 + $0x170] sm:$0xff] %v6039_v0 }
  0x4b   : > { %316 = vst [vmem:[#allocation2 + $0x178] sm:$0xff] %v6039_v0 }
  0x4c   : > { %317 = vst [vmem:[#allocation2 + $0x180] sm:$0xff] %v6039_v0 }
  0x4d   : > { %318 = vst [vmem:[#allocation2 + $0x188] sm:$0xff] %v6039_v0 }
  0x4e   : > { %319 = vst [vmem:[#allocation2 + $0x190] sm:$0xff] %v6039_v0 }
  0x4f   : > { %320 = vst [vmem:[#allocation2 + $0x198] sm:$0xff] %v6039_v0 }
  0x50   : > { %321 = vst [vmem:[#allocation2 + $0x1a0] sm:$0xff] %v6039_v0 }
  0x51   : > { %322 = vst [vmem:[#allocation2 + $0x1a8] sm:$0xff] %v6039_v0 }
  0x52   : > { %323 = vst [vmem:[#allocation2 + $0x1b0] sm:$0xff] %v6039_v0 }
  0x53   : > { %324 = vst [vmem:[#allocation2 + $0x1b8] sm:$0xff] %v6039_v0 }
  0x54   : > { %325 = vst [vmem:[#allocation2 + $0x1c0] sm:$0xff] %v6039_v0 }
  0x55   : > { %326 = vst [vmem:[#allocation2 + $0x1c8] sm:$0xff] %v6039_v0 }
  0x56   : > { %327 = vst [vmem:[#allocation2 + $0x1d0] sm:$0xff] %v6039_v0 }
  0x57   : > { %328 = vst [vmem:[#allocation2 + $0x1d8] sm:$0xff] %v6039_v0 }
  0x58   : > { %329 = vst [vmem:[#allocation2 + $0x1e0] sm:$0xff] %v6039_v0 }
  0x59   : > { %330 = vst [vmem:[#allocation2 + $0x1e8] sm:$0xff] %v6039_v0 }
  0x5a   : > { %331 = vst [vmem:[#allocation2 + $0x1f0] sm:$0xff] %v6039_v0 }
  0x5b   : > { %332 = vst [vmem:[#allocation2 + $0x1f8] sm:$0xff] %v6039_v0 }
  0x5c   : > { %350 = vst [vmem:[#allocation2 + $0xc0] sm:$0xff] %v333_v1 }
  0x5d   : > { %351 = vst [vmem:[#allocation2 + $0xc8] sm:$0xff] %v334_v2 }
  0x5e   : > { %352 = vst [vmem:[#allocation2 + $0xd0] sm:$0xff] %v335_v3 }
  0x5f   : > { %353 = vst [vmem:[#allocation2 + $0xd8] sm:$0xff] %v336_v4 }
  0x60   : > { %354 = vst [vmem:[#allocation2 + $0xe0] sm:$0xff] %v337_v5 }
  0x61   : > { %355 = vst [vmem:[#allocation2 + $0xe8] sm:$0xff] %v338_v6 }
  0x62   : > { %356 = vst [vmem:[#allocation2 + $0xf0] sm:$0xff] %v339_v7 }
  0x63   : > { %357 = vst [vmem:[#allocation2 + $0xf8] sm:$0xff] %v340_v8 }
  0x64   : > { %358 = vst [vmem:[#allocation2 + $0x100] sm:$0xff] %v341_v9 }
  0x65   : > { %359 = vst [vmem:[#allocation2 + $0x108] sm:$0xff] %v342_v10 }
  0x66   : > { %360 = vst [vmem:[#allocation2 + $0x110] sm:$0xff] %v343_v11 }
  0x67   : > { %361 = vst [vmem:[#allocation2 + $0x118] sm:$0xff] %v344_v12 }
  0x68   : > { %362 = vst [vmem:[#allocation2 + $0x120] sm:$0xff] %v345_v13 }
  0x69   : > { %363 = vst [vmem:[#allocation2 + $0x128] sm:$0xff] %v346_v14 }
  0x6a   : > { %364 = vst [vmem:[#allocation2 + $0x130] sm:$0xff] %v347_v15 }
  0x6b   : > { %365 = vst [vmem:[#allocation2 + $0x138] sm:$0xff] %v348_v16 }
  0x6c PF: > { %s366_s27 = scvt.s32.f32 %s6023_s15  ;;  %v367_v17 = vld [vmem:[%s8503_s2] sm:$0xff]  ;;  %v368_v18 = vld [vmem:[%s8503_s2 + $0x8] sm:$0xff]  ;;  %v369_v20 = vld [vmem:[%s8503_s2 + $0x10] sm:$0xff] }
  0x6d   : > { %v370_v21 = vld [vmem:[%s8503_s2 + $0x18] sm:$0xff]  ;;  %v371_v22 = vld [vmem:[%s8503_s2 + $0x20] sm:$0xff]  ;;  %v372_v23 = vld [vmem:[%s8503_s2 + $0x28] sm:$0xff] }
  0x6e   : > { %v6323_v19 = vstv %s366_s27  ;;  %v373_v24 = vld [vmem:[%s8503_s2 + $0x30] sm:$0xff]  ;;  %v374_v25 = vld [vmem:[%s8503_s2 + $0x38] sm:$0xff]  ;;  %v6346_v26 = vld [vmem:[%s8503_s2 + $0x40] sm:$0xff] }
  0x6f   : > { %v6351_v27 = vld [vmem:[%s8503_s2 + $0x48] sm:$0xff]  ;;  %v384_v28 = vsub.f32 %v367_v17, %v6323_v19  ;;  %v385_v29 = vsub.f32 %v368_v18, %v6323_v19  ;;  %v6358_v30 = vld [vmem:[%s8503_s2 + $0x50] sm:$0xff]  ;;  %v6363_v31 = vld [vmem:[%s8503_s2 + $0x58] sm:$0xff]  ;;  %v386_v32 = vsub.f32 %v369_v20, %v6323_v19  ;;  %v448_v33 = vadd.f32 %v6323_v19, %v367_v17 }
  0x70   : > { %v449_v34 = vadd.f32 %v6323_v19, %v368_v18  ;;  %v6371_v35 = vld [vmem:[%s8503_s2 + $0x60] sm:$0xff]  ;;  %v387_v36 = vsub.f32 %v370_v21, %v6323_v19  ;;  %v388_v37 = vsub.f32 %v371_v22, %v6323_v19  ;;  %v389_v38 = vsub.f32 %v372_v23, %v6323_v19  ;;  %v6380_v40 = vld [vmem:[%s8503_s2 + $0x68] sm:$0xff]  ;;  %v6385_v41 = vld [vmem:[%s8503_s2 + $0x70] sm:$0xff] }
  0x71   : > { %v390_v39 = vsub.f32 %v373_v24, %v6323_v19  ;;  %v391_v42 = vsub.f32 %v374_v25, %v6323_v19  ;;  %v392_v43 = vsub.f32 %v6346_v26, %v6323_v19  ;;  %v393_v44 = vsub.f32 %v6351_v27, %v6323_v19  ;;  %v6403_v54 = vld [vmem:[%s8503_s2 + $0x78] sm:$0xff] }
  0x72   : > { %v450_v45 = vadd.f32 %v6323_v19, %v369_v20  ;;  %v394_v46 = vsub.f32 %v6358_v30, %v6323_v19  ;;  %v395_v47 = vsub.f32 %v6363_v31, %v6323_v19  ;;  %v400_v48 = vand.u32 2147483647, %v384_v28 }
  0x73   : > { %v401_v49 = vand.u32 2147483647, %v385_v29  ;;  %v396_v50 = vsub.f32 %v6371_v35, %v6323_v19  ;;  %v451_v51 = vadd.f32 %v6323_v19, %v370_v21  ;;  %v464_v52 = vand.u32 2147483647, %v448_v33 }
  0x74   : > { %v465_v53 = vand.u32 2147483647, %v449_v34  ;;  %v397_v55 = vsub.f32 %v6380_v40, %v6323_v19  ;;  %v398_v56 = vsub.f32 %v6385_v41, %v6323_v19  ;;  %v402_v57 = vand.u32 2147483647, %v386_v32 }
  0x75   : > { %v403_v58 = vand.u32 2147483647, %v387_v36  ;;  %v404_v59 = vand.u32 2147483647, %v388_v37  ;;  %v405_v60 = vand.u32 2147483647, %v389_v38  ;;  %v452_v61 = vadd.f32 %v6323_v19, %v371_v22 }
  0x76   : > { %v466_v62 = vand.u32 2147483647, %v450_v45  ;;  %v406_v63 = vand.u32 2147483647, %v390_v39  ;;  %v6410_v0 = vand.u32 2147483647, %v391_v42  ;;  %v453_v3 = vadd.f32 %v6323_v19, %v372_v23 }
  0x77   : > { %v416_v1 = vsub.f32 1.0, %v400_v48  ;;  %v417_v2 = vsub.f32 1.0, %v401_v49  ;;  %v467_v4 = vand.u32 2147483647, %v451_v51  ;;  %v480_v5 = vsub.f32 1.0, %v464_v52 }
  0x78   : > { %v481_v6 = vsub.f32 1.0, %v465_v53  ;;  %v399_v7 = vsub.f32 %v6403_v54, %v6323_v19  ;;  %v6415_v8 = vand.u32 2147483647, %v392_v43  ;;  %v6417_v9 = vand.u32 2147483647, %v393_v44 }
  0x79   : > { %v418_v10 = vsub.f32 1.0, %v402_v57  ;;  %v6419_v11 = vand.u32 2147483647, %v394_v46  ;;  %v454_v12 = vadd.f32 %v6323_v19, %v373_v24  ;;  %v468_v13 = vand.u32 2147483647, %v452_v61 }
  0x7a   : > { %v482_v14 = vsub.f32 1.0, %v466_v62  ;;  %v419_v15 = vsub.f32 1.0, %v403_v58  ;;  %v432_v16 = vmax.f32 %v416_v1, 0.0  ;;  %v433_v17 = vmax.f32 %v417_v2, 0.0 }
  0x7b   : > { %v455_v18 = vadd.f32 %v6323_v19, %v374_v25  ;;  %v469_v20 = vand.u32 2147483647, %v453_v3  ;;  %v483_v21 = vsub.f32 1.0, %v467_v4  ;;  %v496_v22 = vmax.f32 %v480_v5, 0.0 }
  0x7c   : > { %v497_v23 = vmax.f32 %v481_v6, 0.0  ;;  %v6423_v28 = vand.u32 2147483647, %v395_v47  ;;  %v6425_v29 = vand.u32 2147483647, %v396_v50  ;;  %v420_v32 = vsub.f32 1.0, %v404_v59 }
  0x7d   : > { %v434_v33 = vmax.f32 %v418_v10, 0.0  ;;  %v456_v24 = vadd.f32 %v6323_v19, %v6346_v26  ;;  %v470_v34 = vand.u32 2147483647, %v454_v12  ;;  %v484_v36 = vsub.f32 1.0, %v468_v13 }
  0x7e   : > { %v498_v37 = vmax.f32 %v482_v14, 0.0  ;;  %v421_v38 = vsub.f32 1.0, %v405_v60  ;;  %v435_v39 = vmax.f32 %v419_v15, 0.0  ;;  %v457_v25 = vadd.f32 %v6323_v19, %v6351_v27 }
  0x7f   : > { %v471_v42 = vand.u32 2147483647, %v455_v18  ;;  %v485_v43 = vsub.f32 1.0, %v469_v20  ;;  %v499_v44 = vmax.f32 %v483_v21, 0.0  ;;  %v6431_v45 = vadd.f32 %v496_v22, %v432_v16 }
  0x80   : > { %v6433_v46 = vadd.f32 %v497_v23, %v433_v17  ;;  %v6435_v47 = vand.u32 2147483647, %v397_v55  ;;  %v422_v48 = vsub.f32 1.0, %v406_v63  ;;  %v436_v49 = vmax.f32 %v420_v32, 0.0 }
  0x81   : > { %v458_v26 = vadd.f32 %v6323_v19, %v6358_v30  ;;  %v472_v50 = vand.u32 2147483647, %v456_v24  ;;  %v486_v51 = vsub.f32 1.0, %v470_v34  ;;  %v500_v52 = vmax.f32 %v484_v36, 0.0 }
  0x82   : > { %v6439_v53 = vadd.f32 %v498_v37, %v434_v33  ;;  %v423_v27 = vsub.f32 1.0, %v6410_v0  ;;  %v437_v57 = vmax.f32 %v421_v38, 0.0  ;;  %v459_v58 = vadd.f32 %v6323_v19, %v6363_v31 }
  0x83   : > { %v473_v59 = vand.u32 2147483647, %v457_v25  ;;  %v487_v60 = vsub.f32 1.0, %v471_v42  ;;  %v501_v55 = vmax.f32 %v485_v43, 0.0  ;;  %v6444_v61 = vadd.f32 %v499_v44, %v435_v39 }
  0x84   : > { %v528_v62 = vadd.f32 %v6433_v46, %v6431_v45  ;;  %v424_v30 = vsub.f32 1.0, %v6415_v8  ;;  %v438_v63 = vmax.f32 %v422_v48, 0.0  ;;  %v460_v1 = vadd.f32 %v6323_v19, %v6371_v35 }
  0x85   : > { %v474_v2 = vand.u32 2147483647, %v458_v26  ;;  %v488_v0 = vsub.f32 1.0, %v472_v50  ;;  %v502_v3 = vmax.f32 %v486_v51, 0.0  ;;  %v6451_v4 = vadd.f32 %v500_v52, %v436_v49 }
  0x86   : > { %v529_v31 = vadd.f32 %v528_v62, %v6439_v53  ;;  %v425_v5 = vsub.f32 1.0, %v6417_v9  ;;  %v439_v6 = vmax.f32 %v423_v27, 0.0  ;;  %v461_v10 = vadd.f32 %v6323_v19, %v6380_v40 }
  0x87   : > { %v475_v12 = vand.u32 2147483647, %v459_v58  ;;  %v489_v13 = vsub.f32 1.0, %v473_v59  ;;  %v503_v8 = vmax.f32 %v487_v60, 0.0  ;;  %v6457_v14 = vadd.f32 %v501_v55, %v437_v57 }
  0x88   : > { %v530_v35 = vadd.f32 %v529_v31, %v6444_v61  ;;  %v426_v15 = vsub.f32 1.0, %v6419_v11  ;;  %v440_v16 = vmax.f32 %v424_v30, 0.0  ;;  %v462_v17 = vadd.f32 %v6323_v19, %v6385_v41 }
  0x89   : > { %v476_v18 = vand.u32 2147483647, %v460_v1  ;;  %v490_v20 = vsub.f32 1.0, %v474_v2  ;;  %v504_v9 = vmax.f32 %v488_v0, 0.0  ;;  %v6463_v21 = vadd.f32 %v502_v3, %v438_v63 }
  0x8a   : > { %v531_v40 = vadd.f32 %v530_v35, %v6451_v4  ;;  %v427_v22 = vsub.f32 1.0, %v6423_v28  ;;  %v441_v23 = vmax.f32 %v425_v5, 0.0  ;;  %v463_v32 = vadd.f32 %v6323_v19, %v6403_v54 }
  0x8b   : > { %v477_v33 = vand.u32 2147483647, %v461_v10  ;;  %v491_v24 = vsub.f32 1.0, %v475_v12  ;;  %v505_v11 = vmax.f32 %v489_v13, 0.0  ;;  %v6469_v34 = vadd.f32 %v503_v8, %v439_v6 }
  0x8c   : > { %v532_v36 = vadd.f32 %v531_v40, %v6457_v14  ;;  %v414_v37 = vand.u32 2147483647, %v398_v56  ;;  %v428_v38 = vsub.f32 1.0, %v6425_v29  ;;  %v442_v39 = vmax.f32 %v426_v15, 0.0 }
  0x8d   : > { %v478_v25 = vand.u32 2147483647, %v462_v17  ;;  %v492_v28 = vsub.f32 1.0, %v476_v18  ;;  %v506_v42 = vmax.f32 %v490_v20, 0.0  ;;  %v6476_v43 = vadd.f32 %v504_v9, %v440_v16 }
  0x8e   : > { %v533_v44 = vadd.f32 %v532_v36, %v6463_v21  ;;  %v415_v48 = vand.u32 2147483647, %v399_v7  ;;  %v429_v49 = vsub.f32 1.0, %v6435_v47  ;;  %v443_v26 = vmax.f32 %v427_v22, 0.0 }
  0x8f   : > { %v479_v50 = vand.u32 2147483647, %v463_v32  ;;  %v493_v41 = vsub.f32 1.0, %v477_v33  ;;  %v507_v56 = vmax.f32 %v491_v24, 0.0  ;;  %v6483_v51 = vadd.f32 %v505_v11, %v441_v23 }
  0x90   : > { %v534_v29 = vadd.f32 %v533_v44, %v6469_v34  ;;  %v430_v52 = vsub.f32 1.0, %v414_v37  ;;  %v444_v27 = vmax.f32 %v428_v38, 0.0  ;;  %v494_v57 = vsub.f32 1.0, %v478_v25 }
  0x91   : > { %v508_v58 = vmax.f32 %v492_v28, 0.0  ;;  %v6486_v59 = vadd.f32 %v506_v42, %v442_v39  ;;  %v431_v19 = vsub.f32 1.0, %v415_v48  ;;  %v445_v54 = vmax.f32 %v429_v49, 0.0 }
  0x92   : > { %v535_v60 = vadd.f32 %v534_v29, %v6476_v43  ;;  %v495_v7 = vsub.f32 1.0, %v479_v50  ;;  %v509_v47 = vmax.f32 %v493_v41, 0.0  ;;  %v6489_v55 = vadd.f32 %v507_v56, %v443_v26 }
  0x93   : > { %v446_v30 = vmax.f32 %v430_v52, 0.0  ;;  %v510_v63 = vmax.f32 %v494_v57, 0.0  ;;  %v6492_v1 = vadd.f32 %v508_v58, %v444_v27  ;;  %v447_v0 = vmax.f32 %v431_v19, 0.0 }
  0x94   : > { %v536_v62 = vadd.f32 %v535_v60, %v6483_v51  ;;  %v511_v3 = vmax.f32 %v495_v7, 0.0  ;;  %v6495_v31 = vadd.f32 %v509_v47, %v445_v54 }
  0x95   : > { %v6498_v6 = vadd.f32 %v510_v63, %v446_v30 }
  0x96   : > { %v537_v2 = vadd.f32 %v536_v62, %v6486_v59  ;;  %v6501_v12 = vadd.f32 %v511_v3, %v447_v0 }
  0x98   : > { %v538_v5 = vadd.f32 %v537_v2, %v6489_v55 }
  0x9a   : > { %v539_v10 = vadd.f32 %v538_v5, %v6492_v1 }
  0x9c   : > { %v540_v13 = vadd.f32 %v539_v10, %v6495_v31 }
  0x9e   : > { %v541_v8 = vadd.f32 %v540_v13, %v6498_v6 }
  0xa0   : > { %v542_v35 = vadd.f32 %v541_v8, %v6501_v12 }
  0xa2   : > { %543 = vadd.xlane.f32.xlu0 %v542_v35 }
 0x115   : > { %v544_v15 = vpop.xlane.xlu0 %543 }
 0x116   : > { %v545_v16 = vrot.slane %v544_v15, 4 }
 0x118   : > { %v546_v17 = vadd.f32 %v545_v16, %v544_v15 }
 0x11a   : > { %v547_v18 = vrot.slane %v546_v17, 2 }
 0x11c   : > { %v548_v20 = vadd.f32 %v547_v18, %v546_v17 }
 0x11e   : > { %v549_v9 = vrot.slane %v548_v20, 1 }
 0x120   : > { %v550_v40 = vadd.f32 %v549_v9, %v548_v20 }
 0x122   : > { %5862 = vpush %v550_v40 }
 0x153   : > { %s5863_s12 = spop %5862 }
 0x154   : > { %p552_p8 = scmp.gt.f32.partialorder %s5863_s12, 0.0 }
 0x155   : > { %s5791_s13 = sshll.u32 (%p552_p8), %s6023_s15, 1  ;;  %s6508_s14 = sld [smem:[#allocation4 + %s6023_s15]] (%p552_p8)  ;;  %v6040_v22 = vmov (%p552_p8), 0.0  }
 0x156   : > { %555 = sbr.rel (!%p552_p8) target bundleno = 8407 (0x20d7), region = 52  ;;  %556 = vst [vmem:[#allocation3 + $0x30] sm:$0xff] (%p552_p8), %v6040_v22  ;;  %s6510_s18 = sadd.s32 (%p552_p8), 1, %s5791_s13 }
 0x157   : > { %557 = vst [vmem:[#allocation3] sm:$0xff] (%p552_p8), %v6040_v22  ;;  %p5792_p9 = scmp.le.s32.totalorder (%p552_p8), %s6510_s18, 0 }
 0x158   : > { %558 = vst [vmem:[#allocation3 + $0x58] sm:$0xff] (%p552_p8), %v6040_v22 }
 0x159   : > { %559 = vst [vmem:[#allocation3 + $0x18] sm:$0xff] (%p552_p8), %v6040_v22 }
 0x15a   : > { %560 = vst [vmem:[#allocation3 + $0x50] sm:$0xff] (%p552_p8), %v6040_v22 }
 0x15b   : > { %561 = vst [vmem:[#allocation3 + $0x68] sm:$0xff] %v6040_v22  ;;  %s6513_s20 = smov (!%p5792_p9), 0  }
 0x15c   : > { %562 = vst [vmem:[#allocation3 + $0x8] sm:$0xff] %v6040_v22 }
 0x15d   : > { %563 = vst [vmem:[#allocation3 + $0x48] sm:$0xff] %v6040_v22 }
 0x15e   : > { %564 = vst [vmem:[#allocation3 + $0x40] sm:$0xff] %v6040_v22 }
 0x15f   : > { %565 = vst [vmem:[#allocation3 + $0x20] sm:$0xff] %v6040_v22 }
 0x160   : > { %566 = vst [vmem:[#allocation3 + $0x10] sm:$0xff] %v6040_v22 }
 0x161   : > { %567 = vst [vmem:[#allocation3 + $0x38] sm:$0xff] %v6040_v22  ;;  %5722 = sbr.rel (%p5792_p9) target bundleno = 8386 (0x20c2), region = 285 }
 0x162   : > { %568 = vst [vmem:[#allocation3 + $0x60] sm:$0xff] %v6040_v22 }
 0x163   : > { %569 = vst [vmem:[#allocation3 + $0x70] sm:$0xff] %v6040_v22 }
 0x164   : > { %570 = vst [vmem:[#allocation3 + $0x78] sm:$0xff] %v6040_v22 }
 0x165   : > { %571 = vst [vmem:[#allocation3 + $0x28] sm:$0xff] %v6040_v22 }
 0x166 LB: >> { %s581_s21 = ssub.s32 %s6035_s20, %s6023_s15  ;;  %s601_s22 = smul.u32 %s6035_s20, %s6510_s18  ;;  %s6035_s20 = sphi %s6513_s20, %s578_s20  }
 0x167   : >> { %s5793_s23 = sshll.u32 %s581_s21, 3  ;;  %p8506_p10 = scmp.lt.s32.totalorder %s6023_s15, 24 }
 0x168   : >> { %s602_s24 = sadd.s32 %s601_s22, %s6508_s14  ;;  %s5714_s25 = scalar_lea.vmem [#allocation2], %s5793_s23 }
 0x169   : >> { %v6523_v23 = vld [vmem:[%s5714_s25 + $0xc0] sm:$0xff]  ;;  %v6525_v32 = vld [vmem:[%s5714_s25 + $0xc8] sm:$0xff]  ;;  %v6527_v33 = vld [vmem:[%s5714_s25 + $0xd0] sm:$0xff]  ;;  %s6530_s26 = sadd.s32 %s6023_s15, %s602_s24  ;;  %s6041_s27 = smov (!%p8506_p10), 24  }
 0x16a   : >> { %v6532_v24 = vld [vmem:[%s5714_s25 + $0xd8] sm:$0xff]  ;;  %v6534_v11 = vld [vmem:[%s5714_s25 + $0xe0] sm:$0xff]  ;;  %v6536_v36 = vld [vmem:[%s5714_s25 + $0xe8] sm:$0xff]  ;;  %607 = sbr.rel (%p8506_p10) target bundleno = 527 (0x20f), region = 63  ;;  %s608_s28 = sadd.s32 (!%p8506_p10), 4294967272, %s6530_s26 }
 0x16b   : >> { %v6538_v37 = vld [vmem:[%s5714_s25 + $0xf0] sm:$0xff]  ;;  %v6540_v38 = vld [vmem:[%s5714_s25 + $0xf8] sm:$0xff]  ;;  %v6542_v39 = vld [vmem:[%s5714_s25 + $0x100] sm:$0xff]  ;;  %s609_s29 = sld [smem:[#allocation6 + %s608_s28]] (!%p8506_p10) }
 0x16c   : >> { %v6544_v25 = vld [vmem:[%s5714_s25 + $0x108] sm:$0xff]  ;;  %v6546_v28 = vld [vmem:[%s5714_s25 + $0x110] sm:$0xff]  ;;  %v6548_v42 = vld [vmem:[%s5714_s25 + $0x118] sm:$0xff] }
 0x16d   : >> { %v6550_v44 = vld [vmem:[%s5714_s25 + $0x120] sm:$0xff]  ;;  %v6552_v48 = vld [vmem:[%s5714_s25 + $0x128] sm:$0xff]  ;;  %v6554_v49 = vld [vmem:[%s5714_s25 + $0x130] sm:$0xff] }
 0x16e   : >> { %v6556_v26 = vld [vmem:[%s5714_s25 + $0x138] sm:$0xff] }
 0x16f   : >> { %610 = vrot.lane.b32.xlu0 %v6523_v23, %s6041_s27  ;;  %614 = vrot.lane.b32.xlu1 %v6527_v33, %s6041_s27  ;;  %v646_v41 = vld [vmem:[#allocation3 + $0x50] sm:$0xff]  ;;  %v647_v27 = vld [vmem:[#allocation3 + $0x68] sm:$0xff]  ;;  %v650_v19 = vld [vmem:[#allocation3 + $0x40] sm:$0xff] }
 0x170   : >> { %618 = vrot.lane.b32.xlu2 %v6534_v11, %s6041_s27  ;;  %v642_v62 = vld [vmem:[#allocation3 + $0x30] sm:$0xff]  ;;  %v644_v63 = vld [vmem:[#allocation3 + $0x58] sm:$0xff]  ;;  %v643_v16 = vld [vmem:[#allocation3] sm:$0xff] }
 0x171   : >> { %v6578_v50 = vstv %s609_s29  ;;  %v653_v5 = vld [vmem:[#allocation3 + $0x38] sm:$0xff] }
 0x172   : >> { %v645_v18 = vld [vmem:[#allocation3 + $0x18] sm:$0xff] }
 0x173   : >> { %v656_v22 = vld [vmem:[#allocation3 + $0x78] sm:$0xff] }
 0x177   : >> { %612 = vrot.lane.b32.xlu0 %v6525_v32, %s6041_s27  ;;  %616 = vrot.lane.b32.xlu1 %v6532_v24, %s6041_s27 }
 0x178   : >> { %620 = vrot.lane.b32.xlu2 %v6536_v36, %s6041_s27 }
 0x17f   : >> { %622 = vrot.lane.b32.xlu0 %v6538_v37, %s6041_s27  ;;  %624 = vrot.lane.b32.xlu1 %v6540_v38, %s6041_s27 }
 0x180   : >> { %626 = vrot.lane.b32.xlu2 %v6542_v39, %s6041_s27 }
 0x187   : >> { %628 = vrot.lane.b32.xlu0 %v6544_v25, %s6041_s27  ;;  %630 = vrot.lane.b32.xlu1 %v6546_v28, %s6041_s27 }
 0x188   : >> { %632 = vrot.lane.b32.xlu2 %v6548_v42, %s6041_s27 }
 0x18f   : >> { %634 = vrot.lane.b32.xlu0 %v6550_v44, %s6041_s27  ;;  %636 = vrot.lane.b32.xlu1 %v6552_v48, %s6041_s27 }
 0x190   : >> { %638 = vrot.lane.b32.xlu2 %v6554_v49, %s6041_s27 }
 0x197   : >> { %640 = vrot.lane.b32.xlu0 %v6556_v26, %s6041_s27 }
 0x1ca   : >> { %v619_v56 = vpop.permute.xlu2 %618 }
 0x1cb   : >> { %v663_v29 = vmul.f32 %v6578_v50, %v619_v56 }
 0x1cd   : >> { %v679_v52 = vadd.f32 %v663_v29, %v646_v41 }
 0x1cf   : >> { %695 = vst [vmem:[#allocation3 + $0x50] sm:$0xff] %v679_v52 }
 0x1d2   : >> { %v621_v57 = vpop.permute.xlu2 %620 }
 0x1d3   : >> { %v664_v58 = vmul.f32 %v6578_v50, %v621_v57  ;;  %v648_v57 = vld [vmem:[#allocation3 + $0x8] sm:$0xff] }
 0x1d5   : >> { %v680_v60 = vadd.f32 %v664_v58, %v647_v27 }
 0x1d7   : >> { %696 = vst [vmem:[#allocation3 + $0x68] sm:$0xff] %v680_v60  ;;  %v649_v60 = vld [vmem:[#allocation3 + $0x48] sm:$0xff] }
 0x1da   : >> { %v627_v54 = vpop.permute.xlu2 %626 }
 0x1db   : >> { %v667_v7 = vmul.f32 %v6578_v50, %v627_v54 }
 0x1dd   : >> { %v683_v47 = vadd.f32 %v667_v7, %v650_v19 }
 0x1df   : >> { %699 = vst [vmem:[#allocation3 + $0x40] sm:$0xff] %v683_v47 }
 0x1e1   : >> { %v611_v30 = vpop.permute.xlu0 %610  ;;  %v615_v2 = vpop.permute.xlu1 %614 }
 0x1e2   : >> { %v659_v0 = vmul.f32 %v6578_v50, %v611_v30  ;;  %v661_v3 = vmul.f32 %v6578_v50, %v615_v2  ;;  %v633_v10 = vpop.permute.xlu2 %632  ;;  %v651_v30 = vld [vmem:[#allocation3 + $0x20] sm:$0xff]  ;;  %v652_v2 = vld [vmem:[#allocation3 + $0x10] sm:$0xff] }
 0x1e3   : >> { %v670_v13 = vmul.f32 %v6578_v50, %v633_v10 }
 0x1e4   : >> { %v675_v8 = vadd.f32 %v659_v0, %v642_v62  ;;  %v677_v35 = vadd.f32 %v661_v3, %v644_v63 }
 0x1e5   : >> { %v686_v15 = vadd.f32 %v670_v13, %v653_v5 }
 0x1e6   : >> { %691 = vst [vmem:[#allocation3 + $0x30] sm:$0xff] %v675_v8  ;;  %v654_v8 = vld [vmem:[#allocation3 + $0x60] sm:$0xff] }
 0x1e7   : >> { %693 = vst [vmem:[#allocation3 + $0x58] sm:$0xff] %v677_v35 }
 0x1e8   : >> { %702 = vst [vmem:[#allocation3 + $0x38] sm:$0xff] %v686_v15  ;;  %v655_v15 = vld [vmem:[#allocation3 + $0x70] sm:$0xff] }
 0x1e9   : >> { %v613_v17 = vpop.permute.xlu0 %612  ;;  %v617_v20 = vpop.permute.xlu1 %616 }
 0x1ea   : >> { %v660_v9 = vmul.f32 %v6578_v50, %v613_v17  ;;  %v662_v40 = vmul.f32 %v6578_v50, %v617_v20  ;;  %v639_v41 = vpop.permute.xlu2 %638 }
 0x1eb   : >> { %v673_v56 = vmul.f32 %v6578_v50, %v639_v41 }
 0x1ec   : >> { %v676_v29 = vadd.f32 %v660_v9, %v643_v16  ;;  %v678_v52 = vadd.f32 %v662_v40, %v645_v18  ;;  %v657_v40 = vld [vmem:[#allocation3 + $0x28] sm:$0xff] }
 0x1ed   : >> { %v689_v27 = vadd.f32 %v673_v56, %v656_v22 }
 0x1ee   : >> { %692 = vst [vmem:[#allocation3] sm:$0xff] %v676_v29 }
 0x1ef   : >> { %694 = vst [vmem:[#allocation3 + $0x18] sm:$0xff] %v678_v52 }
 0x1f0   : >> { %705 = vst [vmem:[#allocation3 + $0x78] sm:$0xff] %v689_v27 }
 0x1f1   : >> { %v623_v58 = vpop.permute.xlu0 %622  ;;  %v625_v19 = vpop.permute.xlu1 %624 }
 0x1f2   : >> { %v665_v54 = vmul.f32 %v6578_v50, %v623_v58  ;;  %v666_v7 = vmul.f32 %v6578_v50, %v625_v19 }
 0x1f4   : >> { %v681_v47 = vadd.f32 %v665_v54, %v648_v57  ;;  %v682_v62 = vadd.f32 %v666_v7, %v649_v60 }
 0x1f6   : >> { %697 = vst [vmem:[#allocation3 + $0x8] sm:$0xff] %v681_v47 }
 0x1f7   : >> { %698 = vst [vmem:[#allocation3 + $0x48] sm:$0xff] %v682_v62 }
 0x1f9   : >> { %v629_v63 = vpop.permute.xlu0 %628  ;;  %v631_v0 = vpop.permute.xlu1 %630 }
 0x1fa   : >> { %v668_v3 = vmul.f32 %v6578_v50, %v629_v63  ;;  %v669_v5 = vmul.f32 %v6578_v50, %v631_v0 }
 0x1fc   : >> { %v684_v10 = vadd.f32 %v668_v3, %v651_v30  ;;  %v685_v13 = vadd.f32 %v669_v5, %v652_v2 }
 0x1fe   : >> { %700 = vst [vmem:[#allocation3 + $0x20] sm:$0xff] %v684_v10 }
 0x1ff   : >> { %701 = vst [vmem:[#allocation3 + $0x10] sm:$0xff] %v685_v13 }
 0x201   : >> { %v635_v35 = vpop.permute.xlu0 %634  ;;  %v637_v16 = vpop.permute.xlu1 %636 }
 0x202   : >> { %v671_v17 = vmul.f32 %v6578_v50, %v635_v35  ;;  %v672_v18 = vmul.f32 %v6578_v50, %v637_v16 }
 0x204   : >> { %v687_v20 = vadd.f32 %v671_v17, %v654_v8  ;;  %v688_v9 = vadd.f32 %v672_v18, %v655_v15 }
 0x206   : >> { %703 = vst [vmem:[#allocation3 + $0x60] sm:$0xff] %v687_v20 }
 0x207   : >> { %704 = vst [vmem:[#allocation3 + $0x70] sm:$0xff] %v688_v9 }
 0x209   : >> { %v641_v22 = vpop.permute.xlu0 %640 }
 0x20a   : >> { %v674_v41 = vmul.f32 %v6578_v50, %v641_v22 }
 0x20c   : >> { %v690_v56 = vadd.f32 %v674_v41, %v657_v40 }
 0x20e   : >> { %706 = vst [vmem:[#allocation3 + $0x28] sm:$0xff] %v690_v56 }
 0x20f PF: >> { %p8507_p11 = scmp.lt.s32.totalorder %s6023_s15, 23 }
 0x210   : >> { %s6042_s30 = smov (!%p8507_p11), 23   ;;  %s711_s5 = sadd.s32 (!%p8507_p11), 4294967273, %s6530_s26 }
 0x211   : >> { %710 = sbr.rel (%p8507_p11) target bundleno = 694 (0x2b6), region = 67  ;;  %s712_s6 = sld [smem:[#allocation6 + %s711_s5]] (!%p8507_p11) }
 0x216   : >> { %713 = vrot.lane.b32.xlu0 %v6523_v23, %s6042_s30  ;;  %717 = vrot.lane.b32.xlu1 %v6527_v33, %s6042_s30  ;;  %v749_v29 = vld [vmem:[#allocation3 + $0x50] sm:$0xff]  ;;  %v750_v58 = vld [vmem:[#allocation3 + $0x68] sm:$0xff]  ;;  %v753_v7 = vld [vmem:[#allocation3 + $0x40] sm:$0xff] }
 0x217   : >> { %721 = vrot.lane.b32.xlu2 %v6534_v11, %s6042_s30  ;;  %v6616_v50 = vstv %s712_s6  ;;  %v745_v63 = vld [vmem:[#allocation3 + $0x30] sm:$0xff]  ;;  %v747_v0 = vld [vmem:[#allocation3 + $0x58] sm:$0xff]  ;;  %v746_v18 = vld [vmem:[#allocation3] sm:$0xff] }
 0x218   : >> { %v756_v13 = vld [vmem:[#allocation3 + $0x38] sm:$0xff] }
 0x219   : >> { %v748_v9 = vld [vmem:[#allocation3 + $0x18] sm:$0xff] }
 0x21a   : >> { %v759_v56 = vld [vmem:[#allocation3 + $0x78] sm:$0xff] }
 0x21e   : >> { %715 = vrot.lane.b32.xlu0 %v6525_v32, %s6042_s30  ;;  %719 = vrot.lane.b32.xlu1 %v6532_v24, %s6042_s30 }
 0x21f   : >> { %723 = vrot.lane.b32.xlu2 %v6536_v36, %s6042_s30 }
 0x226   : >> { %725 = vrot.lane.b32.xlu0 %v6538_v37, %s6042_s30  ;;  %727 = vrot.lane.b32.xlu1 %v6540_v38, %s6042_s30 }
 0x227   : >> { %729 = vrot.lane.b32.xlu2 %v6542_v39, %s6042_s30 }
 0x22e   : >> { %731 = vrot.lane.b32.xlu0 %v6544_v25, %s6042_s30  ;;  %733 = vrot.lane.b32.xlu1 %v6546_v28, %s6042_s30 }
 0x22f   : >> { %735 = vrot.lane.b32.xlu2 %v6548_v42, %s6042_s30 }
 0x236   : >> { %737 = vrot.lane.b32.xlu0 %v6550_v44, %s6042_s30  ;;  %739 = vrot.lane.b32.xlu1 %v6552_v48, %s6042_s30 }
 0x237   : >> { %741 = vrot.lane.b32.xlu2 %v6554_v49, %s6042_s30 }
 0x23e   : >> { %743 = vrot.lane.b32.xlu0 %v6556_v26, %s6042_s30 }
 0x271   : >> { %v722_v52 = vpop.permute.xlu2 %721 }
 0x272   : >> { %v766_v27 = vmul.f32 %v6616_v50, %v722_v52 }
 0x274   : >> { %v782_v57 = vadd.f32 %v766_v27, %v749_v29 }
 0x276   : >> { %798 = vst [vmem:[#allocation3 + $0x50] sm:$0xff] %v782_v57 }
 0x279   : >> { %v724_v60 = vpop.permute.xlu2 %723 }
 0x27a   : >> { %v767_v19 = vmul.f32 %v6616_v50, %v724_v60  ;;  %v751_v60 = vld [vmem:[#allocation3 + $0x8] sm:$0xff] }
 0x27c   : >> { %v783_v54 = vadd.f32 %v767_v19, %v750_v58 }
 0x27e   : >> { %799 = vst [vmem:[#allocation3 + $0x68] sm:$0xff] %v783_v54  ;;  %v752_v54 = vld [vmem:[#allocation3 + $0x48] sm:$0xff] }
 0x281   : >> { %v730_v47 = vpop.permute.xlu2 %729 }
 0x282   : >> { %v770_v62 = vmul.f32 %v6616_v50, %v730_v47 }
 0x284   : >> { %v786_v30 = vadd.f32 %v770_v62, %v753_v7 }
 0x286   : >> { %802 = vst [vmem:[#allocation3 + $0x40] sm:$0xff] %v786_v30 }
 0x288   : >> { %v714_v2 = vpop.permute.xlu0 %713  ;;  %v718_v3 = vpop.permute.xlu1 %717 }
 0x289   : >> { %v762_v5 = vmul.f32 %v6616_v50, %v714_v2  ;;  %v764_v10 = vmul.f32 %v6616_v50, %v718_v3  ;;  %v736_v8 = vpop.permute.xlu2 %735  ;;  %v754_v2 = vld [vmem:[#allocation3 + $0x20] sm:$0xff]  ;;  %v755_v3 = vld [vmem:[#allocation3 + $0x10] sm:$0xff] }
 0x28a   : >> { %v773_v35 = vmul.f32 %v6616_v50, %v736_v8 }
 0x28b   : >> { %v778_v15 = vadd.f32 %v762_v5, %v745_v63  ;;  %v780_v16 = vadd.f32 %v764_v10, %v747_v0 }
 0x28c   : >> { %v789_v17 = vadd.f32 %v773_v35, %v756_v13 }
 0x28d   : >> { %794 = vst [vmem:[#allocation3 + $0x30] sm:$0xff] %v778_v15  ;;  %v757_v15 = vld [vmem:[#allocation3 + $0x60] sm:$0xff] }
 0x28e   : >> { %796 = vst [vmem:[#allocation3 + $0x58] sm:$0xff] %v780_v16 }
 0x28f   : >> { %805 = vst [vmem:[#allocation3 + $0x38] sm:$0xff] %v789_v17  ;;  %v758_v17 = vld [vmem:[#allocation3 + $0x70] sm:$0xff] }
 0x290   : >> { %v716_v20 = vpop.permute.xlu0 %715  ;;  %v720_v40 = vpop.permute.xlu1 %719 }
 0x291   : >> { %v763_v22 = vmul.f32 %v6616_v50, %v716_v20  ;;  %v765_v41 = vmul.f32 %v6616_v50, %v720_v40  ;;  %v742_v29 = vpop.permute.xlu2 %741 }
 0x292   : >> { %v776_v52 = vmul.f32 %v6616_v50, %v742_v29 }
 0x293   : >> { %v779_v27 = vadd.f32 %v763_v22, %v746_v18  ;;  %v781_v57 = vadd.f32 %v765_v41, %v748_v9  ;;  %v760_v41 = vld [vmem:[#allocation3 + $0x28] sm:$0xff] }
 0x294   : >> { %v792_v58 = vadd.f32 %v776_v52, %v759_v56 }
 0x295   : >> { %795 = vst [vmem:[#allocation3] sm:$0xff] %v779_v27 }
 0x296   : >> { %797 = vst [vmem:[#allocation3 + $0x18] sm:$0xff] %v781_v57 }
 0x297   : >> { %808 = vst [vmem:[#allocation3 + $0x78] sm:$0xff] %v792_v58 }
 0x298   : >> { %v726_v19 = vpop.permute.xlu0 %725  ;;  %v728_v7 = vpop.permute.xlu1 %727 }
 0x299   : >> { %v768_v47 = vmul.f32 %v6616_v50, %v726_v19  ;;  %v769_v62 = vmul.f32 %v6616_v50, %v728_v7 }
 0x29b   : >> { %v784_v30 = vadd.f32 %v768_v47, %v751_v60  ;;  %v785_v63 = vadd.f32 %v769_v62, %v752_v54 }
 0x29d   : >> { %800 = vst [vmem:[#allocation3 + $0x8] sm:$0xff] %v784_v30 }
 0x29e   : >> { %801 = vst [vmem:[#allocation3 + $0x48] sm:$0xff] %v785_v63 }
 0x2a0   : >> { %v732_v0 = vpop.permute.xlu0 %731  ;;  %v734_v5 = vpop.permute.xlu1 %733 }
 0x2a1   : >> { %v771_v10 = vmul.f32 %v6616_v50, %v732_v0  ;;  %v772_v13 = vmul.f32 %v6616_v50, %v734_v5 }
 0x2a3   : >> { %v787_v8 = vadd.f32 %v771_v10, %v754_v2  ;;  %v788_v35 = vadd.f32 %v772_v13, %v755_v3 }
 0x2a5   : >> { %803 = vst [vmem:[#allocation3 + $0x20] sm:$0xff] %v787_v8 }
 0x2a6   : >> { %804 = vst [vmem:[#allocation3 + $0x10] sm:$0xff] %v788_v35 }
 0x2a8   : >> { %v738_v16 = vpop.permute.xlu0 %737  ;;  %v740_v18 = vpop.permute.xlu1 %739 }
 0x2a9   : >> { %v774_v20 = vmul.f32 %v6616_v50, %v738_v16  ;;  %v775_v9 = vmul.f32 %v6616_v50, %v740_v18 }
 0x2ab   : >> { %v790_v40 = vadd.f32 %v774_v20, %v757_v15  ;;  %v791_v22 = vadd.f32 %v775_v9, %v758_v17 }
 0x2ad   : >> { %806 = vst [vmem:[#allocation3 + $0x60] sm:$0xff] %v790_v40 }
 0x2ae   : >> { %807 = vst [vmem:[#allocation3 + $0x70] sm:$0xff] %v791_v22 }
 0x2b0   : >> { %v744_v56 = vpop.permute.xlu0 %743 }
 0x2b1   : >> { %v777_v29 = vmul.f32 %v6616_v50, %v744_v56 }
 0x2b3   : >> { %v793_v52 = vadd.f32 %v777_v29, %v760_v41 }
 0x2b5   : >> { %809 = vst [vmem:[#allocation3 + $0x28] sm:$0xff] %v793_v52 }
 0x2b6 PF: >> { %p8508_p12 = scmp.lt.s32.totalorder %s6023_s15, 22 }
 0x2b7   : >> { %s6043_s7 = smov (!%p8508_p12), 22   ;;  %s814_s8 = sadd.s32 (!%p8508_p12), 4294967274, %s6530_s26 }
 0x2b8   : >> { %813 = sbr.rel (%p8508_p12) target bundleno = 861 (0x35d), region = 71  ;;  %s815_s9 = sld [smem:[#allocation6 + %s814_s8]] (!%p8508_p12) }
 0x2bd   : >> { %816 = vrot.lane.b32.xlu0 %v6523_v23, %s6043_s7  ;;  %820 = vrot.lane.b32.xlu1 %v6527_v33, %s6043_s7  ;;  %v852_v27 = vld [vmem:[#allocation3 + $0x50] sm:$0xff]  ;;  %v853_v19 = vld [vmem:[#allocation3 + $0x68] sm:$0xff]  ;;  %v856_v62 = vld [vmem:[#allocation3 + $0x40] sm:$0xff] }
 0x2be   : >> { %824 = vrot.lane.b32.xlu2 %v6534_v11, %s6043_s7  ;;  %v6654_v50 = vstv %s815_s9  ;;  %v848_v0 = vld [vmem:[#allocation3 + $0x30] sm:$0xff]  ;;  %v850_v5 = vld [vmem:[#allocation3 + $0x58] sm:$0xff]  ;;  %v849_v9 = vld [vmem:[#allocation3] sm:$0xff] }
 0x2bf   : >> { %v859_v35 = vld [vmem:[#allocation3 + $0x38] sm:$0xff] }
 0x2c0   : >> { %v851_v22 = vld [vmem:[#allocation3 + $0x18] sm:$0xff] }
 0x2c1   : >> { %v862_v52 = vld [vmem:[#allocation3 + $0x78] sm:$0xff] }
 0x2c5   : >> { %818 = vrot.lane.b32.xlu0 %v6525_v32, %s6043_s7  ;;  %822 = vrot.lane.b32.xlu1 %v6532_v24, %s6043_s7 }
 0x2c6   : >> { %826 = vrot.lane.b32.xlu2 %v6536_v36, %s6043_s7 }
 0x2cd   : >> { %828 = vrot.lane.b32.xlu0 %v6538_v37, %s6043_s7  ;;  %830 = vrot.lane.b32.xlu1 %v6540_v38, %s6043_s7 }
 0x2ce   : >> { %832 = vrot.lane.b32.xlu2 %v6542_v39, %s6043_s7 }
 0x2d5   : >> { %834 = vrot.lane.b32.xlu0 %v6544_v25, %s6043_s7  ;;  %836 = vrot.lane.b32.xlu1 %v6546_v28, %s6043_s7 }
 0x2d6   : >> { %838 = vrot.lane.b32.xlu2 %v6548_v42, %s6043_s7 }
 0x2dd   : >> { %840 = vrot.lane.b32.xlu0 %v6550_v44, %s6043_s7  ;;  %842 = vrot.lane.b32.xlu1 %v6552_v48, %s6043_s7 }
 0x2de   : >> { %844 = vrot.lane.b32.xlu2 %v6554_v49, %s6043_s7 }
 0x2e5   : >> { %846 = vrot.lane.b32.xlu0 %v6556_v26, %s6043_s7 }
 0x318   : >> { %v825_v57 = vpop.permute.xlu2 %824 }
 0x319   : >> { %v869_v58 = vmul.f32 %v6654_v50, %v825_v57 }
 0x31b   : >> { %v885_v60 = vadd.f32 %v869_v58, %v852_v27 }
 0x31d   : >> { %901 = vst [vmem:[#allocation3 + $0x50] sm:$0xff] %v885_v60 }
 0x320   : >> { %v827_v54 = vpop.permute.xlu2 %826 }
 0x321   : >> { %v870_v7 = vmul.f32 %v6654_v50, %v827_v54  ;;  %v854_v54 = vld [vmem:[#allocation3 + $0x8] sm:$0xff] }
 0x323   : >> { %v886_v47 = vadd.f32 %v870_v7, %v853_v19 }
 0x325   : >> { %902 = vst [vmem:[#allocation3 + $0x68] sm:$0xff] %v886_v47  ;;  %v855_v47 = vld [vmem:[#allocation3 + $0x48] sm:$0xff] }
 0x328   : >> { %v833_v30 = vpop.permute.xlu2 %832 }
 0x329   : >> { %v873_v63 = vmul.f32 %v6654_v50, %v833_v30 }
 0x32b   : >> { %v889_v2 = vadd.f32 %v873_v63, %v856_v62 }
 0x32d   : >> { %905 = vst [vmem:[#allocation3 + $0x40] sm:$0xff] %v889_v2 }
 0x32f   : >> { %v817_v3 = vpop.permute.xlu0 %816  ;;  %v821_v10 = vpop.permute.xlu1 %820 }
 0x330   : >> { %v865_v13 = vmul.f32 %v6654_v50, %v817_v3  ;;  %v867_v8 = vmul.f32 %v6654_v50, %v821_v10  ;;  %v839_v15 = vpop.permute.xlu2 %838  ;;  %v857_v3 = vld [vmem:[#allocation3 + $0x20] sm:$0xff]  ;;  %v858_v10 = vld [vmem:[#allocation3 + $0x10] sm:$0xff] }
 0x331   : >> { %v876_v16 = vmul.f32 %v6654_v50, %v839_v15 }
 0x332   : >> { %v881_v17 = vadd.f32 %v865_v13, %v848_v0  ;;  %v883_v18 = vadd.f32 %v867_v8, %v850_v5 }
 0x333   : >> { %v892_v20 = vadd.f32 %v876_v16, %v859_v35 }
 0x334   : >> { %897 = vst [vmem:[#allocation3 + $0x30] sm:$0xff] %v881_v17  ;;  %v860_v17 = vld [vmem:[#allocation3 + $0x60] sm:$0xff] }
 0x335   : >> { %899 = vst [vmem:[#allocation3 + $0x58] sm:$0xff] %v883_v18 }
 0x336   : >> { %908 = vst [vmem:[#allocation3 + $0x38] sm:$0xff] %v892_v20  ;;  %v861_v20 = vld [vmem:[#allocation3 + $0x70] sm:$0xff] }
 0x337   : >> { %v819_v40 = vpop.permute.xlu0 %818  ;;  %v823_v41 = vpop.permute.xlu1 %822 }
 0x338   : >> { %v866_v56 = vmul.f32 %v6654_v50, %v819_v40  ;;  %v868_v29 = vmul.f32 %v6654_v50, %v823_v41  ;;  %v845_v27 = vpop.permute.xlu2 %844 }
 0x339   : >> { %v879_v57 = vmul.f32 %v6654_v50, %v845_v27 }
 0x33a   : >> { %v882_v58 = vadd.f32 %v866_v56, %v849_v9  ;;  %v884_v60 = vadd.f32 %v868_v29, %v851_v22  ;;  %v863_v29 = vld [vmem:[#allocation3 + $0x28] sm:$0xff] }
 0x33b   : >> { %v895_v19 = vadd.f32 %v879_v57, %v862_v52 }
 0x33c   : >> { %898 = vst [vmem:[#allocation3] sm:$0xff] %v882_v58 }
 0x33d   : >> { %900 = vst [vmem:[#allocation3 + $0x18] sm:$0xff] %v884_v60 }
 0x33e   : >> { %911 = vst [vmem:[#allocation3 + $0x78] sm:$0xff] %v895_v19 }
 0x33f   : >> { %v829_v7 = vpop.permute.xlu0 %828  ;;  %v831_v62 = vpop.permute.xlu1 %830 }
 0x340   : >> { %v871_v30 = vmul.f32 %v6654_v50, %v829_v7  ;;  %v872_v63 = vmul.f32 %v6654_v50, %v831_v62 }
 0x342   : >> { %v887_v2 = vadd.f32 %v871_v30, %v854_v54  ;;  %v888_v0 = vadd.f32 %v872_v63, %v855_v47 }
 0x344   : >> { %903 = vst [vmem:[#allocation3 + $0x8] sm:$0xff] %v887_v2 }
 0x345   : >> { %904 = vst [vmem:[#allocation3 + $0x48] sm:$0xff] %v888_v0 }
 0x347   : >> { %v835_v5 = vpop.permute.xlu0 %834  ;;  %v837_v13 = vpop.permute.xlu1 %836 }
 0x348   : >> { %v874_v8 = vmul.f32 %v6654_v50, %v835_v5  ;;  %v875_v35 = vmul.f32 %v6654_v50, %v837_v13 }
 0x34a   : >> { %v890_v15 = vadd.f32 %v874_v8, %v857_v3  ;;  %v891_v16 = vadd.f32 %v875_v35, %v858_v10 }
 0x34c   : >> { %906 = vst [vmem:[#allocation3 + $0x20] sm:$0xff] %v890_v15 }
 0x34d   : >> { %907 = vst [vmem:[#allocation3 + $0x10] sm:$0xff] %v891_v16 }
 0x34f   : >> { %v841_v18 = vpop.permute.xlu0 %840  ;;  %v843_v9 = vpop.permute.xlu1 %842 }
 0x350   : >> { %v877_v40 = vmul.f32 %v6654_v50, %v841_v18  ;;  %v878_v22 = vmul.f32 %v6654_v50, %v843_v9 }
 0x352   : >> { %v893_v41 = vadd.f32 %v877_v40, %v860_v17  ;;  %v894_v56 = vadd.f32 %v878_v22, %v861_v20 }
 0x354   : >> { %909 = vst [vmem:[#allocation3 + $0x60] sm:$0xff] %v893_v41 }
 0x355   : >> { %910 = vst [vmem:[#allocation3 + $0x70] sm:$0xff] %v894_v56 }
 0x357   : >> { %v847_v52 = vpop.permute.xlu0 %846 }
 0x358   : >> { %v880_v27 = vmul.f32 %v6654_v50, %v847_v52 }
 0x35a   : >> { %v896_v57 = vadd.f32 %v880_v27, %v863_v29 }
 0x35c   : >> { %912 = vst [vmem:[#allocation3 + $0x28] sm:$0xff] %v896_v57 }
 0x35d PF: >> { %p8509_p13 = scmp.lt.s32.totalorder %s6023_s15, 21 }
 0x35e   : >> { %s6044_s10 = smov (!%p8509_p13), 21   ;;  %s917_s11 = sadd.s32 (!%p8509_p13), 4294967275, %s6530_s26 }
 0x35f   : >> { %916 = sbr.rel (%p8509_p13) target bundleno = 1028 (0x404), region = 75  ;;  %s918_s12 = sld [smem:[#allocation6 + %s917_s11]] (!%p8509_p13) }
 0x364   : >> { %919 = vrot.lane.b32.xlu0 %v6523_v23, %s6044_s10  ;;  %923 = vrot.lane.b32.xlu1 %v6527_v33, %s6044_s10  ;;  %v955_v58 = vld [vmem:[#allocation3 + $0x50] sm:$0xff]  ;;  %v956_v7 = vld [vmem:[#allocation3 + $0x68] sm:$0xff]  ;;  %v959_v63 = vld [vmem:[#allocation3 + $0x40] sm:$0xff] }
 0x365   : >> { %927 = vrot.lane.b32.xlu2 %v6534_v11, %s6044_s10  ;;  %v6692_v50 = vstv %s918_s12  ;;  %v951_v5 = vld [vmem:[#allocation3 + $0x30] sm:$0xff]  ;;  %v953_v13 = vld [vmem:[#allocation3 + $0x58] sm:$0xff]  ;;  %v952_v22 = vld [vmem:[#allocation3] sm:$0xff] }
 0x366   : >> { %v962_v16 = vld [vmem:[#allocation3 + $0x38] sm:$0xff] }
 0x367   : >> { %v954_v56 = vld [vmem:[#allocation3 + $0x18] sm:$0xff] }
 0x368   : >> { %v965_v57 = vld [vmem:[#allocation3 + $0x78] sm:$0xff] }
 0x36c   : >> { %921 = vrot.lane.b32.xlu0 %v6525_v32, %s6044_s10  ;;  %925 = vrot.lane.b32.xlu1 %v6532_v24, %s6044_s10 }
 0x36d   : >> { %929 = vrot.lane.b32.xlu2 %v6536_v36, %s6044_s10 }
 0x374   : >> { %931 = vrot.lane.b32.xlu0 %v6538_v37, %s6044_s10  ;;  %933 = vrot.lane.b32.xlu1 %v6540_v38, %s6044_s10 }
 0x375   : >> { %935 = vrot.lane.b32.xlu2 %v6542_v39, %s6044_s10 }
 0x37c   : >> { %937 = vrot.lane.b32.xlu0 %v6544_v25, %s6044_s10  ;;  %939 = vrot.lane.b32.xlu1 %v6546_v28, %s6044_s10 }
 0x37d   : >> { %941 = vrot.lane.b32.xlu2 %v6548_v42, %s6044_s10 }
 0x384   : >> { %943 = vrot.lane.b32.xlu0 %v6550_v44, %s6044_s10  ;;  %945 = vrot.lane.b32.xlu1 %v6552_v48, %s6044_s10 }
 0x385   : >> { %947 = vrot.lane.b32.xlu2 %v6554_v49, %s6044_s10 }
 0x38c   : >> { %949 = vrot.lane.b32.xlu0 %v6556_v26, %s6044_s10 }
 0x3bf   : >> { %v928_v60 = vpop.permute.xlu2 %927 }
 0x3c0   : >> { %v972_v19 = vmul.f32 %v6692_v50, %v928_v60 }
 0x3c2   : >> { %v988_v54 = vadd.f32 %v972_v19, %v955_v58 }
 0x3c4   : >> { %1004 = vst [vmem:[#allocation3 + $0x50] sm:$0xff] %v988_v54 }
 0x3c7   : >> { %v930_v47 = vpop.permute.xlu2 %929 }
 0x3c8   : >> { %v973_v62 = vmul.f32 %v6692_v50, %v930_v47  ;;  %v957_v47 = vld [vmem:[#allocation3 + $0x8] sm:$0xff] }
 0x3ca   : >> { %v989_v30 = vadd.f32 %v973_v62, %v956_v7 }
 0x3cc   : >> { %1005 = vst [vmem:[#allocation3 + $0x68] sm:$0xff] %v989_v30  ;;  %v958_v30 = vld [vmem:[#allocation3 + $0x48] sm:$0xff] }
 0x3cf   : >> { %v936_v2 = vpop.permute.xlu2 %935 }
 0x3d0   : >> { %v976_v0 = vmul.f32 %v6692_v50, %v936_v2 }
 0x3d2   : >> { %v992_v3 = vadd.f32 %v976_v0, %v959_v63 }
 0x3d4   : >> { %1008 = vst [vmem:[#allocation3 + $0x40] sm:$0xff] %v992_v3 }
 0x3d6   : >> { %v920_v10 = vpop.permute.xlu0 %919  ;;  %v924_v8 = vpop.permute.xlu1 %923 }
 0x3d7   : >> { %v968_v35 = vmul.f32 %v6692_v50, %v920_v10  ;;  %v970_v15 = vmul.f32 %v6692_v50, %v924_v8  ;;  %v942_v17 = vpop.permute.xlu2 %941  ;;  %v960_v10 = vld [vmem:[#allocation3 + $0x20] sm:$0xff]  ;;  %v961_v8 = vld [vmem:[#allocation3 + $0x10] sm:$0xff] }
 0x3d8   : >> { %v979_v18 = vmul.f32 %v6692_v50, %v942_v17 }
 0x3d9   : >> { %v984_v20 = vadd.f32 %v968_v35, %v951_v5  ;;  %v986_v9 = vadd.f32 %v970_v15, %v953_v13 }
 0x3da   : >> { %v995_v40 = vadd.f32 %v979_v18, %v962_v16 }
 0x3db   : >> { %1000 = vst [vmem:[#allocation3 + $0x30] sm:$0xff] %v984_v20  ;;  %v963_v20 = vld [vmem:[#allocation3 + $0x60] sm:$0xff] }
 0x3dc   : >> { %1002 = vst [vmem:[#allocation3 + $0x58] sm:$0xff] %v986_v9 }
 0x3dd   : >> { %1011 = vst [vmem:[#allocation3 + $0x38] sm:$0xff] %v995_v40  ;;  %v964_v40 = vld [vmem:[#allocation3 + $0x70] sm:$0xff] }
 0x3de   : >> { %v922_v41 = vpop.permute.xlu0 %921  ;;  %v926_v29 = vpop.permute.xlu1 %925 }
 0x3df   : >> { %v969_v52 = vmul.f32 %v6692_v50, %v922_v41  ;;  %v971_v27 = vmul.f32 %v6692_v50, %v926_v29  ;;  %v948_v58 = vpop.permute.xlu2 %947 }
 0x3e0   : >> { %v982_v60 = vmul.f32 %v6692_v50, %v948_v58 }
 0x3e1   : >> { %v985_v19 = vadd.f32 %v969_v52, %v952_v22  ;;  %v987_v54 = vadd.f32 %v971_v27, %v954_v56  ;;  %v966_v27 = vld [vmem:[#allocation3 + $0x28] sm:$0xff] }
 0x3e2   : >> { %v998_v7 = vadd.f32 %v982_v60, %v965_v57 }
 0x3e3   : >> { %1001 = vst [vmem:[#allocation3] sm:$0xff] %v985_v19 }
 0x3e4   : >> { %1003 = vst [vmem:[#allocation3 + $0x18] sm:$0xff] %v987_v54 }
 0x3e5   : >> { %1014 = vst [vmem:[#allocation3 + $0x78] sm:$0xff] %v998_v7 }
 0x3e6   : >> { %v932_v62 = vpop.permute.xlu0 %931  ;;  %v934_v63 = vpop.permute.xlu1 %933 }
 0x3e7   : >> { %v974_v2 = vmul.f32 %v6692_v50, %v932_v62  ;;  %v975_v0 = vmul.f32 %v6692_v50, %v934_v63 }
 0x3e9   : >> { %v990_v3 = vadd.f32 %v974_v2, %v957_v47  ;;  %v991_v5 = vadd.f32 %v975_v0, %v958_v30 }
 0x3eb   : >> { %1006 = vst [vmem:[#allocation3 + $0x8] sm:$0xff] %v990_v3 }
 0x3ec   : >> { %1007 = vst [vmem:[#allocation3 + $0x48] sm:$0xff] %v991_v5 }
 0x3ee   : >> { %v938_v13 = vpop.permute.xlu0 %937  ;;  %v940_v35 = vpop.permute.xlu1 %939 }
 0x3ef   : >> { %v977_v15 = vmul.f32 %v6692_v50, %v938_v13  ;;  %v978_v16 = vmul.f32 %v6692_v50, %v940_v35 }
 0x3f1   : >> { %v993_v17 = vadd.f32 %v977_v15, %v960_v10  ;;  %v994_v18 = vadd.f32 %v978_v16, %v961_v8 }
 0x3f3   : >> { %1009 = vst [vmem:[#allocation3 + $0x20] sm:$0xff] %v993_v17 }
 0x3f4   : >> { %1010 = vst [vmem:[#allocation3 + $0x10] sm:$0xff] %v994_v18 }
 0x3f6   : >> { %v944_v9 = vpop.permute.xlu0 %943  ;;  %v946_v22 = vpop.permute.xlu1 %945 }
 0x3f7   : >> { %v980_v41 = vmul.f32 %v6692_v50, %v944_v9  ;;  %v981_v56 = vmul.f32 %v6692_v50, %v946_v22 }
 0x3f9   : >> { %v996_v29 = vadd.f32 %v980_v41, %v963_v20  ;;  %v997_v52 = vadd.f32 %v981_v56, %v964_v40 }
 0x3fb   : >> { %1012 = vst [vmem:[#allocation3 + $0x60] sm:$0xff] %v996_v29 }
 0x3fc   : >> { %1013 = vst [vmem:[#allocation3 + $0x70] sm:$0xff] %v997_v52 }
 0x3fe   : >> { %v950_v57 = vpop.permute.xlu0 %949 }
 0x3ff   : >> { %v983_v58 = vmul.f32 %v6692_v50, %v950_v57 }
 0x401   : >> { %v999_v60 = vadd.f32 %v983_v58, %v966_v27 }
 0x403   : >> { %1015 = vst [vmem:[#allocation3 + $0x28] sm:$0xff] %v999_v60 }
 0x404 PF: >> { %p8510_p0 = scmp.lt.s32.totalorder %s6023_s15, 20 }
 0x405   : >> { %s6045_s13 = smov (!%p8510_p0), 20   ;;  %s1020_s21 = sadd.s32 (!%p8510_p0), 4294967276, %s6530_s26 }
 0x406   : >> { %1019 = sbr.rel (%p8510_p0) target bundleno = 1195 (0x4ab), region = 79  ;;  %s1021_s22 = sld [smem:[#allocation6 + %s1020_s21]] (!%p8510_p0) }
 0x40b   : >> { %1022 = vrot.lane.b32.xlu0 %v6523_v23, %s6045_s13  ;;  %1026 = vrot.lane.b32.xlu1 %v6527_v33, %s6045_s13  ;;  %v1058_v19 = vld [vmem:[#allocation3 + $0x50] sm:$0xff]  ;;  %v1059_v62 = vld [vmem:[#allocation3 + $0x68] sm:$0xff]  ;;  %v1062_v0 = vld [vmem:[#allocation3 + $0x40] sm:$0xff] }
 0x40c   : >> { %1030 = vrot.lane.b32.xlu2 %v6534_v11, %s6045_s13  ;;  %v6730_v50 = vstv %s1021_s22  ;;  %v1054_v13 = vld [vmem:[#allocation3 + $0x30] sm:$0xff]  ;;  %v1056_v35 = vld [vmem:[#allocation3 + $0x58] sm:$0xff]  ;;  %v1055_v56 = vld [vmem:[#allocation3] sm:$0xff] }
 0x40d   : >> { %v1065_v18 = vld [vmem:[#allocation3 + $0x38] sm:$0xff] }
 0x40e   : >> { %v1057_v52 = vld [vmem:[#allocation3 + $0x18] sm:$0xff] }
 0x40f   : >> { %v1068_v60 = vld [vmem:[#allocation3 + $0x78] sm:$0xff] }
 0x413   : >> { %1024 = vrot.lane.b32.xlu0 %v6525_v32, %s6045_s13  ;;  %1028 = vrot.lane.b32.xlu1 %v6532_v24, %s6045_s13 }
 0x414   : >> { %1032 = vrot.lane.b32.xlu2 %v6536_v36, %s6045_s13 }
 0x41b   : >> { %1034 = vrot.lane.b32.xlu0 %v6538_v37, %s6045_s13  ;;  %1036 = vrot.lane.b32.xlu1 %v6540_v38, %s6045_s13 }
 0x41c   : >> { %1038 = vrot.lane.b32.xlu2 %v6542_v39, %s6045_s13 }
 0x423   : >> { %1040 = vrot.lane.b32.xlu0 %v6544_v25, %s6045_s13  ;;  %1042 = vrot.lane.b32.xlu1 %v6546_v28, %s6045_s13 }
 0x424   : >> { %1044 = vrot.lane.b32.xlu2 %v6548_v42, %s6045_s13 }
 0x42b   : >> { %1046 = vrot.lane.b32.xlu0 %v6550_v44, %s6045_s13  ;;  %1048 = vrot.lane.b32.xlu1 %v6552_v48, %s6045_s13 }
 0x42c   : >> { %1050 = vrot.lane.b32.xlu2 %v6554_v49, %s6045_s13 }
 0x433   : >> { %1052 = vrot.lane.b32.xlu0 %v6556_v26, %s6045_s13 }
 0x466   : >> { %v1031_v54 = vpop.permute.xlu2 %1030 }
 0x467   : >> { %v1075_v7 = vmul.f32 %v6730_v50, %v1031_v54 }
 0x469   : >> { %v1091_v47 = vadd.f32 %v1075_v7, %v1058_v19 }
 0x46b   : >> { %1107 = vst [vmem:[#allocation3 + $0x50] sm:$0xff] %v1091_v47 }
 0x46e   : >> { %v1033_v30 = vpop.permute.xlu2 %1032 }
 0x46f   : >> { %v1076_v63 = vmul.f32 %v6730_v50, %v1033_v30  ;;  %v1060_v30 = vld [vmem:[#allocation3 + $0x8] sm:$0xff] }
 0x471   : >> { %v1092_v2 = vadd.f32 %v1076_v63, %v1059_v62 }
 0x473   : >> { %1108 = vst [vmem:[#allocation3 + $0x68] sm:$0xff] %v1092_v2  ;;  %v1061_v2 = vld [vmem:[#allocation3 + $0x48] sm:$0xff] }
 0x476   : >> { %v1039_v3 = vpop.permute.xlu2 %1038 }
 0x477   : >> { %v1079_v5 = vmul.f32 %v6730_v50, %v1039_v3 }
 0x479   : >> { %v1095_v10 = vadd.f32 %v1079_v5, %v1062_v0 }
 0x47b   : >> { %1111 = vst [vmem:[#allocation3 + $0x40] sm:$0xff] %v1095_v10 }
 0x47d   : >> { %v1023_v8 = vpop.permute.xlu0 %1022  ;;  %v1027_v15 = vpop.permute.xlu1 %1026 }
 0x47e   : >> { %v1071_v16 = vmul.f32 %v6730_v50, %v1023_v8  ;;  %v1073_v17 = vmul.f32 %v6730_v50, %v1027_v15  ;;  %v1045_v20 = vpop.permute.xlu2 %1044  ;;  %v1063_v8 = vld [vmem:[#allocation3 + $0x20] sm:$0xff]  ;;  %v1064_v15 = vld [vmem:[#allocation3 + $0x10] sm:$0xff] }
 0x47f   : >> { %v1082_v9 = vmul.f32 %v6730_v50, %v1045_v20 }
 0x480   : >> { %v1087_v40 = vadd.f32 %v1071_v16, %v1054_v13  ;;  %v1089_v22 = vadd.f32 %v1073_v17, %v1056_v35 }
 0x481   : >> { %v1098_v41 = vadd.f32 %v1082_v9, %v1065_v18 }
 0x482   : >> { %1103 = vst [vmem:[#allocation3 + $0x30] sm:$0xff] %v1087_v40  ;;  %v1066_v40 = vld [vmem:[#allocation3 + $0x60] sm:$0xff] }
 0x483   : >> { %1105 = vst [vmem:[#allocation3 + $0x58] sm:$0xff] %v1089_v22 }
 0x484   : >> { %1114 = vst [vmem:[#allocation3 + $0x38] sm:$0xff] %v1098_v41  ;;  %v1067_v41 = vld [vmem:[#allocation3 + $0x70] sm:$0xff] }
 0x485   : >> { %v1025_v29 = vpop.permute.xlu0 %1024  ;;  %v1029_v27 = vpop.permute.xlu1 %1028 }
 0x486   : >> { %v1072_v57 = vmul.f32 %v6730_v50, %v1025_v29  ;;  %v1074_v58 = vmul.f32 %v6730_v50, %v1029_v27  ;;  %v1051_v19 = vpop.permute.xlu2 %1050 }
 0x487   : >> { %v1085_v54 = vmul.f32 %v6730_v50, %v1051_v19 }
 0x488   : >> { %v1088_v7 = vadd.f32 %v1072_v57, %v1055_v56  ;;  %v1090_v47 = vadd.f32 %v1074_v58, %v1057_v52  ;;  %v1069_v58 = vld [vmem:[#allocation3 + $0x28] sm:$0xff] }
 0x489   : >> { %v1101_v62 = vadd.f32 %v1085_v54, %v1068_v60 }
 0x48a   : >> { %1104 = vst [vmem:[#allocation3] sm:$0xff] %v1088_v7 }
 0x48b   : >> { %1106 = vst [vmem:[#allocation3 + $0x18] sm:$0xff] %v1090_v47 }
 0x48c   : >> { %1117 = vst [vmem:[#allocation3 + $0x78] sm:$0xff] %v1101_v62 }
 0x48d   : >> { %v1035_v63 = vpop.permute.xlu0 %1034  ;;  %v1037_v0 = vpop.permute.xlu1 %1036 }
 0x48e   : >> { %v1077_v3 = vmul.f32 %v6730_v50, %v1035_v63  ;;  %v1078_v5 = vmul.f32 %v6730_v50, %v1037_v0 }
 0x490   : >> { %v1093_v10 = vadd.f32 %v1077_v3, %v1060_v30  ;;  %v1094_v13 = vadd.f32 %v1078_v5, %v1061_v2 }
 0x492   : >> { %1109 = vst [vmem:[#allocation3 + $0x8] sm:$0xff] %v1093_v10 }
 0x493   : >> { %1110 = vst [vmem:[#allocation3 + $0x48] sm:$0xff] %v1094_v13 }
 0x495   : >> { %v1041_v35 = vpop.permute.xlu0 %1040  ;;  %v1043_v16 = vpop.permute.xlu1 %1042 }
 0x496   : >> { %v1080_v17 = vmul.f32 %v6730_v50, %v1041_v35  ;;  %v1081_v18 = vmul.f32 %v6730_v50, %v1043_v16 }
 0x498   : >> { %v1096_v20 = vadd.f32 %v1080_v17, %v1063_v8  ;;  %v1097_v9 = vadd.f32 %v1081_v18, %v1064_v15 }
 0x49a   : >> { %1112 = vst [vmem:[#allocation3 + $0x20] sm:$0xff] %v1096_v20 }
 0x49b   : >> { %1113 = vst [vmem:[#allocation3 + $0x10] sm:$0xff] %v1097_v9 }
 0x49d   : >> { %v1047_v22 = vpop.permute.xlu0 %1046  ;;  %v1049_v56 = vpop.permute.xlu1 %1048 }
 0x49e   : >> { %v1083_v29 = vmul.f32 %v6730_v50, %v1047_v22  ;;  %v1084_v52 = vmul.f32 %v6730_v50, %v1049_v56 }
 0x4a0   : >> { %v1099_v27 = vadd.f32 %v1083_v29, %v1066_v40  ;;  %v1100_v57 = vadd.f32 %v1084_v52, %v1067_v41 }
 0x4a2   : >> { %1115 = vst [vmem:[#allocation3 + $0x60] sm:$0xff] %v1099_v27 }
 0x4a3   : >> { %1116 = vst [vmem:[#allocation3 + $0x70] sm:$0xff] %v1100_v57 }
 0x4a5   : >> { %v1053_v60 = vpop.permute.xlu0 %1052 }
 0x4a6   : >> { %v1086_v19 = vmul.f32 %v6730_v50, %v1053_v60 }
 0x4a8   : >> { %v1102_v54 = vadd.f32 %v1086_v19, %v1069_v58 }
 0x4aa   : >> { %1118 = vst [vmem:[#allocation3 + $0x28] sm:$0xff] %v1102_v54 }
 0x4ab PF: >> { %p8511_p1 = scmp.lt.s32.totalorder %s6023_s15, 19 }
 0x4ac   : >> { %s6046_s23 = smov (!%p8511_p1), 19   ;;  %s1123_s24 = sadd.s32 (!%p8511_p1), 4294967277, %s6530_s26 }
 0x4ad   : >> { %1122 = sbr.rel (%p8511_p1) target bundleno = 1362 (0x552), region = 83  ;;  %s1124_s25 = sld [smem:[#allocation6 + %s1123_s24]] (!%p8511_p1) }
 0x4b2   : >> { %1125 = vrot.lane.b32.xlu0 %v6523_v23, %s6046_s23  ;;  %1129 = vrot.lane.b32.xlu1 %v6527_v33, %s6046_s23  ;;  %v1161_v7 = vld [vmem:[#allocation3 + $0x50] sm:$0xff]  ;;  %v1162_v63 = vld [vmem:[#allocation3 + $0x68] sm:$0xff]  ;;  %v1165_v5 = vld [vmem:[#allocation3 + $0x40] sm:$0xff] }
 0x4b3   : >> { %1133 = vrot.lane.b32.xlu2 %v6534_v11, %s6046_s23  ;;  %v6768_v50 = vstv %s1124_s25  ;;  %v1157_v35 = vld [vmem:[#allocation3 + $0x30] sm:$0xff]  ;;  %v1159_v16 = vld [vmem:[#allocation3 + $0x58] sm:$0xff]  ;;  %v1158_v52 = vld [vmem:[#allocation3] sm:$0xff] }
 0x4b4   : >> { %v1168_v9 = vld [vmem:[#allocation3 + $0x38] sm:$0xff] }
 0x4b5   : >> { %v1160_v57 = vld [vmem:[#allocation3 + $0x18] sm:$0xff] }
 0x4b6   : >> { %v1171_v54 = vld [vmem:[#allocation3 + $0x78] sm:$0xff] }
 0x4ba   : >> { %1127 = vrot.lane.b32.xlu0 %v6525_v32, %s6046_s23  ;;  %1131 = vrot.lane.b32.xlu1 %v6532_v24, %s6046_s23 }
 0x4bb   : >> { %1135 = vrot.lane.b32.xlu2 %v6536_v36, %s6046_s23 }
 0x4c2   : >> { %1137 = vrot.lane.b32.xlu0 %v6538_v37, %s6046_s23  ;;  %1139 = vrot.lane.b32.xlu1 %v6540_v38, %s6046_s23 }
 0x4c3   : >> { %1141 = vrot.lane.b32.xlu2 %v6542_v39, %s6046_s23 }
 0x4ca   : >> { %1143 = vrot.lane.b32.xlu0 %v6544_v25, %s6046_s23  ;;  %1145 = vrot.lane.b32.xlu1 %v6546_v28, %s6046_s23 }
 0x4cb   : >> { %1147 = vrot.lane.b32.xlu2 %v6548_v42, %s6046_s23 }
 0x4d2   : >> { %1149 = vrot.lane.b32.xlu0 %v6550_v44, %s6046_s23  ;;  %1151 = vrot.lane.b32.xlu1 %v6552_v48, %s6046_s23 }
 0x4d3   : >> { %1153 = vrot.lane.b32.xlu2 %v6554_v49, %s6046_s23 }
 0x4da   : >> { %1155 = vrot.lane.b32.xlu0 %v6556_v26, %s6046_s23 }
 0x50d   : >> { %v1134_v47 = vpop.permute.xlu2 %1133 }
 0x50e   : >> { %v1178_v62 = vmul.f32 %v6768_v50, %v1134_v47 }
 0x510   : >> { %v1194_v30 = vadd.f32 %v1178_v62, %v1161_v7 }
 0x512   : >> { %1210 = vst [vmem:[#allocation3 + $0x50] sm:$0xff] %v1194_v30 }
 0x515   : >> { %v1136_v2 = vpop.permute.xlu2 %1135 }
 0x516   : >> { %v1179_v0 = vmul.f32 %v6768_v50, %v1136_v2  ;;  %v1163_v2 = vld [vmem:[#allocation3 + $0x8] sm:$0xff] }
 0x518   : >> { %v1195_v3 = vadd.f32 %v1179_v0, %v1162_v63 }
 0x51a   : >> { %1211 = vst [vmem:[#allocation3 + $0x68] sm:$0xff] %v1195_v3  ;;  %v1164_v3 = vld [vmem:[#allocation3 + $0x48] sm:$0xff] }
 0x51d   : >> { %v1142_v10 = vpop.permute.xlu2 %1141 }
 0x51e   : >> { %v1182_v13 = vmul.f32 %v6768_v50, %v1142_v10 }
 0x520   : >> { %v1198_v8 = vadd.f32 %v1182_v13, %v1165_v5 }
 0x522   : >> { %1214 = vst [vmem:[#allocation3 + $0x40] sm:$0xff] %v1198_v8 }
 0x524   : >> { %v1126_v15 = vpop.permute.xlu0 %1125  ;;  %v1130_v17 = vpop.permute.xlu1 %1129 }
 0x525   : >> { %v1174_v18 = vmul.f32 %v6768_v50, %v1126_v15  ;;  %v1176_v20 = vmul.f32 %v6768_v50, %v1130_v17  ;;  %v1148_v40 = vpop.permute.xlu2 %1147  ;;  %v1166_v15 = vld [vmem:[#allocation3 + $0x20] sm:$0xff]  ;;  %v1167_v17 = vld [vmem:[#allocation3 + $0x10] sm:$0xff] }
 0x526   : >> { %v1185_v22 = vmul.f32 %v6768_v50, %v1148_v40 }
 0x527   : >> { %v1190_v41 = vadd.f32 %v1174_v18, %v1157_v35  ;;  %v1192_v56 = vadd.f32 %v1176_v20, %v1159_v16 }
 0x528   : >> { %v1201_v29 = vadd.f32 %v1185_v22, %v1168_v9 }
 0x529   : >> { %1206 = vst [vmem:[#allocation3 + $0x30] sm:$0xff] %v1190_v41  ;;  %v1169_v41 = vld [vmem:[#allocation3 + $0x60] sm:$0xff] }
 0x52a   : >> { %1208 = vst [vmem:[#allocation3 + $0x58] sm:$0xff] %v1192_v56 }
 0x52b   : >> { %1217 = vst [vmem:[#allocation3 + $0x38] sm:$0xff] %v1201_v29  ;;  %v1170_v29 = vld [vmem:[#allocation3 + $0x70] sm:$0xff] }
 0x52c   : >> { %v1128_v27 = vpop.permute.xlu0 %1127  ;;  %v1132_v58 = vpop.permute.xlu1 %1131 }
 0x52d   : >> { %v1175_v60 = vmul.f32 %v6768_v50, %v1128_v27  ;;  %v1177_v19 = vmul.f32 %v6768_v50, %v1132_v58  ;;  %v1154_v7 = vpop.permute.xlu2 %1153 }
 0x52e   : >> { %v1188_v47 = vmul.f32 %v6768_v50, %v1154_v7 }
 0x52f   : >> { %v1191_v62 = vadd.f32 %v1175_v60, %v1158_v52  ;;  %v1193_v30 = vadd.f32 %v1177_v19, %v1160_v57  ;;  %v1172_v19 = vld [vmem:[#allocation3 + $0x28] sm:$0xff] }
 0x530   : >> { %v1204_v63 = vadd.f32 %v1188_v47, %v1171_v54 }
 0x531   : >> { %1207 = vst [vmem:[#allocation3] sm:$0xff] %v1191_v62 }
 0x532   : >> { %1209 = vst [vmem:[#allocation3 + $0x18] sm:$0xff] %v1193_v30 }
 0x533   : >> { %1220 = vst [vmem:[#allocation3 + $0x78] sm:$0xff] %v1204_v63 }
 0x534   : >> { %v1138_v0 = vpop.permute.xlu0 %1137  ;;  %v1140_v5 = vpop.permute.xlu1 %1139 }
 0x535   : >> { %v1180_v10 = vmul.f32 %v6768_v50, %v1138_v0  ;;  %v1181_v13 = vmul.f32 %v6768_v50, %v1140_v5 }
 0x537   : >> { %v1196_v8 = vadd.f32 %v1180_v10, %v1163_v2  ;;  %v1197_v35 = vadd.f32 %v1181_v13, %v1164_v3 }
 0x539   : >> { %1212 = vst [vmem:[#allocation3 + $0x8] sm:$0xff] %v1196_v8 }
 0x53a   : >> { %1213 = vst [vmem:[#allocation3 + $0x48] sm:$0xff] %v1197_v35 }
 0x53c   : >> { %v1144_v16 = vpop.permute.xlu0 %1143  ;;  %v1146_v18 = vpop.permute.xlu1 %1145 }
 0x53d   : >> { %v1183_v20 = vmul.f32 %v6768_v50, %v1144_v16  ;;  %v1184_v9 = vmul.f32 %v6768_v50, %v1146_v18 }
 0x53f   : >> { %v1199_v40 = vadd.f32 %v1183_v20, %v1166_v15  ;;  %v1200_v22 = vadd.f32 %v1184_v9, %v1167_v17 }
 0x541   : >> { %1215 = vst [vmem:[#allocation3 + $0x20] sm:$0xff] %v1199_v40 }
 0x542   : >> { %1216 = vst [vmem:[#allocation3 + $0x10] sm:$0xff] %v1200_v22 }
 0x544   : >> { %v1150_v56 = vpop.permute.xlu0 %1149  ;;  %v1152_v52 = vpop.permute.xlu1 %1151 }
 0x545   : >> { %v1186_v27 = vmul.f32 %v6768_v50, %v1150_v56  ;;  %v1187_v57 = vmul.f32 %v6768_v50, %v1152_v52 }
 0x547   : >> { %v1202_v58 = vadd.f32 %v1186_v27, %v1169_v41  ;;  %v1203_v60 = vadd.f32 %v1187_v57, %v1170_v29 }
 0x549   : >> { %1218 = vst [vmem:[#allocation3 + $0x60] sm:$0xff] %v1202_v58 }
 0x54a   : >> { %1219 = vst [vmem:[#allocation3 + $0x70] sm:$0xff] %v1203_v60 }
 0x54c   : >> { %v1156_v54 = vpop.permute.xlu0 %1155 }
 0x54d   : >> { %v1189_v7 = vmul.f32 %v6768_v50, %v1156_v54 }
 0x54f   : >> { %v1205_v47 = vadd.f32 %v1189_v7, %v1172_v19 }
 0x551   : >> { %1221 = vst [vmem:[#allocation3 + $0x28] sm:$0xff] %v1205_v47 }
 0x552 PF: >> { %p8512_p2 = scmp.lt.s32.totalorder %s6023_s15, 18 }
 0x553   : >> { %s6047_s27 = smov (!%p8512_p2), 18   ;;  %s1226_s28 = sadd.s32 (!%p8512_p2), 4294967278, %s6530_s26 }
 0x554   : >> { %1225 = sbr.rel (%p8512_p2) target bundleno = 1529 (0x5f9), region = 87  ;;  %s1227_s29 = sld [smem:[#allocation6 + %s1226_s28]] (!%p8512_p2) }
 0x559   : >> { %1228 = vrot.lane.b32.xlu0 %v6523_v23, %s6047_s27  ;;  %1232 = vrot.lane.b32.xlu1 %v6527_v33, %s6047_s27  ;;  %v1264_v62 = vld [vmem:[#allocation3 + $0x50] sm:$0xff]  ;;  %v1265_v0 = vld [vmem:[#allocation3 + $0x68] sm:$0xff]  ;;  %v1268_v13 = vld [vmem:[#allocation3 + $0x40] sm:$0xff] }
 0x55a   : >> { %1236 = vrot.lane.b32.xlu2 %v6534_v11, %s6047_s27  ;;  %v6806_v50 = vstv %s1227_s29  ;;  %v1260_v16 = vld [vmem:[#allocation3 + $0x30] sm:$0xff]  ;;  %v1262_v18 = vld [vmem:[#allocation3 + $0x58] sm:$0xff]  ;;  %v1261_v57 = vld [vmem:[#allocation3] sm:$0xff] }
 0x55b   : >> { %v1271_v22 = vld [vmem:[#allocation3 + $0x38] sm:$0xff] }
 0x55c   : >> { %v1263_v60 = vld [vmem:[#allocation3 + $0x18] sm:$0xff] }
 0x55d   : >> { %v1274_v47 = vld [vmem:[#allocation3 + $0x78] sm:$0xff] }
 0x561   : >> { %1230 = vrot.lane.b32.xlu0 %v6525_v32, %s6047_s27  ;;  %1234 = vrot.lane.b32.xlu1 %v6532_v24, %s6047_s27 }
 0x562   : >> { %1238 = vrot.lane.b32.xlu2 %v6536_v36, %s6047_s27 }
 0x569   : >> { %1240 = vrot.lane.b32.xlu0 %v6538_v37, %s6047_s27  ;;  %1242 = vrot.lane.b32.xlu1 %v6540_v38, %s6047_s27 }
 0x56a   : >> { %1244 = vrot.lane.b32.xlu2 %v6542_v39, %s6047_s27 }
 0x571   : >> { %1246 = vrot.lane.b32.xlu0 %v6544_v25, %s6047_s27  ;;  %1248 = vrot.lane.b32.xlu1 %v6546_v28, %s6047_s27 }
 0x572   : >> { %1250 = vrot.lane.b32.xlu2 %v6548_v42, %s6047_s27 }
 0x579   : >> { %1252 = vrot.lane.b32.xlu0 %v6550_v44, %s6047_s27  ;;  %1254 = vrot.lane.b32.xlu1 %v6552_v48, %s6047_s27 }
 0x57a   : >> { %1256 = vrot.lane.b32.xlu2 %v6554_v49, %s6047_s27 }
 0x581   : >> { %1258 = vrot.lane.b32.xlu0 %v6556_v26, %s6047_s27 }
 0x5b4   : >> { %v1237_v30 = vpop.permute.xlu2 %1236 }
 0x5b5   : >> { %v1281_v63 = vmul.f32 %v6806_v50, %v1237_v30 }
 0x5b7   : >> { %v1297_v2 = vadd.f32 %v1281_v63, %v1264_v62 }
 0x5b9   : >> { %1313 = vst [vmem:[#allocation3 + $0x50] sm:$0xff] %v1297_v2 }
 0x5bc   : >> { %v1239_v3 = vpop.permute.xlu2 %1238 }
 0x5bd   : >> { %v1282_v5 = vmul.f32 %v6806_v50, %v1239_v3  ;;  %v1266_v3 = vld [vmem:[#allocation3 + $0x8] sm:$0xff] }
 0x5bf   : >> { %v1298_v10 = vadd.f32 %v1282_v5, %v1265_v0 }
 0x5c1   : >> { %1314 = vst [vmem:[#allocation3 + $0x68] sm:$0xff] %v1298_v10  ;;  %v1267_v10 = vld [vmem:[#allocation3 + $0x48] sm:$0xff] }
 0x5c4   : >> { %v1245_v8 = vpop.permute.xlu2 %1244 }
 0x5c5   : >> { %v1285_v35 = vmul.f32 %v6806_v50, %v1245_v8 }
 0x5c7   : >> { %v1301_v15 = vadd.f32 %v1285_v35, %v1268_v13 }
 0x5c9   : >> { %1317 = vst [vmem:[#allocation3 + $0x40] sm:$0xff] %v1301_v15 }
 0x5cb   : >> { %v1229_v17 = vpop.permute.xlu0 %1228  ;;  %v1233_v20 = vpop.permute.xlu1 %1232 }
 0x5cc   : >> { %v1277_v9 = vmul.f32 %v6806_v50, %v1229_v17  ;;  %v1279_v40 = vmul.f32 %v6806_v50, %v1233_v20  ;;  %v1251_v41 = vpop.permute.xlu2 %1250  ;;  %v1269_v17 = vld [vmem:[#allocation3 + $0x20] sm:$0xff]  ;;  %v1270_v20 = vld [vmem:[#allocation3 + $0x10] sm:$0xff] }
 0x5cd   : >> { %v1288_v56 = vmul.f32 %v6806_v50, %v1251_v41 }
 0x5ce   : >> { %v1293_v29 = vadd.f32 %v1277_v9, %v1260_v16  ;;  %v1295_v52 = vadd.f32 %v1279_v40, %v1262_v18 }
 0x5cf   : >> { %v1304_v27 = vadd.f32 %v1288_v56, %v1271_v22 }
 0x5d0   : >> { %1309 = vst [vmem:[#allocation3 + $0x30] sm:$0xff] %v1293_v29  ;;  %v1272_v29 = vld [vmem:[#allocation3 + $0x60] sm:$0xff] }
 0x5d1   : >> { %1311 = vst [vmem:[#allocation3 + $0x58] sm:$0xff] %v1295_v52 }
 0x5d2   : >> { %1320 = vst [vmem:[#allocation3 + $0x38] sm:$0xff] %v1304_v27  ;;  %v1273_v27 = vld [vmem:[#allocation3 + $0x70] sm:$0xff] }
 0x5d3   : >> { %v1231_v58 = vpop.permute.xlu0 %1230  ;;  %v1235_v19 = vpop.permute.xlu1 %1234 }
 0x5d4   : >> { %v1278_v54 = vmul.f32 %v6806_v50, %v1231_v58  ;;  %v1280_v7 = vmul.f32 %v6806_v50, %v1235_v19  ;;  %v1257_v62 = vpop.permute.xlu2 %1256 }
 0x5d5   : >> { %v1291_v30 = vmul.f32 %v6806_v50, %v1257_v62 }
 0x5d6   : >> { %v1294_v63 = vadd.f32 %v1278_v54, %v1261_v57  ;;  %v1296_v2 = vadd.f32 %v1280_v7, %v1263_v60  ;;  %v1275_v7 = vld [vmem:[#allocation3 + $0x28] sm:$0xff] }
 0x5d7   : >> { %v1307_v0 = vadd.f32 %v1291_v30, %v1274_v47 }
 0x5d8   : >> { %1310 = vst [vmem:[#allocation3] sm:$0xff] %v1294_v63 }
 0x5d9   : >> { %1312 = vst [vmem:[#allocation3 + $0x18] sm:$0xff] %v1296_v2 }
 0x5da   : >> { %1323 = vst [vmem:[#allocation3 + $0x78] sm:$0xff] %v1307_v0 }
 0x5db   : >> { %v1241_v5 = vpop.permute.xlu0 %1240  ;;  %v1243_v13 = vpop.permute.xlu1 %1242 }
 0x5dc   : >> { %v1283_v8 = vmul.f32 %v6806_v50, %v1241_v5  ;;  %v1284_v35 = vmul.f32 %v6806_v50, %v1243_v13 }
 0x5de   : >> { %v1299_v15 = vadd.f32 %v1283_v8, %v1266_v3  ;;  %v1300_v16 = vadd.f32 %v1284_v35, %v1267_v10 }
 0x5e0   : >> { %1315 = vst [vmem:[#allocation3 + $0x8] sm:$0xff] %v1299_v15 }
 0x5e1   : >> { %1316 = vst [vmem:[#allocation3 + $0x48] sm:$0xff] %v1300_v16 }
 0x5e3   : >> { %v1247_v18 = vpop.permute.xlu0 %1246  ;;  %v1249_v9 = vpop.permute.xlu1 %1248 }
 0x5e4   : >> { %v1286_v40 = vmul.f32 %v6806_v50, %v1247_v18  ;;  %v1287_v22 = vmul.f32 %v6806_v50, %v1249_v9 }
 0x5e6   : >> { %v1302_v41 = vadd.f32 %v1286_v40, %v1269_v17  ;;  %v1303_v56 = vadd.f32 %v1287_v22, %v1270_v20 }
 0x5e8   : >> { %1318 = vst [vmem:[#allocation3 + $0x20] sm:$0xff] %v1302_v41 }
 0x5e9   : >> { %1319 = vst [vmem:[#allocation3 + $0x10] sm:$0xff] %v1303_v56 }
 0x5eb   : >> { %v1253_v52 = vpop.permute.xlu0 %1252  ;;  %v1255_v57 = vpop.permute.xlu1 %1254 }
 0x5ec   : >> { %v1289_v58 = vmul.f32 %v6806_v50, %v1253_v52  ;;  %v1290_v60 = vmul.f32 %v6806_v50, %v1255_v57 }
 0x5ee   : >> { %v1305_v19 = vadd.f32 %v1289_v58, %v1272_v29  ;;  %v1306_v54 = vadd.f32 %v1290_v60, %v1273_v27 }
 0x5f0   : >> { %1321 = vst [vmem:[#allocation3 + $0x60] sm:$0xff] %v1305_v19 }
 0x5f1   : >> { %1322 = vst [vmem:[#allocation3 + $0x70] sm:$0xff] %v1306_v54 }
 0x5f3   : >> { %v1259_v47 = vpop.permute.xlu0 %1258 }
 0x5f4   : >> { %v1292_v62 = vmul.f32 %v6806_v50, %v1259_v47 }
 0x5f6   : >> { %v1308_v30 = vadd.f32 %v1292_v62, %v1275_v7 }
 0x5f8   : >> { %1324 = vst [vmem:[#allocation3 + $0x28] sm:$0xff] %v1308_v30 }
 0x5f9 PF: >> { %p8513_p3 = scmp.lt.s32.totalorder %s6023_s15, 17 }
 0x5fa   : >> { %s6048_s30 = smov (!%p8513_p3), 17   ;;  %s1329_s5 = sadd.s32 (!%p8513_p3), 4294967279, %s6530_s26 }
 0x5fb   : >> { %1328 = sbr.rel (%p8513_p3) target bundleno = 1696 (0x6a0), region = 91  ;;  %s1330_s6 = sld [smem:[#allocation6 + %s1329_s5]] (!%p8513_p3) }
 0x600   : >> { %1331 = vrot.lane.b32.xlu0 %v6523_v23, %s6048_s30  ;;  %1335 = vrot.lane.b32.xlu1 %v6527_v33, %s6048_s30  ;;  %v1367_v63 = vld [vmem:[#allocation3 + $0x50] sm:$0xff]  ;;  %v1368_v5 = vld [vmem:[#allocation3 + $0x68] sm:$0xff]  ;;  %v1371_v35 = vld [vmem:[#allocation3 + $0x40] sm:$0xff] }
 0x601   : >> { %1339 = vrot.lane.b32.xlu2 %v6534_v11, %s6048_s30  ;;  %v6844_v50 = vstv %s1330_s6  ;;  %v1363_v18 = vld [vmem:[#allocation3 + $0x30] sm:$0xff]  ;;  %v1365_v9 = vld [vmem:[#allocation3 + $0x58] sm:$0xff]  ;;  %v1364_v60 = vld [vmem:[#allocation3] sm:$0xff] }
 0x602   : >> { %v1374_v56 = vld [vmem:[#allocation3 + $0x38] sm:$0xff] }
 0x603   : >> { %v1366_v54 = vld [vmem:[#allocation3 + $0x18] sm:$0xff] }
 0x604   : >> { %v1377_v30 = vld [vmem:[#allocation3 + $0x78] sm:$0xff] }
 0x608   : >> { %1333 = vrot.lane.b32.xlu0 %v6525_v32, %s6048_s30  ;;  %1337 = vrot.lane.b32.xlu1 %v6532_v24, %s6048_s30 }
 0x609   : >> { %1341 = vrot.lane.b32.xlu2 %v6536_v36, %s6048_s30 }
 0x610   : >> { %1343 = vrot.lane.b32.xlu0 %v6538_v37, %s6048_s30  ;;  %1345 = vrot.lane.b32.xlu1 %v6540_v38, %s6048_s30 }
 0x611   : >> { %1347 = vrot.lane.b32.xlu2 %v6542_v39, %s6048_s30 }
 0x618   : >> { %1349 = vrot.lane.b32.xlu0 %v6544_v25, %s6048_s30  ;;  %1351 = vrot.lane.b32.xlu1 %v6546_v28, %s6048_s30 }
 0x619   : >> { %1353 = vrot.lane.b32.xlu2 %v6548_v42, %s6048_s30 }
 0x620   : >> { %1355 = vrot.lane.b32.xlu0 %v6550_v44, %s6048_s30  ;;  %1357 = vrot.lane.b32.xlu1 %v6552_v48, %s6048_s30 }
 0x621   : >> { %1359 = vrot.lane.b32.xlu2 %v6554_v49, %s6048_s30 }
 0x628   : >> { %1361 = vrot.lane.b32.xlu0 %v6556_v26, %s6048_s30 }
 0x65b   : >> { %v1340_v2 = vpop.permute.xlu2 %1339 }
 0x65c   : >> { %v1384_v0 = vmul.f32 %v6844_v50, %v1340_v2 }
 0x65e   : >> { %v1400_v3 = vadd.f32 %v1384_v0, %v1367_v63 }
 0x660   : >> { %1416 = vst [vmem:[#allocation3 + $0x50] sm:$0xff] %v1400_v3 }
 0x663   : >> { %v1342_v10 = vpop.permute.xlu2 %1341 }
 0x664   : >> { %v1385_v13 = vmul.f32 %v6844_v50, %v1342_v10  ;;  %v1369_v10 = vld [vmem:[#allocation3 + $0x8] sm:$0xff] }
 0x666   : >> { %v1401_v8 = vadd.f32 %v1385_v13, %v1368_v5 }
 0x668   : >> { %1417 = vst [vmem:[#allocation3 + $0x68] sm:$0xff] %v1401_v8  ;;  %v1370_v8 = vld [vmem:[#allocation3 + $0x48] sm:$0xff] }
 0x66b   : >> { %v1348_v15 = vpop.permute.xlu2 %1347 }
 0x66c   : >> { %v1388_v16 = vmul.f32 %v6844_v50, %v1348_v15 }
 0x66e   : >> { %v1404_v17 = vadd.f32 %v1388_v16, %v1371_v35 }
 0x670   : >> { %1420 = vst [vmem:[#allocation3 + $0x40] sm:$0xff] %v1404_v17 }
 0x672   : >> { %v1332_v20 = vpop.permute.xlu0 %1331  ;;  %v1336_v40 = vpop.permute.xlu1 %1335 }
 0x673   : >> { %v1380_v22 = vmul.f32 %v6844_v50, %v1332_v20  ;;  %v1382_v41 = vmul.f32 %v6844_v50, %v1336_v40  ;;  %v1354_v29 = vpop.permute.xlu2 %1353  ;;  %v1372_v20 = vld [vmem:[#allocation3 + $0x20] sm:$0xff]  ;;  %v1373_v40 = vld [vmem:[#allocation3 + $0x10] sm:$0xff] }
 0x674   : >> { %v1391_v52 = vmul.f32 %v6844_v50, %v1354_v29 }
 0x675   : >> { %v1396_v27 = vadd.f32 %v1380_v22, %v1363_v18  ;;  %v1398_v57 = vadd.f32 %v1382_v41, %v1365_v9 }
 0x676   : >> { %v1407_v58 = vadd.f32 %v1391_v52, %v1374_v56 }
 0x677   : >> { %1412 = vst [vmem:[#allocation3 + $0x30] sm:$0xff] %v1396_v27  ;;  %v1375_v27 = vld [vmem:[#allocation3 + $0x60] sm:$0xff] }
 0x678   : >> { %1414 = vst [vmem:[#allocation3 + $0x58] sm:$0xff] %v1398_v57 }
 0x679   : >> { %1423 = vst [vmem:[#allocation3 + $0x38] sm:$0xff] %v1407_v58  ;;  %v1376_v58 = vld [vmem:[#allocation3 + $0x70] sm:$0xff] }
 0x67a   : >> { %v1334_v19 = vpop.permute.xlu0 %1333  ;;  %v1338_v7 = vpop.permute.xlu1 %1337 }
 0x67b   : >> { %v1381_v47 = vmul.f32 %v6844_v50, %v1334_v19  ;;  %v1383_v62 = vmul.f32 %v6844_v50, %v1338_v7  ;;  %v1360_v63 = vpop.permute.xlu2 %1359 }
 0x67c   : >> { %v1394_v2 = vmul.f32 %v6844_v50, %v1360_v63 }
 0x67d   : >> { %v1397_v0 = vadd.f32 %v1381_v47, %v1364_v60  ;;  %v1399_v3 = vadd.f32 %v1383_v62, %v1366_v54  ;;  %v1378_v62 = vld [vmem:[#allocation3 + $0x28] sm:$0xff] }
 0x67e   : >> { %v1410_v5 = vadd.f32 %v1394_v2, %v1377_v30 }
 0x67f   : >> { %1413 = vst [vmem:[#allocation3] sm:$0xff] %v1397_v0 }
 0x680   : >> { %1415 = vst [vmem:[#allocation3 + $0x18] sm:$0xff] %v1399_v3 }
 0x681   : >> { %1426 = vst [vmem:[#allocation3 + $0x78] sm:$0xff] %v1410_v5 }
 0x682   : >> { %v1344_v13 = vpop.permute.xlu0 %1343  ;;  %v1346_v35 = vpop.permute.xlu1 %1345 }
 0x683   : >> { %v1386_v15 = vmul.f32 %v6844_v50, %v1344_v13  ;;  %v1387_v16 = vmul.f32 %v6844_v50, %v1346_v35 }
 0x685   : >> { %v1402_v17 = vadd.f32 %v1386_v15, %v1369_v10  ;;  %v1403_v18 = vadd.f32 %v1387_v16, %v1370_v8 }
 0x687   : >> { %1418 = vst [vmem:[#allocation3 + $0x8] sm:$0xff] %v1402_v17 }
 0x688   : >> { %1419 = vst [vmem:[#allocation3 + $0x48] sm:$0xff] %v1403_v18 }
 0x68a   : >> { %v1350_v9 = vpop.permute.xlu0 %1349  ;;  %v1352_v22 = vpop.permute.xlu1 %1351 }
 0x68b   : >> { %v1389_v41 = vmul.f32 %v6844_v50, %v1350_v9  ;;  %v1390_v56 = vmul.f32 %v6844_v50, %v1352_v22 }
 0x68d   : >> { %v1405_v29 = vadd.f32 %v1389_v41, %v1372_v20  ;;  %v1406_v52 = vadd.f32 %v1390_v56, %v1373_v40 }
 0x68f   : >> { %1421 = vst [vmem:[#allocation3 + $0x20] sm:$0xff] %v1405_v29 }
 0x690   : >> { %1422 = vst [vmem:[#allocation3 + $0x10] sm:$0xff] %v1406_v52 }
 0x692   : >> { %v1356_v57 = vpop.permute.xlu0 %1355  ;;  %v1358_v60 = vpop.permute.xlu1 %1357 }
 0x693   : >> { %v1392_v19 = vmul.f32 %v6844_v50, %v1356_v57  ;;  %v1393_v54 = vmul.f32 %v6844_v50, %v1358_v60 }
 0x695   : >> { %v1408_v7 = vadd.f32 %v1392_v19, %v1375_v27  ;;  %v1409_v47 = vadd.f32 %v1393_v54, %v1376_v58 }
 0x697   : >> { %1424 = vst [vmem:[#allocation3 + $0x60] sm:$0xff] %v1408_v7 }
 0x698   : >> { %1425 = vst [vmem:[#allocation3 + $0x70] sm:$0xff] %v1409_v47 }
 0x69a   : >> { %v1362_v30 = vpop.permute.xlu0 %1361 }
 0x69b   : >> { %v1395_v63 = vmul.f32 %v6844_v50, %v1362_v30 }
 0x69d   : >> { %v1411_v2 = vadd.f32 %v1395_v63, %v1378_v62 }
 0x69f   : >> { %1427 = vst [vmem:[#allocation3 + $0x28] sm:$0xff] %v1411_v2 }
 0x6a0 PF: >> { %p8514_p4 = scmp.lt.s32.totalorder %s6023_s15, 16 }
 0x6a1   : >> { %s6049_s7 = smov (!%p8514_p4), 16   ;;  %s1432_s8 = sadd.s32 (!%p8514_p4), 4294967280, %s6530_s26 }
 0x6a2   : >> { %1431 = sbr.rel (%p8514_p4) target bundleno = 1863 (0x747), region = 95  ;;  %s1433_s9 = sld [smem:[#allocation6 + %s1432_s8]] (!%p8514_p4) }
 0x6a7   : >> { %1434 = vrot.lane.b32.xlu0 %v6523_v23, %s6049_s7  ;;  %1438 = vrot.lane.b32.xlu1 %v6527_v33, %s6049_s7  ;;  %v1470_v0 = vld [vmem:[#allocation3 + $0x50] sm:$0xff]  ;;  %v1471_v13 = vld [vmem:[#allocation3 + $0x68] sm:$0xff]  ;;  %v1474_v16 = vld [vmem:[#allocation3 + $0x40] sm:$0xff] }
 0x6a8   : >> { %1442 = vrot.lane.b32.xlu2 %v6534_v11, %s6049_s7  ;;  %v6882_v50 = vstv %s1433_s9  ;;  %v1466_v9 = vld [vmem:[#allocation3 + $0x30] sm:$0xff]  ;;  %v1468_v22 = vld [vmem:[#allocation3 + $0x58] sm:$0xff]  ;;  %v1467_v54 = vld [vmem:[#allocation3] sm:$0xff] }
 0x6a9   : >> { %v1477_v52 = vld [vmem:[#allocation3 + $0x38] sm:$0xff] }
 0x6aa   : >> { %v1469_v47 = vld [vmem:[#allocation3 + $0x18] sm:$0xff] }
 0x6ab   : >> { %v1480_v2 = vld [vmem:[#allocation3 + $0x78] sm:$0xff] }
 0x6af   : >> { %1436 = vrot.lane.b32.xlu0 %v6525_v32, %s6049_s7  ;;  %1440 = vrot.lane.b32.xlu1 %v6532_v24, %s6049_s7 }
 0x6b0   : >> { %1444 = vrot.lane.b32.xlu2 %v6536_v36, %s6049_s7 }
 0x6b7   : >> { %1446 = vrot.lane.b32.xlu0 %v6538_v37, %s6049_s7  ;;  %1448 = vrot.lane.b32.xlu1 %v6540_v38, %s6049_s7 }
 0x6b8   : >> { %1450 = vrot.lane.b32.xlu2 %v6542_v39, %s6049_s7 }
 0x6bf   : >> { %1452 = vrot.lane.b32.xlu0 %v6544_v25, %s6049_s7  ;;  %1454 = vrot.lane.b32.xlu1 %v6546_v28, %s6049_s7 }
 0x6c0   : >> { %1456 = vrot.lane.b32.xlu2 %v6548_v42, %s6049_s7 }
 0x6c7   : >> { %1458 = vrot.lane.b32.xlu0 %v6550_v44, %s6049_s7  ;;  %1460 = vrot.lane.b32.xlu1 %v6552_v48, %s6049_s7 }
 0x6c8   : >> { %1462 = vrot.lane.b32.xlu2 %v6554_v49, %s6049_s7 }
 0x6cf   : >> { %1464 = vrot.lane.b32.xlu0 %v6556_v26, %s6049_s7 }
 0x702   : >> { %v1443_v3 = vpop.permute.xlu2 %1442 }
 0x703   : >> { %v1487_v5 = vmul.f32 %v6882_v50, %v1443_v3 }
 0x705   : >> { %v1503_v10 = vadd.f32 %v1487_v5, %v1470_v0 }
 0x707   : >> { %1519 = vst [vmem:[#allocation3 + $0x50] sm:$0xff] %v1503_v10 }
 0x70a   : >> { %v1445_v8 = vpop.permute.xlu2 %1444 }
 0x70b   : >> { %v1488_v35 = vmul.f32 %v6882_v50, %v1445_v8  ;;  %v1472_v8 = vld [vmem:[#allocation3 + $0x8] sm:$0xff] }
 0x70d   : >> { %v1504_v15 = vadd.f32 %v1488_v35, %v1471_v13 }
 0x70f   : >> { %1520 = vst [vmem:[#allocation3 + $0x68] sm:$0xff] %v1504_v15  ;;  %v1473_v15 = vld [vmem:[#allocation3 + $0x48] sm:$0xff] }
 0x712   : >> { %v1451_v17 = vpop.permute.xlu2 %1450 }
 0x713   : >> { %v1491_v18 = vmul.f32 %v6882_v50, %v1451_v17 }
 0x715   : >> { %v1507_v20 = vadd.f32 %v1491_v18, %v1474_v16 }
 0x717   : >> { %1523 = vst [vmem:[#allocation3 + $0x40] sm:$0xff] %v1507_v20 }
 0x719   : >> { %v1435_v40 = vpop.permute.xlu0 %1434  ;;  %v1439_v41 = vpop.permute.xlu1 %1438 }
 0x71a   : >> { %v1483_v56 = vmul.f32 %v6882_v50, %v1435_v40  ;;  %v1485_v29 = vmul.f32 %v6882_v50, %v1439_v41  ;;  %v1457_v27 = vpop.permute.xlu2 %1456  ;;  %v1475_v40 = vld [vmem:[#allocation3 + $0x20] sm:$0xff]  ;;  %v1476_v41 = vld [vmem:[#allocation3 + $0x10] sm:$0xff] }
 0x71b   : >> { %v1494_v57 = vmul.f32 %v6882_v50, %v1457_v27 }
 0x71c   : >> { %v1499_v58 = vadd.f32 %v1483_v56, %v1466_v9  ;;  %v1501_v60 = vadd.f32 %v1485_v29, %v1468_v22 }
 0x71d   : >> { %v1510_v19 = vadd.f32 %v1494_v57, %v1477_v52 }
 0x71e   : >> { %1515 = vst [vmem:[#allocation3 + $0x30] sm:$0xff] %v1499_v58  ;;  %v1478_v58 = vld [vmem:[#allocation3 + $0x60] sm:$0xff] }
 0x71f   : >> { %1517 = vst [vmem:[#allocation3 + $0x58] sm:$0xff] %v1501_v60 }
 0x720   : >> { %1526 = vst [vmem:[#allocation3 + $0x38] sm:$0xff] %v1510_v19  ;;  %v1479_v19 = vld [vmem:[#allocation3 + $0x70] sm:$0xff] }
 0x721   : >> { %v1437_v7 = vpop.permute.xlu0 %1436  ;;  %v1441_v62 = vpop.permute.xlu1 %1440 }
 0x722   : >> { %v1484_v30 = vmul.f32 %v6882_v50, %v1437_v7  ;;  %v1486_v63 = vmul.f32 %v6882_v50, %v1441_v62  ;;  %v1463_v0 = vpop.permute.xlu2 %1462 }
 0x723   : >> { %v1497_v3 = vmul.f32 %v6882_v50, %v1463_v0 }
 0x724   : >> { %v1500_v5 = vadd.f32 %v1484_v30, %v1467_v54  ;;  %v1502_v10 = vadd.f32 %v1486_v63, %v1469_v47  ;;  %v1481_v63 = vld [vmem:[#allocation3 + $0x28] sm:$0xff] }
 0x725   : >> { %v1513_v13 = vadd.f32 %v1497_v3, %v1480_v2 }
 0x726   : >> { %1516 = vst [vmem:[#allocation3] sm:$0xff] %v1500_v5 }
 0x727   : >> { %1518 = vst [vmem:[#allocation3 + $0x18] sm:$0xff] %v1502_v10 }
 0x728   : >> { %1529 = vst [vmem:[#allocation3 + $0x78] sm:$0xff] %v1513_v13 }
 0x729   : >> { %v1447_v35 = vpop.permute.xlu0 %1446  ;;  %v1449_v16 = vpop.permute.xlu1 %1448 }
 0x72a   : >> { %v1489_v17 = vmul.f32 %v6882_v50, %v1447_v35  ;;  %v1490_v18 = vmul.f32 %v6882_v50, %v1449_v16 }
 0x72c   : >> { %v1505_v20 = vadd.f32 %v1489_v17, %v1472_v8  ;;  %v1506_v9 = vadd.f32 %v1490_v18, %v1473_v15 }
 0x72e   : >> { %1521 = vst [vmem:[#allocation3 + $0x8] sm:$0xff] %v1505_v20 }
 0x72f   : >> { %1522 = vst [vmem:[#allocation3 + $0x48] sm:$0xff] %v1506_v9 }
 0x731   : >> { %v1453_v22 = vpop.permute.xlu0 %1452  ;;  %v1455_v56 = vpop.permute.xlu1 %1454 }
 0x732   : >> { %v1492_v29 = vmul.f32 %v6882_v50, %v1453_v22  ;;  %v1493_v52 = vmul.f32 %v6882_v50, %v1455_v56 }
 0x734   : >> { %v1508_v27 = vadd.f32 %v1492_v29, %v1475_v40  ;;  %v1509_v57 = vadd.f32 %v1493_v52, %v1476_v41 }
 0x736   : >> { %1524 = vst [vmem:[#allocation3 + $0x20] sm:$0xff] %v1508_v27 }
 0x737   : >> { %1525 = vst [vmem:[#allocation3 + $0x10] sm:$0xff] %v1509_v57 }
 0x739   : >> { %v1459_v60 = vpop.permute.xlu0 %1458  ;;  %v1461_v54 = vpop.permute.xlu1 %1460 }
 0x73a   : >> { %v1495_v7 = vmul.f32 %v6882_v50, %v1459_v60  ;;  %v1496_v47 = vmul.f32 %v6882_v50, %v1461_v54 }
 0x73c   : >> { %v1511_v62 = vadd.f32 %v1495_v7, %v1478_v58  ;;  %v1512_v30 = vadd.f32 %v1496_v47, %v1479_v19 }
 0x73e   : >> { %1527 = vst [vmem:[#allocation3 + $0x60] sm:$0xff] %v1511_v62 }
 0x73f   : >> { %1528 = vst [vmem:[#allocation3 + $0x70] sm:$0xff] %v1512_v30 }
 0x741   : >> { %v1465_v2 = vpop.permute.xlu0 %1464 }
 0x742   : >> { %v1498_v0 = vmul.f32 %v6882_v50, %v1465_v2 }
 0x744   : >> { %v1514_v3 = vadd.f32 %v1498_v0, %v1481_v63 }
 0x746   : >> { %1530 = vst [vmem:[#allocation3 + $0x28] sm:$0xff] %v1514_v3 }
 0x747 PF: >> { %p8515_p5 = scmp.lt.s32.totalorder %s6023_s15, 15 }
 0x748   : >> { %s6050_s10 = smov (!%p8515_p5), 15   ;;  %s1535_s11 = sadd.s32 (!%p8515_p5), 4294967281, %s6530_s26 }
 0x749   : >> { %1534 = sbr.rel (%p8515_p5) target bundleno = 2030 (0x7ee), region = 99  ;;  %s1536_s12 = sld [smem:[#allocation6 + %s1535_s11]] (!%p8515_p5) }
 0x74e   : >> { %1537 = vrot.lane.b32.xlu0 %v6523_v23, %s6050_s10  ;;  %1541 = vrot.lane.b32.xlu1 %v6527_v33, %s6050_s10  ;;  %v1573_v5 = vld [vmem:[#allocation3 + $0x50] sm:$0xff]  ;;  %v1574_v35 = vld [vmem:[#allocation3 + $0x68] sm:$0xff]  ;;  %v1577_v18 = vld [vmem:[#allocation3 + $0x40] sm:$0xff] }
 0x74f   : >> { %1545 = vrot.lane.b32.xlu2 %v6534_v11, %s6050_s10  ;;  %v6920_v50 = vstv %s1536_s12  ;;  %v1569_v22 = vld [vmem:[#allocation3 + $0x30] sm:$0xff]  ;;  %v1571_v56 = vld [vmem:[#allocation3 + $0x58] sm:$0xff]  ;;  %v1570_v47 = vld [vmem:[#allocation3] sm:$0xff] }
 0x750   : >> { %v1580_v57 = vld [vmem:[#allocation3 + $0x38] sm:$0xff] }
 0x751   : >> { %v1572_v30 = vld [vmem:[#allocation3 + $0x18] sm:$0xff] }
 0x752   : >> { %v1583_v3 = vld [vmem:[#allocation3 + $0x78] sm:$0xff] }
 0x756   : >> { %1539 = vrot.lane.b32.xlu0 %v6525_v32, %s6050_s10  ;;  %1543 = vrot.lane.b32.xlu1 %v6532_v24, %s6050_s10 }
 0x757   : >> { %1547 = vrot.lane.b32.xlu2 %v6536_v36, %s6050_s10 }
 0x75e   : >> { %1549 = vrot.lane.b32.xlu0 %v6538_v37, %s6050_s10  ;;  %1551 = vrot.lane.b32.xlu1 %v6540_v38, %s6050_s10 }
 0x75f   : >> { %1553 = vrot.lane.b32.xlu2 %v6542_v39, %s6050_s10 }
 0x766   : >> { %1555 = vrot.lane.b32.xlu0 %v6544_v25, %s6050_s10  ;;  %1557 = vrot.lane.b32.xlu1 %v6546_v28, %s6050_s10 }
 0x767   : >> { %1559 = vrot.lane.b32.xlu2 %v6548_v42, %s6050_s10 }
 0x76e   : >> { %1561 = vrot.lane.b32.xlu0 %v6550_v44, %s6050_s10  ;;  %1563 = vrot.lane.b32.xlu1 %v6552_v48, %s6050_s10 }
 0x76f   : >> { %1565 = vrot.lane.b32.xlu2 %v6554_v49, %s6050_s10 }
 0x776   : >> { %1567 = vrot.lane.b32.xlu0 %v6556_v26, %s6050_s10 }
 0x7a9   : >> { %v1546_v10 = vpop.permute.xlu2 %1545 }
 0x7aa   : >> { %v1590_v13 = vmul.f32 %v6920_v50, %v1546_v10 }
 0x7ac   : >> { %v1606_v8 = vadd.f32 %v1590_v13, %v1573_v5 }
 0x7ae   : >> { %1622 = vst [vmem:[#allocation3 + $0x50] sm:$0xff] %v1606_v8 }
 0x7b1   : >> { %v1548_v15 = vpop.permute.xlu2 %1547 }
 0x7b2   : >> { %v1591_v16 = vmul.f32 %v6920_v50, %v1548_v15  ;;  %v1575_v15 = vld [vmem:[#allocation3 + $0x8] sm:$0xff] }
 0x7b4   : >> { %v1607_v17 = vadd.f32 %v1591_v16, %v1574_v35 }
 0x7b6   : >> { %1623 = vst [vmem:[#allocation3 + $0x68] sm:$0xff] %v1607_v17  ;;  %v1576_v17 = vld [vmem:[#allocation3 + $0x48] sm:$0xff] }
 0x7b9   : >> { %v1554_v20 = vpop.permute.xlu2 %1553 }
 0x7ba   : >> { %v1594_v9 = vmul.f32 %v6920_v50, %v1554_v20 }
 0x7bc   : >> { %v1610_v40 = vadd.f32 %v1594_v9, %v1577_v18 }
 0x7be   : >> { %1626 = vst [vmem:[#allocation3 + $0x40] sm:$0xff] %v1610_v40 }
 0x7c0   : >> { %v1538_v41 = vpop.permute.xlu0 %1537  ;;  %v1542_v29 = vpop.permute.xlu1 %1541 }
 0x7c1   : >> { %v1586_v52 = vmul.f32 %v6920_v50, %v1538_v41  ;;  %v1588_v27 = vmul.f32 %v6920_v50, %v1542_v29  ;;  %v1560_v58 = vpop.permute.xlu2 %1559  ;;  %v1578_v41 = vld [vmem:[#allocation3 + $0x20] sm:$0xff]  ;;  %v1579_v29 = vld [vmem:[#allocation3 + $0x10] sm:$0xff] }
 0x7c2   : >> { %v1597_v60 = vmul.f32 %v6920_v50, %v1560_v58 }
 0x7c3   : >> { %v1602_v19 = vadd.f32 %v1586_v52, %v1569_v22  ;;  %v1604_v54 = vadd.f32 %v1588_v27, %v1571_v56 }
 0x7c4   : >> { %v1613_v7 = vadd.f32 %v1597_v60, %v1580_v57 }
 0x7c5   : >> { %1618 = vst [vmem:[#allocation3 + $0x30] sm:$0xff] %v1602_v19  ;;  %v1581_v19 = vld [vmem:[#allocation3 + $0x60] sm:$0xff] }
 0x7c6   : >> { %1620 = vst [vmem:[#allocation3 + $0x58] sm:$0xff] %v1604_v54 }
 0x7c7   : >> { %1629 = vst [vmem:[#allocation3 + $0x38] sm:$0xff] %v1613_v7  ;;  %v1582_v7 = vld [vmem:[#allocation3 + $0x70] sm:$0xff] }
 0x7c8   : >> { %v1540_v62 = vpop.permute.xlu0 %1539  ;;  %v1544_v63 = vpop.permute.xlu1 %1543 }
 0x7c9   : >> { %v1587_v2 = vmul.f32 %v6920_v50, %v1540_v62  ;;  %v1589_v0 = vmul.f32 %v6920_v50, %v1544_v63  ;;  %v1566_v5 = vpop.permute.xlu2 %1565 }
 0x7ca   : >> { %v1600_v10 = vmul.f32 %v6920_v50, %v1566_v5 }
 0x7cb   : >> { %v1603_v13 = vadd.f32 %v1587_v2, %v1570_v47  ;;  %v1605_v8 = vadd.f32 %v1589_v0, %v1572_v30  ;;  %v1584_v0 = vld [vmem:[#allocation3 + $0x28] sm:$0xff] }
 0x7cc   : >> { %v1616_v35 = vadd.f32 %v1600_v10, %v1583_v3 }
 0x7cd   : >> { %1619 = vst [vmem:[#allocation3] sm:$0xff] %v1603_v13 }
 0x7ce   : >> { %1621 = vst [vmem:[#allocation3 + $0x18] sm:$0xff] %v1605_v8 }
 0x7cf   : >> { %1632 = vst [vmem:[#allocation3 + $0x78] sm:$0xff] %v1616_v35 }
 0x7d0   : >> { %v1550_v16 = vpop.permute.xlu0 %1549  ;;  %v1552_v18 = vpop.permute.xlu1 %1551 }
 0x7d1   : >> { %v1592_v20 = vmul.f32 %v6920_v50, %v1550_v16  ;;  %v1593_v9 = vmul.f32 %v6920_v50, %v1552_v18 }
 0x7d3   : >> { %v1608_v40 = vadd.f32 %v1592_v20, %v1575_v15  ;;  %v1609_v22 = vadd.f32 %v1593_v9, %v1576_v17 }
 0x7d5   : >> { %1624 = vst [vmem:[#allocation3 + $0x8] sm:$0xff] %v1608_v40 }
 0x7d6   : >> { %1625 = vst [vmem:[#allocation3 + $0x48] sm:$0xff] %v1609_v22 }
 0x7d8   : >> { %v1556_v56 = vpop.permute.xlu0 %1555  ;;  %v1558_v52 = vpop.permute.xlu1 %1557 }
 0x7d9   : >> { %v1595_v27 = vmul.f32 %v6920_v50, %v1556_v56  ;;  %v1596_v57 = vmul.f32 %v6920_v50, %v1558_v52 }
 0x7db   : >> { %v1611_v58 = vadd.f32 %v1595_v27, %v1578_v41  ;;  %v1612_v60 = vadd.f32 %v1596_v57, %v1579_v29 }
 0x7dd   : >> { %1627 = vst [vmem:[#allocation3 + $0x20] sm:$0xff] %v1611_v58 }
 0x7de   : >> { %1628 = vst [vmem:[#allocation3 + $0x10] sm:$0xff] %v1612_v60 }
 0x7e0   : >> { %v1562_v54 = vpop.permute.xlu0 %1561  ;;  %v1564_v47 = vpop.permute.xlu1 %1563 }
 0x7e1   : >> { %v1598_v62 = vmul.f32 %v6920_v50, %v1562_v54  ;;  %v1599_v30 = vmul.f32 %v6920_v50, %v1564_v47 }
 0x7e3   : >> { %v1614_v63 = vadd.f32 %v1598_v62, %v1581_v19  ;;  %v1615_v2 = vadd.f32 %v1599_v30, %v1582_v7 }
 0x7e5   : >> { %1630 = vst [vmem:[#allocation3 + $0x60] sm:$0xff] %v1614_v63 }
 0x7e6   : >> { %1631 = vst [vmem:[#allocation3 + $0x70] sm:$0xff] %v1615_v2 }
 0x7e8   : >> { %v1568_v3 = vpop.permute.xlu0 %1567 }
 0x7e9   : >> { %v1601_v5 = vmul.f32 %v6920_v50, %v1568_v3 }
 0x7eb   : >> { %v1617_v10 = vadd.f32 %v1601_v5, %v1584_v0 }
 0x7ed   : >> { %1633 = vst [vmem:[#allocation3 + $0x28] sm:$0xff] %v1617_v10 }
 0x7ee PF: >> { %p8516_p6 = scmp.lt.s32.totalorder %s6023_s15, 14 }
 0x7ef   : >> { %s6051_s13 = smov (!%p8516_p6), 14   ;;  %s1638_s21 = sadd.s32 (!%p8516_p6), 4294967282, %s6530_s26 }
 0x7f0   : >> { %1637 = sbr.rel (%p8516_p6) target bundleno = 2197 (0x895), region = 103  ;;  %s1639_s22 = sld [smem:[#allocation6 + %s1638_s21]] (!%p8516_p6) }
 0x7f5   : >> { %1640 = vrot.lane.b32.xlu0 %v6523_v23, %s6051_s13  ;;  %1644 = vrot.lane.b32.xlu1 %v6527_v33, %s6051_s13  ;;  %v1676_v13 = vld [vmem:[#allocation3 + $0x50] sm:$0xff]  ;;  %v1677_v16 = vld [vmem:[#allocation3 + $0x68] sm:$0xff]  ;;  %v1680_v9 = vld [vmem:[#allocation3 + $0x40] sm:$0xff] }
 0x7f6   : >> { %1648 = vrot.lane.b32.xlu2 %v6534_v11, %s6051_s13  ;;  %v6958_v50 = vstv %s1639_s22  ;;  %v1672_v56 = vld [vmem:[#allocation3 + $0x30] sm:$0xff]  ;;  %v1674_v52 = vld [vmem:[#allocation3 + $0x58] sm:$0xff]  ;;  %v1673_v30 = vld [vmem:[#allocation3] sm:$0xff] }
 0x7f7   : >> { %v1683_v60 = vld [vmem:[#allocation3 + $0x38] sm:$0xff] }
 0x7f8   : >> { %v1675_v2 = vld [vmem:[#allocation3 + $0x18] sm:$0xff] }
 0x7f9   : >> { %v1686_v10 = vld [vmem:[#allocation3 + $0x78] sm:$0xff] }
 0x7fd   : >> { %1642 = vrot.lane.b32.xlu0 %v6525_v32, %s6051_s13  ;;  %1646 = vrot.lane.b32.xlu1 %v6532_v24, %s6051_s13 }
 0x7fe   : >> { %1650 = vrot.lane.b32.xlu2 %v6536_v36, %s6051_s13 }
 0x805   : >> { %1652 = vrot.lane.b32.xlu0 %v6538_v37, %s6051_s13  ;;  %1654 = vrot.lane.b32.xlu1 %v6540_v38, %s6051_s13 }
 0x806   : >> { %1656 = vrot.lane.b32.xlu2 %v6542_v39, %s6051_s13 }
 0x80d   : >> { %1658 = vrot.lane.b32.xlu0 %v6544_v25, %s6051_s13  ;;  %1660 = vrot.lane.b32.xlu1 %v6546_v28, %s6051_s13 }
 0x80e   : >> { %1662 = vrot.lane.b32.xlu2 %v6548_v42, %s6051_s13 }
 0x815   : >> { %1664 = vrot.lane.b32.xlu0 %v6550_v44, %s6051_s13  ;;  %1666 = vrot.lane.b32.xlu1 %v6552_v48, %s6051_s13 }
 0x816   : >> { %1668 = vrot.lane.b32.xlu2 %v6554_v49, %s6051_s13 }
 0x81d   : >> { %1670 = vrot.lane.b32.xlu0 %v6556_v26, %s6051_s13 }
 0x850   : >> { %v1649_v8 = vpop.permute.xlu2 %1648 }
 0x851   : >> { %v1693_v35 = vmul.f32 %v6958_v50, %v1649_v8 }
 0x853   : >> { %v1709_v15 = vadd.f32 %v1693_v35, %v1676_v13 }
 0x855   : >> { %1725 = vst [vmem:[#allocation3 + $0x50] sm:$0xff] %v1709_v15 }
 0x858   : >> { %v1651_v17 = vpop.permute.xlu2 %1650 }
 0x859   : >> { %v1694_v18 = vmul.f32 %v6958_v50, %v1651_v17  ;;  %v1678_v17 = vld [vmem:[#allocation3 + $0x8] sm:$0xff] }
 0x85b   : >> { %v1710_v20 = vadd.f32 %v1694_v18, %v1677_v16 }
 0x85d   : >> { %1726 = vst [vmem:[#allocation3 + $0x68] sm:$0xff] %v1710_v20  ;;  %v1679_v20 = vld [vmem:[#allocation3 + $0x48] sm:$0xff] }
 0x860   : >> { %v1657_v40 = vpop.permute.xlu2 %1656 }
 0x861   : >> { %v1697_v22 = vmul.f32 %v6958_v50, %v1657_v40 }
 0x863   : >> { %v1713_v41 = vadd.f32 %v1697_v22, %v1680_v9 }
 0x865   : >> { %1729 = vst [vmem:[#allocation3 + $0x40] sm:$0xff] %v1713_v41 }
 0x867   : >> { %v1641_v29 = vpop.permute.xlu0 %1640  ;;  %v1645_v27 = vpop.permute.xlu1 %1644 }
 0x868   : >> { %v1689_v57 = vmul.f32 %v6958_v50, %v1641_v29  ;;  %v1691_v58 = vmul.f32 %v6958_v50, %v1645_v27  ;;  %v1663_v19 = vpop.permute.xlu2 %1662  ;;  %v1681_v29 = vld [vmem:[#allocation3 + $0x20] sm:$0xff]  ;;  %v1682_v27 = vld [vmem:[#allocation3 + $0x10] sm:$0xff] }
 0x869   : >> { %v1700_v54 = vmul.f32 %v6958_v50, %v1663_v19 }
 0x86a   : >> { %v1705_v7 = vadd.f32 %v1689_v57, %v1672_v56  ;;  %v1707_v47 = vadd.f32 %v1691_v58, %v1674_v52 }
 0x86b   : >> { %v1716_v62 = vadd.f32 %v1700_v54, %v1683_v60 }
 0x86c   : >> { %1721 = vst [vmem:[#allocation3 + $0x30] sm:$0xff] %v1705_v7  ;;  %v1684_v7 = vld [vmem:[#allocation3 + $0x60] sm:$0xff] }
 0x86d   : >> { %1723 = vst [vmem:[#allocation3 + $0x58] sm:$0xff] %v1707_v47 }
 0x86e   : >> { %1732 = vst [vmem:[#allocation3 + $0x38] sm:$0xff] %v1716_v62  ;;  %v1685_v62 = vld [vmem:[#allocation3 + $0x70] sm:$0xff] }
 0x86f   : >> { %v1643_v63 = vpop.permute.xlu0 %1642  ;;  %v1647_v0 = vpop.permute.xlu1 %1646 }
 0x870   : >> { %v1690_v3 = vmul.f32 %v6958_v50, %v1643_v63  ;;  %v1692_v5 = vmul.f32 %v6958_v50, %v1647_v0  ;;  %v1669_v13 = vpop.permute.xlu2 %1668 }
 0x871   : >> { %v1703_v8 = vmul.f32 %v6958_v50, %v1669_v13 }
 0x872   : >> { %v1706_v35 = vadd.f32 %v1690_v3, %v1673_v30  ;;  %v1708_v15 = vadd.f32 %v1692_v5, %v1675_v2  ;;  %v1687_v5 = vld [vmem:[#allocation3 + $0x28] sm:$0xff] }
 0x873   : >> { %v1719_v16 = vadd.f32 %v1703_v8, %v1686_v10 }
 0x874   : >> { %1722 = vst [vmem:[#allocation3] sm:$0xff] %v1706_v35 }
 0x875   : >> { %1724 = vst [vmem:[#allocation3 + $0x18] sm:$0xff] %v1708_v15 }
 0x876   : >> { %1735 = vst [vmem:[#allocation3 + $0x78] sm:$0xff] %v1719_v16 }
 0x877   : >> { %v1653_v18 = vpop.permute.xlu0 %1652  ;;  %v1655_v9 = vpop.permute.xlu1 %1654 }
 0x878   : >> { %v1695_v40 = vmul.f32 %v6958_v50, %v1653_v18  ;;  %v1696_v22 = vmul.f32 %v6958_v50, %v1655_v9 }
 0x87a   : >> { %v1711_v41 = vadd.f32 %v1695_v40, %v1678_v17  ;;  %v1712_v56 = vadd.f32 %v1696_v22, %v1679_v20 }
 0x87c   : >> { %1727 = vst [vmem:[#allocation3 + $0x8] sm:$0xff] %v1711_v41 }
 0x87d   : >> { %1728 = vst [vmem:[#allocation3 + $0x48] sm:$0xff] %v1712_v56 }
 0x87f   : >> { %v1659_v52 = vpop.permute.xlu0 %1658  ;;  %v1661_v57 = vpop.permute.xlu1 %1660 }
 0x880   : >> { %v1698_v58 = vmul.f32 %v6958_v50, %v1659_v52  ;;  %v1699_v60 = vmul.f32 %v6958_v50, %v1661_v57 }
 0x882   : >> { %v1714_v19 = vadd.f32 %v1698_v58, %v1681_v29  ;;  %v1715_v54 = vadd.f32 %v1699_v60, %v1682_v27 }
 0x884   : >> { %1730 = vst [vmem:[#allocation3 + $0x20] sm:$0xff] %v1714_v19 }
 0x885   : >> { %1731 = vst [vmem:[#allocation3 + $0x10] sm:$0xff] %v1715_v54 }
 0x887   : >> { %v1665_v47 = vpop.permute.xlu0 %1664  ;;  %v1667_v30 = vpop.permute.xlu1 %1666 }
 0x888   : >> { %v1701_v63 = vmul.f32 %v6958_v50, %v1665_v47  ;;  %v1702_v2 = vmul.f32 %v6958_v50, %v1667_v30 }
 0x88a   : >> { %v1717_v0 = vadd.f32 %v1701_v63, %v1684_v7  ;;  %v1718_v3 = vadd.f32 %v1702_v2, %v1685_v62 }
 0x88c   : >> { %1733 = vst [vmem:[#allocation3 + $0x60] sm:$0xff] %v1717_v0 }
 0x88d   : >> { %1734 = vst [vmem:[#allocation3 + $0x70] sm:$0xff] %v1718_v3 }
 0x88f   : >> { %v1671_v10 = vpop.permute.xlu0 %1670 }
 0x890   : >> { %v1704_v13 = vmul.f32 %v6958_v50, %v1671_v10 }
 0x892   : >> { %v1720_v8 = vadd.f32 %v1704_v13, %v1687_v5 }
 0x894   : >> { %1736 = vst [vmem:[#allocation3 + $0x28] sm:$0xff] %v1720_v8 }
 0x895 PF: >> { %p5821_p7 = scmp.lt.s32.totalorder %s6023_s15, 13 }
 0x896   : >> { %s6052_s23 = smov (!%p5821_p7), 13   ;;  %s1741_s24 = sadd.s32 (!%p5821_p7), 4294967283, %s6530_s26 }
 0x897   : >> { %1740 = sbr.rel (%p5821_p7) target bundleno = 2364 (0x93c), region = 107  ;;  %s1742_s25 = sld [smem:[#allocation6 + %s1741_s24]] (!%p5821_p7) }
 0x89c   : >> { %1743 = vrot.lane.b32.xlu0 %v6523_v23, %s6052_s23  ;;  %1747 = vrot.lane.b32.xlu1 %v6527_v33, %s6052_s23  ;;  %v1779_v35 = vld [vmem:[#allocation3 + $0x50] sm:$0xff]  ;;  %v1780_v18 = vld [vmem:[#allocation3 + $0x68] sm:$0xff]  ;;  %v1783_v22 = vld [vmem:[#allocation3 + $0x40] sm:$0xff] }
 0x89d   : >> { %1751 = vrot.lane.b32.xlu2 %v6534_v11, %s6052_s23  ;;  %v6996_v50 = vstv %s1742_s25  ;;  %v1775_v52 = vld [vmem:[#allocation3 + $0x30] sm:$0xff]  ;;  %v1777_v57 = vld [vmem:[#allocation3 + $0x58] sm:$0xff]  ;;  %v1776_v2 = vld [vmem:[#allocation3] sm:$0xff] }
 0x89e   : >> { %v1786_v54 = vld [vmem:[#allocation3 + $0x38] sm:$0xff] }
 0x89f   : >> { %v1778_v3 = vld [vmem:[#allocation3 + $0x18] sm:$0xff] }
 0x8a0   : >> { %v1789_v8 = vld [vmem:[#allocation3 + $0x78] sm:$0xff] }
 0x8a4   : >> { %1745 = vrot.lane.b32.xlu0 %v6525_v32, %s6052_s23  ;;  %1749 = vrot.lane.b32.xlu1 %v6532_v24, %s6052_s23 }
 0x8a5   : >> { %1753 = vrot.lane.b32.xlu2 %v6536_v36, %s6052_s23 }
 0x8ac   : >> { %1755 = vrot.lane.b32.xlu0 %v6538_v37, %s6052_s23  ;;  %1757 = vrot.lane.b32.xlu1 %v6540_v38, %s6052_s23 }
 0x8ad   : >> { %1759 = vrot.lane.b32.xlu2 %v6542_v39, %s6052_s23 }
 0x8b4   : >> { %1761 = vrot.lane.b32.xlu0 %v6544_v25, %s6052_s23  ;;  %1763 = vrot.lane.b32.xlu1 %v6546_v28, %s6052_s23 }
 0x8b5   : >> { %1765 = vrot.lane.b32.xlu2 %v6548_v42, %s6052_s23 }
 0x8bc   : >> { %1767 = vrot.lane.b32.xlu0 %v6550_v44, %s6052_s23  ;;  %1769 = vrot.lane.b32.xlu1 %v6552_v48, %s6052_s23 }
 0x8bd   : >> { %1771 = vrot.lane.b32.xlu2 %v6554_v49, %s6052_s23 }
 0x8c4   : >> { %1773 = vrot.lane.b32.xlu0 %v6556_v26, %s6052_s23 }
 0x8f7   : >> { %v1752_v15 = vpop.permute.xlu2 %1751 }
 0x8f8   : >> { %v1796_v16 = vmul.f32 %v6996_v50, %v1752_v15 }
 0x8fa   : >> { %v1812_v17 = vadd.f32 %v1796_v16, %v1779_v35 }
 0x8fc   : >> { %1828 = vst [vmem:[#allocation3 + $0x50] sm:$0xff] %v1812_v17 }
 0x8ff   : >> { %v1754_v20 = vpop.permute.xlu2 %1753 }
 0x900   : >> { %v1797_v9 = vmul.f32 %v6996_v50, %v1754_v20  ;;  %v1781_v20 = vld [vmem:[#allocation3 + $0x8] sm:$0xff] }
 0x902   : >> { %v1813_v40 = vadd.f32 %v1797_v9, %v1780_v18 }
 0x904   : >> { %1829 = vst [vmem:[#allocation3 + $0x68] sm:$0xff] %v1813_v40  ;;  %v1782_v40 = vld [vmem:[#allocation3 + $0x48] sm:$0xff] }
 0x907   : >> { %v1760_v41 = vpop.permute.xlu2 %1759 }
 0x908   : >> { %v1800_v56 = vmul.f32 %v6996_v50, %v1760_v41 }
 0x90a   : >> { %v1816_v29 = vadd.f32 %v1800_v56, %v1783_v22 }
 0x90c   : >> { %1832 = vst [vmem:[#allocation3 + $0x40] sm:$0xff] %v1816_v29 }
 0x90e   : >> { %v1744_v27 = vpop.permute.xlu0 %1743  ;;  %v1748_v58 = vpop.permute.xlu1 %1747 }
 0x90f   : >> { %v1792_v60 = vmul.f32 %v6996_v50, %v1744_v27  ;;  %v1794_v19 = vmul.f32 %v6996_v50, %v1748_v58  ;;  %v1766_v7 = vpop.permute.xlu2 %1765  ;;  %v1784_v27 = vld [vmem:[#allocation3 + $0x20] sm:$0xff]  ;;  %v1785_v58 = vld [vmem:[#allocation3 + $0x10] sm:$0xff] }
 0x910   : >> { %v1803_v47 = vmul.f32 %v6996_v50, %v1766_v7 }
 0x911   : >> { %v1808_v62 = vadd.f32 %v1792_v60, %v1775_v52  ;;  %v1810_v30 = vadd.f32 %v1794_v19, %v1777_v57 }
 0x912   : >> { %v1819_v63 = vadd.f32 %v1803_v47, %v1786_v54 }
 0x913   : >> { %1824 = vst [vmem:[#allocation3 + $0x30] sm:$0xff] %v1808_v62  ;;  %v1787_v62 = vld [vmem:[#allocation3 + $0x60] sm:$0xff] }
 0x914   : >> { %1826 = vst [vmem:[#allocation3 + $0x58] sm:$0xff] %v1810_v30 }
 0x915   : >> { %1835 = vst [vmem:[#allocation3 + $0x38] sm:$0xff] %v1819_v63  ;;  %v1788_v63 = vld [vmem:[#allocation3 + $0x70] sm:$0xff] }
 0x916   : >> { %v1746_v0 = vpop.permute.xlu0 %1745  ;;  %v1750_v5 = vpop.permute.xlu1 %1749 }
 0x917   : >> { %v1793_v10 = vmul.f32 %v6996_v50, %v1746_v0  ;;  %v1795_v13 = vmul.f32 %v6996_v50, %v1750_v5  ;;  %v1772_v35 = vpop.permute.xlu2 %1771 }
 0x918   : >> { %v1806_v15 = vmul.f32 %v6996_v50, %v1772_v35 }
 0x919   : >> { %v1809_v16 = vadd.f32 %v1793_v10, %v1776_v2  ;;  %v1811_v17 = vadd.f32 %v1795_v13, %v1778_v3  ;;  %v1790_v13 = vld [vmem:[#allocation3 + $0x28] sm:$0xff] }
 0x91a   : >> { %v1822_v18 = vadd.f32 %v1806_v15, %v1789_v8 }
 0x91b   : >> { %1825 = vst [vmem:[#allocation3] sm:$0xff] %v1809_v16 }
 0x91c   : >> { %1827 = vst [vmem:[#allocation3 + $0x18] sm:$0xff] %v1811_v17 }
 0x91d   : >> { %1838 = vst [vmem:[#allocation3 + $0x78] sm:$0xff] %v1822_v18 }
 0x91e   : >> { %v1756_v9 = vpop.permute.xlu0 %1755  ;;  %v1758_v22 = vpop.permute.xlu1 %1757 }
 0x91f   : >> { %v1798_v41 = vmul.f32 %v6996_v50, %v1756_v9  ;;  %v1799_v56 = vmul.f32 %v6996_v50, %v1758_v22 }
 0x921   : >> { %v1814_v29 = vadd.f32 %v1798_v41, %v1781_v20  ;;  %v1815_v52 = vadd.f32 %v1799_v56, %v1782_v40 }
 0x923   : >> { %1830 = vst [vmem:[#allocation3 + $0x8] sm:$0xff] %v1814_v29 }
 0x924   : >> { %1831 = vst [vmem:[#allocation3 + $0x48] sm:$0xff] %v1815_v52 }
 0x926   : >> { %v1762_v57 = vpop.permute.xlu0 %1761  ;;  %v1764_v60 = vpop.permute.xlu1 %1763 }
 0x927   : >> { %v1801_v19 = vmul.f32 %v6996_v50, %v1762_v57  ;;  %v1802_v54 = vmul.f32 %v6996_v50, %v1764_v60 }
 0x929   : >> { %v1817_v7 = vadd.f32 %v1801_v19, %v1784_v27  ;;  %v1818_v47 = vadd.f32 %v1802_v54, %v1785_v58 }
 0x92b   : >> { %1833 = vst [vmem:[#allocation3 + $0x20] sm:$0xff] %v1817_v7 }
 0x92c   : >> { %1834 = vst [vmem:[#allocation3 + $0x10] sm:$0xff] %v1818_v47 }
 0x92e   : >> { %v1768_v30 = vpop.permute.xlu0 %1767  ;;  %v1770_v2 = vpop.permute.xlu1 %1769 }
 0x92f   : >> { %v1804_v0 = vmul.f32 %v6996_v50, %v1768_v30  ;;  %v1805_v3 = vmul.f32 %v6996_v50, %v1770_v2 }
 0x931   : >> { %v1820_v5 = vadd.f32 %v1804_v0, %v1787_v62  ;;  %v1821_v10 = vadd.f32 %v1805_v3, %v1788_v63 }
 0x933   : >> { %1836 = vst [vmem:[#allocation3 + $0x60] sm:$0xff] %v1820_v5 }
 0x934   : >> { %1837 = vst [vmem:[#allocation3 + $0x70] sm:$0xff] %v1821_v10 }
 0x936   : >> { %v1774_v8 = vpop.permute.xlu0 %1773 }
 0x937   : >> { %v1807_v35 = vmul.f32 %v6996_v50, %v1774_v8 }
 0x939   : >> { %v1823_v15 = vadd.f32 %v1807_v35, %v1790_v13 }
 0x93b   : >> { %1839 = vst [vmem:[#allocation3 + $0x28] sm:$0xff] %v1823_v15 }
 0x93c PF: >> { %p5822_p8 = scmp.lt.s32.totalorder %s6023_s15, 12 }
 0x93d   : >> { %s6053_s27 = smov (!%p5822_p8), 12   ;;  %s1844_s28 = sadd.s32 (!%p5822_p8), 4294967284, %s6530_s26 }
 0x93e   : >> { %1843 = sbr.rel (%p5822_p8) target bundleno = 2531 (0x9e3), region = 111  ;;  %s1845_s29 = sld [smem:[#allocation6 + %s1844_s28]] (!%p5822_p8) }
 0x943   : >> { %1846 = vrot.lane.b32.xlu0 %v6523_v23, %s6053_s27  ;;  %1850 = vrot.lane.b32.xlu1 %v6527_v33, %s6053_s27  ;;  %v1882_v16 = vld [vmem:[#allocation3 + $0x50] sm:$0xff]  ;;  %v1883_v9 = vld [vmem:[#allocation3 + $0x68] sm:$0xff]  ;;  %v1886_v56 = vld [vmem:[#allocation3 + $0x40] sm:$0xff] }
 0x944   : >> { %1854 = vrot.lane.b32.xlu2 %v6534_v11, %s6053_s27  ;;  %v7034_v50 = vstv %s1845_s29  ;;  %v1878_v57 = vld [vmem:[#allocation3 + $0x30] sm:$0xff]  ;;  %v1880_v60 = vld [vmem:[#allocation3 + $0x58] sm:$0xff]  ;;  %v1879_v3 = vld [vmem:[#allocation3] sm:$0xff] }
 0x945   : >> { %v1889_v47 = vld [vmem:[#allocation3 + $0x38] sm:$0xff] }
 0x946   : >> { %v1881_v10 = vld [vmem:[#allocation3 + $0x18] sm:$0xff] }
 0x947   : >> { %v1892_v15 = vld [vmem:[#allocation3 + $0x78] sm:$0xff] }
 0x94b   : >> { %1848 = vrot.lane.b32.xlu0 %v6525_v32, %s6053_s27  ;;  %1852 = vrot.lane.b32.xlu1 %v6532_v24, %s6053_s27 }
 0x94c   : >> { %1856 = vrot.lane.b32.xlu2 %v6536_v36, %s6053_s27 }
 0x953   : >> { %1858 = vrot.lane.b32.xlu0 %v6538_v37, %s6053_s27  ;;  %1860 = vrot.lane.b32.xlu1 %v6540_v38, %s6053_s27 }
 0x954   : >> { %1862 = vrot.lane.b32.xlu2 %v6542_v39, %s6053_s27 }
 0x95b   : >> { %1864 = vrot.lane.b32.xlu0 %v6544_v25, %s6053_s27  ;;  %1866 = vrot.lane.b32.xlu1 %v6546_v28, %s6053_s27 }
 0x95c   : >> { %1868 = vrot.lane.b32.xlu2 %v6548_v42, %s6053_s27 }
 0x963   : >> { %1870 = vrot.lane.b32.xlu0 %v6550_v44, %s6053_s27  ;;  %1872 = vrot.lane.b32.xlu1 %v6552_v48, %s6053_s27 }
 0x964   : >> { %1874 = vrot.lane.b32.xlu2 %v6554_v49, %s6053_s27 }
 0x96b   : >> { %1876 = vrot.lane.b32.xlu0 %v6556_v26, %s6053_s27 }
 0x99e   : >> { %v1855_v17 = vpop.permute.xlu2 %1854 }
 0x99f   : >> { %v1899_v18 = vmul.f32 %v7034_v50, %v1855_v17 }
 0x9a1   : >> { %v1915_v20 = vadd.f32 %v1899_v18, %v1882_v16 }
 0x9a3   : >> { %1931 = vst [vmem:[#allocation3 + $0x50] sm:$0xff] %v1915_v20 }
 0x9a6   : >> { %v1857_v40 = vpop.permute.xlu2 %1856 }
 0x9a7   : >> { %v1900_v22 = vmul.f32 %v7034_v50, %v1857_v40  ;;  %v1884_v40 = vld [vmem:[#allocation3 + $0x8] sm:$0xff] }
 0x9a9   : >> { %v1916_v41 = vadd.f32 %v1900_v22, %v1883_v9 }
 0x9ab   : >> { %1932 = vst [vmem:[#allocation3 + $0x68] sm:$0xff] %v1916_v41  ;;  %v1885_v41 = vld [vmem:[#allocation3 + $0x48] sm:$0xff] }
 0x9ae   : >> { %v1863_v29 = vpop.permute.xlu2 %1862 }
 0x9af   : >> { %v1903_v52 = vmul.f32 %v7034_v50, %v1863_v29 }
 0x9b1   : >> { %v1919_v27 = vadd.f32 %v1903_v52, %v1886_v56 }
 0x9b3   : >> { %1935 = vst [vmem:[#allocation3 + $0x40] sm:$0xff] %v1919_v27 }
 0x9b5   : >> { %v1847_v58 = vpop.permute.xlu0 %1846  ;;  %v1851_v19 = vpop.permute.xlu1 %1850 }
 0x9b6   : >> { %v1895_v54 = vmul.f32 %v7034_v50, %v1847_v58  ;;  %v1897_v7 = vmul.f32 %v7034_v50, %v1851_v19  ;;  %v1869_v62 = vpop.permute.xlu2 %1868  ;;  %v1887_v58 = vld [vmem:[#allocation3 + $0x20] sm:$0xff]  ;;  %v1888_v19 = vld [vmem:[#allocation3 + $0x10] sm:$0xff] }
 0x9b7   : >> { %v1906_v30 = vmul.f32 %v7034_v50, %v1869_v62 }
 0x9b8   : >> { %v1911_v63 = vadd.f32 %v1895_v54, %v1878_v57  ;;  %v1913_v2 = vadd.f32 %v1897_v7, %v1880_v60 }
 0x9b9   : >> { %v1922_v0 = vadd.f32 %v1906_v30, %v1889_v47 }
 0x9ba   : >> { %1927 = vst [vmem:[#allocation3 + $0x30] sm:$0xff] %v1911_v63  ;;  %v1890_v63 = vld [vmem:[#allocation3 + $0x60] sm:$0xff] }
 0x9bb   : >> { %1929 = vst [vmem:[#allocation3 + $0x58] sm:$0xff] %v1913_v2 }
 0x9bc   : >> { %1938 = vst [vmem:[#allocation3 + $0x38] sm:$0xff] %v1922_v0  ;;  %v1891_v0 = vld [vmem:[#allocation3 + $0x70] sm:$0xff] }
 0x9bd   : >> { %v1849_v5 = vpop.permute.xlu0 %1848  ;;  %v1853_v13 = vpop.permute.xlu1 %1852 }
 0x9be   : >> { %v1896_v8 = vmul.f32 %v7034_v50, %v1849_v5  ;;  %v1898_v35 = vmul.f32 %v7034_v50, %v1853_v13  ;;  %v1875_v16 = vpop.permute.xlu2 %1874 }
 0x9bf   : >> { %v1909_v17 = vmul.f32 %v7034_v50, %v1875_v16 }
 0x9c0   : >> { %v1912_v18 = vadd.f32 %v1896_v8, %v1879_v3  ;;  %v1914_v20 = vadd.f32 %v1898_v35, %v1881_v10  ;;  %v1893_v35 = vld [vmem:[#allocation3 + $0x28] sm:$0xff] }
 0x9c1   : >> { %v1925_v9 = vadd.f32 %v1909_v17, %v1892_v15 }
 0x9c2   : >> { %1928 = vst [vmem:[#allocation3] sm:$0xff] %v1912_v18 }
 0x9c3   : >> { %1930 = vst [vmem:[#allocation3 + $0x18] sm:$0xff] %v1914_v20 }
 0x9c4   : >> { %1941 = vst [vmem:[#allocation3 + $0x78] sm:$0xff] %v1925_v9 }
 0x9c5   : >> { %v1859_v22 = vpop.permute.xlu0 %1858  ;;  %v1861_v56 = vpop.permute.xlu1 %1860 }
 0x9c6   : >> { %v1901_v29 = vmul.f32 %v7034_v50, %v1859_v22  ;;  %v1902_v52 = vmul.f32 %v7034_v50, %v1861_v56 }
 0x9c8   : >> { %v1917_v27 = vadd.f32 %v1901_v29, %v1884_v40  ;;  %v1918_v57 = vadd.f32 %v1902_v52, %v1885_v41 }
 0x9ca   : >> { %1933 = vst [vmem:[#allocation3 + $0x8] sm:$0xff] %v1917_v27 }
 0x9cb   : >> { %1934 = vst [vmem:[#allocation3 + $0x48] sm:$0xff] %v1918_v57 }
 0x9cd   : >> { %v1865_v60 = vpop.permute.xlu0 %1864  ;;  %v1867_v54 = vpop.permute.xlu1 %1866 }
 0x9ce   : >> { %v1904_v7 = vmul.f32 %v7034_v50, %v1865_v60  ;;  %v1905_v47 = vmul.f32 %v7034_v50, %v1867_v54 }
 0x9d0   : >> { %v1920_v62 = vadd.f32 %v1904_v7, %v1887_v58  ;;  %v1921_v30 = vadd.f32 %v1905_v47, %v1888_v19 }
 0x9d2   : >> { %1936 = vst [vmem:[#allocation3 + $0x20] sm:$0xff] %v1920_v62 }
 0x9d3   : >> { %1937 = vst [vmem:[#allocation3 + $0x10] sm:$0xff] %v1921_v30 }
 0x9d5   : >> { %v1871_v2 = vpop.permute.xlu0 %1870  ;;  %v1873_v3 = vpop.permute.xlu1 %1872 }
 0x9d6   : >> { %v1907_v5 = vmul.f32 %v7034_v50, %v1871_v2  ;;  %v1908_v10 = vmul.f32 %v7034_v50, %v1873_v3 }
 0x9d8   : >> { %v1923_v13 = vadd.f32 %v1907_v5, %v1890_v63  ;;  %v1924_v8 = vadd.f32 %v1908_v10, %v1891_v0 }
 0x9da   : >> { %1939 = vst [vmem:[#allocation3 + $0x60] sm:$0xff] %v1923_v13 }
 0x9db   : >> { %1940 = vst [vmem:[#allocation3 + $0x70] sm:$0xff] %v1924_v8 }
 0x9dd   : >> { %v1877_v15 = vpop.permute.xlu0 %1876 }
 0x9de   : >> { %v1910_v16 = vmul.f32 %v7034_v50, %v1877_v15 }
 0x9e0   : >> { %v1926_v17 = vadd.f32 %v1910_v16, %v1893_v35 }
 0x9e2   : >> { %1942 = vst [vmem:[#allocation3 + $0x28] sm:$0xff] %v1926_v17 }
 0x9e3 PF: >> { %p5823_p9 = scmp.lt.s32.totalorder %s6023_s15, 11 }
 0x9e4   : >> { %s6054_s30 = smov (!%p5823_p9), 11   ;;  %s1947_s5 = sadd.s32 (!%p5823_p9), 4294967285, %s6530_s26 }
 0x9e5   : >> { %1946 = sbr.rel (%p5823_p9) target bundleno = 2698 (0xa8a), region = 115  ;;  %s1948_s6 = sld [smem:[#allocation6 + %s1947_s5]] (!%p5823_p9) }
 0x9ea   : >> { %1949 = vrot.lane.b32.xlu0 %v6523_v23, %s6054_s30  ;;  %1953 = vrot.lane.b32.xlu1 %v6527_v33, %s6054_s30  ;;  %v1985_v18 = vld [vmem:[#allocation3 + $0x50] sm:$0xff]  ;;  %v1986_v22 = vld [vmem:[#allocation3 + $0x68] sm:$0xff]  ;;  %v1989_v52 = vld [vmem:[#allocation3 + $0x40] sm:$0xff] }
 0x9eb   : >> { %1957 = vrot.lane.b32.xlu2 %v6534_v11, %s6054_s30  ;;  %v7072_v50 = vstv %s1948_s6  ;;  %v1981_v60 = vld [vmem:[#allocation3 + $0x30] sm:$0xff]  ;;  %v1983_v54 = vld [vmem:[#allocation3 + $0x58] sm:$0xff]  ;;  %v1982_v10 = vld [vmem:[#allocation3] sm:$0xff] }
 0x9ec   : >> { %v1992_v30 = vld [vmem:[#allocation3 + $0x38] sm:$0xff] }
 0x9ed   : >> { %v1984_v8 = vld [vmem:[#allocation3 + $0x18] sm:$0xff] }
 0x9ee   : >> { %v1995_v17 = vld [vmem:[#allocation3 + $0x78] sm:$0xff] }
 0x9f2   : >> { %1951 = vrot.lane.b32.xlu0 %v6525_v32, %s6054_s30  ;;  %1955 = vrot.lane.b32.xlu1 %v6532_v24, %s6054_s30 }
 0x9f3   : >> { %1959 = vrot.lane.b32.xlu2 %v6536_v36, %s6054_s30 }
 0x9fa   : >> { %1961 = vrot.lane.b32.xlu0 %v6538_v37, %s6054_s30  ;;  %1963 = vrot.lane.b32.xlu1 %v6540_v38, %s6054_s30 }
 0x9fb   : >> { %1965 = vrot.lane.b32.xlu2 %v6542_v39, %s6054_s30 }
 0xa02   : >> { %1967 = vrot.lane.b32.xlu0 %v6544_v25, %s6054_s30  ;;  %1969 = vrot.lane.b32.xlu1 %v6546_v28, %s6054_s30 }
 0xa03   : >> { %1971 = vrot.lane.b32.xlu2 %v6548_v42, %s6054_s30 }
 0xa0a   : >> { %1973 = vrot.lane.b32.xlu0 %v6550_v44, %s6054_s30  ;;  %1975 = vrot.lane.b32.xlu1 %v6552_v48, %s6054_s30 }
 0xa0b   : >> { %1977 = vrot.lane.b32.xlu2 %v6554_v49, %s6054_s30 }
 0xa12   : >> { %1979 = vrot.lane.b32.xlu0 %v6556_v26, %s6054_s30 }
 0xa45   : >> { %v1958_v20 = vpop.permute.xlu2 %1957 }
 0xa46   : >> { %v2002_v9 = vmul.f32 %v7072_v50, %v1958_v20 }
 0xa48   : >> { %v2018_v40 = vadd.f32 %v2002_v9, %v1985_v18 }
 0xa4a   : >> { %2034 = vst [vmem:[#allocation3 + $0x50] sm:$0xff] %v2018_v40 }
 0xa4d   : >> { %v1960_v41 = vpop.permute.xlu2 %1959 }
 0xa4e   : >> { %v2003_v56 = vmul.f32 %v7072_v50, %v1960_v41  ;;  %v1987_v41 = vld [vmem:[#allocation3 + $0x8] sm:$0xff] }
 0xa50   : >> { %v2019_v29 = vadd.f32 %v2003_v56, %v1986_v22 }
 0xa52   : >> { %2035 = vst [vmem:[#allocation3 + $0x68] sm:$0xff] %v2019_v29  ;;  %v1988_v29 = vld [vmem:[#allocation3 + $0x48] sm:$0xff] }
 0xa55   : >> { %v1966_v27 = vpop.permute.xlu2 %1965 }
 0xa56   : >> { %v2006_v57 = vmul.f32 %v7072_v50, %v1966_v27 }
 0xa58   : >> { %v2022_v58 = vadd.f32 %v2006_v57, %v1989_v52 }
 0xa5a   : >> { %2038 = vst [vmem:[#allocation3 + $0x40] sm:$0xff] %v2022_v58 }
 0xa5c   : >> { %v1950_v19 = vpop.permute.xlu0 %1949  ;;  %v1954_v7 = vpop.permute.xlu1 %1953 }
 0xa5d   : >> { %v1998_v47 = vmul.f32 %v7072_v50, %v1950_v19  ;;  %v2000_v62 = vmul.f32 %v7072_v50, %v1954_v7  ;;  %v1972_v63 = vpop.permute.xlu2 %1971  ;;  %v1990_v19 = vld [vmem:[#allocation3 + $0x20] sm:$0xff]  ;;  %v1991_v7 = vld [vmem:[#allocation3 + $0x10] sm:$0xff] }
 0xa5e   : >> { %v2009_v2 = vmul.f32 %v7072_v50, %v1972_v63 }
 0xa5f   : >> { %v2014_v0 = vadd.f32 %v1998_v47, %v1981_v60  ;;  %v2016_v3 = vadd.f32 %v2000_v62, %v1983_v54 }
 0xa60   : >> { %v2025_v5 = vadd.f32 %v2009_v2, %v1992_v30 }
 0xa61   : >> { %2030 = vst [vmem:[#allocation3 + $0x30] sm:$0xff] %v2014_v0  ;;  %v1993_v0 = vld [vmem:[#allocation3 + $0x60] sm:$0xff] }
 0xa62   : >> { %2032 = vst [vmem:[#allocation3 + $0x58] sm:$0xff] %v2016_v3 }
 0xa63   : >> { %2041 = vst [vmem:[#allocation3 + $0x38] sm:$0xff] %v2025_v5  ;;  %v1994_v5 = vld [vmem:[#allocation3 + $0x70] sm:$0xff] }
 0xa64   : >> { %v1952_v13 = vpop.permute.xlu0 %1951  ;;  %v1956_v35 = vpop.permute.xlu1 %1955 }
 0xa65   : >> { %v1999_v15 = vmul.f32 %v7072_v50, %v1952_v13  ;;  %v2001_v16 = vmul.f32 %v7072_v50, %v1956_v35  ;;  %v1978_v18 = vpop.permute.xlu2 %1977 }
 0xa66   : >> { %v2012_v20 = vmul.f32 %v7072_v50, %v1978_v18 }
 0xa67   : >> { %v2015_v9 = vadd.f32 %v1999_v15, %v1982_v10  ;;  %v2017_v40 = vadd.f32 %v2001_v16, %v1984_v8  ;;  %v1996_v16 = vld [vmem:[#allocation3 + $0x28] sm:$0xff] }
 0xa68   : >> { %v2028_v22 = vadd.f32 %v2012_v20, %v1995_v17 }
 0xa69   : >> { %2031 = vst [vmem:[#allocation3] sm:$0xff] %v2015_v9 }
 0xa6a   : >> { %2033 = vst [vmem:[#allocation3 + $0x18] sm:$0xff] %v2017_v40 }
 0xa6b   : >> { %2044 = vst [vmem:[#allocation3 + $0x78] sm:$0xff] %v2028_v22 }
 0xa6c   : >> { %v1962_v56 = vpop.permute.xlu0 %1961  ;;  %v1964_v52 = vpop.permute.xlu1 %1963 }
 0xa6d   : >> { %v2004_v27 = vmul.f32 %v7072_v50, %v1962_v56  ;;  %v2005_v57 = vmul.f32 %v7072_v50, %v1964_v52 }
 0xa6f   : >> { %v2020_v58 = vadd.f32 %v2004_v27, %v1987_v41  ;;  %v2021_v60 = vadd.f32 %v2005_v57, %v1988_v29 }
 0xa71   : >> { %2036 = vst [vmem:[#allocation3 + $0x8] sm:$0xff] %v2020_v58 }
 0xa72   : >> { %2037 = vst [vmem:[#allocation3 + $0x48] sm:$0xff] %v2021_v60 }
 0xa74   : >> { %v1968_v54 = vpop.permute.xlu0 %1967  ;;  %v1970_v47 = vpop.permute.xlu1 %1969 }
 0xa75   : >> { %v2007_v62 = vmul.f32 %v7072_v50, %v1968_v54  ;;  %v2008_v30 = vmul.f32 %v7072_v50, %v1970_v47 }
 0xa77   : >> { %v2023_v63 = vadd.f32 %v2007_v62, %v1990_v19  ;;  %v2024_v2 = vadd.f32 %v2008_v30, %v1991_v7 }
 0xa79   : >> { %2039 = vst [vmem:[#allocation3 + $0x20] sm:$0xff] %v2023_v63 }
 0xa7a   : >> { %2040 = vst [vmem:[#allocation3 + $0x10] sm:$0xff] %v2024_v2 }
 0xa7c   : >> { %v1974_v3 = vpop.permute.xlu0 %1973  ;;  %v1976_v10 = vpop.permute.xlu1 %1975 }
 0xa7d   : >> { %v2010_v13 = vmul.f32 %v7072_v50, %v1974_v3  ;;  %v2011_v8 = vmul.f32 %v7072_v50, %v1976_v10 }
 0xa7f   : >> { %v2026_v35 = vadd.f32 %v2010_v13, %v1993_v0  ;;  %v2027_v15 = vadd.f32 %v2011_v8, %v1994_v5 }
 0xa81   : >> { %2042 = vst [vmem:[#allocation3 + $0x60] sm:$0xff] %v2026_v35 }
 0xa82   : >> { %2043 = vst [vmem:[#allocation3 + $0x70] sm:$0xff] %v2027_v15 }
 0xa84   : >> { %v1980_v17 = vpop.permute.xlu0 %1979 }
 0xa85   : >> { %v2013_v18 = vmul.f32 %v7072_v50, %v1980_v17 }
 0xa87   : >> { %v2029_v20 = vadd.f32 %v2013_v18, %v1996_v16 }
 0xa89   : >> { %2045 = vst [vmem:[#allocation3 + $0x28] sm:$0xff] %v2029_v20 }
 0xa8a PF: >> { %p5824_p10 = scmp.lt.s32.totalorder %s6023_s15, 10 }
 0xa8b   : >> { %s6055_s7 = smov (!%p5824_p10), 10   ;;  %s2050_s8 = sadd.s32 (!%p5824_p10), 4294967286, %s6530_s26 }
 0xa8c   : >> { %2049 = sbr.rel (%p5824_p10) target bundleno = 2865 (0xb31), region = 119  ;;  %s2051_s9 = sld [smem:[#allocation6 + %s2050_s8]] (!%p5824_p10) }
 0xa91   : >> { %2052 = vrot.lane.b32.xlu0 %v6523_v23, %s6055_s7  ;;  %2056 = vrot.lane.b32.xlu1 %v6527_v33, %s6055_s7  ;;  %v2088_v9 = vld [vmem:[#allocation3 + $0x50] sm:$0xff]  ;;  %v2089_v56 = vld [vmem:[#allocation3 + $0x68] sm:$0xff]  ;;  %v2092_v57 = vld [vmem:[#allocation3 + $0x40] sm:$0xff] }
 0xa92   : >> { %2060 = vrot.lane.b32.xlu2 %v6534_v11, %s6055_s7  ;;  %v7110_v50 = vstv %s2051_s9  ;;  %v2084_v54 = vld [vmem:[#allocation3 + $0x30] sm:$0xff]  ;;  %v2086_v47 = vld [vmem:[#allocation3 + $0x58] sm:$0xff]  ;;  %v2085_v8 = vld [vmem:[#allocation3] sm:$0xff] }
 0xa93   : >> { %v2095_v2 = vld [vmem:[#allocation3 + $0x38] sm:$0xff] }
 0xa94   : >> { %v2087_v15 = vld [vmem:[#allocation3 + $0x18] sm:$0xff] }
 0xa95   : >> { %v2098_v20 = vld [vmem:[#allocation3 + $0x78] sm:$0xff] }
 0xa99   : >> { %2054 = vrot.lane.b32.xlu0 %v6525_v32, %s6055_s7  ;;  %2058 = vrot.lane.b32.xlu1 %v6532_v24, %s6055_s7 }
 0xa9a   : >> { %2062 = vrot.lane.b32.xlu2 %v6536_v36, %s6055_s7 }
 0xaa1   : >> { %2064 = vrot.lane.b32.xlu0 %v6538_v37, %s6055_s7  ;;  %2066 = vrot.lane.b32.xlu1 %v6540_v38, %s6055_s7 }
 0xaa2   : >> { %2068 = vrot.lane.b32.xlu2 %v6542_v39, %s6055_s7 }
 0xaa9   : >> { %2070 = vrot.lane.b32.xlu0 %v6544_v25, %s6055_s7  ;;  %2072 = vrot.lane.b32.xlu1 %v6546_v28, %s6055_s7 }
 0xaaa   : >> { %2074 = vrot.lane.b32.xlu2 %v6548_v42, %s6055_s7 }
 0xab1   : >> { %2076 = vrot.lane.b32.xlu0 %v6550_v44, %s6055_s7  ;;  %2078 = vrot.lane.b32.xlu1 %v6552_v48, %s6055_s7 }
 0xab2   : >> { %2080 = vrot.lane.b32.xlu2 %v6554_v49, %s6055_s7 }
 0xab9   : >> { %2082 = vrot.lane.b32.xlu0 %v6556_v26, %s6055_s7 }
 0xaec   : >> { %v2061_v40 = vpop.permute.xlu2 %2060 }
 0xaed   : >> { %v2105_v22 = vmul.f32 %v7110_v50, %v2061_v40 }
 0xaef   : >> { %v2121_v41 = vadd.f32 %v2105_v22, %v2088_v9 }
 0xaf1   : >> { %2137 = vst [vmem:[#allocation3 + $0x50] sm:$0xff] %v2121_v41 }
 0xaf4   : >> { %v2063_v29 = vpop.permute.xlu2 %2062 }
 0xaf5   : >> { %v2106_v52 = vmul.f32 %v7110_v50, %v2063_v29  ;;  %v2090_v29 = vld [vmem:[#allocation3 + $0x8] sm:$0xff] }
 0xaf7   : >> { %v2122_v27 = vadd.f32 %v2106_v52, %v2089_v56 }
 0xaf9   : >> { %2138 = vst [vmem:[#allocation3 + $0x68] sm:$0xff] %v2122_v27  ;;  %v2091_v27 = vld [vmem:[#allocation3 + $0x48] sm:$0xff] }
 0xafc   : >> { %v2069_v58 = vpop.permute.xlu2 %2068 }
 0xafd   : >> { %v2109_v60 = vmul.f32 %v7110_v50, %v2069_v58 }
 0xaff   : >> { %v2125_v19 = vadd.f32 %v2109_v60, %v2092_v57 }
 0xb01   : >> { %2141 = vst [vmem:[#allocation3 + $0x40] sm:$0xff] %v2125_v19 }
 0xb03   : >> { %v2053_v7 = vpop.permute.xlu0 %2052  ;;  %v2057_v62 = vpop.permute.xlu1 %2056 }
 0xb04   : >> { %v2101_v30 = vmul.f32 %v7110_v50, %v2053_v7  ;;  %v2103_v63 = vmul.f32 %v7110_v50, %v2057_v62  ;;  %v2075_v0 = vpop.permute.xlu2 %2074  ;;  %v2093_v7 = vld [vmem:[#allocation3 + $0x20] sm:$0xff]  ;;  %v2094_v62 = vld [vmem:[#allocation3 + $0x10] sm:$0xff] }
 0xb05   : >> { %v2112_v3 = vmul.f32 %v7110_v50, %v2075_v0 }
 0xb06   : >> { %v2117_v5 = vadd.f32 %v2101_v30, %v2084_v54  ;;  %v2119_v10 = vadd.f32 %v2103_v63, %v2086_v47 }
 0xb07   : >> { %v2128_v13 = vadd.f32 %v2112_v3, %v2095_v2 }
 0xb08   : >> { %2133 = vst [vmem:[#allocation3 + $0x30] sm:$0xff] %v2117_v5  ;;  %v2096_v5 = vld [vmem:[#allocation3 + $0x60] sm:$0xff] }
 0xb09   : >> { %2135 = vst [vmem:[#allocation3 + $0x58] sm:$0xff] %v2119_v10 }
 0xb0a   : >> { %2144 = vst [vmem:[#allocation3 + $0x38] sm:$0xff] %v2128_v13  ;;  %v2097_v13 = vld [vmem:[#allocation3 + $0x70] sm:$0xff] }
 0xb0b   : >> { %v2055_v35 = vpop.permute.xlu0 %2054  ;;  %v2059_v16 = vpop.permute.xlu1 %2058 }
 0xb0c   : >> { %v2102_v17 = vmul.f32 %v7110_v50, %v2055_v35  ;;  %v2104_v18 = vmul.f32 %v7110_v50, %v2059_v16  ;;  %v2081_v9 = vpop.permute.xlu2 %2080 }
 0xb0d   : >> { %v2115_v40 = vmul.f32 %v7110_v50, %v2081_v9 }
 0xb0e   : >> { %v2118_v22 = vadd.f32 %v2102_v17, %v2085_v8  ;;  %v2120_v41 = vadd.f32 %v2104_v18, %v2087_v15  ;;  %v2099_v18 = vld [vmem:[#allocation3 + $0x28] sm:$0xff] }
 0xb0f   : >> { %v2131_v56 = vadd.f32 %v2115_v40, %v2098_v20 }
 0xb10   : >> { %2134 = vst [vmem:[#allocation3] sm:$0xff] %v2118_v22 }
 0xb11   : >> { %2136 = vst [vmem:[#allocation3 + $0x18] sm:$0xff] %v2120_v41 }
 0xb12   : >> { %2147 = vst [vmem:[#allocation3 + $0x78] sm:$0xff] %v2131_v56 }
 0xb13   : >> { %v2065_v52 = vpop.permute.xlu0 %2064  ;;  %v2067_v57 = vpop.permute.xlu1 %2066 }
 0xb14   : >> { %v2107_v58 = vmul.f32 %v7110_v50, %v2065_v52  ;;  %v2108_v60 = vmul.f32 %v7110_v50, %v2067_v57 }
 0xb16   : >> { %v2123_v19 = vadd.f32 %v2107_v58, %v2090_v29  ;;  %v2124_v54 = vadd.f32 %v2108_v60, %v2091_v27 }
 0xb18   : >> { %2139 = vst [vmem:[#allocation3 + $0x8] sm:$0xff] %v2123_v19 }
 0xb19   : >> { %2140 = vst [vmem:[#allocation3 + $0x48] sm:$0xff] %v2124_v54 }
 0xb1b   : >> { %v2071_v47 = vpop.permute.xlu0 %2070  ;;  %v2073_v30 = vpop.permute.xlu1 %2072 }
 0xb1c   : >> { %v2110_v63 = vmul.f32 %v7110_v50, %v2071_v47  ;;  %v2111_v2 = vmul.f32 %v7110_v50, %v2073_v30 }
 0xb1e   : >> { %v2126_v0 = vadd.f32 %v2110_v63, %v2093_v7  ;;  %v2127_v3 = vadd.f32 %v2111_v2, %v2094_v62 }
 0xb20   : >> { %2142 = vst [vmem:[#allocation3 + $0x20] sm:$0xff] %v2126_v0 }
 0xb21   : >> { %2143 = vst [vmem:[#allocation3 + $0x10] sm:$0xff] %v2127_v3 }
 0xb23   : >> { %v2077_v10 = vpop.permute.xlu0 %2076  ;;  %v2079_v8 = vpop.permute.xlu1 %2078 }
 0xb24   : >> { %v2113_v35 = vmul.f32 %v7110_v50, %v2077_v10  ;;  %v2114_v15 = vmul.f32 %v7110_v50, %v2079_v8 }
 0xb26   : >> { %v2129_v16 = vadd.f32 %v2113_v35, %v2096_v5  ;;  %v2130_v17 = vadd.f32 %v2114_v15, %v2097_v13 }
 0xb28   : >> { %2145 = vst [vmem:[#allocation3 + $0x60] sm:$0xff] %v2129_v16 }
 0xb29   : >> { %2146 = vst [vmem:[#allocation3 + $0x70] sm:$0xff] %v2130_v17 }
 0xb2b   : >> { %v2083_v20 = vpop.permute.xlu0 %2082 }
 0xb2c   : >> { %v2116_v9 = vmul.f32 %v7110_v50, %v2083_v20 }
 0xb2e   : >> { %v2132_v40 = vadd.f32 %v2116_v9, %v2099_v18 }
 0xb30   : >> { %2148 = vst [vmem:[#allocation3 + $0x28] sm:$0xff] %v2132_v40 }
 0xb31 PF: >> { %p5825_p11 = scmp.lt.s32.totalorder %s6023_s15, 9 }
 0xb32   : >> { %s6056_s10 = smov (!%p5825_p11), 9   ;;  %s2153_s11 = sadd.s32 (!%p5825_p11), 4294967287, %s6530_s26 }
 0xb33   : >> { %2152 = sbr.rel (%p5825_p11) target bundleno = 3032 (0xbd8), region = 123  ;;  %s2154_s12 = sld [smem:[#allocation6 + %s2153_s11]] (!%p5825_p11) }
 0xb38   : >> { %2155 = vrot.lane.b32.xlu0 %v6523_v23, %s6056_s10  ;;  %2159 = vrot.lane.b32.xlu1 %v6527_v33, %s6056_s10  ;;  %v2191_v22 = vld [vmem:[#allocation3 + $0x50] sm:$0xff]  ;;  %v2192_v52 = vld [vmem:[#allocation3 + $0x68] sm:$0xff]  ;;  %v2195_v60 = vld [vmem:[#allocation3 + $0x40] sm:$0xff] }
 0xb39   : >> { %2163 = vrot.lane.b32.xlu2 %v6534_v11, %s6056_s10  ;;  %v7148_v50 = vstv %s2154_s12  ;;  %v2187_v47 = vld [vmem:[#allocation3 + $0x30] sm:$0xff]  ;;  %v2189_v30 = vld [vmem:[#allocation3 + $0x58] sm:$0xff]  ;;  %v2188_v15 = vld [vmem:[#allocation3] sm:$0xff] }
 0xb3a   : >> { %v2198_v3 = vld [vmem:[#allocation3 + $0x38] sm:$0xff] }
 0xb3b   : >> { %v2190_v17 = vld [vmem:[#allocation3 + $0x18] sm:$0xff] }
 0xb3c   : >> { %v2201_v40 = vld [vmem:[#allocation3 + $0x78] sm:$0xff] }
 0xb40   : >> { %2157 = vrot.lane.b32.xlu0 %v6525_v32, %s6056_s10  ;;  %2161 = vrot.lane.b32.xlu1 %v6532_v24, %s6056_s10 }
 0xb41   : >> { %2165 = vrot.lane.b32.xlu2 %v6536_v36, %s6056_s10 }
 0xb48   : >> { %2167 = vrot.lane.b32.xlu0 %v6538_v37, %s6056_s10  ;;  %2169 = vrot.lane.b32.xlu1 %v6540_v38, %s6056_s10 }
 0xb49   : >> { %2171 = vrot.lane.b32.xlu2 %v6542_v39, %s6056_s10 }
 0xb50   : >> { %2173 = vrot.lane.b32.xlu0 %v6544_v25, %s6056_s10  ;;  %2175 = vrot.lane.b32.xlu1 %v6546_v28, %s6056_s10 }
 0xb51   : >> { %2177 = vrot.lane.b32.xlu2 %v6548_v42, %s6056_s10 }
 0xb58   : >> { %2179 = vrot.lane.b32.xlu0 %v6550_v44, %s6056_s10  ;;  %2181 = vrot.lane.b32.xlu1 %v6552_v48, %s6056_s10 }
 0xb59   : >> { %2183 = vrot.lane.b32.xlu2 %v6554_v49, %s6056_s10 }
 0xb60   : >> { %2185 = vrot.lane.b32.xlu0 %v6556_v26, %s6056_s10 }
 0xb93   : >> { %v2164_v41 = vpop.permute.xlu2 %2163 }
 0xb94   : >> { %v2208_v56 = vmul.f32 %v7148_v50, %v2164_v41 }
 0xb96   : >> { %v2224_v29 = vadd.f32 %v2208_v56, %v2191_v22 }
 0xb98   : >> { %2240 = vst [vmem:[#allocation3 + $0x50] sm:$0xff] %v2224_v29 }
 0xb9b   : >> { %v2166_v27 = vpop.permute.xlu2 %2165 }
 0xb9c   : >> { %v2209_v57 = vmul.f32 %v7148_v50, %v2166_v27  ;;  %v2193_v27 = vld [vmem:[#allocation3 + $0x8] sm:$0xff] }
 0xb9e   : >> { %v2225_v58 = vadd.f32 %v2209_v57, %v2192_v52 }
 0xba0   : >> { %2241 = vst [vmem:[#allocation3 + $0x68] sm:$0xff] %v2225_v58  ;;  %v2194_v58 = vld [vmem:[#allocation3 + $0x48] sm:$0xff] }
 0xba3   : >> { %v2172_v19 = vpop.permute.xlu2 %2171 }
 0xba4   : >> { %v2212_v54 = vmul.f32 %v7148_v50, %v2172_v19 }
 0xba6   : >> { %v2228_v7 = vadd.f32 %v2212_v54, %v2195_v60 }
 0xba8   : >> { %2244 = vst [vmem:[#allocation3 + $0x40] sm:$0xff] %v2228_v7 }
 0xbaa   : >> { %v2156_v62 = vpop.permute.xlu0 %2155  ;;  %v2160_v63 = vpop.permute.xlu1 %2159 }
 0xbab   : >> { %v2204_v2 = vmul.f32 %v7148_v50, %v2156_v62  ;;  %v2206_v0 = vmul.f32 %v7148_v50, %v2160_v63  ;;  %v2178_v5 = vpop.permute.xlu2 %2177  ;;  %v2196_v62 = vld [vmem:[#allocation3 + $0x20] sm:$0xff]  ;;  %v2197_v63 = vld [vmem:[#allocation3 + $0x10] sm:$0xff] }
 0xbac   : >> { %v2215_v10 = vmul.f32 %v7148_v50, %v2178_v5 }
 0xbad   : >> { %v2220_v13 = vadd.f32 %v2204_v2, %v2187_v47  ;;  %v2222_v8 = vadd.f32 %v2206_v0, %v2189_v30 }
 0xbae   : >> { %v2231_v35 = vadd.f32 %v2215_v10, %v2198_v3 }
 0xbaf   : >> { %2236 = vst [vmem:[#allocation3 + $0x30] sm:$0xff] %v2220_v13  ;;  %v2199_v13 = vld [vmem:[#allocation3 + $0x60] sm:$0xff] }
 0xbb0   : >> { %2238 = vst [vmem:[#allocation3 + $0x58] sm:$0xff] %v2222_v8 }
 0xbb1   : >> { %2247 = vst [vmem:[#allocation3 + $0x38] sm:$0xff] %v2231_v35  ;;  %v2200_v35 = vld [vmem:[#allocation3 + $0x70] sm:$0xff] }
 0xbb2   : >> { %v2158_v16 = vpop.permute.xlu0 %2157  ;;  %v2162_v18 = vpop.permute.xlu1 %2161 }
 0xbb3   : >> { %v2205_v20 = vmul.f32 %v7148_v50, %v2158_v16  ;;  %v2207_v9 = vmul.f32 %v7148_v50, %v2162_v18  ;;  %v2184_v22 = vpop.permute.xlu2 %2183 }
 0xbb4   : >> { %v2218_v41 = vmul.f32 %v7148_v50, %v2184_v22 }
 0xbb5   : >> { %v2221_v56 = vadd.f32 %v2205_v20, %v2188_v15  ;;  %v2223_v29 = vadd.f32 %v2207_v9, %v2190_v17  ;;  %v2202_v9 = vld [vmem:[#allocation3 + $0x28] sm:$0xff] }
 0xbb6   : >> { %v2234_v52 = vadd.f32 %v2218_v41, %v2201_v40 }
 0xbb7   : >> { %2237 = vst [vmem:[#allocation3] sm:$0xff] %v2221_v56 }
 0xbb8   : >> { %2239 = vst [vmem:[#allocation3 + $0x18] sm:$0xff] %v2223_v29 }
 0xbb9   : >> { %2250 = vst [vmem:[#allocation3 + $0x78] sm:$0xff] %v2234_v52 }
 0xbba   : >> { %v2168_v57 = vpop.permute.xlu0 %2167  ;;  %v2170_v60 = vpop.permute.xlu1 %2169 }
 0xbbb   : >> { %v2210_v19 = vmul.f32 %v7148_v50, %v2168_v57  ;;  %v2211_v54 = vmul.f32 %v7148_v50, %v2170_v60 }
 0xbbd   : >> { %v2226_v7 = vadd.f32 %v2210_v19, %v2193_v27  ;;  %v2227_v47 = vadd.f32 %v2211_v54, %v2194_v58 }
 0xbbf   : >> { %2242 = vst [vmem:[#allocation3 + $0x8] sm:$0xff] %v2226_v7 }
 0xbc0   : >> { %2243 = vst [vmem:[#allocation3 + $0x48] sm:$0xff] %v2227_v47 }
 0xbc2   : >> { %v2174_v30 = vpop.permute.xlu0 %2173  ;;  %v2176_v2 = vpop.permute.xlu1 %2175 }
 0xbc3   : >> { %v2213_v0 = vmul.f32 %v7148_v50, %v2174_v30  ;;  %v2214_v3 = vmul.f32 %v7148_v50, %v2176_v2 }
 0xbc5   : >> { %v2229_v5 = vadd.f32 %v2213_v0, %v2196_v62  ;;  %v2230_v10 = vadd.f32 %v2214_v3, %v2197_v63 }
 0xbc7   : >> { %2245 = vst [vmem:[#allocation3 + $0x20] sm:$0xff] %v2229_v5 }
 0xbc8   : >> { %2246 = vst [vmem:[#allocation3 + $0x10] sm:$0xff] %v2230_v10 }
 0xbca   : >> { %v2180_v8 = vpop.permute.xlu0 %2179  ;;  %v2182_v15 = vpop.permute.xlu1 %2181 }
 0xbcb   : >> { %v2216_v16 = vmul.f32 %v7148_v50, %v2180_v8  ;;  %v2217_v17 = vmul.f32 %v7148_v50, %v2182_v15 }
 0xbcd   : >> { %v2232_v18 = vadd.f32 %v2216_v16, %v2199_v13  ;;  %v2233_v20 = vadd.f32 %v2217_v17, %v2200_v35 }
 0xbcf   : >> { %2248 = vst [vmem:[#allocation3 + $0x60] sm:$0xff] %v2232_v18 }
 0xbd0   : >> { %2249 = vst [vmem:[#allocation3 + $0x70] sm:$0xff] %v2233_v20 }
 0xbd2   : >> { %v2186_v40 = vpop.permute.xlu0 %2185 }
 0xbd3   : >> { %v2219_v22 = vmul.f32 %v7148_v50, %v2186_v40 }
 0xbd5   : >> { %v2235_v41 = vadd.f32 %v2219_v22, %v2202_v9 }
 0xbd7   : >> { %2251 = vst [vmem:[#allocation3 + $0x28] sm:$0xff] %v2235_v41 }
 0xbd8 PF: >> { %p5826_p12 = scmp.lt.s32.totalorder %s6023_s15, 8 }
 0xbd9   : >> { %s6057_s13 = smov (!%p5826_p12), 8   ;;  %s2256_s21 = sadd.s32 (!%p5826_p12), 4294967288, %s6530_s26 }
 0xbda   : >> { %2255 = sbr.rel (%p5826_p12) target bundleno = 3199 (0xc7f), region = 127  ;;  %s2257_s22 = sld [smem:[#allocation6 + %s2256_s21]] (!%p5826_p12) }
 0xbdf   : >> { %2258 = vrot.lane.b32.xlu0 %v6523_v23, %s6057_s13  ;;  %2262 = vrot.lane.b32.xlu1 %v6527_v33, %s6057_s13  ;;  %v2294_v56 = vld [vmem:[#allocation3 + $0x50] sm:$0xff]  ;;  %v2295_v57 = vld [vmem:[#allocation3 + $0x68] sm:$0xff]  ;;  %v2298_v54 = vld [vmem:[#allocation3 + $0x40] sm:$0xff] }
 0xbe0   : >> { %2266 = vrot.lane.b32.xlu2 %v6534_v11, %s6057_s13  ;;  %v7186_v50 = vstv %s2257_s22  ;;  %v2290_v30 = vld [vmem:[#allocation3 + $0x30] sm:$0xff]  ;;  %v2292_v2 = vld [vmem:[#allocation3 + $0x58] sm:$0xff]  ;;  %v2291_v17 = vld [vmem:[#allocation3] sm:$0xff] }
 0xbe1   : >> { %v2301_v10 = vld [vmem:[#allocation3 + $0x38] sm:$0xff] }
 0xbe2   : >> { %v2293_v20 = vld [vmem:[#allocation3 + $0x18] sm:$0xff] }
 0xbe3   : >> { %v2304_v41 = vld [vmem:[#allocation3 + $0x78] sm:$0xff] }
 0xbe7   : >> { %2260 = vrot.lane.b32.xlu0 %v6525_v32, %s6057_s13  ;;  %2264 = vrot.lane.b32.xlu1 %v6532_v24, %s6057_s13 }
 0xbe8   : >> { %2268 = vrot.lane.b32.xlu2 %v6536_v36, %s6057_s13 }
 0xbef   : >> { %2270 = vrot.lane.b32.xlu0 %v6538_v37, %s6057_s13  ;;  %2272 = vrot.lane.b32.xlu1 %v6540_v38, %s6057_s13 }
 0xbf0   : >> { %2274 = vrot.lane.b32.xlu2 %v6542_v39, %s6057_s13 }
 0xbf7   : >> { %2276 = vrot.lane.b32.xlu0 %v6544_v25, %s6057_s13  ;;  %2278 = vrot.lane.b32.xlu1 %v6546_v28, %s6057_s13 }
 0xbf8   : >> { %2280 = vrot.lane.b32.xlu2 %v6548_v42, %s6057_s13 }
 0xbff   : >> { %2282 = vrot.lane.b32.xlu0 %v6550_v44, %s6057_s13  ;;  %2284 = vrot.lane.b32.xlu1 %v6552_v48, %s6057_s13 }
 0xc00   : >> { %2286 = vrot.lane.b32.xlu2 %v6554_v49, %s6057_s13 }
 0xc07   : >> { %2288 = vrot.lane.b32.xlu0 %v6556_v26, %s6057_s13 }
 0xc3a   : >> { %v2267_v29 = vpop.permute.xlu2 %2266 }
 0xc3b   : >> { %v2311_v52 = vmul.f32 %v7186_v50, %v2267_v29 }
 0xc3d   : >> { %v2327_v27 = vadd.f32 %v2311_v52, %v2294_v56 }
 0xc3f   : >> { %2343 = vst [vmem:[#allocation3 + $0x50] sm:$0xff] %v2327_v27 }
 0xc42   : >> { %v2269_v58 = vpop.permute.xlu2 %2268 }
 0xc43   : >> { %v2312_v60 = vmul.f32 %v7186_v50, %v2269_v58  ;;  %v2296_v58 = vld [vmem:[#allocation3 + $0x8] sm:$0xff] }
 0xc45   : >> { %v2328_v19 = vadd.f32 %v2312_v60, %v2295_v57 }
 0xc47   : >> { %2344 = vst [vmem:[#allocation3 + $0x68] sm:$0xff] %v2328_v19  ;;  %v2297_v19 = vld [vmem:[#allocation3 + $0x48] sm:$0xff] }
 0xc4a   : >> { %v2275_v7 = vpop.permute.xlu2 %2274 }
 0xc4b   : >> { %v2315_v47 = vmul.f32 %v7186_v50, %v2275_v7 }
 0xc4d   : >> { %v2331_v62 = vadd.f32 %v2315_v47, %v2298_v54 }
 0xc4f   : >> { %2347 = vst [vmem:[#allocation3 + $0x40] sm:$0xff] %v2331_v62 }
 0xc51   : >> { %v2259_v63 = vpop.permute.xlu0 %2258  ;;  %v2263_v0 = vpop.permute.xlu1 %2262 }
 0xc52   : >> { %v2307_v3 = vmul.f32 %v7186_v50, %v2259_v63  ;;  %v2309_v5 = vmul.f32 %v7186_v50, %v2263_v0  ;;  %v2281_v13 = vpop.permute.xlu2 %2280  ;;  %v2299_v63 = vld [vmem:[#allocation3 + $0x20] sm:$0xff]  ;;  %v2300_v0 = vld [vmem:[#allocation3 + $0x10] sm:$0xff] }
 0xc53   : >> { %v2318_v8 = vmul.f32 %v7186_v50, %v2281_v13 }
 0xc54   : >> { %v2323_v35 = vadd.f32 %v2307_v3, %v2290_v30  ;;  %v2325_v15 = vadd.f32 %v2309_v5, %v2292_v2 }
 0xc55   : >> { %v2334_v16 = vadd.f32 %v2318_v8, %v2301_v10 }
 0xc56   : >> { %2339 = vst [vmem:[#allocation3 + $0x30] sm:$0xff] %v2323_v35  ;;  %v2302_v35 = vld [vmem:[#allocation3 + $0x60] sm:$0xff] }
 0xc57   : >> { %2341 = vst [vmem:[#allocation3 + $0x58] sm:$0xff] %v2325_v15 }
 0xc58   : >> { %2350 = vst [vmem:[#allocation3 + $0x38] sm:$0xff] %v2334_v16  ;;  %v2303_v16 = vld [vmem:[#allocation3 + $0x70] sm:$0xff] }
 0xc59   : >> { %v2261_v18 = vpop.permute.xlu0 %2260  ;;  %v2265_v9 = vpop.permute.xlu1 %2264 }
 0xc5a   : >> { %v2308_v40 = vmul.f32 %v7186_v50, %v2261_v18  ;;  %v2310_v22 = vmul.f32 %v7186_v50, %v2265_v9  ;;  %v2287_v56 = vpop.permute.xlu2 %2286 }
 0xc5b   : >> { %v2321_v29 = vmul.f32 %v7186_v50, %v2287_v56 }
 0xc5c   : >> { %v2324_v52 = vadd.f32 %v2308_v40, %v2291_v17  ;;  %v2326_v27 = vadd.f32 %v2310_v22, %v2293_v20  ;;  %v2305_v22 = vld [vmem:[#allocation3 + $0x28] sm:$0xff] }
 0xc5d   : >> { %v2337_v57 = vadd.f32 %v2321_v29, %v2304_v41 }
 0xc5e   : >> { %2340 = vst [vmem:[#allocation3] sm:$0xff] %v2324_v52 }
 0xc5f   : >> { %2342 = vst [vmem:[#allocation3 + $0x18] sm:$0xff] %v2326_v27 }
 0xc60   : >> { %2353 = vst [vmem:[#allocation3 + $0x78] sm:$0xff] %v2337_v57 }
 0xc61   : >> { %v2271_v60 = vpop.permute.xlu0 %2270  ;;  %v2273_v54 = vpop.permute.xlu1 %2272 }
 0xc62   : >> { %v2313_v7 = vmul.f32 %v7186_v50, %v2271_v60  ;;  %v2314_v47 = vmul.f32 %v7186_v50, %v2273_v54 }
 0xc64   : >> { %v2329_v62 = vadd.f32 %v2313_v7, %v2296_v58  ;;  %v2330_v30 = vadd.f32 %v2314_v47, %v2297_v19 }
 0xc66   : >> { %2345 = vst [vmem:[#allocation3 + $0x8] sm:$0xff] %v2329_v62 }
 0xc67   : >> { %2346 = vst [vmem:[#allocation3 + $0x48] sm:$0xff] %v2330_v30 }
 0xc69   : >> { %v2277_v2 = vpop.permute.xlu0 %2276  ;;  %v2279_v3 = vpop.permute.xlu1 %2278 }
 0xc6a   : >> { %v2316_v5 = vmul.f32 %v7186_v50, %v2277_v2  ;;  %v2317_v10 = vmul.f32 %v7186_v50, %v2279_v3 }
 0xc6c   : >> { %v2332_v13 = vadd.f32 %v2316_v5, %v2299_v63  ;;  %v2333_v8 = vadd.f32 %v2317_v10, %v2300_v0 }
 0xc6e   : >> { %2348 = vst [vmem:[#allocation3 + $0x20] sm:$0xff] %v2332_v13 }
 0xc6f   : >> { %2349 = vst [vmem:[#allocation3 + $0x10] sm:$0xff] %v2333_v8 }
 0xc71   : >> { %v2283_v15 = vpop.permute.xlu0 %2282  ;;  %v2285_v17 = vpop.permute.xlu1 %2284 }
 0xc72   : >> { %v2319_v18 = vmul.f32 %v7186_v50, %v2283_v15  ;;  %v2320_v20 = vmul.f32 %v7186_v50, %v2285_v17 }
 0xc74   : >> { %v2335_v9 = vadd.f32 %v2319_v18, %v2302_v35  ;;  %v2336_v40 = vadd.f32 %v2320_v20, %v2303_v16 }
 0xc76   : >> { %2351 = vst [vmem:[#allocation3 + $0x60] sm:$0xff] %v2335_v9 }
 0xc77   : >> { %2352 = vst [vmem:[#allocation3 + $0x70] sm:$0xff] %v2336_v40 }
 0xc79   : >> { %v2289_v41 = vpop.permute.xlu0 %2288 }
 0xc7a   : >> { %v2322_v56 = vmul.f32 %v7186_v50, %v2289_v41 }
 0xc7c   : >> { %v2338_v29 = vadd.f32 %v2322_v56, %v2305_v22 }
 0xc7e   : >> { %2354 = vst [vmem:[#allocation3 + $0x28] sm:$0xff] %v2338_v29 }
 0xc7f PF: >> { %p5827_p13 = scmp.lt.s32.totalorder %s6023_s15, 7 }
 0xc80   : >> { %s6058_s23 = smov (!%p5827_p13), 7   ;;  %s2359_s24 = sadd.s32 (!%p5827_p13), 4294967289, %s6530_s26 }
 0xc81   : >> { %2358 = sbr.rel (%p5827_p13) target bundleno = 3366 (0xd26), region = 131  ;;  %s2360_s25 = sld [smem:[#allocation6 + %s2359_s24]] (!%p5827_p13) }
 0xc86   : >> { %2361 = vrot.lane.b32.xlu0 %v6523_v23, %s6058_s23  ;;  %2365 = vrot.lane.b32.xlu1 %v6527_v33, %s6058_s23  ;;  %v2397_v52 = vld [vmem:[#allocation3 + $0x50] sm:$0xff]  ;;  %v2398_v60 = vld [vmem:[#allocation3 + $0x68] sm:$0xff]  ;;  %v2401_v47 = vld [vmem:[#allocation3 + $0x40] sm:$0xff] }
 0xc87   : >> { %2369 = vrot.lane.b32.xlu2 %v6534_v11, %s6058_s23  ;;  %v7224_v50 = vstv %s2360_s25  ;;  %v2393_v2 = vld [vmem:[#allocation3 + $0x30] sm:$0xff]  ;;  %v2395_v3 = vld [vmem:[#allocation3 + $0x58] sm:$0xff]  ;;  %v2394_v20 = vld [vmem:[#allocation3] sm:$0xff] }
 0xc88   : >> { %v2404_v8 = vld [vmem:[#allocation3 + $0x38] sm:$0xff] }
 0xc89   : >> { %v2396_v40 = vld [vmem:[#allocation3 + $0x18] sm:$0xff] }
 0xc8a   : >> { %v2407_v29 = vld [vmem:[#allocation3 + $0x78] sm:$0xff] }
 0xc8e   : >> { %2363 = vrot.lane.b32.xlu0 %v6525_v32, %s6058_s23  ;;  %2367 = vrot.lane.b32.xlu1 %v6532_v24, %s6058_s23 }
 0xc8f   : >> { %2371 = vrot.lane.b32.xlu2 %v6536_v36, %s6058_s23 }
 0xc96   : >> { %2373 = vrot.lane.b32.xlu0 %v6538_v37, %s6058_s23  ;;  %2375 = vrot.lane.b32.xlu1 %v6540_v38, %s6058_s23 }
 0xc97   : >> { %2377 = vrot.lane.b32.xlu2 %v6542_v39, %s6058_s23 }
 0xc9e   : >> { %2379 = vrot.lane.b32.xlu0 %v6544_v25, %s6058_s23  ;;  %2381 = vrot.lane.b32.xlu1 %v6546_v28, %s6058_s23 }
 0xc9f   : >> { %2383 = vrot.lane.b32.xlu2 %v6548_v42, %s6058_s23 }
 0xca6   : >> { %2385 = vrot.lane.b32.xlu0 %v6550_v44, %s6058_s23  ;;  %2387 = vrot.lane.b32.xlu1 %v6552_v48, %s6058_s23 }
 0xca7   : >> { %2389 = vrot.lane.b32.xlu2 %v6554_v49, %s6058_s23 }
 0xcae   : >> { %2391 = vrot.lane.b32.xlu0 %v6556_v26, %s6058_s23 }
 0xce1   : >> { %v2370_v27 = vpop.permute.xlu2 %2369 }
 0xce2   : >> { %v2414_v57 = vmul.f32 %v7224_v50, %v2370_v27 }
 0xce4   : >> { %v2430_v58 = vadd.f32 %v2414_v57, %v2397_v52 }
 0xce6   : >> { %2446 = vst [vmem:[#allocation3 + $0x50] sm:$0xff] %v2430_v58 }
 0xce9   : >> { %v2372_v19 = vpop.permute.xlu2 %2371 }
 0xcea   : >> { %v2415_v54 = vmul.f32 %v7224_v50, %v2372_v19  ;;  %v2399_v19 = vld [vmem:[#allocation3 + $0x8] sm:$0xff] }
 0xcec   : >> { %v2431_v7 = vadd.f32 %v2415_v54, %v2398_v60 }
 0xcee   : >> { %2447 = vst [vmem:[#allocation3 + $0x68] sm:$0xff] %v2431_v7  ;;  %v2400_v7 = vld [vmem:[#allocation3 + $0x48] sm:$0xff] }
 0xcf1   : >> { %v2378_v62 = vpop.permute.xlu2 %2377 }
 0xcf2   : >> { %v2418_v30 = vmul.f32 %v7224_v50, %v2378_v62 }
 0xcf4   : >> { %v2434_v63 = vadd.f32 %v2418_v30, %v2401_v47 }
 0xcf6   : >> { %2450 = vst [vmem:[#allocation3 + $0x40] sm:$0xff] %v2434_v63 }
 0xcf8   : >> { %v2362_v0 = vpop.permute.xlu0 %2361  ;;  %v2366_v5 = vpop.permute.xlu1 %2365 }
 0xcf9   : >> { %v2410_v10 = vmul.f32 %v7224_v50, %v2362_v0  ;;  %v2412_v13 = vmul.f32 %v7224_v50, %v2366_v5  ;;  %v2384_v35 = vpop.permute.xlu2 %2383  ;;  %v2402_v0 = vld [vmem:[#allocation3 + $0x20] sm:$0xff]  ;;  %v2403_v5 = vld [vmem:[#allocation3 + $0x10] sm:$0xff] }
 0xcfa   : >> { %v2421_v15 = vmul.f32 %v7224_v50, %v2384_v35 }
 0xcfb   : >> { %v2426_v16 = vadd.f32 %v2410_v10, %v2393_v2  ;;  %v2428_v17 = vadd.f32 %v2412_v13, %v2395_v3 }
 0xcfc   : >> { %v2437_v18 = vadd.f32 %v2421_v15, %v2404_v8 }
 0xcfd   : >> { %2442 = vst [vmem:[#allocation3 + $0x30] sm:$0xff] %v2426_v16  ;;  %v2405_v16 = vld [vmem:[#allocation3 + $0x60] sm:$0xff] }
 0xcfe   : >> { %2444 = vst [vmem:[#allocation3 + $0x58] sm:$0xff] %v2428_v17 }
 0xcff   : >> { %2453 = vst [vmem:[#allocation3 + $0x38] sm:$0xff] %v2437_v18  ;;  %v2406_v18 = vld [vmem:[#allocation3 + $0x70] sm:$0xff] }
 0xd00   : >> { %v2364_v9 = vpop.permute.xlu0 %2363  ;;  %v2368_v22 = vpop.permute.xlu1 %2367 }
 0xd01   : >> { %v2411_v41 = vmul.f32 %v7224_v50, %v2364_v9  ;;  %v2413_v56 = vmul.f32 %v7224_v50, %v2368_v22  ;;  %v2390_v52 = vpop.permute.xlu2 %2389 }
 0xd02   : >> { %v2424_v27 = vmul.f32 %v7224_v50, %v2390_v52 }
 0xd03   : >> { %v2427_v57 = vadd.f32 %v2411_v41, %v2394_v20  ;;  %v2429_v58 = vadd.f32 %v2413_v56, %v2396_v40  ;;  %v2408_v56 = vld [vmem:[#allocation3 + $0x28] sm:$0xff] }
 0xd04   : >> { %v2440_v60 = vadd.f32 %v2424_v27, %v2407_v29 }
 0xd05   : >> { %2443 = vst [vmem:[#allocation3] sm:$0xff] %v2427_v57 }
 0xd06   : >> { %2445 = vst [vmem:[#allocation3 + $0x18] sm:$0xff] %v2429_v58 }
 0xd07   : >> { %2456 = vst [vmem:[#allocation3 + $0x78] sm:$0xff] %v2440_v60 }
 0xd08   : >> { %v2374_v54 = vpop.permute.xlu0 %2373  ;;  %v2376_v47 = vpop.permute.xlu1 %2375 }
 0xd09   : >> { %v2416_v62 = vmul.f32 %v7224_v50, %v2374_v54  ;;  %v2417_v30 = vmul.f32 %v7224_v50, %v2376_v47 }
 0xd0b   : >> { %v2432_v63 = vadd.f32 %v2416_v62, %v2399_v19  ;;  %v2433_v2 = vadd.f32 %v2417_v30, %v2400_v7 }
 0xd0d   : >> { %2448 = vst [vmem:[#allocation3 + $0x8] sm:$0xff] %v2432_v63 }
 0xd0e   : >> { %2449 = vst [vmem:[#allocation3 + $0x48] sm:$0xff] %v2433_v2 }
 0xd10   : >> { %v2380_v3 = vpop.permute.xlu0 %2379  ;;  %v2382_v10 = vpop.permute.xlu1 %2381 }
 0xd11   : >> { %v2419_v13 = vmul.f32 %v7224_v50, %v2380_v3  ;;  %v2420_v8 = vmul.f32 %v7224_v50, %v2382_v10 }
 0xd13   : >> { %v2435_v35 = vadd.f32 %v2419_v13, %v2402_v0  ;;  %v2436_v15 = vadd.f32 %v2420_v8, %v2403_v5 }
 0xd15   : >> { %2451 = vst [vmem:[#allocation3 + $0x20] sm:$0xff] %v2435_v35 }
 0xd16   : >> { %2452 = vst [vmem:[#allocation3 + $0x10] sm:$0xff] %v2436_v15 }
 0xd18   : >> { %v2386_v17 = vpop.permute.xlu0 %2385  ;;  %v2388_v20 = vpop.permute.xlu1 %2387 }
 0xd19   : >> { %v2422_v9 = vmul.f32 %v7224_v50, %v2386_v17  ;;  %v2423_v40 = vmul.f32 %v7224_v50, %v2388_v20 }
 0xd1b   : >> { %v2438_v22 = vadd.f32 %v2422_v9, %v2405_v16  ;;  %v2439_v41 = vadd.f32 %v2423_v40, %v2406_v18 }
 0xd1d   : >> { %2454 = vst [vmem:[#allocation3 + $0x60] sm:$0xff] %v2438_v22 }
 0xd1e   : >> { %2455 = vst [vmem:[#allocation3 + $0x70] sm:$0xff] %v2439_v41 }
 0xd20   : >> { %v2392_v29 = vpop.permute.xlu0 %2391 }
 0xd21   : >> { %v2425_v52 = vmul.f32 %v7224_v50, %v2392_v29 }
 0xd23   : >> { %v2441_v27 = vadd.f32 %v2425_v52, %v2408_v56 }
 0xd25   : >> { %2457 = vst [vmem:[#allocation3 + $0x28] sm:$0xff] %v2441_v27 }
 0xd26 PF: >> { %p5828_p0 = scmp.lt.s32.totalorder %s6023_s15, 6 }
 0xd27   : >> { %s6059_s27 = smov (!%p5828_p0), 6   ;;  %s2462_s28 = sadd.s32 (!%p5828_p0), 4294967290, %s6530_s26 }
 0xd28   : >> { %2461 = sbr.rel (%p5828_p0) target bundleno = 3533 (0xdcd), region = 135  ;;  %s2463_s29 = sld [smem:[#allocation6 + %s2462_s28]] (!%p5828_p0) }
 0xd2d   : >> { %2464 = vrot.lane.b32.xlu0 %v6523_v23, %s6059_s27  ;;  %2468 = vrot.lane.b32.xlu1 %v6527_v33, %s6059_s27  ;;  %v2500_v57 = vld [vmem:[#allocation3 + $0x50] sm:$0xff]  ;;  %v2501_v54 = vld [vmem:[#allocation3 + $0x68] sm:$0xff]  ;;  %v2504_v30 = vld [vmem:[#allocation3 + $0x40] sm:$0xff] }
 0xd2e   : >> { %2472 = vrot.lane.b32.xlu2 %v6534_v11, %s6059_s27  ;;  %v7262_v50 = vstv %s2463_s29  ;;  %v2496_v3 = vld [vmem:[#allocation3 + $0x30] sm:$0xff]  ;;  %v2498_v10 = vld [vmem:[#allocation3 + $0x58] sm:$0xff]  ;;  %v2497_v40 = vld [vmem:[#allocation3] sm:$0xff] }
 0xd2f   : >> { %v2507_v15 = vld [vmem:[#allocation3 + $0x38] sm:$0xff] }
 0xd30   : >> { %v2499_v41 = vld [vmem:[#allocation3 + $0x18] sm:$0xff] }
 0xd31   : >> { %v2510_v27 = vld [vmem:[#allocation3 + $0x78] sm:$0xff] }
 0xd35   : >> { %2466 = vrot.lane.b32.xlu0 %v6525_v32, %s6059_s27  ;;  %2470 = vrot.lane.b32.xlu1 %v6532_v24, %s6059_s27 }
 0xd36   : >> { %2474 = vrot.lane.b32.xlu2 %v6536_v36, %s6059_s27 }
 0xd3d   : >> { %2476 = vrot.lane.b32.xlu0 %v6538_v37, %s6059_s27  ;;  %2478 = vrot.lane.b32.xlu1 %v6540_v38, %s6059_s27 }
 0xd3e   : >> { %2480 = vrot.lane.b32.xlu2 %v6542_v39, %s6059_s27 }
 0xd45   : >> { %2482 = vrot.lane.b32.xlu0 %v6544_v25, %s6059_s27  ;;  %2484 = vrot.lane.b32.xlu1 %v6546_v28, %s6059_s27 }
 0xd46   : >> { %2486 = vrot.lane.b32.xlu2 %v6548_v42, %s6059_s27 }
 0xd4d   : >> { %2488 = vrot.lane.b32.xlu0 %v6550_v44, %s6059_s27  ;;  %2490 = vrot.lane.b32.xlu1 %v6552_v48, %s6059_s27 }
 0xd4e   : >> { %2492 = vrot.lane.b32.xlu2 %v6554_v49, %s6059_s27 }
 0xd55   : >> { %2494 = vrot.lane.b32.xlu0 %v6556_v26, %s6059_s27 }
 0xd88   : >> { %v2473_v58 = vpop.permute.xlu2 %2472 }
 0xd89   : >> { %v2517_v60 = vmul.f32 %v7262_v50, %v2473_v58 }
 0xd8b   : >> { %v2533_v19 = vadd.f32 %v2517_v60, %v2500_v57 }
 0xd8d   : >> { %2549 = vst [vmem:[#allocation3 + $0x50] sm:$0xff] %v2533_v19 }
 0xd90   : >> { %v2475_v7 = vpop.permute.xlu2 %2474 }
 0xd91   : >> { %v2518_v47 = vmul.f32 %v7262_v50, %v2475_v7  ;;  %v2502_v7 = vld [vmem:[#allocation3 + $0x8] sm:$0xff] }
 0xd93   : >> { %v2534_v62 = vadd.f32 %v2518_v47, %v2501_v54 }
 0xd95   : >> { %2550 = vst [vmem:[#allocation3 + $0x68] sm:$0xff] %v2534_v62  ;;  %v2503_v62 = vld [vmem:[#allocation3 + $0x48] sm:$0xff] }
 0xd98   : >> { %v2481_v63 = vpop.permute.xlu2 %2480 }
 0xd99   : >> { %v2521_v2 = vmul.f32 %v7262_v50, %v2481_v63 }
 0xd9b   : >> { %v2537_v0 = vadd.f32 %v2521_v2, %v2504_v30 }
 0xd9d   : >> { %2553 = vst [vmem:[#allocation3 + $0x40] sm:$0xff] %v2537_v0 }
 0xd9f   : >> { %v2465_v5 = vpop.permute.xlu0 %2464  ;;  %v2469_v13 = vpop.permute.xlu1 %2468 }
 0xda0   : >> { %v2513_v8 = vmul.f32 %v7262_v50, %v2465_v5  ;;  %v2515_v35 = vmul.f32 %v7262_v50, %v2469_v13  ;;  %v2487_v16 = vpop.permute.xlu2 %2486  ;;  %v2505_v5 = vld [vmem:[#allocation3 + $0x20] sm:$0xff]  ;;  %v2506_v13 = vld [vmem:[#allocation3 + $0x10] sm:$0xff] }
 0xda1   : >> { %v2524_v17 = vmul.f32 %v7262_v50, %v2487_v16 }
 0xda2   : >> { %v2529_v18 = vadd.f32 %v2513_v8, %v2496_v3  ;;  %v2531_v20 = vadd.f32 %v2515_v35, %v2498_v10 }
 0xda3   : >> { %v2540_v9 = vadd.f32 %v2524_v17, %v2507_v15 }
 0xda4   : >> { %2545 = vst [vmem:[#allocation3 + $0x30] sm:$0xff] %v2529_v18  ;;  %v2508_v18 = vld [vmem:[#allocation3 + $0x60] sm:$0xff] }
 0xda5   : >> { %2547 = vst [vmem:[#allocation3 + $0x58] sm:$0xff] %v2531_v20 }
 0xda6   : >> { %2556 = vst [vmem:[#allocation3 + $0x38] sm:$0xff] %v2540_v9  ;;  %v2509_v9 = vld [vmem:[#allocation3 + $0x70] sm:$0xff] }
 0xda7   : >> { %v2467_v22 = vpop.permute.xlu0 %2466  ;;  %v2471_v56 = vpop.permute.xlu1 %2470 }
 0xda8   : >> { %v2514_v29 = vmul.f32 %v7262_v50, %v2467_v22  ;;  %v2516_v52 = vmul.f32 %v7262_v50, %v2471_v56  ;;  %v2493_v57 = vpop.permute.xlu2 %2492 }
 0xda9   : >> { %v2527_v58 = vmul.f32 %v7262_v50, %v2493_v57 }
 0xdaa   : >> { %v2530_v60 = vadd.f32 %v2514_v29, %v2497_v40  ;;  %v2532_v19 = vadd.f32 %v2516_v52, %v2499_v41  ;;  %v2511_v52 = vld [vmem:[#allocation3 + $0x28] sm:$0xff] }
 0xdab   : >> { %v2543_v54 = vadd.f32 %v2527_v58, %v2510_v27 }
 0xdac   : >> { %2546 = vst [vmem:[#allocation3] sm:$0xff] %v2530_v60 }
 0xdad   : >> { %2548 = vst [vmem:[#allocation3 + $0x18] sm:$0xff] %v2532_v19 }
 0xdae   : >> { %2559 = vst [vmem:[#allocation3 + $0x78] sm:$0xff] %v2543_v54 }
 0xdaf   : >> { %v2477_v47 = vpop.permute.xlu0 %2476  ;;  %v2479_v30 = vpop.permute.xlu1 %2478 }
 0xdb0   : >> { %v2519_v63 = vmul.f32 %v7262_v50, %v2477_v47  ;;  %v2520_v2 = vmul.f32 %v7262_v50, %v2479_v30 }
 0xdb2   : >> { %v2535_v0 = vadd.f32 %v2519_v63, %v2502_v7  ;;  %v2536_v3 = vadd.f32 %v2520_v2, %v2503_v62 }
 0xdb4   : >> { %2551 = vst [vmem:[#allocation3 + $0x8] sm:$0xff] %v2535_v0 }
 0xdb5   : >> { %2552 = vst [vmem:[#allocation3 + $0x48] sm:$0xff] %v2536_v3 }
 0xdb7   : >> { %v2483_v10 = vpop.permute.xlu0 %2482  ;;  %v2485_v8 = vpop.permute.xlu1 %2484 }
 0xdb8   : >> { %v2522_v35 = vmul.f32 %v7262_v50, %v2483_v10  ;;  %v2523_v15 = vmul.f32 %v7262_v50, %v2485_v8 }
 0xdba   : >> { %v2538_v16 = vadd.f32 %v2522_v35, %v2505_v5  ;;  %v2539_v17 = vadd.f32 %v2523_v15, %v2506_v13 }
 0xdbc   : >> { %2554 = vst [vmem:[#allocation3 + $0x20] sm:$0xff] %v2538_v16 }
 0xdbd   : >> { %2555 = vst [vmem:[#allocation3 + $0x10] sm:$0xff] %v2539_v17 }
 0xdbf   : >> { %v2489_v20 = vpop.permute.xlu0 %2488  ;;  %v2491_v40 = vpop.permute.xlu1 %2490 }
 0xdc0   : >> { %v2525_v22 = vmul.f32 %v7262_v50, %v2489_v20  ;;  %v2526_v41 = vmul.f32 %v7262_v50, %v2491_v40 }
 0xdc2   : >> { %v2541_v56 = vadd.f32 %v2525_v22, %v2508_v18  ;;  %v2542_v29 = vadd.f32 %v2526_v41, %v2509_v9 }
 0xdc4   : >> { %2557 = vst [vmem:[#allocation3 + $0x60] sm:$0xff] %v2541_v56 }
 0xdc5   : >> { %2558 = vst [vmem:[#allocation3 + $0x70] sm:$0xff] %v2542_v29 }
 0xdc7   : >> { %v2495_v27 = vpop.permute.xlu0 %2494 }
 0xdc8   : >> { %v2528_v57 = vmul.f32 %v7262_v50, %v2495_v27 }
 0xdca   : >> { %v2544_v58 = vadd.f32 %v2528_v57, %v2511_v52 }
 0xdcc   : >> { %2560 = vst [vmem:[#allocation3 + $0x28] sm:$0xff] %v2544_v58 }
 0xdcd PF: >> { %p5829_p1 = scmp.lt.s32.totalorder %s6023_s15, 5 }
 0xdce   : >> { %s6060_s30 = smov (!%p5829_p1), 5   ;;  %s2565_s5 = sadd.s32 (!%p5829_p1), 4294967291, %s6530_s26 }
 0xdcf   : >> { %2564 = sbr.rel (%p5829_p1) target bundleno = 3700 (0xe74), region = 139  ;;  %s2566_s6 = sld [smem:[#allocation6 + %s2565_s5]] (!%p5829_p1) }
 0xdd4   : >> { %2567 = vrot.lane.b32.xlu0 %v6523_v23, %s6060_s30  ;;  %2571 = vrot.lane.b32.xlu1 %v6527_v33, %s6060_s30  ;;  %v2603_v60 = vld [vmem:[#allocation3 + $0x50] sm:$0xff]  ;;  %v2604_v47 = vld [vmem:[#allocation3 + $0x68] sm:$0xff]  ;;  %v2607_v2 = vld [vmem:[#allocation3 + $0x40] sm:$0xff] }
 0xdd5   : >> { %2575 = vrot.lane.b32.xlu2 %v6534_v11, %s6060_s30  ;;  %v7300_v50 = vstv %s2566_s6  ;;  %v2599_v10 = vld [vmem:[#allocation3 + $0x30] sm:$0xff]  ;;  %v2601_v8 = vld [vmem:[#allocation3 + $0x58] sm:$0xff]  ;;  %v2600_v41 = vld [vmem:[#allocation3] sm:$0xff] }
 0xdd6   : >> { %v2610_v17 = vld [vmem:[#allocation3 + $0x38] sm:$0xff] }
 0xdd7   : >> { %v2602_v29 = vld [vmem:[#allocation3 + $0x18] sm:$0xff] }
 0xdd8   : >> { %v2613_v58 = vld [vmem:[#allocation3 + $0x78] sm:$0xff] }
 0xddc   : >> { %2569 = vrot.lane.b32.xlu0 %v6525_v32, %s6060_s30  ;;  %2573 = vrot.lane.b32.xlu1 %v6532_v24, %s6060_s30 }
 0xddd   : >> { %2577 = vrot.lane.b32.xlu2 %v6536_v36, %s6060_s30 }
 0xde4   : >> { %2579 = vrot.lane.b32.xlu0 %v6538_v37, %s6060_s30  ;;  %2581 = vrot.lane.b32.xlu1 %v6540_v38, %s6060_s30 }
 0xde5   : >> { %2583 = vrot.lane.b32.xlu2 %v6542_v39, %s6060_s30 }
 0xdec   : >> { %2585 = vrot.lane.b32.xlu0 %v6544_v25, %s6060_s30  ;;  %2587 = vrot.lane.b32.xlu1 %v6546_v28, %s6060_s30 }
 0xded   : >> { %2589 = vrot.lane.b32.xlu2 %v6548_v42, %s6060_s30 }
 0xdf4   : >> { %2591 = vrot.lane.b32.xlu0 %v6550_v44, %s6060_s30  ;;  %2593 = vrot.lane.b32.xlu1 %v6552_v48, %s6060_s30 }
 0xdf5   : >> { %2595 = vrot.lane.b32.xlu2 %v6554_v49, %s6060_s30 }
 0xdfc   : >> { %2597 = vrot.lane.b32.xlu0 %v6556_v26, %s6060_s30 }
 0xe2f   : >> { %v2576_v19 = vpop.permute.xlu2 %2575 }
 0xe30   : >> { %v2620_v54 = vmul.f32 %v7300_v50, %v2576_v19 }
 0xe32   : >> { %v2636_v7 = vadd.f32 %v2620_v54, %v2603_v60 }
 0xe34   : >> { %2652 = vst [vmem:[#allocation3 + $0x50] sm:$0xff] %v2636_v7 }
 0xe37   : >> { %v2578_v62 = vpop.permute.xlu2 %2577 }
 0xe38   : >> { %v2621_v30 = vmul.f32 %v7300_v50, %v2578_v62  ;;  %v2605_v62 = vld [vmem:[#allocation3 + $0x8] sm:$0xff] }
 0xe3a   : >> { %v2637_v63 = vadd.f32 %v2621_v30, %v2604_v47 }
 0xe3c   : >> { %2653 = vst [vmem:[#allocation3 + $0x68] sm:$0xff] %v2637_v63  ;;  %v2606_v63 = vld [vmem:[#allocation3 + $0x48] sm:$0xff] }
 0xe3f   : >> { %v2584_v0 = vpop.permute.xlu2 %2583 }
 0xe40   : >> { %v2624_v3 = vmul.f32 %v7300_v50, %v2584_v0 }
 0xe42   : >> { %v2640_v5 = vadd.f32 %v2624_v3, %v2607_v2 }
 0xe44   : >> { %2656 = vst [vmem:[#allocation3 + $0x40] sm:$0xff] %v2640_v5 }
 0xe46   : >> { %v2568_v13 = vpop.permute.xlu0 %2567  ;;  %v2572_v35 = vpop.permute.xlu1 %2571 }
 0xe47   : >> { %v2616_v15 = vmul.f32 %v7300_v50, %v2568_v13  ;;  %v2618_v16 = vmul.f32 %v7300_v50, %v2572_v35  ;;  %v2590_v18 = vpop.permute.xlu2 %2589  ;;  %v2608_v13 = vld [vmem:[#allocation3 + $0x20] sm:$0xff]  ;;  %v2609_v35 = vld [vmem:[#allocation3 + $0x10] sm:$0xff] }
 0xe48   : >> { %v2627_v20 = vmul.f32 %v7300_v50, %v2590_v18 }
 0xe49   : >> { %v2632_v9 = vadd.f32 %v2616_v15, %v2599_v10  ;;  %v2634_v40 = vadd.f32 %v2618_v16, %v2601_v8 }
 0xe4a   : >> { %v2643_v22 = vadd.f32 %v2627_v20, %v2610_v17 }
 0xe4b   : >> { %2648 = vst [vmem:[#allocation3 + $0x30] sm:$0xff] %v2632_v9  ;;  %v2611_v9 = vld [vmem:[#allocation3 + $0x60] sm:$0xff] }
 0xe4c   : >> { %2650 = vst [vmem:[#allocation3 + $0x58] sm:$0xff] %v2634_v40 }
 0xe4d   : >> { %2659 = vst [vmem:[#allocation3 + $0x38] sm:$0xff] %v2643_v22  ;;  %v2612_v22 = vld [vmem:[#allocation3 + $0x70] sm:$0xff] }
 0xe4e   : >> { %v2570_v56 = vpop.permute.xlu0 %2569  ;;  %v2574_v52 = vpop.permute.xlu1 %2573 }
 0xe4f   : >> { %v2617_v27 = vmul.f32 %v7300_v50, %v2570_v56  ;;  %v2619_v57 = vmul.f32 %v7300_v50, %v2574_v52  ;;  %v2596_v60 = vpop.permute.xlu2 %2595 }
 0xe50   : >> { %v2630_v19 = vmul.f32 %v7300_v50, %v2596_v60 }
 0xe51   : >> { %v2633_v54 = vadd.f32 %v2617_v27, %v2600_v41  ;;  %v2635_v7 = vadd.f32 %v2619_v57, %v2602_v29  ;;  %v2614_v57 = vld [vmem:[#allocation3 + $0x28] sm:$0xff] }
 0xe52   : >> { %v2646_v47 = vadd.f32 %v2630_v19, %v2613_v58 }
 0xe53   : >> { %2649 = vst [vmem:[#allocation3] sm:$0xff] %v2633_v54 }
 0xe54   : >> { %2651 = vst [vmem:[#allocation3 + $0x18] sm:$0xff] %v2635_v7 }
 0xe55   : >> { %2662 = vst [vmem:[#allocation3 + $0x78] sm:$0xff] %v2646_v47 }
 0xe56   : >> { %v2580_v30 = vpop.permute.xlu0 %2579  ;;  %v2582_v2 = vpop.permute.xlu1 %2581 }
 0xe57   : >> { %v2622_v0 = vmul.f32 %v7300_v50, %v2580_v30  ;;  %v2623_v3 = vmul.f32 %v7300_v50, %v2582_v2 }
 0xe59   : >> { %v2638_v5 = vadd.f32 %v2622_v0, %v2605_v62  ;;  %v2639_v10 = vadd.f32 %v2623_v3, %v2606_v63 }
 0xe5b   : >> { %2654 = vst [vmem:[#allocation3 + $0x8] sm:$0xff] %v2638_v5 }
 0xe5c   : >> { %2655 = vst [vmem:[#allocation3 + $0x48] sm:$0xff] %v2639_v10 }
 0xe5e   : >> { %v2586_v8 = vpop.permute.xlu0 %2585  ;;  %v2588_v15 = vpop.permute.xlu1 %2587 }
 0xe5f   : >> { %v2625_v16 = vmul.f32 %v7300_v50, %v2586_v8  ;;  %v2626_v17 = vmul.f32 %v7300_v50, %v2588_v15 }
 0xe61   : >> { %v2641_v18 = vadd.f32 %v2625_v16, %v2608_v13  ;;  %v2642_v20 = vadd.f32 %v2626_v17, %v2609_v35 }
 0xe63   : >> { %2657 = vst [vmem:[#allocation3 + $0x20] sm:$0xff] %v2641_v18 }
 0xe64   : >> { %2658 = vst [vmem:[#allocation3 + $0x10] sm:$0xff] %v2642_v20 }
 0xe66   : >> { %v2592_v40 = vpop.permute.xlu0 %2591  ;;  %v2594_v41 = vpop.permute.xlu1 %2593 }
 0xe67   : >> { %v2628_v56 = vmul.f32 %v7300_v50, %v2592_v40  ;;  %v2629_v29 = vmul.f32 %v7300_v50, %v2594_v41 }
 0xe69   : >> { %v2644_v52 = vadd.f32 %v2628_v56, %v2611_v9  ;;  %v2645_v27 = vadd.f32 %v2629_v29, %v2612_v22 }
 0xe6b   : >> { %2660 = vst [vmem:[#allocation3 + $0x60] sm:$0xff] %v2644_v52 }
 0xe6c   : >> { %2661 = vst [vmem:[#allocation3 + $0x70] sm:$0xff] %v2645_v27 }
 0xe6e   : >> { %v2598_v58 = vpop.permute.xlu0 %2597 }
 0xe6f   : >> { %v2631_v60 = vmul.f32 %v7300_v50, %v2598_v58 }
 0xe71   : >> { %v2647_v19 = vadd.f32 %v2631_v60, %v2614_v57 }
 0xe73   : >> { %2663 = vst [vmem:[#allocation3 + $0x28] sm:$0xff] %v2647_v19 }
 0xe74 PF: >> { %p5830_p2 = scmp.lt.s32.totalorder %s6023_s15, 4 }
 0xe75   : >> { %s6061_s7 = smov (!%p5830_p2), 4   ;;  %s2668_s8 = sadd.s32 (!%p5830_p2), 4294967292, %s6530_s26 }
 0xe76   : >> { %2667 = sbr.rel (%p5830_p2) target bundleno = 3867 (0xf1b), region = 143  ;;  %s2669_s9 = sld [smem:[#allocation6 + %s2668_s8]] (!%p5830_p2) }
 0xe7b   : >> { %2670 = vrot.lane.b32.xlu0 %v6523_v23, %s6061_s7  ;;  %2674 = vrot.lane.b32.xlu1 %v6527_v33, %s6061_s7  ;;  %v2706_v54 = vld [vmem:[#allocation3 + $0x50] sm:$0xff]  ;;  %v2707_v30 = vld [vmem:[#allocation3 + $0x68] sm:$0xff]  ;;  %v2710_v3 = vld [vmem:[#allocation3 + $0x40] sm:$0xff] }
 0xe7c   : >> { %2678 = vrot.lane.b32.xlu2 %v6534_v11, %s6061_s7  ;;  %v7338_v50 = vstv %s2669_s9  ;;  %v2702_v8 = vld [vmem:[#allocation3 + $0x30] sm:$0xff]  ;;  %v2704_v15 = vld [vmem:[#allocation3 + $0x58] sm:$0xff]  ;;  %v2703_v29 = vld [vmem:[#allocation3] sm:$0xff] }
 0xe7d   : >> { %v2713_v20 = vld [vmem:[#allocation3 + $0x38] sm:$0xff] }
 0xe7e   : >> { %v2705_v27 = vld [vmem:[#allocation3 + $0x18] sm:$0xff] }
 0xe7f   : >> { %v2716_v19 = vld [vmem:[#allocation3 + $0x78] sm:$0xff] }
 0xe83   : >> { %2672 = vrot.lane.b32.xlu0 %v6525_v32, %s6061_s7  ;;  %2676 = vrot.lane.b32.xlu1 %v6532_v24, %s6061_s7 }
 0xe84   : >> { %2680 = vrot.lane.b32.xlu2 %v6536_v36, %s6061_s7 }
 0xe8b   : >> { %2682 = vrot.lane.b32.xlu0 %v6538_v37, %s6061_s7  ;;  %2684 = vrot.lane.b32.xlu1 %v6540_v38, %s6061_s7 }
 0xe8c   : >> { %2686 = vrot.lane.b32.xlu2 %v6542_v39, %s6061_s7 }
 0xe93   : >> { %2688 = vrot.lane.b32.xlu0 %v6544_v25, %s6061_s7  ;;  %2690 = vrot.lane.b32.xlu1 %v6546_v28, %s6061_s7 }
 0xe94   : >> { %2692 = vrot.lane.b32.xlu2 %v6548_v42, %s6061_s7 }
 0xe9b   : >> { %2694 = vrot.lane.b32.xlu0 %v6550_v44, %s6061_s7  ;;  %2696 = vrot.lane.b32.xlu1 %v6552_v48, %s6061_s7 }
 0xe9c   : >> { %2698 = vrot.lane.b32.xlu2 %v6554_v49, %s6061_s7 }
 0xea3   : >> { %2700 = vrot.lane.b32.xlu0 %v6556_v26, %s6061_s7 }
 0xed6   : >> { %v2679_v7 = vpop.permute.xlu2 %2678 }
 0xed7   : >> { %v2723_v47 = vmul.f32 %v7338_v50, %v2679_v7 }
 0xed9   : >> { %v2739_v62 = vadd.f32 %v2723_v47, %v2706_v54 }
 0xedb   : >> { %2755 = vst [vmem:[#allocation3 + $0x50] sm:$0xff] %v2739_v62 }
 0xede   : >> { %v2681_v63 = vpop.permute.xlu2 %2680 }
 0xedf   : >> { %v2724_v2 = vmul.f32 %v7338_v50, %v2681_v63  ;;  %v2708_v63 = vld [vmem:[#allocation3 + $0x8] sm:$0xff] }
 0xee1   : >> { %v2740_v0 = vadd.f32 %v2724_v2, %v2707_v30 }
 0xee3   : >> { %2756 = vst [vmem:[#allocation3 + $0x68] sm:$0xff] %v2740_v0  ;;  %v2709_v0 = vld [vmem:[#allocation3 + $0x48] sm:$0xff] }
 0xee6   : >> { %v2687_v5 = vpop.permute.xlu2 %2686 }
 0xee7   : >> { %v2727_v10 = vmul.f32 %v7338_v50, %v2687_v5 }
 0xee9   : >> { %v2743_v13 = vadd.f32 %v2727_v10, %v2710_v3 }
 0xeeb   : >> { %2759 = vst [vmem:[#allocation3 + $0x40] sm:$0xff] %v2743_v13 }
 0xeed   : >> { %v2671_v35 = vpop.permute.xlu0 %2670  ;;  %v2675_v16 = vpop.permute.xlu1 %2674 }
 0xeee   : >> { %v2719_v17 = vmul.f32 %v7338_v50, %v2671_v35  ;;  %v2721_v18 = vmul.f32 %v7338_v50, %v2675_v16  ;;  %v2693_v9 = vpop.permute.xlu2 %2692  ;;  %v2711_v35 = vld [vmem:[#allocation3 + $0x20] sm:$0xff]  ;;  %v2712_v16 = vld [vmem:[#allocation3 + $0x10] sm:$0xff] }
 0xeef   : >> { %v2730_v40 = vmul.f32 %v7338_v50, %v2693_v9 }
 0xef0   : >> { %v2735_v22 = vadd.f32 %v2719_v17, %v2702_v8  ;;  %v2737_v41 = vadd.f32 %v2721_v18, %v2704_v15 }
 0xef1   : >> { %v2746_v56 = vadd.f32 %v2730_v40, %v2713_v20 }
 0xef2   : >> { %2751 = vst [vmem:[#allocation3 + $0x30] sm:$0xff] %v2735_v22  ;;  %v2714_v22 = vld [vmem:[#allocation3 + $0x60] sm:$0xff] }
 0xef3   : >> { %2753 = vst [vmem:[#allocation3 + $0x58] sm:$0xff] %v2737_v41 }
 0xef4   : >> { %2762 = vst [vmem:[#allocation3 + $0x38] sm:$0xff] %v2746_v56  ;;  %v2715_v56 = vld [vmem:[#allocation3 + $0x70] sm:$0xff] }
 0xef5   : >> { %v2673_v52 = vpop.permute.xlu0 %2672  ;;  %v2677_v57 = vpop.permute.xlu1 %2676 }
 0xef6   : >> { %v2720_v58 = vmul.f32 %v7338_v50, %v2673_v52  ;;  %v2722_v60 = vmul.f32 %v7338_v50, %v2677_v57  ;;  %v2699_v54 = vpop.permute.xlu2 %2698 }
 0xef7   : >> { %v2733_v7 = vmul.f32 %v7338_v50, %v2699_v54 }
 0xef8   : >> { %v2736_v47 = vadd.f32 %v2720_v58, %v2703_v29  ;;  %v2738_v62 = vadd.f32 %v2722_v60, %v2705_v27  ;;  %v2717_v60 = vld [vmem:[#allocation3 + $0x28] sm:$0xff] }
 0xef9   : >> { %v2749_v30 = vadd.f32 %v2733_v7, %v2716_v19 }
 0xefa   : >> { %2752 = vst [vmem:[#allocation3] sm:$0xff] %v2736_v47 }
 0xefb   : >> { %2754 = vst [vmem:[#allocation3 + $0x18] sm:$0xff] %v2738_v62 }
 0xefc   : >> { %2765 = vst [vmem:[#allocation3 + $0x78] sm:$0xff] %v2749_v30 }
 0xefd   : >> { %v2683_v2 = vpop.permute.xlu0 %2682  ;;  %v2685_v3 = vpop.permute.xlu1 %2684 }
 0xefe   : >> { %v2725_v5 = vmul.f32 %v7338_v50, %v2683_v2  ;;  %v2726_v10 = vmul.f32 %v7338_v50, %v2685_v3 }
 0xf00   : >> { %v2741_v13 = vadd.f32 %v2725_v5, %v2708_v63  ;;  %v2742_v8 = vadd.f32 %v2726_v10, %v2709_v0 }
 0xf02   : >> { %2757 = vst [vmem:[#allocation3 + $0x8] sm:$0xff] %v2741_v13 }
 0xf03   : >> { %2758 = vst [vmem:[#allocation3 + $0x48] sm:$0xff] %v2742_v8 }
 0xf05   : >> { %v2689_v15 = vpop.permute.xlu0 %2688  ;;  %v2691_v17 = vpop.permute.xlu1 %2690 }
 0xf06   : >> { %v2728_v18 = vmul.f32 %v7338_v50, %v2689_v15  ;;  %v2729_v20 = vmul.f32 %v7338_v50, %v2691_v17 }
 0xf08   : >> { %v2744_v9 = vadd.f32 %v2728_v18, %v2711_v35  ;;  %v2745_v40 = vadd.f32 %v2729_v20, %v2712_v16 }
 0xf0a   : >> { %2760 = vst [vmem:[#allocation3 + $0x20] sm:$0xff] %v2744_v9 }
 0xf0b   : >> { %2761 = vst [vmem:[#allocation3 + $0x10] sm:$0xff] %v2745_v40 }
 0xf0d   : >> { %v2695_v41 = vpop.permute.xlu0 %2694  ;;  %v2697_v29 = vpop.permute.xlu1 %2696 }
 0xf0e   : >> { %v2731_v52 = vmul.f32 %v7338_v50, %v2695_v41  ;;  %v2732_v27 = vmul.f32 %v7338_v50, %v2697_v29 }
 0xf10   : >> { %v2747_v57 = vadd.f32 %v2731_v52, %v2714_v22  ;;  %v2748_v58 = vadd.f32 %v2732_v27, %v2715_v56 }
 0xf12   : >> { %2763 = vst [vmem:[#allocation3 + $0x60] sm:$0xff] %v2747_v57 }
 0xf13   : >> { %2764 = vst [vmem:[#allocation3 + $0x70] sm:$0xff] %v2748_v58 }
 0xf15   : >> { %v2701_v19 = vpop.permute.xlu0 %2700 }
 0xf16   : >> { %v2734_v54 = vmul.f32 %v7338_v50, %v2701_v19 }
 0xf18   : >> { %v2750_v7 = vadd.f32 %v2734_v54, %v2717_v60 }
 0xf1a   : >> { %2766 = vst [vmem:[#allocation3 + $0x28] sm:$0xff] %v2750_v7 }
 0xf1b PF: >> { %p5831_p3 = scmp.lt.s32.totalorder %s6023_s15, 3 }
 0xf1c   : >> { %s6062_s10 = smov (!%p5831_p3), 3   ;;  %s2771_s11 = sadd.s32 (!%p5831_p3), 4294967293, %s6530_s26 }
 0xf1d   : >> { %2770 = sbr.rel (%p5831_p3) target bundleno = 4034 (0xfc2), region = 147  ;;  %s2772_s12 = sld [smem:[#allocation6 + %s2771_s11]] (!%p5831_p3) }
 0xf22   : >> { %2773 = vrot.lane.b32.xlu0 %v6523_v23, %s6062_s10  ;;  %2777 = vrot.lane.b32.xlu1 %v6527_v33, %s6062_s10  ;;  %v2809_v47 = vld [vmem:[#allocation3 + $0x50] sm:$0xff]  ;;  %v2810_v2 = vld [vmem:[#allocation3 + $0x68] sm:$0xff]  ;;  %v2813_v10 = vld [vmem:[#allocation3 + $0x40] sm:$0xff] }
 0xf23   : >> { %2781 = vrot.lane.b32.xlu2 %v6534_v11, %s6062_s10  ;;  %v7376_v50 = vstv %s2772_s12  ;;  %v2805_v15 = vld [vmem:[#allocation3 + $0x30] sm:$0xff]  ;;  %v2807_v17 = vld [vmem:[#allocation3 + $0x58] sm:$0xff]  ;;  %v2806_v27 = vld [vmem:[#allocation3] sm:$0xff] }
 0xf24   : >> { %v2816_v40 = vld [vmem:[#allocation3 + $0x38] sm:$0xff] }
 0xf25   : >> { %v2808_v58 = vld [vmem:[#allocation3 + $0x18] sm:$0xff] }
 0xf26   : >> { %v2819_v7 = vld [vmem:[#allocation3 + $0x78] sm:$0xff] }
 0xf2a   : >> { %2775 = vrot.lane.b32.xlu0 %v6525_v32, %s6062_s10  ;;  %2779 = vrot.lane.b32.xlu1 %v6532_v24, %s6062_s10 }
 0xf2b   : >> { %2783 = vrot.lane.b32.xlu2 %v6536_v36, %s6062_s10 }
 0xf32   : >> { %2785 = vrot.lane.b32.xlu0 %v6538_v37, %s6062_s10  ;;  %2787 = vrot.lane.b32.xlu1 %v6540_v38, %s6062_s10 }
 0xf33   : >> { %2789 = vrot.lane.b32.xlu2 %v6542_v39, %s6062_s10 }
 0xf3a   : >> { %2791 = vrot.lane.b32.xlu0 %v6544_v25, %s6062_s10  ;;  %2793 = vrot.lane.b32.xlu1 %v6546_v28, %s6062_s10 }
 0xf3b   : >> { %2795 = vrot.lane.b32.xlu2 %v6548_v42, %s6062_s10 }
 0xf42   : >> { %2797 = vrot.lane.b32.xlu0 %v6550_v44, %s6062_s10  ;;  %2799 = vrot.lane.b32.xlu1 %v6552_v48, %s6062_s10 }
 0xf43   : >> { %2801 = vrot.lane.b32.xlu2 %v6554_v49, %s6062_s10 }
 0xf4a   : >> { %2803 = vrot.lane.b32.xlu0 %v6556_v26, %s6062_s10 }
 0xf7d   : >> { %v2782_v62 = vpop.permute.xlu2 %2781 }
 0xf7e   : >> { %v2826_v30 = vmul.f32 %v7376_v50, %v2782_v62 }
 0xf80   : >> { %v2842_v63 = vadd.f32 %v2826_v30, %v2809_v47 }
 0xf82   : >> { %2858 = vst [vmem:[#allocation3 + $0x50] sm:$0xff] %v2842_v63 }
 0xf85   : >> { %v2784_v0 = vpop.permute.xlu2 %2783 }
 0xf86   : >> { %v2827_v3 = vmul.f32 %v7376_v50, %v2784_v0  ;;  %v2811_v0 = vld [vmem:[#allocation3 + $0x8] sm:$0xff] }
 0xf88   : >> { %v2843_v5 = vadd.f32 %v2827_v3, %v2810_v2 }
 0xf8a   : >> { %2859 = vst [vmem:[#allocation3 + $0x68] sm:$0xff] %v2843_v5  ;;  %v2812_v5 = vld [vmem:[#allocation3 + $0x48] sm:$0xff] }
 0xf8d   : >> { %v2790_v13 = vpop.permute.xlu2 %2789 }
 0xf8e   : >> { %v2830_v8 = vmul.f32 %v7376_v50, %v2790_v13 }
 0xf90   : >> { %v2846_v35 = vadd.f32 %v2830_v8, %v2813_v10 }
 0xf92   : >> { %2862 = vst [vmem:[#allocation3 + $0x40] sm:$0xff] %v2846_v35 }
 0xf94   : >> { %v2774_v16 = vpop.permute.xlu0 %2773  ;;  %v2778_v18 = vpop.permute.xlu1 %2777 }
 0xf95   : >> { %v2822_v20 = vmul.f32 %v7376_v50, %v2774_v16  ;;  %v2824_v9 = vmul.f32 %v7376_v50, %v2778_v18  ;;  %v2796_v22 = vpop.permute.xlu2 %2795  ;;  %v2814_v16 = vld [vmem:[#allocation3 + $0x20] sm:$0xff]  ;;  %v2815_v18 = vld [vmem:[#allocation3 + $0x10] sm:$0xff] }
 0xf96   : >> { %v2833_v41 = vmul.f32 %v7376_v50, %v2796_v22 }
 0xf97   : >> { %v2838_v56 = vadd.f32 %v2822_v20, %v2805_v15  ;;  %v2840_v29 = vadd.f32 %v2824_v9, %v2807_v17 }
 0xf98   : >> { %v2849_v52 = vadd.f32 %v2833_v41, %v2816_v40 }
 0xf99   : >> { %2854 = vst [vmem:[#allocation3 + $0x30] sm:$0xff] %v2838_v56  ;;  %v2817_v56 = vld [vmem:[#allocation3 + $0x60] sm:$0xff] }
 0xf9a   : >> { %2856 = vst [vmem:[#allocation3 + $0x58] sm:$0xff] %v2840_v29 }
 0xf9b   : >> { %2865 = vst [vmem:[#allocation3 + $0x38] sm:$0xff] %v2849_v52  ;;  %v2818_v52 = vld [vmem:[#allocation3 + $0x70] sm:$0xff] }
 0xf9c   : >> { %v2776_v57 = vpop.permute.xlu0 %2775  ;;  %v2780_v60 = vpop.permute.xlu1 %2779 }
 0xf9d   : >> { %v2823_v19 = vmul.f32 %v7376_v50, %v2776_v57  ;;  %v2825_v54 = vmul.f32 %v7376_v50, %v2780_v60  ;;  %v2802_v47 = vpop.permute.xlu2 %2801 }
 0xf9e   : >> { %v2836_v62 = vmul.f32 %v7376_v50, %v2802_v47 }
 0xf9f   : >> { %v2839_v30 = vadd.f32 %v2823_v19, %v2806_v27  ;;  %v2841_v63 = vadd.f32 %v2825_v54, %v2808_v58  ;;  %v2820_v54 = vld [vmem:[#allocation3 + $0x28] sm:$0xff] }
 0xfa0   : >> { %v2852_v2 = vadd.f32 %v2836_v62, %v2819_v7 }
 0xfa1   : >> { %2855 = vst [vmem:[#allocation3] sm:$0xff] %v2839_v30 }
 0xfa2   : >> { %2857 = vst [vmem:[#allocation3 + $0x18] sm:$0xff] %v2841_v63 }
 0xfa3   : >> { %2868 = vst [vmem:[#allocation3 + $0x78] sm:$0xff] %v2852_v2 }
 0xfa4   : >> { %v2786_v3 = vpop.permute.xlu0 %2785  ;;  %v2788_v10 = vpop.permute.xlu1 %2787 }
 0xfa5   : >> { %v2828_v13 = vmul.f32 %v7376_v50, %v2786_v3  ;;  %v2829_v8 = vmul.f32 %v7376_v50, %v2788_v10 }
 0xfa7   : >> { %v2844_v35 = vadd.f32 %v2828_v13, %v2811_v0  ;;  %v2845_v15 = vadd.f32 %v2829_v8, %v2812_v5 }
 0xfa9   : >> { %2860 = vst [vmem:[#allocation3 + $0x8] sm:$0xff] %v2844_v35 }
 0xfaa   : >> { %2861 = vst [vmem:[#allocation3 + $0x48] sm:$0xff] %v2845_v15 }
 0xfac   : >> { %v2792_v17 = vpop.permute.xlu0 %2791  ;;  %v2794_v20 = vpop.permute.xlu1 %2793 }
 0xfad   : >> { %v2831_v9 = vmul.f32 %v7376_v50, %v2792_v17  ;;  %v2832_v40 = vmul.f32 %v7376_v50, %v2794_v20 }
 0xfaf   : >> { %v2847_v22 = vadd.f32 %v2831_v9, %v2814_v16  ;;  %v2848_v41 = vadd.f32 %v2832_v40, %v2815_v18 }
 0xfb1   : >> { %2863 = vst [vmem:[#allocation3 + $0x20] sm:$0xff] %v2847_v22 }
 0xfb2   : >> { %2864 = vst [vmem:[#allocation3 + $0x10] sm:$0xff] %v2848_v41 }
 0xfb4   : >> { %v2798_v29 = vpop.permute.xlu0 %2797  ;;  %v2800_v27 = vpop.permute.xlu1 %2799 }
 0xfb5   : >> { %v2834_v57 = vmul.f32 %v7376_v50, %v2798_v29  ;;  %v2835_v58 = vmul.f32 %v7376_v50, %v2800_v27 }
 0xfb7   : >> { %v2850_v60 = vadd.f32 %v2834_v57, %v2817_v56  ;;  %v2851_v19 = vadd.f32 %v2835_v58, %v2818_v52 }
 0xfb9   : >> { %2866 = vst [vmem:[#allocation3 + $0x60] sm:$0xff] %v2850_v60 }
 0xfba   : >> { %2867 = vst [vmem:[#allocation3 + $0x70] sm:$0xff] %v2851_v19 }
 0xfbc   : >> { %v2804_v7 = vpop.permute.xlu0 %2803 }
 0xfbd   : >> { %v2837_v47 = vmul.f32 %v7376_v50, %v2804_v7 }
 0xfbf   : >> { %v2853_v62 = vadd.f32 %v2837_v47, %v2820_v54 }
 0xfc1   : >> { %2869 = vst [vmem:[#allocation3 + $0x28] sm:$0xff] %v2853_v62 }
 0xfc2 PF: >> { %p5832_p4 = scmp.lt.s32.totalorder %s6023_s15, 2 }
 0xfc3   : >> { %s6063_s13 = smov (!%p5832_p4), 2   ;;  %s2874_s21 = sadd.s32 (!%p5832_p4), 4294967294, %s6530_s26 }
 0xfc4   : >> { %2873 = sbr.rel (%p5832_p4) target bundleno = 4201 (0x1069), region = 151  ;;  %s2875_s22 = sld [smem:[#allocation6 + %s2874_s21]] (!%p5832_p4) }
 0xfc9   : >> { %2876 = vrot.lane.b32.xlu0 %v6523_v23, %s6063_s13  ;;  %2880 = vrot.lane.b32.xlu1 %v6527_v33, %s6063_s13  ;;  %v2912_v30 = vld [vmem:[#allocation3 + $0x50] sm:$0xff]  ;;  %v2913_v3 = vld [vmem:[#allocation3 + $0x68] sm:$0xff]  ;;  %v2916_v8 = vld [vmem:[#allocation3 + $0x40] sm:$0xff] }
 0xfca   : >> { %2884 = vrot.lane.b32.xlu2 %v6534_v11, %s6063_s13  ;;  %v7414_v50 = vstv %s2875_s22  ;;  %v2908_v17 = vld [vmem:[#allocation3 + $0x30] sm:$0xff]  ;;  %v2910_v20 = vld [vmem:[#allocation3 + $0x58] sm:$0xff]  ;;  %v2909_v58 = vld [vmem:[#allocation3] sm:$0xff] }
 0xfcb   : >> { %v2919_v41 = vld [vmem:[#allocation3 + $0x38] sm:$0xff] }
 0xfcc   : >> { %v2911_v19 = vld [vmem:[#allocation3 + $0x18] sm:$0xff] }
 0xfcd   : >> { %v2922_v62 = vld [vmem:[#allocation3 + $0x78] sm:$0xff] }
 0xfd1   : >> { %2878 = vrot.lane.b32.xlu0 %v6525_v32, %s6063_s13  ;;  %2882 = vrot.lane.b32.xlu1 %v6532_v24, %s6063_s13 }
 0xfd2   : >> { %2886 = vrot.lane.b32.xlu2 %v6536_v36, %s6063_s13 }
 0xfd9   : >> { %2888 = vrot.lane.b32.xlu0 %v6538_v37, %s6063_s13  ;;  %2890 = vrot.lane.b32.xlu1 %v6540_v38, %s6063_s13 }
 0xfda   : >> { %2892 = vrot.lane.b32.xlu2 %v6542_v39, %s6063_s13 }
 0xfe1   : >> { %2894 = vrot.lane.b32.xlu0 %v6544_v25, %s6063_s13  ;;  %2896 = vrot.lane.b32.xlu1 %v6546_v28, %s6063_s13 }
 0xfe2   : >> { %2898 = vrot.lane.b32.xlu2 %v6548_v42, %s6063_s13 }
 0xfe9   : >> { %2900 = vrot.lane.b32.xlu0 %v6550_v44, %s6063_s13  ;;  %2902 = vrot.lane.b32.xlu1 %v6552_v48, %s6063_s13 }
 0xfea   : >> { %2904 = vrot.lane.b32.xlu2 %v6554_v49, %s6063_s13 }
 0xff1   : >> { %2906 = vrot.lane.b32.xlu0 %v6556_v26, %s6063_s13 }
0x1024   : >> { %v2885_v63 = vpop.permute.xlu2 %2884 }
0x1025   : >> { %v2929_v2 = vmul.f32 %v7414_v50, %v2885_v63 }
0x1027   : >> { %v2945_v0 = vadd.f32 %v2929_v2, %v2912_v30 }
0x1029   : >> { %2961 = vst [vmem:[#allocation3 + $0x50] sm:$0xff] %v2945_v0 }
0x102c   : >> { %v2887_v5 = vpop.permute.xlu2 %2886 }
0x102d   : >> { %v2930_v10 = vmul.f32 %v7414_v50, %v2887_v5  ;;  %v2914_v5 = vld [vmem:[#allocation3 + $0x8] sm:$0xff] }
0x102f   : >> { %v2946_v13 = vadd.f32 %v2930_v10, %v2913_v3 }
0x1031   : >> { %2962 = vst [vmem:[#allocation3 + $0x68] sm:$0xff] %v2946_v13  ;;  %v2915_v13 = vld [vmem:[#allocation3 + $0x48] sm:$0xff] }
0x1034   : >> { %v2893_v35 = vpop.permute.xlu2 %2892 }
0x1035   : >> { %v2933_v15 = vmul.f32 %v7414_v50, %v2893_v35 }
0x1037   : >> { %v2949_v16 = vadd.f32 %v2933_v15, %v2916_v8 }
0x1039   : >> { %2965 = vst [vmem:[#allocation3 + $0x40] sm:$0xff] %v2949_v16 }
0x103b   : >> { %v2877_v18 = vpop.permute.xlu0 %2876  ;;  %v2881_v9 = vpop.permute.xlu1 %2880 }
0x103c   : >> { %v2925_v40 = vmul.f32 %v7414_v50, %v2877_v18  ;;  %v2927_v22 = vmul.f32 %v7414_v50, %v2881_v9  ;;  %v2899_v56 = vpop.permute.xlu2 %2898  ;;  %v2917_v18 = vld [vmem:[#allocation3 + $0x20] sm:$0xff]  ;;  %v2918_v9 = vld [vmem:[#allocation3 + $0x10] sm:$0xff] }
0x103d   : >> { %v2936_v29 = vmul.f32 %v7414_v50, %v2899_v56 }
0x103e   : >> { %v2941_v52 = vadd.f32 %v2925_v40, %v2908_v17  ;;  %v2943_v27 = vadd.f32 %v2927_v22, %v2910_v20 }
0x103f   : >> { %v2952_v57 = vadd.f32 %v2936_v29, %v2919_v41 }
0x1040   : >> { %2957 = vst [vmem:[#allocation3 + $0x30] sm:$0xff] %v2941_v52  ;;  %v2920_v52 = vld [vmem:[#allocation3 + $0x60] sm:$0xff] }
0x1041   : >> { %2959 = vst [vmem:[#allocation3 + $0x58] sm:$0xff] %v2943_v27 }
0x1042   : >> { %2968 = vst [vmem:[#allocation3 + $0x38] sm:$0xff] %v2952_v57  ;;  %v2921_v57 = vld [vmem:[#allocation3 + $0x70] sm:$0xff] }
0x1043   : >> { %v2879_v60 = vpop.permute.xlu0 %2878  ;;  %v2883_v54 = vpop.permute.xlu1 %2882 }
0x1044   : >> { %v2926_v7 = vmul.f32 %v7414_v50, %v2879_v60  ;;  %v2928_v47 = vmul.f32 %v7414_v50, %v2883_v54  ;;  %v2905_v30 = vpop.permute.xlu2 %2904 }
0x1045   : >> { %v2939_v63 = vmul.f32 %v7414_v50, %v2905_v30 }
0x1046   : >> { %v2942_v2 = vadd.f32 %v2926_v7, %v2909_v58  ;;  %v2944_v0 = vadd.f32 %v2928_v47, %v2911_v19  ;;  %v2923_v47 = vld [vmem:[#allocation3 + $0x28] sm:$0xff] }
0x1047   : >> { %v2955_v3 = vadd.f32 %v2939_v63, %v2922_v62 }
0x1048   : >> { %2958 = vst [vmem:[#allocation3] sm:$0xff] %v2942_v2 }
0x1049   : >> { %2960 = vst [vmem:[#allocation3 + $0x18] sm:$0xff] %v2944_v0 }
0x104a   : >> { %2971 = vst [vmem:[#allocation3 + $0x78] sm:$0xff] %v2955_v3 }
0x104b   : >> { %v2889_v10 = vpop.permute.xlu0 %2888  ;;  %v2891_v8 = vpop.permute.xlu1 %2890 }
0x104c   : >> { %v2931_v35 = vmul.f32 %v7414_v50, %v2889_v10  ;;  %v2932_v15 = vmul.f32 %v7414_v50, %v2891_v8 }
0x104e   : >> { %v2947_v16 = vadd.f32 %v2931_v35, %v2914_v5  ;;  %v2948_v17 = vadd.f32 %v2932_v15, %v2915_v13 }
0x1050   : >> { %2963 = vst [vmem:[#allocation3 + $0x8] sm:$0xff] %v2947_v16 }
0x1051   : >> { %2964 = vst [vmem:[#allocation3 + $0x48] sm:$0xff] %v2948_v17 }
0x1053   : >> { %v2895_v20 = vpop.permute.xlu0 %2894  ;;  %v2897_v40 = vpop.permute.xlu1 %2896 }
0x1054   : >> { %v2934_v22 = vmul.f32 %v7414_v50, %v2895_v20  ;;  %v2935_v41 = vmul.f32 %v7414_v50, %v2897_v40 }
0x1056   : >> { %v2950_v56 = vadd.f32 %v2934_v22, %v2917_v18  ;;  %v2951_v29 = vadd.f32 %v2935_v41, %v2918_v9 }
0x1058   : >> { %2966 = vst [vmem:[#allocation3 + $0x20] sm:$0xff] %v2950_v56 }
0x1059   : >> { %2967 = vst [vmem:[#allocation3 + $0x10] sm:$0xff] %v2951_v29 }
0x105b   : >> { %v2901_v27 = vpop.permute.xlu0 %2900  ;;  %v2903_v58 = vpop.permute.xlu1 %2902 }
0x105c   : >> { %v2937_v60 = vmul.f32 %v7414_v50, %v2901_v27  ;;  %v2938_v19 = vmul.f32 %v7414_v50, %v2903_v58 }
0x105e   : >> { %v2953_v54 = vadd.f32 %v2937_v60, %v2920_v52  ;;  %v2954_v7 = vadd.f32 %v2938_v19, %v2921_v57 }
0x1060   : >> { %2969 = vst [vmem:[#allocation3 + $0x60] sm:$0xff] %v2953_v54 }
0x1061   : >> { %2970 = vst [vmem:[#allocation3 + $0x70] sm:$0xff] %v2954_v7 }
0x1063   : >> { %v2907_v62 = vpop.permute.xlu0 %2906 }
0x1064   : >> { %v2940_v30 = vmul.f32 %v7414_v50, %v2907_v62 }
0x1066   : >> { %v2956_v63 = vadd.f32 %v2940_v30, %v2923_v47 }
0x1068   : >> { %2972 = vst [vmem:[#allocation3 + $0x28] sm:$0xff] %v2956_v63 }
0x1069 PF: >> { %p5833_p5 = scmp.lt.s32.totalorder %s6023_s15, 1 }
0x106a   : >> { %s6064_s23 = smov (!%p5833_p5), 1   ;;  %s2977_s24 = sadd.s32 (!%p5833_p5), 4294967295, %s6530_s26 }
0x106b   : >> { %2976 = sbr.rel (%p5833_p5) target bundleno = 4368 (0x1110), region = 155  ;;  %s2978_s25 = sld [smem:[#allocation6 + %s2977_s24]] (!%p5833_p5) }
0x1070   : >> { %2979 = vrot.lane.b32.xlu0 %v6523_v23, %s6064_s23  ;;  %2983 = vrot.lane.b32.xlu1 %v6527_v33, %s6064_s23  ;;  %v3015_v2 = vld [vmem:[#allocation3 + $0x50] sm:$0xff]  ;;  %v3016_v10 = vld [vmem:[#allocation3 + $0x68] sm:$0xff]  ;;  %v3019_v15 = vld [vmem:[#allocation3 + $0x40] sm:$0xff] }
0x1071   : >> { %2987 = vrot.lane.b32.xlu2 %v6534_v11, %s6064_s23  ;;  %v7452_v50 = vstv %s2978_s25  ;;  %v3011_v20 = vld [vmem:[#allocation3 + $0x30] sm:$0xff]  ;;  %v3013_v40 = vld [vmem:[#allocation3 + $0x58] sm:$0xff]  ;;  %v3012_v19 = vld [vmem:[#allocation3] sm:$0xff] }
0x1072   : >> { %v3022_v29 = vld [vmem:[#allocation3 + $0x38] sm:$0xff] }
0x1073   : >> { %v3014_v7 = vld [vmem:[#allocation3 + $0x18] sm:$0xff] }
0x1074   : >> { %v3025_v63 = vld [vmem:[#allocation3 + $0x78] sm:$0xff] }
0x1078   : >> { %2981 = vrot.lane.b32.xlu0 %v6525_v32, %s6064_s23  ;;  %2985 = vrot.lane.b32.xlu1 %v6532_v24, %s6064_s23 }
0x1079   : >> { %2989 = vrot.lane.b32.xlu2 %v6536_v36, %s6064_s23 }
0x1080   : >> { %2991 = vrot.lane.b32.xlu0 %v6538_v37, %s6064_s23  ;;  %2993 = vrot.lane.b32.xlu1 %v6540_v38, %s6064_s23 }
0x1081   : >> { %2995 = vrot.lane.b32.xlu2 %v6542_v39, %s6064_s23 }
0x1088   : >> { %2997 = vrot.lane.b32.xlu0 %v6544_v25, %s6064_s23  ;;  %2999 = vrot.lane.b32.xlu1 %v6546_v28, %s6064_s23 }
0x1089   : >> { %3001 = vrot.lane.b32.xlu2 %v6548_v42, %s6064_s23 }
0x1090   : >> { %3003 = vrot.lane.b32.xlu0 %v6550_v44, %s6064_s23  ;;  %3005 = vrot.lane.b32.xlu1 %v6552_v48, %s6064_s23 }
0x1091   : >> { %3007 = vrot.lane.b32.xlu2 %v6554_v49, %s6064_s23 }
0x1098   : >> { %3009 = vrot.lane.b32.xlu0 %v6556_v26, %s6064_s23 }
0x10cb   : >> { %v2988_v0 = vpop.permute.xlu2 %2987 }
0x10cc   : >> { %v3032_v3 = vmul.f32 %v7452_v50, %v2988_v0 }
0x10ce   : >> { %v3048_v5 = vadd.f32 %v3032_v3, %v3015_v2 }
0x10d0   : >> { %3064 = vst [vmem:[#allocation3 + $0x50] sm:$0xff] %v3048_v5 }
0x10d3   : >> { %v2990_v13 = vpop.permute.xlu2 %2989 }
0x10d4   : >> { %v3033_v8 = vmul.f32 %v7452_v50, %v2990_v13  ;;  %v3017_v13 = vld [vmem:[#allocation3 + $0x8] sm:$0xff] }
0x10d6   : >> { %v3049_v35 = vadd.f32 %v3033_v8, %v3016_v10 }
0x10d8   : >> { %3065 = vst [vmem:[#allocation3 + $0x68] sm:$0xff] %v3049_v35  ;;  %v3018_v35 = vld [vmem:[#allocation3 + $0x48] sm:$0xff] }
0x10db   : >> { %v2996_v16 = vpop.permute.xlu2 %2995 }
0x10dc   : >> { %v3036_v17 = vmul.f32 %v7452_v50, %v2996_v16 }
0x10de   : >> { %v3052_v18 = vadd.f32 %v3036_v17, %v3019_v15 }
0x10e0   : >> { %3068 = vst [vmem:[#allocation3 + $0x40] sm:$0xff] %v3052_v18 }
0x10e2   : >> { %v2980_v9 = vpop.permute.xlu0 %2979  ;;  %v2984_v22 = vpop.permute.xlu1 %2983 }
0x10e3   : >> { %v3028_v41 = vmul.f32 %v7452_v50, %v2980_v9  ;;  %v3030_v56 = vmul.f32 %v7452_v50, %v2984_v22  ;;  %v3002_v52 = vpop.permute.xlu2 %3001  ;;  %v3020_v9 = vld [vmem:[#allocation3 + $0x20] sm:$0xff]  ;;  %v3021_v22 = vld [vmem:[#allocation3 + $0x10] sm:$0xff] }
0x10e4   : >> { %v3039_v27 = vmul.f32 %v7452_v50, %v3002_v52 }
0x10e5   : >> { %v3044_v57 = vadd.f32 %v3028_v41, %v3011_v20  ;;  %v3046_v58 = vadd.f32 %v3030_v56, %v3013_v40 }
0x10e6   : >> { %v3055_v60 = vadd.f32 %v3039_v27, %v3022_v29 }
0x10e7   : >> { %3060 = vst [vmem:[#allocation3 + $0x30] sm:$0xff] %v3044_v57  ;;  %v3023_v57 = vld [vmem:[#allocation3 + $0x60] sm:$0xff] }
0x10e8   : >> { %3062 = vst [vmem:[#allocation3 + $0x58] sm:$0xff] %v3046_v58 }
0x10e9   : >> { %3071 = vst [vmem:[#allocation3 + $0x38] sm:$0xff] %v3055_v60  ;;  %v3024_v60 = vld [vmem:[#allocation3 + $0x70] sm:$0xff] }
0x10ea   : >> { %v2982_v54 = vpop.permute.xlu0 %2981  ;;  %v2986_v47 = vpop.permute.xlu1 %2985 }
0x10eb   : >> { %v3029_v62 = vmul.f32 %v7452_v50, %v2982_v54  ;;  %v3031_v30 = vmul.f32 %v7452_v50, %v2986_v47  ;;  %v3008_v2 = vpop.permute.xlu2 %3007 }
0x10ec   : >> { %v3042_v0 = vmul.f32 %v7452_v50, %v3008_v2 }
0x10ed   : >> { %v3045_v3 = vadd.f32 %v3029_v62, %v3012_v19  ;;  %v3047_v5 = vadd.f32 %v3031_v30, %v3014_v7  ;;  %v3026_v30 = vld [vmem:[#allocation3 + $0x28] sm:$0xff] }
0x10ee   : >> { %v3058_v10 = vadd.f32 %v3042_v0, %v3025_v63 }
0x10ef   : >> { %3061 = vst [vmem:[#allocation3] sm:$0xff] %v3045_v3 }
0x10f0   : >> { %3063 = vst [vmem:[#allocation3 + $0x18] sm:$0xff] %v3047_v5 }
0x10f1   : >> { %3074 = vst [vmem:[#allocation3 + $0x78] sm:$0xff] %v3058_v10 }
0x10f2   : >> { %v2992_v8 = vpop.permute.xlu0 %2991  ;;  %v2994_v15 = vpop.permute.xlu1 %2993 }
0x10f3   : >> { %v3034_v16 = vmul.f32 %v7452_v50, %v2992_v8  ;;  %v3035_v17 = vmul.f32 %v7452_v50, %v2994_v15 }
0x10f5   : >> { %v3050_v18 = vadd.f32 %v3034_v16, %v3017_v13  ;;  %v3051_v20 = vadd.f32 %v3035_v17, %v3018_v35 }
0x10f7   : >> { %3066 = vst [vmem:[#allocation3 + $0x8] sm:$0xff] %v3050_v18 }
0x10f8   : >> { %3067 = vst [vmem:[#allocation3 + $0x48] sm:$0xff] %v3051_v20 }
0x10fa   : >> { %v2998_v40 = vpop.permute.xlu0 %2997  ;;  %v3000_v41 = vpop.permute.xlu1 %2999 }
0x10fb   : >> { %v3037_v56 = vmul.f32 %v7452_v50, %v2998_v40  ;;  %v3038_v29 = vmul.f32 %v7452_v50, %v3000_v41 }
0x10fd   : >> { %v3053_v52 = vadd.f32 %v3037_v56, %v3020_v9  ;;  %v3054_v27 = vadd.f32 %v3038_v29, %v3021_v22 }
0x10ff   : >> { %3069 = vst [vmem:[#allocation3 + $0x20] sm:$0xff] %v3053_v52 }
0x1100   : >> { %3070 = vst [vmem:[#allocation3 + $0x10] sm:$0xff] %v3054_v27 }
0x1102   : >> { %v3004_v58 = vpop.permute.xlu0 %3003  ;;  %v3006_v19 = vpop.permute.xlu1 %3005 }
0x1103   : >> { %v3040_v54 = vmul.f32 %v7452_v50, %v3004_v58  ;;  %v3041_v7 = vmul.f32 %v7452_v50, %v3006_v19 }
0x1105   : >> { %v3056_v47 = vadd.f32 %v3040_v54, %v3023_v57  ;;  %v3057_v62 = vadd.f32 %v3041_v7, %v3024_v60 }
0x1107   : >> { %3072 = vst [vmem:[#allocation3 + $0x60] sm:$0xff] %v3056_v47 }
0x1108   : >> { %3073 = vst [vmem:[#allocation3 + $0x70] sm:$0xff] %v3057_v62 }
0x110a   : >> { %v3010_v63 = vpop.permute.xlu0 %3009 }
0x110b   : >> { %v3043_v2 = vmul.f32 %v7452_v50, %v3010_v63 }
0x110d   : >> { %v3059_v0 = vadd.f32 %v3043_v2, %v3026_v30 }
0x110f   : >> { %3075 = vst [vmem:[#allocation3 + $0x28] sm:$0xff] %v3059_v0 }
0x1110 PF: >> { %p5834_p6 = scmp.lt.s32.totalorder %s6023_s15, 0 }
0x1111   : >> { %s3080_s27 = sld [smem:[#allocation6 + %s6530_s26]] (!%p5834_p6) }
0x1112   : >> { %3079 = sbr.rel (%p5834_p6) target bundleno = 4396 (0x112c), region = 159 }
0x1117   : >> { %v3081_v3 = vld [vmem:[#allocation3 + $0x30] sm:$0xff]  ;;  %v3097_v5 = vstv %s3080_s27  ;;  %v3082_v10 = vld [vmem:[#allocation3] sm:$0xff]  ;;  %v3083_v13 = vld [vmem:[#allocation3 + $0x58] sm:$0xff] }
0x1118   : >> { %v3098_v8 = vmul.f32 %v6523_v23, %v3097_v5  ;;  %v3099_v35 = vmul.f32 %v6525_v32, %v3097_v5  ;;  %v3100_v15 = vmul.f32 %v6527_v33, %v3097_v5  ;;  %v3084_v16 = vld [vmem:[#allocation3 + $0x18] sm:$0xff]  ;;  %v3101_v50 = vmul.f32 %v6532_v24, %v3097_v5  ;;  %v3085_v17 = vld [vmem:[#allocation3 + $0x50] sm:$0xff]  ;;  %v3086_v41 = vld [vmem:[#allocation3 + $0x68] sm:$0xff] }
0x1119   : >> { %v3102_v18 = vmul.f32 %v6534_v11, %v3097_v5  ;;  %v3103_v20 = vmul.f32 %v6536_v36, %v3097_v5  ;;  %v3104_v56 = vmul.f32 %v6538_v37, %v3097_v5  ;;  %v3087_v52 = vld [vmem:[#allocation3 + $0x8] sm:$0xff]  ;;  %v3105_v27 = vmul.f32 %v6540_v38, %v3097_v5  ;;  %v3089_v54 = vld [vmem:[#allocation3 + $0x40] sm:$0xff]  ;;  %v3091_v2 = vld [vmem:[#allocation3 + $0x10] sm:$0xff] }
0x111a   : >> { %v3114_v9 = vadd.f32 %v3098_v8, %v3081_v3  ;;  %v3115_v40 = vadd.f32 %v3099_v35, %v3082_v10  ;;  %v3116_v22 = vadd.f32 %v3100_v15, %v3083_v13  ;;  %v3117_v29 = vadd.f32 %v3101_v50, %v3084_v16  ;;  %v3088_v58 = vld [vmem:[#allocation3 + $0x48] sm:$0xff]  ;;  %v3090_v62 = vld [vmem:[#allocation3 + $0x20] sm:$0xff]  ;;  %v3092_v10 = vld [vmem:[#allocation3 + $0x38] sm:$0xff] }
0x111b   : >> { %v3118_v57 = vadd.f32 %v3102_v18, %v3085_v17  ;;  %v3106_v60 = vmul.f32 %v6542_v39, %v3097_v5  ;;  %v3119_v19 = vadd.f32 %v3103_v20, %v3086_v41  ;;  %v3107_v7 = vmul.f32 %v6544_v25, %v3097_v5  ;;  %v3093_v35 = vld [vmem:[#allocation3 + $0x60] sm:$0xff]  ;;  %v3094_v50 = vld [vmem:[#allocation3 + $0x70] sm:$0xff]  ;;  %v3095_v20 = vld [vmem:[#allocation3 + $0x78] sm:$0xff] }
0x111c   : >> { %3130 = vst [vmem:[#allocation3 + $0x30] sm:$0xff] %v3114_v9  ;;  %v3120_v47 = vadd.f32 %v3104_v56, %v3087_v52  ;;  %v3108_v30 = vmul.f32 %v6546_v28, %v3097_v5  ;;  %v3121_v63 = vadd.f32 %v3105_v27, %v3088_v58  ;;  %v3109_v0 = vmul.f32 %v6548_v42, %v3097_v5 }
0x111d   : >> { %3131 = vst [vmem:[#allocation3] sm:$0xff] %v3115_v40  ;;  %v3122_v3 = vadd.f32 %v3106_v60, %v3089_v54  ;;  %v3110_v13 = vmul.f32 %v6550_v44, %v3097_v5  ;;  %v3123_v8 = vadd.f32 %v3107_v7, %v3090_v62  ;;  %v3111_v15 = vmul.f32 %v6552_v48, %v3097_v5 }
0x111e   : >> { %3132 = vst [vmem:[#allocation3 + $0x58] sm:$0xff] %v3116_v22  ;;  %v3124_v16 = vadd.f32 %v3108_v30, %v3091_v2  ;;  %v3112_v17 = vmul.f32 %v6554_v49, %v3097_v5  ;;  %v3125_v18 = vadd.f32 %v3109_v0, %v3092_v10  ;;  %v3113_v9 = vmul.f32 %v6556_v26, %v3097_v5  ;;  %v3096_v22 = vld [vmem:[#allocation3 + $0x28] sm:$0xff] }
0x111f   : >> { %3133 = vst [vmem:[#allocation3 + $0x18] sm:$0xff] %v3117_v29  ;;  %v3126_v40 = vadd.f32 %v3110_v13, %v3093_v35  ;;  %v3127_v41 = vadd.f32 %v3111_v15, %v3094_v50 }
0x1120   : >> { %3134 = vst [vmem:[#allocation3 + $0x50] sm:$0xff] %v3118_v57  ;;  %v3128_v56 = vadd.f32 %v3112_v17, %v3095_v20  ;;  %v3129_v29 = vadd.f32 %v3113_v9, %v3096_v22 }
0x1121   : >> { %3135 = vst [vmem:[#allocation3 + $0x68] sm:$0xff] %v3119_v19 }
0x1122   : >> { %3136 = vst [vmem:[#allocation3 + $0x8] sm:$0xff] %v3120_v47 }
0x1123   : >> { %3137 = vst [vmem:[#allocation3 + $0x48] sm:$0xff] %v3121_v63 }
0x1124   : >> { %3138 = vst [vmem:[#allocation3 + $0x40] sm:$0xff] %v3122_v3 }
0x1125   : >> { %3139 = vst [vmem:[#allocation3 + $0x20] sm:$0xff] %v3123_v8 }
0x1126   : >> { %3140 = vst [vmem:[#allocation3 + $0x10] sm:$0xff] %v3124_v16 }
0x1127   : >> { %3141 = vst [vmem:[#allocation3 + $0x38] sm:$0xff] %v3125_v18 }
0x1128   : >> { %3142 = vst [vmem:[#allocation3 + $0x60] sm:$0xff] %v3126_v40 }
0x1129   : >> { %3143 = vst [vmem:[#allocation3 + $0x70] sm:$0xff] %v3127_v41 }
0x112a   : >> { %3144 = vst [vmem:[#allocation3 + $0x78] sm:$0xff] %v3128_v56 }
0x112b   : >> { %3145 = vst [vmem:[#allocation3 + $0x28] sm:$0xff] %v3129_v29 }
0x112c PF: >> { %3148 = sbr.rel (%p5833_p5) target bundleno = 4561 (0x11d1), region = 163  ;;  %s6065_s28 = smov (!%p5833_p5), 127  }
0x112d   : >> { %s3149_s29 = sadd.s32 (!%p5833_p5), 1, %s6530_s26 }
0x112e   : >> { %s3150_s30 = sld [smem:[#allocation6 + %s3149_s29]] (!%p5833_p5) }
0x1131   : >> { %3151 = vrot.lane.b32.xlu0 %v6523_v23, %s6065_s28  ;;  %3155 = vrot.lane.b32.xlu1 %v6527_v33, %s6065_s28  ;;  %v3187_v52 = vld [vmem:[#allocation3 + $0x50] sm:$0xff]  ;;  %v3188_v60 = vld [vmem:[#allocation3 + $0x68] sm:$0xff]  ;;  %v3191_v47 = vld [vmem:[#allocation3 + $0x40] sm:$0xff] }
0x1132   : >> { %3159 = vrot.lane.b32.xlu2 %v6534_v11, %s6065_s28  ;;  %v3183_v2 = vld [vmem:[#allocation3 + $0x30] sm:$0xff]  ;;  %v3185_v3 = vld [vmem:[#allocation3 + $0x58] sm:$0xff]  ;;  %v3184_v20 = vld [vmem:[#allocation3] sm:$0xff] }
0x1133   : >> { %v3194_v35 = vld [vmem:[#allocation3 + $0x38] sm:$0xff] }
0x1134   : >> { %v7507_v5 = vstv %s3150_s30  ;;  %v3186_v40 = vld [vmem:[#allocation3 + $0x18] sm:$0xff] }
0x1135   : >> { %v3197_v29 = vld [vmem:[#allocation3 + $0x78] sm:$0xff] }
0x1139   : >> { %3153 = vrot.lane.b32.xlu0 %v6525_v32, %s6065_s28  ;;  %3157 = vrot.lane.b32.xlu1 %v6532_v24, %s6065_s28 }
0x113a   : >> { %3161 = vrot.lane.b32.xlu2 %v6536_v36, %s6065_s28 }
0x1141   : >> { %3163 = vrot.lane.b32.xlu0 %v6538_v37, %s6065_s28  ;;  %3165 = vrot.lane.b32.xlu1 %v6540_v38, %s6065_s28 }
0x1142   : >> { %3167 = vrot.lane.b32.xlu2 %v6542_v39, %s6065_s28 }
0x1149   : >> { %3169 = vrot.lane.b32.xlu0 %v6544_v25, %s6065_s28  ;;  %3171 = vrot.lane.b32.xlu1 %v6546_v28, %s6065_s28 }
0x114a   : >> { %3173 = vrot.lane.b32.xlu2 %v6548_v42, %s6065_s28 }
0x1151   : >> { %3175 = vrot.lane.b32.xlu0 %v6550_v44, %s6065_s28  ;;  %3177 = vrot.lane.b32.xlu1 %v6552_v48, %s6065_s28 }
0x1152   : >> { %3179 = vrot.lane.b32.xlu2 %v6554_v49, %s6065_s28 }
0x1159   : >> { %3181 = vrot.lane.b32.xlu0 %v6556_v26, %s6065_s28 }
0x118c   : >> { %v3160_v27 = vpop.permute.xlu2 %3159 }
0x118d   : >> { %v3204_v57 = vmul.f32 %v7507_v5, %v3160_v27 }
0x118f   : >> { %v3220_v58 = vadd.f32 %v3204_v57, %v3187_v52 }
0x1191   : >> { %3236 = vst [vmem:[#allocation3 + $0x50] sm:$0xff] %v3220_v58 }
0x1194   : >> { %v3162_v19 = vpop.permute.xlu2 %3161 }
0x1195   : >> { %v3205_v54 = vmul.f32 %v7507_v5, %v3162_v19  ;;  %v3189_v19 = vld [vmem:[#allocation3 + $0x8] sm:$0xff] }
0x1197   : >> { %v3221_v7 = vadd.f32 %v3205_v54, %v3188_v60 }
0x1199   : >> { %3237 = vst [vmem:[#allocation3 + $0x68] sm:$0xff] %v3221_v7  ;;  %v3190_v7 = vld [vmem:[#allocation3 + $0x48] sm:$0xff] }
0x119c   : >> { %v3168_v62 = vpop.permute.xlu2 %3167 }
0x119d   : >> { %v3208_v30 = vmul.f32 %v7507_v5, %v3168_v62 }
0x119f   : >> { %v3224_v63 = vadd.f32 %v3208_v30, %v3191_v47 }
0x11a1   : >> { %3240 = vst [vmem:[#allocation3 + $0x40] sm:$0xff] %v3224_v63 }
0x11a3   : >> { %v3152_v0 = vpop.permute.xlu0 %3151  ;;  %v3156_v10 = vpop.permute.xlu1 %3155 }
0x11a4   : >> { %v3200_v13 = vmul.f32 %v7507_v5, %v3152_v0  ;;  %v3202_v8 = vmul.f32 %v7507_v5, %v3156_v10  ;;  %v3174_v15 = vpop.permute.xlu2 %3173  ;;  %v3192_v0 = vld [vmem:[#allocation3 + $0x20] sm:$0xff]  ;;  %v3193_v10 = vld [vmem:[#allocation3 + $0x10] sm:$0xff] }
0x11a5   : >> { %v3211_v16 = vmul.f32 %v7507_v5, %v3174_v15 }
0x11a6   : >> { %v3216_v50 = vadd.f32 %v3200_v13, %v3183_v2  ;;  %v3218_v17 = vadd.f32 %v3202_v8, %v3185_v3 }
0x11a7   : >> { %v3227_v18 = vadd.f32 %v3211_v16, %v3194_v35 }
0x11a8   : >> { %3232 = vst [vmem:[#allocation3 + $0x30] sm:$0xff] %v3216_v50  ;;  %v3195_v50 = vld [vmem:[#allocation3 + $0x60] sm:$0xff] }
0x11a9   : >> { %3234 = vst [vmem:[#allocation3 + $0x58] sm:$0xff] %v3218_v17 }
0x11aa   : >> { %3243 = vst [vmem:[#allocation3 + $0x38] sm:$0xff] %v3227_v18  ;;  %v3196_v18 = vld [vmem:[#allocation3 + $0x70] sm:$0xff] }
0x11ab   : >> { %v3154_v9 = vpop.permute.xlu0 %3153  ;;  %v3158_v22 = vpop.permute.xlu1 %3157 }
0x11ac   : >> { %v3201_v41 = vmul.f32 %v7507_v5, %v3154_v9  ;;  %v3203_v56 = vmul.f32 %v7507_v5, %v3158_v22  ;;  %v3180_v52 = vpop.permute.xlu2 %3179 }
0x11ad   : >> { %v3214_v27 = vmul.f32 %v7507_v5, %v3180_v52 }
0x11ae   : >> { %v3217_v57 = vadd.f32 %v3201_v41, %v3184_v20  ;;  %v3219_v58 = vadd.f32 %v3203_v56, %v3186_v40  ;;  %v3198_v56 = vld [vmem:[#allocation3 + $0x28] sm:$0xff] }
0x11af   : >> { %v3230_v60 = vadd.f32 %v3214_v27, %v3197_v29 }
0x11b0   : >> { %3233 = vst [vmem:[#allocation3] sm:$0xff] %v3217_v57 }
0x11b1   : >> { %3235 = vst [vmem:[#allocation3 + $0x18] sm:$0xff] %v3219_v58 }
0x11b2   : >> { %3246 = vst [vmem:[#allocation3 + $0x78] sm:$0xff] %v3230_v60 }
0x11b3   : >> { %v3164_v54 = vpop.permute.xlu0 %3163  ;;  %v3166_v47 = vpop.permute.xlu1 %3165 }
0x11b4   : >> { %v3206_v62 = vmul.f32 %v7507_v5, %v3164_v54  ;;  %v3207_v30 = vmul.f32 %v7507_v5, %v3166_v47 }
0x11b6   : >> { %v3222_v63 = vadd.f32 %v3206_v62, %v3189_v19  ;;  %v3223_v2 = vadd.f32 %v3207_v30, %v3190_v7 }
0x11b8   : >> { %3238 = vst [vmem:[#allocation3 + $0x8] sm:$0xff] %v3222_v63 }
0x11b9   : >> { %3239 = vst [vmem:[#allocation3 + $0x48] sm:$0xff] %v3223_v2 }
0x11bb   : >> { %v3170_v3 = vpop.permute.xlu0 %3169  ;;  %v3172_v13 = vpop.permute.xlu1 %3171 }
0x11bc   : >> { %v3209_v8 = vmul.f32 %v7507_v5, %v3170_v3  ;;  %v3210_v35 = vmul.f32 %v7507_v5, %v3172_v13 }
0x11be   : >> { %v3225_v15 = vadd.f32 %v3209_v8, %v3192_v0  ;;  %v3226_v16 = vadd.f32 %v3210_v35, %v3193_v10 }
0x11c0   : >> { %3241 = vst [vmem:[#allocation3 + $0x20] sm:$0xff] %v3225_v15 }
0x11c1   : >> { %3242 = vst [vmem:[#allocation3 + $0x10] sm:$0xff] %v3226_v16 }
0x11c3   : >> { %v3176_v17 = vpop.permute.xlu0 %3175  ;;  %v3178_v20 = vpop.permute.xlu1 %3177 }
0x11c4   : >> { %v3212_v9 = vmul.f32 %v7507_v5, %v3176_v17  ;;  %v3213_v40 = vmul.f32 %v7507_v5, %v3178_v20 }
0x11c6   : >> { %v3228_v22 = vadd.f32 %v3212_v9, %v3195_v50  ;;  %v3229_v41 = vadd.f32 %v3213_v40, %v3196_v18 }
0x11c8   : >> { %3244 = vst [vmem:[#allocation3 + $0x60] sm:$0xff] %v3228_v22 }
0x11c9   : >> { %3245 = vst [vmem:[#allocation3 + $0x70] sm:$0xff] %v3229_v41 }
0x11cb   : >> { %v3182_v29 = vpop.permute.xlu0 %3181 }
0x11cc   : >> { %v3215_v52 = vmul.f32 %v7507_v5, %v3182_v29 }
0x11ce   : >> { %v3231_v27 = vadd.f32 %v3215_v52, %v3198_v56 }
0x11d0   : >> { %3247 = vst [vmem:[#allocation3 + $0x28] sm:$0xff] %v3231_v27 }
0x11d1 PF: >> { %3250 = sbr.rel (%p5832_p4) target bundleno = 4726 (0x1276), region = 167  ;;  %s6066_s5 = smov (!%p5832_p4), 126  }
0x11d2   : >> { %s3251_s6 = sadd.s32 (!%p5832_p4), 2, %s6530_s26 }
0x11d3   : >> { %s3252_s7 = sld [smem:[#allocation6 + %s3251_s6]] (!%p5832_p4) }
0x11d6   : >> { %3253 = vrot.lane.b32.xlu0 %v6523_v23, %s6066_s5  ;;  %3257 = vrot.lane.b32.xlu1 %v6527_v33, %s6066_s5  ;;  %v3289_v57 = vld [vmem:[#allocation3 + $0x50] sm:$0xff]  ;;  %v3290_v54 = vld [vmem:[#allocation3 + $0x68] sm:$0xff]  ;;  %v3293_v30 = vld [vmem:[#allocation3 + $0x40] sm:$0xff] }
0x11d7   : >> { %3261 = vrot.lane.b32.xlu2 %v6534_v11, %s6066_s5  ;;  %v3285_v3 = vld [vmem:[#allocation3 + $0x30] sm:$0xff]  ;;  %v3287_v13 = vld [vmem:[#allocation3 + $0x58] sm:$0xff]  ;;  %v3286_v40 = vld [vmem:[#allocation3] sm:$0xff] }
0x11d8   : >> { %v3296_v16 = vld [vmem:[#allocation3 + $0x38] sm:$0xff] }
0x11d9   : >> { %v7544_v5 = vstv %s3252_s7  ;;  %v3288_v41 = vld [vmem:[#allocation3 + $0x18] sm:$0xff] }
0x11da   : >> { %v3299_v27 = vld [vmem:[#allocation3 + $0x78] sm:$0xff] }
0x11de   : >> { %3255 = vrot.lane.b32.xlu0 %v6525_v32, %s6066_s5  ;;  %3259 = vrot.lane.b32.xlu1 %v6532_v24, %s6066_s5 }
0x11df   : >> { %3263 = vrot.lane.b32.xlu2 %v6536_v36, %s6066_s5 }
0x11e6   : >> { %3265 = vrot.lane.b32.xlu0 %v6538_v37, %s6066_s5  ;;  %3267 = vrot.lane.b32.xlu1 %v6540_v38, %s6066_s5 }
0x11e7   : >> { %3269 = vrot.lane.b32.xlu2 %v6542_v39, %s6066_s5 }
0x11ee   : >> { %3271 = vrot.lane.b32.xlu0 %v6544_v25, %s6066_s5  ;;  %3273 = vrot.lane.b32.xlu1 %v6546_v28, %s6066_s5 }
0x11ef   : >> { %3275 = vrot.lane.b32.xlu2 %v6548_v42, %s6066_s5 }
0x11f6   : >> { %3277 = vrot.lane.b32.xlu0 %v6550_v44, %s6066_s5  ;;  %3279 = vrot.lane.b32.xlu1 %v6552_v48, %s6066_s5 }
0x11f7   : >> { %3281 = vrot.lane.b32.xlu2 %v6554_v49, %s6066_s5 }
0x11fe   : >> { %3283 = vrot.lane.b32.xlu0 %v6556_v26, %s6066_s5 }
0x1231   : >> { %v3262_v58 = vpop.permute.xlu2 %3261 }
0x1232   : >> { %v3306_v60 = vmul.f32 %v7544_v5, %v3262_v58 }
0x1234   : >> { %v3322_v19 = vadd.f32 %v3306_v60, %v3289_v57 }
0x1236   : >> { %3338 = vst [vmem:[#allocation3 + $0x50] sm:$0xff] %v3322_v19 }
0x1239   : >> { %v3264_v7 = vpop.permute.xlu2 %3263 }
0x123a   : >> { %v3307_v47 = vmul.f32 %v7544_v5, %v3264_v7  ;;  %v3291_v7 = vld [vmem:[#allocation3 + $0x8] sm:$0xff] }
0x123c   : >> { %v3323_v62 = vadd.f32 %v3307_v47, %v3290_v54 }
0x123e   : >> { %3339 = vst [vmem:[#allocation3 + $0x68] sm:$0xff] %v3323_v62  ;;  %v3292_v62 = vld [vmem:[#allocation3 + $0x48] sm:$0xff] }
0x1241   : >> { %v3270_v63 = vpop.permute.xlu2 %3269 }
0x1242   : >> { %v3310_v2 = vmul.f32 %v7544_v5, %v3270_v63 }
0x1244   : >> { %v3326_v0 = vadd.f32 %v3310_v2, %v3293_v30 }
0x1246   : >> { %3342 = vst [vmem:[#allocation3 + $0x40] sm:$0xff] %v3326_v0 }
0x1248   : >> { %v3254_v10 = vpop.permute.xlu0 %3253  ;;  %v3258_v8 = vpop.permute.xlu1 %3257 }
0x1249   : >> { %v3302_v35 = vmul.f32 %v7544_v5, %v3254_v10  ;;  %v3304_v15 = vmul.f32 %v7544_v5, %v3258_v8  ;;  %v3276_v50 = vpop.permute.xlu2 %3275  ;;  %v3294_v10 = vld [vmem:[#allocation3 + $0x20] sm:$0xff]  ;;  %v3295_v8 = vld [vmem:[#allocation3 + $0x10] sm:$0xff] }
0x124a   : >> { %v3313_v17 = vmul.f32 %v7544_v5, %v3276_v50 }
0x124b   : >> { %v3318_v18 = vadd.f32 %v3302_v35, %v3285_v3  ;;  %v3320_v20 = vadd.f32 %v3304_v15, %v3287_v13 }
0x124c   : >> { %v3329_v9 = vadd.f32 %v3313_v17, %v3296_v16 }
0x124d   : >> { %3334 = vst [vmem:[#allocation3 + $0x30] sm:$0xff] %v3318_v18  ;;  %v3297_v18 = vld [vmem:[#allocation3 + $0x60] sm:$0xff] }
0x124e   : >> { %3336 = vst [vmem:[#allocation3 + $0x58] sm:$0xff] %v3320_v20 }
0x124f   : >> { %3345 = vst [vmem:[#allocation3 + $0x38] sm:$0xff] %v3329_v9  ;;  %v3298_v9 = vld [vmem:[#allocation3 + $0x70] sm:$0xff] }
0x1250   : >> { %v3256_v22 = vpop.permute.xlu0 %3255  ;;  %v3260_v56 = vpop.permute.xlu1 %3259 }
0x1251   : >> { %v3303_v29 = vmul.f32 %v7544_v5, %v3256_v22  ;;  %v3305_v52 = vmul.f32 %v7544_v5, %v3260_v56  ;;  %v3282_v57 = vpop.permute.xlu2 %3281 }
0x1252   : >> { %v3316_v58 = vmul.f32 %v7544_v5, %v3282_v57 }
0x1253   : >> { %v3319_v60 = vadd.f32 %v3303_v29, %v3286_v40  ;;  %v3321_v19 = vadd.f32 %v3305_v52, %v3288_v41  ;;  %v3300_v52 = vld [vmem:[#allocation3 + $0x28] sm:$0xff] }
0x1254   : >> { %v3332_v54 = vadd.f32 %v3316_v58, %v3299_v27 }
0x1255   : >> { %3335 = vst [vmem:[#allocation3] sm:$0xff] %v3319_v60 }
0x1256   : >> { %3337 = vst [vmem:[#allocation3 + $0x18] sm:$0xff] %v3321_v19 }
0x1257   : >> { %3348 = vst [vmem:[#allocation3 + $0x78] sm:$0xff] %v3332_v54 }
0x1258   : >> { %v3266_v47 = vpop.permute.xlu0 %3265  ;;  %v3268_v30 = vpop.permute.xlu1 %3267 }
0x1259   : >> { %v3308_v63 = vmul.f32 %v7544_v5, %v3266_v47  ;;  %v3309_v2 = vmul.f32 %v7544_v5, %v3268_v30 }
0x125b   : >> { %v3324_v0 = vadd.f32 %v3308_v63, %v3291_v7  ;;  %v3325_v3 = vadd.f32 %v3309_v2, %v3292_v62 }
0x125d   : >> { %3340 = vst [vmem:[#allocation3 + $0x8] sm:$0xff] %v3324_v0 }
0x125e   : >> { %3341 = vst [vmem:[#allocation3 + $0x48] sm:$0xff] %v3325_v3 }
0x1260   : >> { %v3272_v13 = vpop.permute.xlu0 %3271  ;;  %v3274_v35 = vpop.permute.xlu1 %3273 }
0x1261   : >> { %v3311_v15 = vmul.f32 %v7544_v5, %v3272_v13  ;;  %v3312_v16 = vmul.f32 %v7544_v5, %v3274_v35 }
0x1263   : >> { %v3327_v50 = vadd.f32 %v3311_v15, %v3294_v10  ;;  %v3328_v17 = vadd.f32 %v3312_v16, %v3295_v8 }
0x1265   : >> { %3343 = vst [vmem:[#allocation3 + $0x20] sm:$0xff] %v3327_v50 }
0x1266   : >> { %3344 = vst [vmem:[#allocation3 + $0x10] sm:$0xff] %v3328_v17 }
0x1268   : >> { %v3278_v20 = vpop.permute.xlu0 %3277  ;;  %v3280_v40 = vpop.permute.xlu1 %3279 }
0x1269   : >> { %v3314_v22 = vmul.f32 %v7544_v5, %v3278_v20  ;;  %v3315_v41 = vmul.f32 %v7544_v5, %v3280_v40 }
0x126b   : >> { %v3330_v56 = vadd.f32 %v3314_v22, %v3297_v18  ;;  %v3331_v29 = vadd.f32 %v3315_v41, %v3298_v9 }
0x126d   : >> { %3346 = vst [vmem:[#allocation3 + $0x60] sm:$0xff] %v3330_v56 }
0x126e   : >> { %3347 = vst [vmem:[#allocation3 + $0x70] sm:$0xff] %v3331_v29 }
0x1270   : >> { %v3284_v27 = vpop.permute.xlu0 %3283 }
0x1271   : >> { %v3317_v57 = vmul.f32 %v7544_v5, %v3284_v27 }
0x1273   : >> { %v3333_v58 = vadd.f32 %v3317_v57, %v3300_v52 }
0x1275   : >> { %3349 = vst [vmem:[#allocation3 + $0x28] sm:$0xff] %v3333_v58 }
0x1276 PF: >> { %3352 = sbr.rel (%p5831_p3) target bundleno = 4891 (0x131b), region = 171  ;;  %s6067_s8 = smov (!%p5831_p3), 125  }
0x1277   : >> { %s3353_s9 = sadd.s32 (!%p5831_p3), 3, %s6530_s26 }
0x1278   : >> { %s3354_s10 = sld [smem:[#allocation6 + %s3353_s9]] (!%p5831_p3) }
0x127b   : >> { %3355 = vrot.lane.b32.xlu0 %v6523_v23, %s6067_s8  ;;  %3359 = vrot.lane.b32.xlu1 %v6527_v33, %s6067_s8  ;;  %v3391_v60 = vld [vmem:[#allocation3 + $0x50] sm:$0xff]  ;;  %v3392_v47 = vld [vmem:[#allocation3 + $0x68] sm:$0xff]  ;;  %v3395_v2 = vld [vmem:[#allocation3 + $0x40] sm:$0xff] }
0x127c   : >> { %3363 = vrot.lane.b32.xlu2 %v6534_v11, %s6067_s8  ;;  %v3387_v13 = vld [vmem:[#allocation3 + $0x30] sm:$0xff]  ;;  %v3389_v35 = vld [vmem:[#allocation3 + $0x58] sm:$0xff]  ;;  %v3388_v41 = vld [vmem:[#allocation3] sm:$0xff] }
0x127d   : >> { %v3398_v17 = vld [vmem:[#allocation3 + $0x38] sm:$0xff] }
0x127e   : >> { %v7581_v5 = vstv %s3354_s10  ;;  %v3390_v29 = vld [vmem:[#allocation3 + $0x18] sm:$0xff] }
0x127f   : >> { %v3401_v58 = vld [vmem:[#allocation3 + $0x78] sm:$0xff] }
0x1283   : >> { %3357 = vrot.lane.b32.xlu0 %v6525_v32, %s6067_s8  ;;  %3361 = vrot.lane.b32.xlu1 %v6532_v24, %s6067_s8 }
0x1284   : >> { %3365 = vrot.lane.b32.xlu2 %v6536_v36, %s6067_s8 }
0x128b   : >> { %3367 = vrot.lane.b32.xlu0 %v6538_v37, %s6067_s8  ;;  %3369 = vrot.lane.b32.xlu1 %v6540_v38, %s6067_s8 }
0x128c   : >> { %3371 = vrot.lane.b32.xlu2 %v6542_v39, %s6067_s8 }
0x1293   : >> { %3373 = vrot.lane.b32.xlu0 %v6544_v25, %s6067_s8  ;;  %3375 = vrot.lane.b32.xlu1 %v6546_v28, %s6067_s8 }
0x1294   : >> { %3377 = vrot.lane.b32.xlu2 %v6548_v42, %s6067_s8 }
0x129b   : >> { %3379 = vrot.lane.b32.xlu0 %v6550_v44, %s6067_s8  ;;  %3381 = vrot.lane.b32.xlu1 %v6552_v48, %s6067_s8 }
0x129c   : >> { %3383 = vrot.lane.b32.xlu2 %v6554_v49, %s6067_s8 }
0x12a3   : >> { %3385 = vrot.lane.b32.xlu0 %v6556_v26, %s6067_s8 }
0x12d6   : >> { %v3364_v19 = vpop.permute.xlu2 %3363 }
0x12d7   : >> { %v3408_v54 = vmul.f32 %v7581_v5, %v3364_v19 }
0x12d9   : >> { %v3424_v7 = vadd.f32 %v3408_v54, %v3391_v60 }
0x12db   : >> { %3440 = vst [vmem:[#allocation3 + $0x50] sm:$0xff] %v3424_v7 }
0x12de   : >> { %v3366_v62 = vpop.permute.xlu2 %3365 }
0x12df   : >> { %v3409_v30 = vmul.f32 %v7581_v5, %v3366_v62  ;;  %v3393_v62 = vld [vmem:[#allocation3 + $0x8] sm:$0xff] }
0x12e1   : >> { %v3425_v63 = vadd.f32 %v3409_v30, %v3392_v47 }
0x12e3   : >> { %3441 = vst [vmem:[#allocation3 + $0x68] sm:$0xff] %v3425_v63  ;;  %v3394_v63 = vld [vmem:[#allocation3 + $0x48] sm:$0xff] }
0x12e6   : >> { %v3372_v0 = vpop.permute.xlu2 %3371 }
0x12e7   : >> { %v3412_v3 = vmul.f32 %v7581_v5, %v3372_v0 }
0x12e9   : >> { %v3428_v10 = vadd.f32 %v3412_v3, %v3395_v2 }
0x12eb   : >> { %3444 = vst [vmem:[#allocation3 + $0x40] sm:$0xff] %v3428_v10 }
0x12ed   : >> { %v3356_v8 = vpop.permute.xlu0 %3355  ;;  %v3360_v15 = vpop.permute.xlu1 %3359 }
0x12ee   : >> { %v3404_v16 = vmul.f32 %v7581_v5, %v3356_v8  ;;  %v3406_v50 = vmul.f32 %v7581_v5, %v3360_v15  ;;  %v3378_v18 = vpop.permute.xlu2 %3377  ;;  %v3396_v8 = vld [vmem:[#allocation3 + $0x20] sm:$0xff]  ;;  %v3397_v15 = vld [vmem:[#allocation3 + $0x10] sm:$0xff] }
0x12ef   : >> { %v3415_v20 = vmul.f32 %v7581_v5, %v3378_v18 }
0x12f0   : >> { %v3420_v9 = vadd.f32 %v3404_v16, %v3387_v13  ;;  %v3422_v40 = vadd.f32 %v3406_v50, %v3389_v35 }
0x12f1   : >> { %v3431_v22 = vadd.f32 %v3415_v20, %v3398_v17 }
0x12f2   : >> { %3436 = vst [vmem:[#allocation3 + $0x30] sm:$0xff] %v3420_v9  ;;  %v3399_v9 = vld [vmem:[#allocation3 + $0x60] sm:$0xff] }
0x12f3   : >> { %3438 = vst [vmem:[#allocation3 + $0x58] sm:$0xff] %v3422_v40 }
0x12f4   : >> { %3447 = vst [vmem:[#allocation3 + $0x38] sm:$0xff] %v3431_v22  ;;  %v3400_v22 = vld [vmem:[#allocation3 + $0x70] sm:$0xff] }
0x12f5   : >> { %v3358_v56 = vpop.permute.xlu0 %3357  ;;  %v3362_v52 = vpop.permute.xlu1 %3361 }
0x12f6   : >> { %v3405_v27 = vmul.f32 %v7581_v5, %v3358_v56  ;;  %v3407_v57 = vmul.f32 %v7581_v5, %v3362_v52  ;;  %v3384_v60 = vpop.permute.xlu2 %3383 }
0x12f7   : >> { %v3418_v19 = vmul.f32 %v7581_v5, %v3384_v60 }
0x12f8   : >> { %v3421_v54 = vadd.f32 %v3405_v27, %v3388_v41  ;;  %v3423_v7 = vadd.f32 %v3407_v57, %v3390_v29  ;;  %v3402_v57 = vld [vmem:[#allocation3 + $0x28] sm:$0xff] }
0x12f9   : >> { %v3434_v47 = vadd.f32 %v3418_v19, %v3401_v58 }
0x12fa   : >> { %3437 = vst [vmem:[#allocation3] sm:$0xff] %v3421_v54 }
0x12fb   : >> { %3439 = vst [vmem:[#allocation3 + $0x18] sm:$0xff] %v3423_v7 }
0x12fc   : >> { %3450 = vst [vmem:[#allocation3 + $0x78] sm:$0xff] %v3434_v47 }
0x12fd   : >> { %v3368_v30 = vpop.permute.xlu0 %3367  ;;  %v3370_v2 = vpop.permute.xlu1 %3369 }
0x12fe   : >> { %v3410_v0 = vmul.f32 %v7581_v5, %v3368_v30  ;;  %v3411_v3 = vmul.f32 %v7581_v5, %v3370_v2 }
0x1300   : >> { %v3426_v10 = vadd.f32 %v3410_v0, %v3393_v62  ;;  %v3427_v13 = vadd.f32 %v3411_v3, %v3394_v63 }
0x1302   : >> { %3442 = vst [vmem:[#allocation3 + $0x8] sm:$0xff] %v3426_v10 }
0x1303   : >> { %3443 = vst [vmem:[#allocation3 + $0x48] sm:$0xff] %v3427_v13 }
0x1305   : >> { %v3374_v35 = vpop.permute.xlu0 %3373  ;;  %v3376_v16 = vpop.permute.xlu1 %3375 }
0x1306   : >> { %v3413_v50 = vmul.f32 %v7581_v5, %v3374_v35  ;;  %v3414_v17 = vmul.f32 %v7581_v5, %v3376_v16 }
0x1308   : >> { %v3429_v18 = vadd.f32 %v3413_v50, %v3396_v8  ;;  %v3430_v20 = vadd.f32 %v3414_v17, %v3397_v15 }
0x130a   : >> { %3445 = vst [vmem:[#allocation3 + $0x20] sm:$0xff] %v3429_v18 }
0x130b   : >> { %3446 = vst [vmem:[#allocation3 + $0x10] sm:$0xff] %v3430_v20 }
0x130d   : >> { %v3380_v40 = vpop.permute.xlu0 %3379  ;;  %v3382_v41 = vpop.permute.xlu1 %3381 }
0x130e   : >> { %v3416_v56 = vmul.f32 %v7581_v5, %v3380_v40  ;;  %v3417_v29 = vmul.f32 %v7581_v5, %v3382_v41 }
0x1310   : >> { %v3432_v52 = vadd.f32 %v3416_v56, %v3399_v9  ;;  %v3433_v27 = vadd.f32 %v3417_v29, %v3400_v22 }
0x1312   : >> { %3448 = vst [vmem:[#allocation3 + $0x60] sm:$0xff] %v3432_v52 }
0x1313   : >> { %3449 = vst [vmem:[#allocation3 + $0x70] sm:$0xff] %v3433_v27 }
0x1315   : >> { %v3386_v58 = vpop.permute.xlu0 %3385 }
0x1316   : >> { %v3419_v60 = vmul.f32 %v7581_v5, %v3386_v58 }
0x1318   : >> { %v3435_v19 = vadd.f32 %v3419_v60, %v3402_v57 }
0x131a   : >> { %3451 = vst [vmem:[#allocation3 + $0x28] sm:$0xff] %v3435_v19 }
0x131b PF: >> { %3454 = sbr.rel (%p5830_p2) target bundleno = 5056 (0x13c0), region = 175  ;;  %s6068_s11 = smov (!%p5830_p2), 124  }
0x131c   : >> { %s3455_s12 = sadd.s32 (!%p5830_p2), 4, %s6530_s26 }
0x131d   : >> { %s3456_s13 = sld [smem:[#allocation6 + %s3455_s12]] (!%p5830_p2) }
0x1320   : >> { %3457 = vrot.lane.b32.xlu0 %v6523_v23, %s6068_s11  ;;  %3461 = vrot.lane.b32.xlu1 %v6527_v33, %s6068_s11  ;;  %v3493_v54 = vld [vmem:[#allocation3 + $0x50] sm:$0xff]  ;;  %v3494_v30 = vld [vmem:[#allocation3 + $0x68] sm:$0xff]  ;;  %v3497_v3 = vld [vmem:[#allocation3 + $0x40] sm:$0xff] }
0x1321   : >> { %3465 = vrot.lane.b32.xlu2 %v6534_v11, %s6068_s11  ;;  %v3489_v35 = vld [vmem:[#allocation3 + $0x30] sm:$0xff]  ;;  %v3491_v16 = vld [vmem:[#allocation3 + $0x58] sm:$0xff]  ;;  %v3490_v29 = vld [vmem:[#allocation3] sm:$0xff] }
0x1322   : >> { %v3500_v20 = vld [vmem:[#allocation3 + $0x38] sm:$0xff] }
0x1323   : >> { %v7618_v5 = vstv %s3456_s13  ;;  %v3492_v27 = vld [vmem:[#allocation3 + $0x18] sm:$0xff] }
0x1324   : >> { %v3503_v19 = vld [vmem:[#allocation3 + $0x78] sm:$0xff] }
0x1328   : >> { %3459 = vrot.lane.b32.xlu0 %v6525_v32, %s6068_s11  ;;  %3463 = vrot.lane.b32.xlu1 %v6532_v24, %s6068_s11 }
0x1329   : >> { %3467 = vrot.lane.b32.xlu2 %v6536_v36, %s6068_s11 }
0x1330   : >> { %3469 = vrot.lane.b32.xlu0 %v6538_v37, %s6068_s11  ;;  %3471 = vrot.lane.b32.xlu1 %v6540_v38, %s6068_s11 }
0x1331   : >> { %3473 = vrot.lane.b32.xlu2 %v6542_v39, %s6068_s11 }
0x1338   : >> { %3475 = vrot.lane.b32.xlu0 %v6544_v25, %s6068_s11  ;;  %3477 = vrot.lane.b32.xlu1 %v6546_v28, %s6068_s11 }
0x1339   : >> { %3479 = vrot.lane.b32.xlu2 %v6548_v42, %s6068_s11 }
0x1340   : >> { %3481 = vrot.lane.b32.xlu0 %v6550_v44, %s6068_s11  ;;  %3483 = vrot.lane.b32.xlu1 %v6552_v48, %s6068_s11 }
0x1341   : >> { %3485 = vrot.lane.b32.xlu2 %v6554_v49, %s6068_s11 }
0x1348   : >> { %3487 = vrot.lane.b32.xlu0 %v6556_v26, %s6068_s11 }
0x137b   : >> { %v3466_v7 = vpop.permute.xlu2 %3465 }
0x137c   : >> { %v3510_v47 = vmul.f32 %v7618_v5, %v3466_v7 }
0x137e   : >> { %v3526_v62 = vadd.f32 %v3510_v47, %v3493_v54 }
0x1380   : >> { %3542 = vst [vmem:[#allocation3 + $0x50] sm:$0xff] %v3526_v62 }
0x1383   : >> { %v3468_v63 = vpop.permute.xlu2 %3467 }
0x1384   : >> { %v3511_v2 = vmul.f32 %v7618_v5, %v3468_v63  ;;  %v3495_v63 = vld [vmem:[#allocation3 + $0x8] sm:$0xff] }
0x1386   : >> { %v3527_v0 = vadd.f32 %v3511_v2, %v3494_v30 }
0x1388   : >> { %3543 = vst [vmem:[#allocation3 + $0x68] sm:$0xff] %v3527_v0  ;;  %v3496_v0 = vld [vmem:[#allocation3 + $0x48] sm:$0xff] }
0x138b   : >> { %v3474_v10 = vpop.permute.xlu2 %3473 }
0x138c   : >> { %v3514_v13 = vmul.f32 %v7618_v5, %v3474_v10 }
0x138e   : >> { %v3530_v8 = vadd.f32 %v3514_v13, %v3497_v3 }
0x1390   : >> { %3546 = vst [vmem:[#allocation3 + $0x40] sm:$0xff] %v3530_v8 }
0x1392   : >> { %v3458_v15 = vpop.permute.xlu0 %3457  ;;  %v3462_v50 = vpop.permute.xlu1 %3461 }
0x1393   : >> { %v3506_v17 = vmul.f32 %v7618_v5, %v3458_v15  ;;  %v3508_v18 = vmul.f32 %v7618_v5, %v3462_v50  ;;  %v3480_v9 = vpop.permute.xlu2 %3479  ;;  %v3498_v15 = vld [vmem:[#allocation3 + $0x20] sm:$0xff]  ;;  %v3499_v50 = vld [vmem:[#allocation3 + $0x10] sm:$0xff] }
0x1394   : >> { %v3517_v40 = vmul.f32 %v7618_v5, %v3480_v9 }
0x1395   : >> { %v3522_v22 = vadd.f32 %v3506_v17, %v3489_v35  ;;  %v3524_v41 = vadd.f32 %v3508_v18, %v3491_v16 }
0x1396   : >> { %v3533_v56 = vadd.f32 %v3517_v40, %v3500_v20 }
0x1397   : >> { %3538 = vst [vmem:[#allocation3 + $0x30] sm:$0xff] %v3522_v22  ;;  %v3501_v22 = vld [vmem:[#allocation3 + $0x60] sm:$0xff] }
0x1398   : >> { %3540 = vst [vmem:[#allocation3 + $0x58] sm:$0xff] %v3524_v41 }
0x1399   : >> { %3549 = vst [vmem:[#allocation3 + $0x38] sm:$0xff] %v3533_v56  ;;  %v3502_v56 = vld [vmem:[#allocation3 + $0x70] sm:$0xff] }
0x139a   : >> { %v3460_v52 = vpop.permute.xlu0 %3459  ;;  %v3464_v57 = vpop.permute.xlu1 %3463 }
0x139b   : >> { %v3507_v58 = vmul.f32 %v7618_v5, %v3460_v52  ;;  %v3509_v60 = vmul.f32 %v7618_v5, %v3464_v57  ;;  %v3486_v54 = vpop.permute.xlu2 %3485 }
0x139c   : >> { %v3520_v7 = vmul.f32 %v7618_v5, %v3486_v54 }
0x139d   : >> { %v3523_v47 = vadd.f32 %v3507_v58, %v3490_v29  ;;  %v3525_v62 = vadd.f32 %v3509_v60, %v3492_v27  ;;  %v3504_v60 = vld [vmem:[#allocation3 + $0x28] sm:$0xff] }
0x139e   : >> { %v3536_v30 = vadd.f32 %v3520_v7, %v3503_v19 }
0x139f   : >> { %3539 = vst [vmem:[#allocation3] sm:$0xff] %v3523_v47 }
0x13a0   : >> { %3541 = vst [vmem:[#allocation3 + $0x18] sm:$0xff] %v3525_v62 }
0x13a1   : >> { %3552 = vst [vmem:[#allocation3 + $0x78] sm:$0xff] %v3536_v30 }
0x13a2   : >> { %v3470_v2 = vpop.permute.xlu0 %3469  ;;  %v3472_v3 = vpop.permute.xlu1 %3471 }
0x13a3   : >> { %v3512_v10 = vmul.f32 %v7618_v5, %v3470_v2  ;;  %v3513_v13 = vmul.f32 %v7618_v5, %v3472_v3 }
0x13a5   : >> { %v3528_v8 = vadd.f32 %v3512_v10, %v3495_v63  ;;  %v3529_v35 = vadd.f32 %v3513_v13, %v3496_v0 }
0x13a7   : >> { %3544 = vst [vmem:[#allocation3 + $0x8] sm:$0xff] %v3528_v8 }
0x13a8   : >> { %3545 = vst [vmem:[#allocation3 + $0x48] sm:$0xff] %v3529_v35 }
0x13aa   : >> { %v3476_v16 = vpop.permute.xlu0 %3475  ;;  %v3478_v17 = vpop.permute.xlu1 %3477 }
0x13ab   : >> { %v3515_v18 = vmul.f32 %v7618_v5, %v3476_v16  ;;  %v3516_v20 = vmul.f32 %v7618_v5, %v3478_v17 }
0x13ad   : >> { %v3531_v9 = vadd.f32 %v3515_v18, %v3498_v15  ;;  %v3532_v40 = vadd.f32 %v3516_v20, %v3499_v50 }
0x13af   : >> { %3547 = vst [vmem:[#allocation3 + $0x20] sm:$0xff] %v3531_v9 }
0x13b0   : >> { %3548 = vst [vmem:[#allocation3 + $0x10] sm:$0xff] %v3532_v40 }
0x13b2   : >> { %v3482_v41 = vpop.permute.xlu0 %3481  ;;  %v3484_v29 = vpop.permute.xlu1 %3483 }
0x13b3   : >> { %v3518_v52 = vmul.f32 %v7618_v5, %v3482_v41  ;;  %v3519_v27 = vmul.f32 %v7618_v5, %v3484_v29 }
0x13b5   : >> { %v3534_v57 = vadd.f32 %v3518_v52, %v3501_v22  ;;  %v3535_v58 = vadd.f32 %v3519_v27, %v3502_v56 }
0x13b7   : >> { %3550 = vst [vmem:[#allocation3 + $0x60] sm:$0xff] %v3534_v57 }
0x13b8   : >> { %3551 = vst [vmem:[#allocation3 + $0x70] sm:$0xff] %v3535_v58 }
0x13ba   : >> { %v3488_v19 = vpop.permute.xlu0 %3487 }
0x13bb   : >> { %v3521_v54 = vmul.f32 %v7618_v5, %v3488_v19 }
0x13bd   : >> { %v3537_v7 = vadd.f32 %v3521_v54, %v3504_v60 }
0x13bf   : >> { %3553 = vst [vmem:[#allocation3 + $0x28] sm:$0xff] %v3537_v7 }
0x13c0 PF: >> { %3556 = sbr.rel (%p5829_p1) target bundleno = 5221 (0x1465), region = 179  ;;  %s6069_s21 = smov (!%p5829_p1), 123  }
0x13c1   : >> { %s3557_s22 = sadd.s32 (!%p5829_p1), 5, %s6530_s26 }
0x13c2   : >> { %s3558_s23 = sld [smem:[#allocation6 + %s3557_s22]] (!%p5829_p1) }
0x13c5   : >> { %3559 = vrot.lane.b32.xlu0 %v6523_v23, %s6069_s21  ;;  %3563 = vrot.lane.b32.xlu1 %v6527_v33, %s6069_s21  ;;  %v3595_v47 = vld [vmem:[#allocation3 + $0x50] sm:$0xff]  ;;  %v3596_v2 = vld [vmem:[#allocation3 + $0x68] sm:$0xff]  ;;  %v3599_v13 = vld [vmem:[#allocation3 + $0x40] sm:$0xff] }
0x13c6   : >> { %3567 = vrot.lane.b32.xlu2 %v6534_v11, %s6069_s21  ;;  %v3591_v16 = vld [vmem:[#allocation3 + $0x30] sm:$0xff]  ;;  %v3593_v17 = vld [vmem:[#allocation3 + $0x58] sm:$0xff]  ;;  %v3592_v27 = vld [vmem:[#allocation3] sm:$0xff] }
0x13c7   : >> { %v3602_v40 = vld [vmem:[#allocation3 + $0x38] sm:$0xff] }
0x13c8   : >> { %v7655_v5 = vstv %s3558_s23  ;;  %v3594_v58 = vld [vmem:[#allocation3 + $0x18] sm:$0xff] }
0x13c9   : >> { %v3605_v7 = vld [vmem:[#allocation3 + $0x78] sm:$0xff] }
0x13cd   : >> { %3561 = vrot.lane.b32.xlu0 %v6525_v32, %s6069_s21  ;;  %3565 = vrot.lane.b32.xlu1 %v6532_v24, %s6069_s21 }
0x13ce   : >> { %3569 = vrot.lane.b32.xlu2 %v6536_v36, %s6069_s21 }
0x13d5   : >> { %3571 = vrot.lane.b32.xlu0 %v6538_v37, %s6069_s21  ;;  %3573 = vrot.lane.b32.xlu1 %v6540_v38, %s6069_s21 }
0x13d6   : >> { %3575 = vrot.lane.b32.xlu2 %v6542_v39, %s6069_s21 }
0x13dd   : >> { %3577 = vrot.lane.b32.xlu0 %v6544_v25, %s6069_s21  ;;  %3579 = vrot.lane.b32.xlu1 %v6546_v28, %s6069_s21 }
0x13de   : >> { %3581 = vrot.lane.b32.xlu2 %v6548_v42, %s6069_s21 }
0x13e5   : >> { %3583 = vrot.lane.b32.xlu0 %v6550_v44, %s6069_s21  ;;  %3585 = vrot.lane.b32.xlu1 %v6552_v48, %s6069_s21 }
0x13e6   : >> { %3587 = vrot.lane.b32.xlu2 %v6554_v49, %s6069_s21 }
0x13ed   : >> { %3589 = vrot.lane.b32.xlu0 %v6556_v26, %s6069_s21 }
0x1420   : >> { %v3568_v62 = vpop.permute.xlu2 %3567 }
0x1421   : >> { %v3612_v30 = vmul.f32 %v7655_v5, %v3568_v62 }
0x1423   : >> { %v3628_v63 = vadd.f32 %v3612_v30, %v3595_v47 }
0x1425   : >> { %3644 = vst [vmem:[#allocation3 + $0x50] sm:$0xff] %v3628_v63 }
0x1428   : >> { %v3570_v0 = vpop.permute.xlu2 %3569 }
0x1429   : >> { %v3613_v3 = vmul.f32 %v7655_v5, %v3570_v0  ;;  %v3597_v0 = vld [vmem:[#allocation3 + $0x8] sm:$0xff] }
0x142b   : >> { %v3629_v10 = vadd.f32 %v3613_v3, %v3596_v2 }
0x142d   : >> { %3645 = vst [vmem:[#allocation3 + $0x68] sm:$0xff] %v3629_v10  ;;  %v3598_v10 = vld [vmem:[#allocation3 + $0x48] sm:$0xff] }
0x1430   : >> { %v3576_v8 = vpop.permute.xlu2 %3575 }
0x1431   : >> { %v3616_v35 = vmul.f32 %v7655_v5, %v3576_v8 }
0x1433   : >> { %v3632_v15 = vadd.f32 %v3616_v35, %v3599_v13 }
0x1435   : >> { %3648 = vst [vmem:[#allocation3 + $0x40] sm:$0xff] %v3632_v15 }
0x1437   : >> { %v3560_v50 = vpop.permute.xlu0 %3559  ;;  %v3564_v18 = vpop.permute.xlu1 %3563 }
0x1438   : >> { %v3608_v20 = vmul.f32 %v7655_v5, %v3560_v50  ;;  %v3610_v9 = vmul.f32 %v7655_v5, %v3564_v18  ;;  %v3582_v22 = vpop.permute.xlu2 %3581  ;;  %v3600_v50 = vld [vmem:[#allocation3 + $0x20] sm:$0xff]  ;;  %v3601_v18 = vld [vmem:[#allocation3 + $0x10] sm:$0xff] }
0x1439   : >> { %v3619_v41 = vmul.f32 %v7655_v5, %v3582_v22 }
0x143a   : >> { %v3624_v56 = vadd.f32 %v3608_v20, %v3591_v16  ;;  %v3626_v29 = vadd.f32 %v3610_v9, %v3593_v17 }
0x143b   : >> { %v3635_v52 = vadd.f32 %v3619_v41, %v3602_v40 }
0x143c   : >> { %3640 = vst [vmem:[#allocation3 + $0x30] sm:$0xff] %v3624_v56  ;;  %v3603_v56 = vld [vmem:[#allocation3 + $0x60] sm:$0xff] }
0x143d   : >> { %3642 = vst [vmem:[#allocation3 + $0x58] sm:$0xff] %v3626_v29 }
0x143e   : >> { %3651 = vst [vmem:[#allocation3 + $0x38] sm:$0xff] %v3635_v52  ;;  %v3604_v52 = vld [vmem:[#allocation3 + $0x70] sm:$0xff] }
0x143f   : >> { %v3562_v57 = vpop.permute.xlu0 %3561  ;;  %v3566_v60 = vpop.permute.xlu1 %3565 }
0x1440   : >> { %v3609_v19 = vmul.f32 %v7655_v5, %v3562_v57  ;;  %v3611_v54 = vmul.f32 %v7655_v5, %v3566_v60  ;;  %v3588_v47 = vpop.permute.xlu2 %3587 }
0x1441   : >> { %v3622_v62 = vmul.f32 %v7655_v5, %v3588_v47 }
0x1442   : >> { %v3625_v30 = vadd.f32 %v3609_v19, %v3592_v27  ;;  %v3627_v63 = vadd.f32 %v3611_v54, %v3594_v58  ;;  %v3606_v54 = vld [vmem:[#allocation3 + $0x28] sm:$0xff] }
0x1443   : >> { %v3638_v2 = vadd.f32 %v3622_v62, %v3605_v7 }
0x1444   : >> { %3641 = vst [vmem:[#allocation3] sm:$0xff] %v3625_v30 }
0x1445   : >> { %3643 = vst [vmem:[#allocation3 + $0x18] sm:$0xff] %v3627_v63 }
0x1446   : >> { %3654 = vst [vmem:[#allocation3 + $0x78] sm:$0xff] %v3638_v2 }
0x1447   : >> { %v3572_v3 = vpop.permute.xlu0 %3571  ;;  %v3574_v13 = vpop.permute.xlu1 %3573 }
0x1448   : >> { %v3614_v8 = vmul.f32 %v7655_v5, %v3572_v3  ;;  %v3615_v35 = vmul.f32 %v7655_v5, %v3574_v13 }
0x144a   : >> { %v3630_v15 = vadd.f32 %v3614_v8, %v3597_v0  ;;  %v3631_v16 = vadd.f32 %v3615_v35, %v3598_v10 }
0x144c   : >> { %3646 = vst [vmem:[#allocation3 + $0x8] sm:$0xff] %v3630_v15 }
0x144d   : >> { %3647 = vst [vmem:[#allocation3 + $0x48] sm:$0xff] %v3631_v16 }
0x144f   : >> { %v3578_v17 = vpop.permute.xlu0 %3577  ;;  %v3580_v20 = vpop.permute.xlu1 %3579 }
0x1450   : >> { %v3617_v9 = vmul.f32 %v7655_v5, %v3578_v17  ;;  %v3618_v40 = vmul.f32 %v7655_v5, %v3580_v20 }
0x1452   : >> { %v3633_v22 = vadd.f32 %v3617_v9, %v3600_v50  ;;  %v3634_v41 = vadd.f32 %v3618_v40, %v3601_v18 }
0x1454   : >> { %3649 = vst [vmem:[#allocation3 + $0x20] sm:$0xff] %v3633_v22 }
0x1455   : >> { %3650 = vst [vmem:[#allocation3 + $0x10] sm:$0xff] %v3634_v41 }
0x1457   : >> { %v3584_v29 = vpop.permute.xlu0 %3583  ;;  %v3586_v27 = vpop.permute.xlu1 %3585 }
0x1458   : >> { %v3620_v57 = vmul.f32 %v7655_v5, %v3584_v29  ;;  %v3621_v58 = vmul.f32 %v7655_v5, %v3586_v27 }
0x145a   : >> { %v3636_v60 = vadd.f32 %v3620_v57, %v3603_v56  ;;  %v3637_v19 = vadd.f32 %v3621_v58, %v3604_v52 }
0x145c   : >> { %3652 = vst [vmem:[#allocation3 + $0x60] sm:$0xff] %v3636_v60 }
0x145d   : >> { %3653 = vst [vmem:[#allocation3 + $0x70] sm:$0xff] %v3637_v19 }
0x145f   : >> { %v3590_v7 = vpop.permute.xlu0 %3589 }
0x1460   : >> { %v3623_v47 = vmul.f32 %v7655_v5, %v3590_v7 }
0x1462   : >> { %v3639_v62 = vadd.f32 %v3623_v47, %v3606_v54 }
0x1464   : >> { %3655 = vst [vmem:[#allocation3 + $0x28] sm:$0xff] %v3639_v62 }
0x1465 PF: >> { %3658 = sbr.rel (%p5828_p0) target bundleno = 5386 (0x150a), region = 183  ;;  %s6070_s24 = smov (!%p5828_p0), 122  }
0x1466   : >> { %s3659_s25 = sadd.s32 (!%p5828_p0), 6, %s6530_s26 }
0x1467   : >> { %s3660_s27 = sld [smem:[#allocation6 + %s3659_s25]] (!%p5828_p0) }
0x146a   : >> { %3661 = vrot.lane.b32.xlu0 %v6523_v23, %s6070_s24  ;;  %3665 = vrot.lane.b32.xlu1 %v6527_v33, %s6070_s24  ;;  %v3697_v30 = vld [vmem:[#allocation3 + $0x50] sm:$0xff]  ;;  %v3698_v3 = vld [vmem:[#allocation3 + $0x68] sm:$0xff]  ;;  %v3701_v35 = vld [vmem:[#allocation3 + $0x40] sm:$0xff] }
0x146b   : >> { %3669 = vrot.lane.b32.xlu2 %v6534_v11, %s6070_s24  ;;  %v3693_v17 = vld [vmem:[#allocation3 + $0x30] sm:$0xff]  ;;  %v3695_v20 = vld [vmem:[#allocation3 + $0x58] sm:$0xff]  ;;  %v3694_v58 = vld [vmem:[#allocation3] sm:$0xff] }
0x146c   : >> { %v3704_v41 = vld [vmem:[#allocation3 + $0x38] sm:$0xff] }
0x146d   : >> { %v7692_v5 = vstv %s3660_s27  ;;  %v3696_v19 = vld [vmem:[#allocation3 + $0x18] sm:$0xff] }
0x146e   : >> { %v3707_v62 = vld [vmem:[#allocation3 + $0x78] sm:$0xff] }
0x1472   : >> { %3663 = vrot.lane.b32.xlu0 %v6525_v32, %s6070_s24  ;;  %3667 = vrot.lane.b32.xlu1 %v6532_v24, %s6070_s24 }
0x1473   : >> { %3671 = vrot.lane.b32.xlu2 %v6536_v36, %s6070_s24 }
0x147a   : >> { %3673 = vrot.lane.b32.xlu0 %v6538_v37, %s6070_s24  ;;  %3675 = vrot.lane.b32.xlu1 %v6540_v38, %s6070_s24 }
0x147b   : >> { %3677 = vrot.lane.b32.xlu2 %v6542_v39, %s6070_s24 }
0x1482   : >> { %3679 = vrot.lane.b32.xlu0 %v6544_v25, %s6070_s24  ;;  %3681 = vrot.lane.b32.xlu1 %v6546_v28, %s6070_s24 }
0x1483   : >> { %3683 = vrot.lane.b32.xlu2 %v6548_v42, %s6070_s24 }
0x148a   : >> { %3685 = vrot.lane.b32.xlu0 %v6550_v44, %s6070_s24  ;;  %3687 = vrot.lane.b32.xlu1 %v6552_v48, %s6070_s24 }
0x148b   : >> { %3689 = vrot.lane.b32.xlu2 %v6554_v49, %s6070_s24 }
0x1492   : >> { %3691 = vrot.lane.b32.xlu0 %v6556_v26, %s6070_s24 }
0x14c5   : >> { %v3670_v63 = vpop.permute.xlu2 %3669 }
0x14c6   : >> { %v3714_v2 = vmul.f32 %v7692_v5, %v3670_v63 }
0x14c8   : >> { %v3730_v0 = vadd.f32 %v3714_v2, %v3697_v30 }
0x14ca   : >> { %3746 = vst [vmem:[#allocation3 + $0x50] sm:$0xff] %v3730_v0 }
0x14cd   : >> { %v3672_v10 = vpop.permute.xlu2 %3671 }
0x14ce   : >> { %v3715_v13 = vmul.f32 %v7692_v5, %v3672_v10  ;;  %v3699_v10 = vld [vmem:[#allocation3 + $0x8] sm:$0xff] }
0x14d0   : >> { %v3731_v8 = vadd.f32 %v3715_v13, %v3698_v3 }
0x14d2   : >> { %3747 = vst [vmem:[#allocation3 + $0x68] sm:$0xff] %v3731_v8  ;;  %v3700_v8 = vld [vmem:[#allocation3 + $0x48] sm:$0xff] }
0x14d5   : >> { %v3678_v15 = vpop.permute.xlu2 %3677 }
0x14d6   : >> { %v3718_v16 = vmul.f32 %v7692_v5, %v3678_v15 }
0x14d8   : >> { %v3734_v50 = vadd.f32 %v3718_v16, %v3701_v35 }
0x14da   : >> { %3750 = vst [vmem:[#allocation3 + $0x40] sm:$0xff] %v3734_v50 }
0x14dc   : >> { %v3662_v18 = vpop.permute.xlu0 %3661  ;;  %v3666_v9 = vpop.permute.xlu1 %3665 }
0x14dd   : >> { %v3710_v40 = vmul.f32 %v7692_v5, %v3662_v18  ;;  %v3712_v22 = vmul.f32 %v7692_v5, %v3666_v9  ;;  %v3684_v56 = vpop.permute.xlu2 %3683  ;;  %v3702_v18 = vld [vmem:[#allocation3 + $0x20] sm:$0xff]  ;;  %v3703_v9 = vld [vmem:[#allocation3 + $0x10] sm:$0xff] }
0x14de   : >> { %v3721_v29 = vmul.f32 %v7692_v5, %v3684_v56 }
0x14df   : >> { %v3726_v52 = vadd.f32 %v3710_v40, %v3693_v17  ;;  %v3728_v27 = vadd.f32 %v3712_v22, %v3695_v20 }
0x14e0   : >> { %v3737_v57 = vadd.f32 %v3721_v29, %v3704_v41 }
0x14e1   : >> { %3742 = vst [vmem:[#allocation3 + $0x30] sm:$0xff] %v3726_v52  ;;  %v3705_v52 = vld [vmem:[#allocation3 + $0x60] sm:$0xff] }
0x14e2   : >> { %3744 = vst [vmem:[#allocation3 + $0x58] sm:$0xff] %v3728_v27 }
0x14e3   : >> { %3753 = vst [vmem:[#allocation3 + $0x38] sm:$0xff] %v3737_v57  ;;  %v3706_v57 = vld [vmem:[#allocation3 + $0x70] sm:$0xff] }
0x14e4   : >> { %v3664_v60 = vpop.permute.xlu0 %3663  ;;  %v3668_v54 = vpop.permute.xlu1 %3667 }
0x14e5   : >> { %v3711_v7 = vmul.f32 %v7692_v5, %v3664_v60  ;;  %v3713_v47 = vmul.f32 %v7692_v5, %v3668_v54  ;;  %v3690_v30 = vpop.permute.xlu2 %3689 }
0x14e6   : >> { %v3724_v63 = vmul.f32 %v7692_v5, %v3690_v30 }
0x14e7   : >> { %v3727_v2 = vadd.f32 %v3711_v7, %v3694_v58  ;;  %v3729_v0 = vadd.f32 %v3713_v47, %v3696_v19  ;;  %v3708_v47 = vld [vmem:[#allocation3 + $0x28] sm:$0xff] }
0x14e8   : >> { %v3740_v3 = vadd.f32 %v3724_v63, %v3707_v62 }
0x14e9   : >> { %3743 = vst [vmem:[#allocation3] sm:$0xff] %v3727_v2 }
0x14ea   : >> { %3745 = vst [vmem:[#allocation3 + $0x18] sm:$0xff] %v3729_v0 }
0x14eb   : >> { %3756 = vst [vmem:[#allocation3 + $0x78] sm:$0xff] %v3740_v3 }
0x14ec   : >> { %v3674_v13 = vpop.permute.xlu0 %3673  ;;  %v3676_v35 = vpop.permute.xlu1 %3675 }
0x14ed   : >> { %v3716_v15 = vmul.f32 %v7692_v5, %v3674_v13  ;;  %v3717_v16 = vmul.f32 %v7692_v5, %v3676_v35 }
0x14ef   : >> { %v3732_v50 = vadd.f32 %v3716_v15, %v3699_v10  ;;  %v3733_v17 = vadd.f32 %v3717_v16, %v3700_v8 }
0x14f1   : >> { %3748 = vst [vmem:[#allocation3 + $0x8] sm:$0xff] %v3732_v50 }
0x14f2   : >> { %3749 = vst [vmem:[#allocation3 + $0x48] sm:$0xff] %v3733_v17 }
0x14f4   : >> { %v3680_v20 = vpop.permute.xlu0 %3679  ;;  %v3682_v40 = vpop.permute.xlu1 %3681 }
0x14f5   : >> { %v3719_v22 = vmul.f32 %v7692_v5, %v3680_v20  ;;  %v3720_v41 = vmul.f32 %v7692_v5, %v3682_v40 }
0x14f7   : >> { %v3735_v56 = vadd.f32 %v3719_v22, %v3702_v18  ;;  %v3736_v29 = vadd.f32 %v3720_v41, %v3703_v9 }
0x14f9   : >> { %3751 = vst [vmem:[#allocation3 + $0x20] sm:$0xff] %v3735_v56 }
0x14fa   : >> { %3752 = vst [vmem:[#allocation3 + $0x10] sm:$0xff] %v3736_v29 }
0x14fc   : >> { %v3686_v27 = vpop.permute.xlu0 %3685  ;;  %v3688_v58 = vpop.permute.xlu1 %3687 }
0x14fd   : >> { %v3722_v60 = vmul.f32 %v7692_v5, %v3686_v27  ;;  %v3723_v19 = vmul.f32 %v7692_v5, %v3688_v58 }
0x14ff   : >> { %v3738_v54 = vadd.f32 %v3722_v60, %v3705_v52  ;;  %v3739_v7 = vadd.f32 %v3723_v19, %v3706_v57 }
0x1501   : >> { %3754 = vst [vmem:[#allocation3 + $0x60] sm:$0xff] %v3738_v54 }
0x1502   : >> { %3755 = vst [vmem:[#allocation3 + $0x70] sm:$0xff] %v3739_v7 }
0x1504   : >> { %v3692_v62 = vpop.permute.xlu0 %3691 }
0x1505   : >> { %v3725_v30 = vmul.f32 %v7692_v5, %v3692_v62 }
0x1507   : >> { %v3741_v63 = vadd.f32 %v3725_v30, %v3708_v47 }
0x1509   : >> { %3757 = vst [vmem:[#allocation3 + $0x28] sm:$0xff] %v3741_v63 }
0x150a PF: >> { %3760 = sbr.rel (%p5827_p13) target bundleno = 5551 (0x15af), region = 187  ;;  %s6071_s28 = smov (!%p5827_p13), 121  }
0x150b   : >> { %s3761_s29 = sadd.s32 (!%p5827_p13), 7, %s6530_s26 }
0x150c   : >> { %s3762_s30 = sld [smem:[#allocation6 + %s3761_s29]] (!%p5827_p13) }
0x150f   : >> { %3763 = vrot.lane.b32.xlu0 %v6523_v23, %s6071_s28  ;;  %3767 = vrot.lane.b32.xlu1 %v6527_v33, %s6071_s28  ;;  %v3799_v2 = vld [vmem:[#allocation3 + $0x50] sm:$0xff]  ;;  %v3800_v13 = vld [vmem:[#allocation3 + $0x68] sm:$0xff]  ;;  %v3803_v16 = vld [vmem:[#allocation3 + $0x40] sm:$0xff] }
0x1510   : >> { %3771 = vrot.lane.b32.xlu2 %v6534_v11, %s6071_s28  ;;  %v3795_v20 = vld [vmem:[#allocation3 + $0x30] sm:$0xff]  ;;  %v3797_v40 = vld [vmem:[#allocation3 + $0x58] sm:$0xff]  ;;  %v3796_v19 = vld [vmem:[#allocation3] sm:$0xff] }
0x1511   : >> { %v3806_v29 = vld [vmem:[#allocation3 + $0x38] sm:$0xff] }
0x1512   : >> { %v7729_v5 = vstv %s3762_s30  ;;  %v3798_v7 = vld [vmem:[#allocation3 + $0x18] sm:$0xff] }
0x1513   : >> { %v3809_v63 = vld [vmem:[#allocation3 + $0x78] sm:$0xff] }
0x1517   : >> { %3765 = vrot.lane.b32.xlu0 %v6525_v32, %s6071_s28  ;;  %3769 = vrot.lane.b32.xlu1 %v6532_v24, %s6071_s28 }
0x1518   : >> { %3773 = vrot.lane.b32.xlu2 %v6536_v36, %s6071_s28 }
0x151f   : >> { %3775 = vrot.lane.b32.xlu0 %v6538_v37, %s6071_s28  ;;  %3777 = vrot.lane.b32.xlu1 %v6540_v38, %s6071_s28 }
0x1520   : >> { %3779 = vrot.lane.b32.xlu2 %v6542_v39, %s6071_s28 }
0x1527   : >> { %3781 = vrot.lane.b32.xlu0 %v6544_v25, %s6071_s28  ;;  %3783 = vrot.lane.b32.xlu1 %v6546_v28, %s6071_s28 }
0x1528   : >> { %3785 = vrot.lane.b32.xlu2 %v6548_v42, %s6071_s28 }
0x152f   : >> { %3787 = vrot.lane.b32.xlu0 %v6550_v44, %s6071_s28  ;;  %3789 = vrot.lane.b32.xlu1 %v6552_v48, %s6071_s28 }
0x1530   : >> { %3791 = vrot.lane.b32.xlu2 %v6554_v49, %s6071_s28 }
0x1537   : >> { %3793 = vrot.lane.b32.xlu0 %v6556_v26, %s6071_s28 }
0x156a   : >> { %v3772_v0 = vpop.permute.xlu2 %3771 }
0x156b   : >> { %v3816_v3 = vmul.f32 %v7729_v5, %v3772_v0 }
0x156d   : >> { %v3832_v10 = vadd.f32 %v3816_v3, %v3799_v2 }
0x156f   : >> { %3848 = vst [vmem:[#allocation3 + $0x50] sm:$0xff] %v3832_v10 }
0x1572   : >> { %v3774_v8 = vpop.permute.xlu2 %3773 }
0x1573   : >> { %v3817_v35 = vmul.f32 %v7729_v5, %v3774_v8  ;;  %v3801_v8 = vld [vmem:[#allocation3 + $0x8] sm:$0xff] }
0x1575   : >> { %v3833_v15 = vadd.f32 %v3817_v35, %v3800_v13 }
0x1577   : >> { %3849 = vst [vmem:[#allocation3 + $0x68] sm:$0xff] %v3833_v15  ;;  %v3802_v15 = vld [vmem:[#allocation3 + $0x48] sm:$0xff] }
0x157a   : >> { %v3780_v50 = vpop.permute.xlu2 %3779 }
0x157b   : >> { %v3820_v17 = vmul.f32 %v7729_v5, %v3780_v50 }
0x157d   : >> { %v3836_v18 = vadd.f32 %v3820_v17, %v3803_v16 }
0x157f   : >> { %3852 = vst [vmem:[#allocation3 + $0x40] sm:$0xff] %v3836_v18 }
0x1581   : >> { %v3764_v9 = vpop.permute.xlu0 %3763  ;;  %v3768_v22 = vpop.permute.xlu1 %3767 }
0x1582   : >> { %v3812_v41 = vmul.f32 %v7729_v5, %v3764_v9  ;;  %v3814_v56 = vmul.f32 %v7729_v5, %v3768_v22  ;;  %v3786_v52 = vpop.permute.xlu2 %3785  ;;  %v3804_v9 = vld [vmem:[#allocation3 + $0x20] sm:$0xff]  ;;  %v3805_v22 = vld [vmem:[#allocation3 + $0x10] sm:$0xff] }
0x1583   : >> { %v3823_v27 = vmul.f32 %v7729_v5, %v3786_v52 }
0x1584   : >> { %v3828_v57 = vadd.f32 %v3812_v41, %v3795_v20  ;;  %v3830_v58 = vadd.f32 %v3814_v56, %v3797_v40 }
0x1585   : >> { %v3839_v60 = vadd.f32 %v3823_v27, %v3806_v29 }
0x1586   : >> { %3844 = vst [vmem:[#allocation3 + $0x30] sm:$0xff] %v3828_v57  ;;  %v3807_v57 = vld [vmem:[#allocation3 + $0x60] sm:$0xff] }
0x1587   : >> { %3846 = vst [vmem:[#allocation3 + $0x58] sm:$0xff] %v3830_v58 }
0x1588   : >> { %3855 = vst [vmem:[#allocation3 + $0x38] sm:$0xff] %v3839_v60  ;;  %v3808_v60 = vld [vmem:[#allocation3 + $0x70] sm:$0xff] }
0x1589   : >> { %v3766_v54 = vpop.permute.xlu0 %3765  ;;  %v3770_v47 = vpop.permute.xlu1 %3769 }
0x158a   : >> { %v3813_v62 = vmul.f32 %v7729_v5, %v3766_v54  ;;  %v3815_v30 = vmul.f32 %v7729_v5, %v3770_v47  ;;  %v3792_v2 = vpop.permute.xlu2 %3791 }
0x158b   : >> { %v3826_v0 = vmul.f32 %v7729_v5, %v3792_v2 }
0x158c   : >> { %v3829_v3 = vadd.f32 %v3813_v62, %v3796_v19  ;;  %v3831_v10 = vadd.f32 %v3815_v30, %v3798_v7  ;;  %v3810_v30 = vld [vmem:[#allocation3 + $0x28] sm:$0xff] }
0x158d   : >> { %v3842_v13 = vadd.f32 %v3826_v0, %v3809_v63 }
0x158e   : >> { %3845 = vst [vmem:[#allocation3] sm:$0xff] %v3829_v3 }
0x158f   : >> { %3847 = vst [vmem:[#allocation3 + $0x18] sm:$0xff] %v3831_v10 }
0x1590   : >> { %3858 = vst [vmem:[#allocation3 + $0x78] sm:$0xff] %v3842_v13 }
0x1591   : >> { %v3776_v35 = vpop.permute.xlu0 %3775  ;;  %v3778_v16 = vpop.permute.xlu1 %3777 }
0x1592   : >> { %v3818_v50 = vmul.f32 %v7729_v5, %v3776_v35  ;;  %v3819_v17 = vmul.f32 %v7729_v5, %v3778_v16 }
0x1594   : >> { %v3834_v18 = vadd.f32 %v3818_v50, %v3801_v8  ;;  %v3835_v20 = vadd.f32 %v3819_v17, %v3802_v15 }
0x1596   : >> { %3850 = vst [vmem:[#allocation3 + $0x8] sm:$0xff] %v3834_v18 }
0x1597   : >> { %3851 = vst [vmem:[#allocation3 + $0x48] sm:$0xff] %v3835_v20 }
0x1599   : >> { %v3782_v40 = vpop.permute.xlu0 %3781  ;;  %v3784_v41 = vpop.permute.xlu1 %3783 }
0x159a   : >> { %v3821_v56 = vmul.f32 %v7729_v5, %v3782_v40  ;;  %v3822_v29 = vmul.f32 %v7729_v5, %v3784_v41 }
0x159c   : >> { %v3837_v52 = vadd.f32 %v3821_v56, %v3804_v9  ;;  %v3838_v27 = vadd.f32 %v3822_v29, %v3805_v22 }
0x159e   : >> { %3853 = vst [vmem:[#allocation3 + $0x20] sm:$0xff] %v3837_v52 }
0x159f   : >> { %3854 = vst [vmem:[#allocation3 + $0x10] sm:$0xff] %v3838_v27 }
0x15a1   : >> { %v3788_v58 = vpop.permute.xlu0 %3787  ;;  %v3790_v19 = vpop.permute.xlu1 %3789 }
0x15a2   : >> { %v3824_v54 = vmul.f32 %v7729_v5, %v3788_v58  ;;  %v3825_v7 = vmul.f32 %v7729_v5, %v3790_v19 }
0x15a4   : >> { %v3840_v47 = vadd.f32 %v3824_v54, %v3807_v57  ;;  %v3841_v62 = vadd.f32 %v3825_v7, %v3808_v60 }
0x15a6   : >> { %3856 = vst [vmem:[#allocation3 + $0x60] sm:$0xff] %v3840_v47 }
0x15a7   : >> { %3857 = vst [vmem:[#allocation3 + $0x70] sm:$0xff] %v3841_v62 }
0x15a9   : >> { %v3794_v63 = vpop.permute.xlu0 %3793 }
0x15aa   : >> { %v3827_v2 = vmul.f32 %v7729_v5, %v3794_v63 }
0x15ac   : >> { %v3843_v0 = vadd.f32 %v3827_v2, %v3810_v30 }
0x15ae   : >> { %3859 = vst [vmem:[#allocation3 + $0x28] sm:$0xff] %v3843_v0 }
0x15af PF: >> { %3862 = sbr.rel (%p5826_p12) target bundleno = 5716 (0x1654), region = 191  ;;  %s6072_s5 = smov (!%p5826_p12), 120  }
0x15b0   : >> { %s3863_s6 = sadd.s32 (!%p5826_p12), 8, %s6530_s26 }
0x15b1   : >> { %s3864_s7 = sld [smem:[#allocation6 + %s3863_s6]] (!%p5826_p12) }
0x15b4   : >> { %3865 = vrot.lane.b32.xlu0 %v6523_v23, %s6072_s5  ;;  %3869 = vrot.lane.b32.xlu1 %v6527_v33, %s6072_s5  ;;  %v3901_v3 = vld [vmem:[#allocation3 + $0x50] sm:$0xff]  ;;  %v3902_v35 = vld [vmem:[#allocation3 + $0x68] sm:$0xff]  ;;  %v3905_v17 = vld [vmem:[#allocation3 + $0x40] sm:$0xff] }
0x15b5   : >> { %3873 = vrot.lane.b32.xlu2 %v6534_v11, %s6072_s5  ;;  %v3897_v40 = vld [vmem:[#allocation3 + $0x30] sm:$0xff]  ;;  %v3899_v41 = vld [vmem:[#allocation3 + $0x58] sm:$0xff]  ;;  %v3898_v7 = vld [vmem:[#allocation3] sm:$0xff] }
0x15b6   : >> { %v3908_v27 = vld [vmem:[#allocation3 + $0x38] sm:$0xff] }
0x15b7   : >> { %v7766_v5 = vstv %s3864_s7  ;;  %v3900_v62 = vld [vmem:[#allocation3 + $0x18] sm:$0xff] }
0x15b8   : >> { %v3911_v0 = vld [vmem:[#allocation3 + $0x78] sm:$0xff] }
0x15bc   : >> { %3867 = vrot.lane.b32.xlu0 %v6525_v32, %s6072_s5  ;;  %3871 = vrot.lane.b32.xlu1 %v6532_v24, %s6072_s5 }
0x15bd   : >> { %3875 = vrot.lane.b32.xlu2 %v6536_v36, %s6072_s5 }
0x15c4   : >> { %3877 = vrot.lane.b32.xlu0 %v6538_v37, %s6072_s5  ;;  %3879 = vrot.lane.b32.xlu1 %v6540_v38, %s6072_s5 }
0x15c5   : >> { %3881 = vrot.lane.b32.xlu2 %v6542_v39, %s6072_s5 }
0x15cc   : >> { %3883 = vrot.lane.b32.xlu0 %v6544_v25, %s6072_s5  ;;  %3885 = vrot.lane.b32.xlu1 %v6546_v28, %s6072_s5 }
0x15cd   : >> { %3887 = vrot.lane.b32.xlu2 %v6548_v42, %s6072_s5 }
0x15d4   : >> { %3889 = vrot.lane.b32.xlu0 %v6550_v44, %s6072_s5  ;;  %3891 = vrot.lane.b32.xlu1 %v6552_v48, %s6072_s5 }
0x15d5   : >> { %3893 = vrot.lane.b32.xlu2 %v6554_v49, %s6072_s5 }
0x15dc   : >> { %3895 = vrot.lane.b32.xlu0 %v6556_v26, %s6072_s5 }
0x160f   : >> { %v3874_v10 = vpop.permute.xlu2 %3873 }
0x1610   : >> { %v3918_v13 = vmul.f32 %v7766_v5, %v3874_v10 }
0x1612   : >> { %v3934_v8 = vadd.f32 %v3918_v13, %v3901_v3 }
0x1614   : >> { %3950 = vst [vmem:[#allocation3 + $0x50] sm:$0xff] %v3934_v8 }
0x1617   : >> { %v3876_v15 = vpop.permute.xlu2 %3875 }
0x1618   : >> { %v3919_v16 = vmul.f32 %v7766_v5, %v3876_v15  ;;  %v3903_v15 = vld [vmem:[#allocation3 + $0x8] sm:$0xff] }
0x161a   : >> { %v3935_v50 = vadd.f32 %v3919_v16, %v3902_v35 }
0x161c   : >> { %3951 = vst [vmem:[#allocation3 + $0x68] sm:$0xff] %v3935_v50  ;;  %v3904_v50 = vld [vmem:[#allocation3 + $0x48] sm:$0xff] }
0x161f   : >> { %v3882_v18 = vpop.permute.xlu2 %3881 }
0x1620   : >> { %v3922_v20 = vmul.f32 %v7766_v5, %v3882_v18 }
0x1622   : >> { %v3938_v9 = vadd.f32 %v3922_v20, %v3905_v17 }
0x1624   : >> { %3954 = vst [vmem:[#allocation3 + $0x40] sm:$0xff] %v3938_v9 }
0x1626   : >> { %v3866_v22 = vpop.permute.xlu0 %3865  ;;  %v3870_v56 = vpop.permute.xlu1 %3869 }
0x1627   : >> { %v3914_v29 = vmul.f32 %v7766_v5, %v3866_v22  ;;  %v3916_v52 = vmul.f32 %v7766_v5, %v3870_v56  ;;  %v3888_v57 = vpop.permute.xlu2 %3887  ;;  %v3906_v22 = vld [vmem:[#allocation3 + $0x20] sm:$0xff]  ;;  %v3907_v56 = vld [vmem:[#allocation3 + $0x10] sm:$0xff] }
0x1628   : >> { %v3925_v58 = vmul.f32 %v7766_v5, %v3888_v57 }
0x1629   : >> { %v3930_v60 = vadd.f32 %v3914_v29, %v3897_v40  ;;  %v3932_v19 = vadd.f32 %v3916_v52, %v3899_v41 }
0x162a   : >> { %v3941_v54 = vadd.f32 %v3925_v58, %v3908_v27 }
0x162b   : >> { %3946 = vst [vmem:[#allocation3 + $0x30] sm:$0xff] %v3930_v60  ;;  %v3909_v60 = vld [vmem:[#allocation3 + $0x60] sm:$0xff] }
0x162c   : >> { %3948 = vst [vmem:[#allocation3 + $0x58] sm:$0xff] %v3932_v19 }
0x162d   : >> { %3957 = vst [vmem:[#allocation3 + $0x38] sm:$0xff] %v3941_v54  ;;  %v3910_v54 = vld [vmem:[#allocation3 + $0x70] sm:$0xff] }
0x162e   : >> { %v3868_v47 = vpop.permute.xlu0 %3867  ;;  %v3872_v30 = vpop.permute.xlu1 %3871 }
0x162f   : >> { %v3915_v63 = vmul.f32 %v7766_v5, %v3868_v47  ;;  %v3917_v2 = vmul.f32 %v7766_v5, %v3872_v30  ;;  %v3894_v3 = vpop.permute.xlu2 %3893 }
0x1630   : >> { %v3928_v10 = vmul.f32 %v7766_v5, %v3894_v3 }
0x1631   : >> { %v3931_v13 = vadd.f32 %v3915_v63, %v3898_v7  ;;  %v3933_v8 = vadd.f32 %v3917_v2, %v3900_v62  ;;  %v3912_v2 = vld [vmem:[#allocation3 + $0x28] sm:$0xff] }
0x1632   : >> { %v3944_v35 = vadd.f32 %v3928_v10, %v3911_v0 }
0x1633   : >> { %3947 = vst [vmem:[#allocation3] sm:$0xff] %v3931_v13 }
0x1634   : >> { %3949 = vst [vmem:[#allocation3 + $0x18] sm:$0xff] %v3933_v8 }
0x1635   : >> { %3960 = vst [vmem:[#allocation3 + $0x78] sm:$0xff] %v3944_v35 }
0x1636   : >> { %v3878_v16 = vpop.permute.xlu0 %3877  ;;  %v3880_v17 = vpop.permute.xlu1 %3879 }
0x1637   : >> { %v3920_v18 = vmul.f32 %v7766_v5, %v3878_v16  ;;  %v3921_v20 = vmul.f32 %v7766_v5, %v3880_v17 }
0x1639   : >> { %v3936_v9 = vadd.f32 %v3920_v18, %v3903_v15  ;;  %v3937_v40 = vadd.f32 %v3921_v20, %v3904_v50 }
0x163b   : >> { %3952 = vst [vmem:[#allocation3 + $0x8] sm:$0xff] %v3936_v9 }
0x163c   : >> { %3953 = vst [vmem:[#allocation3 + $0x48] sm:$0xff] %v3937_v40 }
0x163e   : >> { %v3884_v41 = vpop.permute.xlu0 %3883  ;;  %v3886_v29 = vpop.permute.xlu1 %3885 }
0x163f   : >> { %v3923_v52 = vmul.f32 %v7766_v5, %v3884_v41  ;;  %v3924_v27 = vmul.f32 %v7766_v5, %v3886_v29 }
0x1641   : >> { %v3939_v57 = vadd.f32 %v3923_v52, %v3906_v22  ;;  %v3940_v58 = vadd.f32 %v3924_v27, %v3907_v56 }
0x1643   : >> { %3955 = vst [vmem:[#allocation3 + $0x20] sm:$0xff] %v3939_v57 }
0x1644   : >> { %3956 = vst [vmem:[#allocation3 + $0x10] sm:$0xff] %v3940_v58 }
0x1646   : >> { %v3890_v19 = vpop.permute.xlu0 %3889  ;;  %v3892_v7 = vpop.permute.xlu1 %3891 }
0x1647   : >> { %v3926_v47 = vmul.f32 %v7766_v5, %v3890_v19  ;;  %v3927_v62 = vmul.f32 %v7766_v5, %v3892_v7 }
0x1649   : >> { %v3942_v30 = vadd.f32 %v3926_v47, %v3909_v60  ;;  %v3943_v63 = vadd.f32 %v3927_v62, %v3910_v54 }
0x164b   : >> { %3958 = vst [vmem:[#allocation3 + $0x60] sm:$0xff] %v3942_v30 }
0x164c   : >> { %3959 = vst [vmem:[#allocation3 + $0x70] sm:$0xff] %v3943_v63 }
0x164e   : >> { %v3896_v0 = vpop.permute.xlu0 %3895 }
0x164f   : >> { %v3929_v3 = vmul.f32 %v7766_v5, %v3896_v0 }
0x1651   : >> { %v3945_v10 = vadd.f32 %v3929_v3, %v3912_v2 }
0x1653   : >> { %3961 = vst [vmem:[#allocation3 + $0x28] sm:$0xff] %v3945_v10 }
0x1654 PF: >> { %3964 = sbr.rel (%p5825_p11) target bundleno = 5881 (0x16f9), region = 195  ;;  %s6073_s8 = smov (!%p5825_p11), 119  }
0x1655   : >> { %s3965_s9 = sadd.s32 (!%p5825_p11), 9, %s6530_s26 }
0x1656   : >> { %s3966_s10 = sld [smem:[#allocation6 + %s3965_s9]] (!%p5825_p11) }
0x1659   : >> { %3967 = vrot.lane.b32.xlu0 %v6523_v23, %s6073_s8  ;;  %3971 = vrot.lane.b32.xlu1 %v6527_v33, %s6073_s8  ;;  %v4003_v13 = vld [vmem:[#allocation3 + $0x50] sm:$0xff]  ;;  %v4004_v16 = vld [vmem:[#allocation3 + $0x68] sm:$0xff]  ;;  %v4007_v20 = vld [vmem:[#allocation3 + $0x40] sm:$0xff] }
0x165a   : >> { %3975 = vrot.lane.b32.xlu2 %v6534_v11, %s6073_s8  ;;  %v3999_v41 = vld [vmem:[#allocation3 + $0x30] sm:$0xff]  ;;  %v4001_v29 = vld [vmem:[#allocation3 + $0x58] sm:$0xff]  ;;  %v4000_v62 = vld [vmem:[#allocation3] sm:$0xff] }
0x165b   : >> { %v4010_v58 = vld [vmem:[#allocation3 + $0x38] sm:$0xff] }
0x165c   : >> { %v7803_v5 = vstv %s3966_s10  ;;  %v4002_v63 = vld [vmem:[#allocation3 + $0x18] sm:$0xff] }
0x165d   : >> { %v4013_v10 = vld [vmem:[#allocation3 + $0x78] sm:$0xff] }
0x1661   : >> { %3969 = vrot.lane.b32.xlu0 %v6525_v32, %s6073_s8  ;;  %3973 = vrot.lane.b32.xlu1 %v6532_v24, %s6073_s8 }
0x1662   : >> { %3977 = vrot.lane.b32.xlu2 %v6536_v36, %s6073_s8 }
0x1669   : >> { %3979 = vrot.lane.b32.xlu0 %v6538_v37, %s6073_s8  ;;  %3981 = vrot.lane.b32.xlu1 %v6540_v38, %s6073_s8 }
0x166a   : >> { %3983 = vrot.lane.b32.xlu2 %v6542_v39, %s6073_s8 }
0x1671   : >> { %3985 = vrot.lane.b32.xlu0 %v6544_v25, %s6073_s8  ;;  %3987 = vrot.lane.b32.xlu1 %v6546_v28, %s6073_s8 }
0x1672   : >> { %3989 = vrot.lane.b32.xlu2 %v6548_v42, %s6073_s8 }
0x1679   : >> { %3991 = vrot.lane.b32.xlu0 %v6550_v44, %s6073_s8  ;;  %3993 = vrot.lane.b32.xlu1 %v6552_v48, %s6073_s8 }
0x167a   : >> { %3995 = vrot.lane.b32.xlu2 %v6554_v49, %s6073_s8 }
0x1681   : >> { %3997 = vrot.lane.b32.xlu0 %v6556_v26, %s6073_s8 }
0x16b4   : >> { %v3976_v8 = vpop.permute.xlu2 %3975 }
0x16b5   : >> { %v4020_v35 = vmul.f32 %v7803_v5, %v3976_v8 }
0x16b7   : >> { %v4036_v15 = vadd.f32 %v4020_v35, %v4003_v13 }
0x16b9   : >> { %4052 = vst [vmem:[#allocation3 + $0x50] sm:$0xff] %v4036_v15 }
0x16bc   : >> { %v3978_v50 = vpop.permute.xlu2 %3977 }
0x16bd   : >> { %v4021_v17 = vmul.f32 %v7803_v5, %v3978_v50  ;;  %v4005_v50 = vld [vmem:[#allocation3 + $0x8] sm:$0xff] }
0x16bf   : >> { %v4037_v18 = vadd.f32 %v4021_v17, %v4004_v16 }
0x16c1   : >> { %4053 = vst [vmem:[#allocation3 + $0x68] sm:$0xff] %v4037_v18  ;;  %v4006_v18 = vld [vmem:[#allocation3 + $0x48] sm:$0xff] }
0x16c4   : >> { %v3984_v9 = vpop.permute.xlu2 %3983 }
0x16c5   : >> { %v4024_v40 = vmul.f32 %v7803_v5, %v3984_v9 }
0x16c7   : >> { %v4040_v22 = vadd.f32 %v4024_v40, %v4007_v20 }
0x16c9   : >> { %4056 = vst [vmem:[#allocation3 + $0x40] sm:$0xff] %v4040_v22 }
0x16cb   : >> { %v3968_v56 = vpop.permute.xlu0 %3967  ;;  %v3972_v52 = vpop.permute.xlu1 %3971 }
0x16cc   : >> { %v4016_v27 = vmul.f32 %v7803_v5, %v3968_v56  ;;  %v4018_v57 = vmul.f32 %v7803_v5, %v3972_v52  ;;  %v3990_v60 = vpop.permute.xlu2 %3989  ;;  %v4008_v56 = vld [vmem:[#allocation3 + $0x20] sm:$0xff]  ;;  %v4009_v52 = vld [vmem:[#allocation3 + $0x10] sm:$0xff] }
0x16cd   : >> { %v4027_v19 = vmul.f32 %v7803_v5, %v3990_v60 }
0x16ce   : >> { %v4032_v54 = vadd.f32 %v4016_v27, %v3999_v41  ;;  %v4034_v7 = vadd.f32 %v4018_v57, %v4001_v29 }
0x16cf   : >> { %v4043_v47 = vadd.f32 %v4027_v19, %v4010_v58 }
0x16d0   : >> { %4048 = vst [vmem:[#allocation3 + $0x30] sm:$0xff] %v4032_v54  ;;  %v4011_v54 = vld [vmem:[#allocation3 + $0x60] sm:$0xff] }
0x16d1   : >> { %4050 = vst [vmem:[#allocation3 + $0x58] sm:$0xff] %v4034_v7 }
0x16d2   : >> { %4059 = vst [vmem:[#allocation3 + $0x38] sm:$0xff] %v4043_v47  ;;  %v4012_v47 = vld [vmem:[#allocation3 + $0x70] sm:$0xff] }
0x16d3   : >> { %v3970_v30 = vpop.permute.xlu0 %3969  ;;  %v3974_v2 = vpop.permute.xlu1 %3973 }
0x16d4   : >> { %v4017_v0 = vmul.f32 %v7803_v5, %v3970_v30  ;;  %v4019_v3 = vmul.f32 %v7803_v5, %v3974_v2  ;;  %v3996_v13 = vpop.permute.xlu2 %3995 }
0x16d5   : >> { %v4030_v8 = vmul.f32 %v7803_v5, %v3996_v13 }
0x16d6   : >> { %v4033_v35 = vadd.f32 %v4017_v0, %v4000_v62  ;;  %v4035_v15 = vadd.f32 %v4019_v3, %v4002_v63  ;;  %v4014_v3 = vld [vmem:[#allocation3 + $0x28] sm:$0xff] }
0x16d7   : >> { %v4046_v16 = vadd.f32 %v4030_v8, %v4013_v10 }
0x16d8   : >> { %4049 = vst [vmem:[#allocation3] sm:$0xff] %v4033_v35 }
0x16d9   : >> { %4051 = vst [vmem:[#allocation3 + $0x18] sm:$0xff] %v4035_v15 }
0x16da   : >> { %4062 = vst [vmem:[#allocation3 + $0x78] sm:$0xff] %v4046_v16 }
0x16db   : >> { %v3980_v17 = vpop.permute.xlu0 %3979  ;;  %v3982_v20 = vpop.permute.xlu1 %3981 }
0x16dc   : >> { %v4022_v9 = vmul.f32 %v7803_v5, %v3980_v17  ;;  %v4023_v40 = vmul.f32 %v7803_v5, %v3982_v20 }
0x16de   : >> { %v4038_v22 = vadd.f32 %v4022_v9, %v4005_v50  ;;  %v4039_v41 = vadd.f32 %v4023_v40, %v4006_v18 }
0x16e0   : >> { %4054 = vst [vmem:[#allocation3 + $0x8] sm:$0xff] %v4038_v22 }
0x16e1   : >> { %4055 = vst [vmem:[#allocation3 + $0x48] sm:$0xff] %v4039_v41 }
0x16e3   : >> { %v3986_v29 = vpop.permute.xlu0 %3985  ;;  %v3988_v27 = vpop.permute.xlu1 %3987 }
0x16e4   : >> { %v4025_v57 = vmul.f32 %v7803_v5, %v3986_v29  ;;  %v4026_v58 = vmul.f32 %v7803_v5, %v3988_v27 }
0x16e6   : >> { %v4041_v60 = vadd.f32 %v4025_v57, %v4008_v56  ;;  %v4042_v19 = vadd.f32 %v4026_v58, %v4009_v52 }
0x16e8   : >> { %4057 = vst [vmem:[#allocation3 + $0x20] sm:$0xff] %v4041_v60 }
0x16e9   : >> { %4058 = vst [vmem:[#allocation3 + $0x10] sm:$0xff] %v4042_v19 }
0x16eb   : >> { %v3992_v7 = vpop.permute.xlu0 %3991  ;;  %v3994_v62 = vpop.permute.xlu1 %3993 }
0x16ec   : >> { %v4028_v30 = vmul.f32 %v7803_v5, %v3992_v7  ;;  %v4029_v63 = vmul.f32 %v7803_v5, %v3994_v62 }
0x16ee   : >> { %v4044_v2 = vadd.f32 %v4028_v30, %v4011_v54  ;;  %v4045_v0 = vadd.f32 %v4029_v63, %v4012_v47 }
0x16f0   : >> { %4060 = vst [vmem:[#allocation3 + $0x60] sm:$0xff] %v4044_v2 }
0x16f1   : >> { %4061 = vst [vmem:[#allocation3 + $0x70] sm:$0xff] %v4045_v0 }
0x16f3   : >> { %v3998_v10 = vpop.permute.xlu0 %3997 }
0x16f4   : >> { %v4031_v13 = vmul.f32 %v7803_v5, %v3998_v10 }
0x16f6   : >> { %v4047_v8 = vadd.f32 %v4031_v13, %v4014_v3 }
0x16f8   : >> { %4063 = vst [vmem:[#allocation3 + $0x28] sm:$0xff] %v4047_v8 }
0x16f9 PF: >> { %4066 = sbr.rel (%p5824_p10) target bundleno = 6046 (0x179e), region = 199  ;;  %s6074_s11 = smov (!%p5824_p10), 118  }
0x16fa   : >> { %s4067_s12 = sadd.s32 (!%p5824_p10), 10, %s6530_s26 }
0x16fb   : >> { %s4068_s13 = sld [smem:[#allocation6 + %s4067_s12]] (!%p5824_p10) }
0x16fe   : >> { %4069 = vrot.lane.b32.xlu0 %v6523_v23, %s6074_s11  ;;  %4073 = vrot.lane.b32.xlu1 %v6527_v33, %s6074_s11  ;;  %v4105_v35 = vld [vmem:[#allocation3 + $0x50] sm:$0xff]  ;;  %v4106_v17 = vld [vmem:[#allocation3 + $0x68] sm:$0xff]  ;;  %v4109_v40 = vld [vmem:[#allocation3 + $0x40] sm:$0xff] }
0x16ff   : >> { %4077 = vrot.lane.b32.xlu2 %v6534_v11, %s6074_s11  ;;  %v4101_v29 = vld [vmem:[#allocation3 + $0x30] sm:$0xff]  ;;  %v4103_v27 = vld [vmem:[#allocation3 + $0x58] sm:$0xff]  ;;  %v4102_v63 = vld [vmem:[#allocation3] sm:$0xff] }
0x1700   : >> { %v4112_v19 = vld [vmem:[#allocation3 + $0x38] sm:$0xff] }
0x1701   : >> { %v7840_v5 = vstv %s4068_s13  ;;  %v4104_v0 = vld [vmem:[#allocation3 + $0x18] sm:$0xff] }
0x1702   : >> { %v4115_v8 = vld [vmem:[#allocation3 + $0x78] sm:$0xff] }
0x1706   : >> { %4071 = vrot.lane.b32.xlu0 %v6525_v32, %s6074_s11  ;;  %4075 = vrot.lane.b32.xlu1 %v6532_v24, %s6074_s11 }
0x1707   : >> { %4079 = vrot.lane.b32.xlu2 %v6536_v36, %s6074_s11 }
0x170e   : >> { %4081 = vrot.lane.b32.xlu0 %v6538_v37, %s6074_s11  ;;  %4083 = vrot.lane.b32.xlu1 %v6540_v38, %s6074_s11 }
0x170f   : >> { %4085 = vrot.lane.b32.xlu2 %v6542_v39, %s6074_s11 }
0x1716   : >> { %4087 = vrot.lane.b32.xlu0 %v6544_v25, %s6074_s11  ;;  %4089 = vrot.lane.b32.xlu1 %v6546_v28, %s6074_s11 }
0x1717   : >> { %4091 = vrot.lane.b32.xlu2 %v6548_v42, %s6074_s11 }
0x171e   : >> { %4093 = vrot.lane.b32.xlu0 %v6550_v44, %s6074_s11  ;;  %4095 = vrot.lane.b32.xlu1 %v6552_v48, %s6074_s11 }
0x171f   : >> { %4097 = vrot.lane.b32.xlu2 %v6554_v49, %s6074_s11 }
0x1726   : >> { %4099 = vrot.lane.b32.xlu0 %v6556_v26, %s6074_s11 }
0x1759   : >> { %v4078_v15 = vpop.permute.xlu2 %4077 }
0x175a   : >> { %v4122_v16 = vmul.f32 %v7840_v5, %v4078_v15 }
0x175c   : >> { %v4138_v50 = vadd.f32 %v4122_v16, %v4105_v35 }
0x175e   : >> { %4154 = vst [vmem:[#allocation3 + $0x50] sm:$0xff] %v4138_v50 }
0x1761   : >> { %v4080_v18 = vpop.permute.xlu2 %4079 }
0x1762   : >> { %v4123_v20 = vmul.f32 %v7840_v5, %v4080_v18  ;;  %v4107_v18 = vld [vmem:[#allocation3 + $0x8] sm:$0xff] }
0x1764   : >> { %v4139_v9 = vadd.f32 %v4123_v20, %v4106_v17 }
0x1766   : >> { %4155 = vst [vmem:[#allocation3 + $0x68] sm:$0xff] %v4139_v9  ;;  %v4108_v9 = vld [vmem:[#allocation3 + $0x48] sm:$0xff] }
0x1769   : >> { %v4086_v22 = vpop.permute.xlu2 %4085 }
0x176a   : >> { %v4126_v41 = vmul.f32 %v7840_v5, %v4086_v22 }
0x176c   : >> { %v4142_v56 = vadd.f32 %v4126_v41, %v4109_v40 }
0x176e   : >> { %4158 = vst [vmem:[#allocation3 + $0x40] sm:$0xff] %v4142_v56 }
0x1770   : >> { %v4070_v52 = vpop.permute.xlu0 %4069  ;;  %v4074_v57 = vpop.permute.xlu1 %4073 }
0x1771   : >> { %v4118_v58 = vmul.f32 %v7840_v5, %v4070_v52  ;;  %v4120_v60 = vmul.f32 %v7840_v5, %v4074_v57  ;;  %v4092_v54 = vpop.permute.xlu2 %4091  ;;  %v4110_v52 = vld [vmem:[#allocation3 + $0x20] sm:$0xff]  ;;  %v4111_v57 = vld [vmem:[#allocation3 + $0x10] sm:$0xff] }
0x1772   : >> { %v4129_v7 = vmul.f32 %v7840_v5, %v4092_v54 }
0x1773   : >> { %v4134_v47 = vadd.f32 %v4118_v58, %v4101_v29  ;;  %v4136_v62 = vadd.f32 %v4120_v60, %v4103_v27 }
0x1774   : >> { %v4145_v30 = vadd.f32 %v4129_v7, %v4112_v19 }
0x1775   : >> { %4150 = vst [vmem:[#allocation3 + $0x30] sm:$0xff] %v4134_v47  ;;  %v4113_v47 = vld [vmem:[#allocation3 + $0x60] sm:$0xff] }
0x1776   : >> { %4152 = vst [vmem:[#allocation3 + $0x58] sm:$0xff] %v4136_v62 }
0x1777   : >> { %4161 = vst [vmem:[#allocation3 + $0x38] sm:$0xff] %v4145_v30  ;;  %v4114_v30 = vld [vmem:[#allocation3 + $0x70] sm:$0xff] }
0x1778   : >> { %v4072_v2 = vpop.permute.xlu0 %4071  ;;  %v4076_v3 = vpop.permute.xlu1 %4075 }
0x1779   : >> { %v4119_v10 = vmul.f32 %v7840_v5, %v4072_v2  ;;  %v4121_v13 = vmul.f32 %v7840_v5, %v4076_v3  ;;  %v4098_v35 = vpop.permute.xlu2 %4097 }
0x177a   : >> { %v4132_v15 = vmul.f32 %v7840_v5, %v4098_v35 }
0x177b   : >> { %v4135_v16 = vadd.f32 %v4119_v10, %v4102_v63  ;;  %v4137_v50 = vadd.f32 %v4121_v13, %v4104_v0  ;;  %v4116_v13 = vld [vmem:[#allocation3 + $0x28] sm:$0xff] }
0x177c   : >> { %v4148_v17 = vadd.f32 %v4132_v15, %v4115_v8 }
0x177d   : >> { %4151 = vst [vmem:[#allocation3] sm:$0xff] %v4135_v16 }
0x177e   : >> { %4153 = vst [vmem:[#allocation3 + $0x18] sm:$0xff] %v4137_v50 }
0x177f   : >> { %4164 = vst [vmem:[#allocation3 + $0x78] sm:$0xff] %v4148_v17 }
0x1780   : >> { %v4082_v20 = vpop.permute.xlu0 %4081  ;;  %v4084_v40 = vpop.permute.xlu1 %4083 }
0x1781   : >> { %v4124_v22 = vmul.f32 %v7840_v5, %v4082_v20  ;;  %v4125_v41 = vmul.f32 %v7840_v5, %v4084_v40 }
0x1783   : >> { %v4140_v56 = vadd.f32 %v4124_v22, %v4107_v18  ;;  %v4141_v29 = vadd.f32 %v4125_v41, %v4108_v9 }
0x1785   : >> { %4156 = vst [vmem:[#allocation3 + $0x8] sm:$0xff] %v4140_v56 }
0x1786   : >> { %4157 = vst [vmem:[#allocation3 + $0x48] sm:$0xff] %v4141_v29 }
0x1788   : >> { %v4088_v27 = vpop.permute.xlu0 %4087  ;;  %v4090_v58 = vpop.permute.xlu1 %4089 }
0x1789   : >> { %v4127_v60 = vmul.f32 %v7840_v5, %v4088_v27  ;;  %v4128_v19 = vmul.f32 %v7840_v5, %v4090_v58 }
0x178b   : >> { %v4143_v54 = vadd.f32 %v4127_v60, %v4110_v52  ;;  %v4144_v7 = vadd.f32 %v4128_v19, %v4111_v57 }
0x178d   : >> { %4159 = vst [vmem:[#allocation3 + $0x20] sm:$0xff] %v4143_v54 }
0x178e   : >> { %4160 = vst [vmem:[#allocation3 + $0x10] sm:$0xff] %v4144_v7 }
0x1790   : >> { %v4094_v62 = vpop.permute.xlu0 %4093  ;;  %v4096_v63 = vpop.permute.xlu1 %4095 }
0x1791   : >> { %v4130_v2 = vmul.f32 %v7840_v5, %v4094_v62  ;;  %v4131_v0 = vmul.f32 %v7840_v5, %v4096_v63 }
0x1793   : >> { %v4146_v3 = vadd.f32 %v4130_v2, %v4113_v47  ;;  %v4147_v10 = vadd.f32 %v4131_v0, %v4114_v30 }
0x1795   : >> { %4162 = vst [vmem:[#allocation3 + $0x60] sm:$0xff] %v4146_v3 }
0x1796   : >> { %4163 = vst [vmem:[#allocation3 + $0x70] sm:$0xff] %v4147_v10 }
0x1798   : >> { %v4100_v8 = vpop.permute.xlu0 %4099 }
0x1799   : >> { %v4133_v35 = vmul.f32 %v7840_v5, %v4100_v8 }
0x179b   : >> { %v4149_v15 = vadd.f32 %v4133_v35, %v4116_v13 }
0x179d   : >> { %4165 = vst [vmem:[#allocation3 + $0x28] sm:$0xff] %v4149_v15 }
0x179e PF: >> { %4168 = sbr.rel (%p5823_p9) target bundleno = 6211 (0x1843), region = 203  ;;  %s6075_s21 = smov (!%p5823_p9), 117  }
0x179f   : >> { %s4169_s22 = sadd.s32 (!%p5823_p9), 11, %s6530_s26 }
0x17a0   : >> { %s4170_s23 = sld [smem:[#allocation6 + %s4169_s22]] (!%p5823_p9) }
0x17a3   : >> { %4171 = vrot.lane.b32.xlu0 %v6523_v23, %s6075_s21  ;;  %4175 = vrot.lane.b32.xlu1 %v6527_v33, %s6075_s21  ;;  %v4207_v16 = vld [vmem:[#allocation3 + $0x50] sm:$0xff]  ;;  %v4208_v20 = vld [vmem:[#allocation3 + $0x68] sm:$0xff]  ;;  %v4211_v41 = vld [vmem:[#allocation3 + $0x40] sm:$0xff] }
0x17a4   : >> { %4179 = vrot.lane.b32.xlu2 %v6534_v11, %s6075_s21  ;;  %v4203_v27 = vld [vmem:[#allocation3 + $0x30] sm:$0xff]  ;;  %v4205_v58 = vld [vmem:[#allocation3 + $0x58] sm:$0xff]  ;;  %v4204_v0 = vld [vmem:[#allocation3] sm:$0xff] }
0x17a5   : >> { %v4214_v7 = vld [vmem:[#allocation3 + $0x38] sm:$0xff] }
0x17a6   : >> { %v7877_v5 = vstv %s4170_s23  ;;  %v4206_v10 = vld [vmem:[#allocation3 + $0x18] sm:$0xff] }
0x17a7   : >> { %v4217_v15 = vld [vmem:[#allocation3 + $0x78] sm:$0xff] }
0x17ab   : >> { %4173 = vrot.lane.b32.xlu0 %v6525_v32, %s6075_s21  ;;  %4177 = vrot.lane.b32.xlu1 %v6532_v24, %s6075_s21 }
0x17ac   : >> { %4181 = vrot.lane.b32.xlu2 %v6536_v36, %s6075_s21 }
0x17b3   : >> { %4183 = vrot.lane.b32.xlu0 %v6538_v37, %s6075_s21  ;;  %4185 = vrot.lane.b32.xlu1 %v6540_v38, %s6075_s21 }
0x17b4   : >> { %4187 = vrot.lane.b32.xlu2 %v6542_v39, %s6075_s21 }
0x17bb   : >> { %4189 = vrot.lane.b32.xlu0 %v6544_v25, %s6075_s21  ;;  %4191 = vrot.lane.b32.xlu1 %v6546_v28, %s6075_s21 }
0x17bc   : >> { %4193 = vrot.lane.b32.xlu2 %v6548_v42, %s6075_s21 }
0x17c3   : >> { %4195 = vrot.lane.b32.xlu0 %v6550_v44, %s6075_s21  ;;  %4197 = vrot.lane.b32.xlu1 %v6552_v48, %s6075_s21 }
0x17c4   : >> { %4199 = vrot.lane.b32.xlu2 %v6554_v49, %s6075_s21 }
0x17cb   : >> { %4201 = vrot.lane.b32.xlu0 %v6556_v26, %s6075_s21 }
0x17fe   : >> { %v4180_v50 = vpop.permute.xlu2 %4179 }
0x17ff   : >> { %v4224_v17 = vmul.f32 %v7877_v5, %v4180_v50 }
0x1801   : >> { %v4240_v18 = vadd.f32 %v4224_v17, %v4207_v16 }
0x1803   : >> { %4256 = vst [vmem:[#allocation3 + $0x50] sm:$0xff] %v4240_v18 }
0x1806   : >> { %v4182_v9 = vpop.permute.xlu2 %4181 }
0x1807   : >> { %v4225_v40 = vmul.f32 %v7877_v5, %v4182_v9  ;;  %v4209_v9 = vld [vmem:[#allocation3 + $0x8] sm:$0xff] }
0x1809   : >> { %v4241_v22 = vadd.f32 %v4225_v40, %v4208_v20 }
0x180b   : >> { %4257 = vst [vmem:[#allocation3 + $0x68] sm:$0xff] %v4241_v22  ;;  %v4210_v22 = vld [vmem:[#allocation3 + $0x48] sm:$0xff] }
0x180e   : >> { %v4188_v56 = vpop.permute.xlu2 %4187 }
0x180f   : >> { %v4228_v29 = vmul.f32 %v7877_v5, %v4188_v56 }
0x1811   : >> { %v4244_v52 = vadd.f32 %v4228_v29, %v4211_v41 }
0x1813   : >> { %4260 = vst [vmem:[#allocation3 + $0x40] sm:$0xff] %v4244_v52 }
0x1815   : >> { %v4172_v57 = vpop.permute.xlu0 %4171  ;;  %v4176_v60 = vpop.permute.xlu1 %4175 }
0x1816   : >> { %v4220_v19 = vmul.f32 %v7877_v5, %v4172_v57  ;;  %v4222_v54 = vmul.f32 %v7877_v5, %v4176_v60  ;;  %v4194_v47 = vpop.permute.xlu2 %4193  ;;  %v4212_v57 = vld [vmem:[#allocation3 + $0x20] sm:$0xff]  ;;  %v4213_v60 = vld [vmem:[#allocation3 + $0x10] sm:$0xff] }
0x1817   : >> { %v4231_v62 = vmul.f32 %v7877_v5, %v4194_v47 }
0x1818   : >> { %v4236_v30 = vadd.f32 %v4220_v19, %v4203_v27  ;;  %v4238_v63 = vadd.f32 %v4222_v54, %v4205_v58 }
0x1819   : >> { %v4247_v2 = vadd.f32 %v4231_v62, %v4214_v7 }
0x181a   : >> { %4252 = vst [vmem:[#allocation3 + $0x30] sm:$0xff] %v4236_v30  ;;  %v4215_v30 = vld [vmem:[#allocation3 + $0x60] sm:$0xff] }
0x181b   : >> { %4254 = vst [vmem:[#allocation3 + $0x58] sm:$0xff] %v4238_v63 }
0x181c   : >> { %4263 = vst [vmem:[#allocation3 + $0x38] sm:$0xff] %v4247_v2  ;;  %v4216_v2 = vld [vmem:[#allocation3 + $0x70] sm:$0xff] }
0x181d   : >> { %v4174_v3 = vpop.permute.xlu0 %4173  ;;  %v4178_v13 = vpop.permute.xlu1 %4177 }
0x181e   : >> { %v4221_v8 = vmul.f32 %v7877_v5, %v4174_v3  ;;  %v4223_v35 = vmul.f32 %v7877_v5, %v4178_v13  ;;  %v4200_v16 = vpop.permute.xlu2 %4199 }
0x181f   : >> { %v4234_v50 = vmul.f32 %v7877_v5, %v4200_v16 }
0x1820   : >> { %v4237_v17 = vadd.f32 %v4221_v8, %v4204_v0  ;;  %v4239_v18 = vadd.f32 %v4223_v35, %v4206_v10  ;;  %v4218_v35 = vld [vmem:[#allocation3 + $0x28] sm:$0xff] }
0x1821   : >> { %v4250_v20 = vadd.f32 %v4234_v50, %v4217_v15 }
0x1822   : >> { %4253 = vst [vmem:[#allocation3] sm:$0xff] %v4237_v17 }
0x1823   : >> { %4255 = vst [vmem:[#allocation3 + $0x18] sm:$0xff] %v4239_v18 }
0x1824   : >> { %4266 = vst [vmem:[#allocation3 + $0x78] sm:$0xff] %v4250_v20 }
0x1825   : >> { %v4184_v40 = vpop.permute.xlu0 %4183  ;;  %v4186_v41 = vpop.permute.xlu1 %4185 }
0x1826   : >> { %v4226_v56 = vmul.f32 %v7877_v5, %v4184_v40  ;;  %v4227_v29 = vmul.f32 %v7877_v5, %v4186_v41 }
0x1828   : >> { %v4242_v52 = vadd.f32 %v4226_v56, %v4209_v9  ;;  %v4243_v27 = vadd.f32 %v4227_v29, %v4210_v22 }
0x182a   : >> { %4258 = vst [vmem:[#allocation3 + $0x8] sm:$0xff] %v4242_v52 }
0x182b   : >> { %4259 = vst [vmem:[#allocation3 + $0x48] sm:$0xff] %v4243_v27 }
0x182d   : >> { %v4190_v58 = vpop.permute.xlu0 %4189  ;;  %v4192_v19 = vpop.permute.xlu1 %4191 }
0x182e   : >> { %v4229_v54 = vmul.f32 %v7877_v5, %v4190_v58  ;;  %v4230_v7 = vmul.f32 %v7877_v5, %v4192_v19 }
0x1830   : >> { %v4245_v47 = vadd.f32 %v4229_v54, %v4212_v57  ;;  %v4246_v62 = vadd.f32 %v4230_v7, %v4213_v60 }
0x1832   : >> { %4261 = vst [vmem:[#allocation3 + $0x20] sm:$0xff] %v4245_v47 }
0x1833   : >> { %4262 = vst [vmem:[#allocation3 + $0x10] sm:$0xff] %v4246_v62 }
0x1835   : >> { %v4196_v63 = vpop.permute.xlu0 %4195  ;;  %v4198_v0 = vpop.permute.xlu1 %4197 }
0x1836   : >> { %v4232_v3 = vmul.f32 %v7877_v5, %v4196_v63  ;;  %v4233_v10 = vmul.f32 %v7877_v5, %v4198_v0 }
0x1838   : >> { %v4248_v13 = vadd.f32 %v4232_v3, %v4215_v30  ;;  %v4249_v8 = vadd.f32 %v4233_v10, %v4216_v2 }
0x183a   : >> { %4264 = vst [vmem:[#allocation3 + $0x60] sm:$0xff] %v4248_v13 }
0x183b   : >> { %4265 = vst [vmem:[#allocation3 + $0x70] sm:$0xff] %v4249_v8 }
0x183d   : >> { %v4202_v15 = vpop.permute.xlu0 %4201 }
0x183e   : >> { %v4235_v16 = vmul.f32 %v7877_v5, %v4202_v15 }
0x1840   : >> { %v4251_v50 = vadd.f32 %v4235_v16, %v4218_v35 }
0x1842   : >> { %4267 = vst [vmem:[#allocation3 + $0x28] sm:$0xff] %v4251_v50 }
0x1843 PF: >> { %4270 = sbr.rel (%p5822_p8) target bundleno = 6376 (0x18e8), region = 207  ;;  %s6076_s24 = smov (!%p5822_p8), 116  }
0x1844   : >> { %s4271_s25 = sadd.s32 (!%p5822_p8), 12, %s6530_s26 }
0x1845   : >> { %s4272_s27 = sld [smem:[#allocation6 + %s4271_s25]] (!%p5822_p8) }
0x1848   : >> { %4273 = vrot.lane.b32.xlu0 %v6523_v23, %s6076_s24  ;;  %4277 = vrot.lane.b32.xlu1 %v6527_v33, %s6076_s24  ;;  %v4309_v17 = vld [vmem:[#allocation3 + $0x50] sm:$0xff]  ;;  %v4310_v40 = vld [vmem:[#allocation3 + $0x68] sm:$0xff]  ;;  %v4313_v29 = vld [vmem:[#allocation3 + $0x40] sm:$0xff] }
0x1849   : >> { %4281 = vrot.lane.b32.xlu2 %v6534_v11, %s6076_s24  ;;  %v4305_v58 = vld [vmem:[#allocation3 + $0x30] sm:$0xff]  ;;  %v4307_v19 = vld [vmem:[#allocation3 + $0x58] sm:$0xff]  ;;  %v4306_v10 = vld [vmem:[#allocation3] sm:$0xff] }
0x184a   : >> { %v4316_v62 = vld [vmem:[#allocation3 + $0x38] sm:$0xff] }
0x184b   : >> { %v7914_v5 = vstv %s4272_s27  ;;  %v4308_v8 = vld [vmem:[#allocation3 + $0x18] sm:$0xff] }
0x184c   : >> { %v4319_v50 = vld [vmem:[#allocation3 + $0x78] sm:$0xff] }
0x1850   : >> { %4275 = vrot.lane.b32.xlu0 %v6525_v32, %s6076_s24  ;;  %4279 = vrot.lane.b32.xlu1 %v6532_v24, %s6076_s24 }
0x1851   : >> { %4283 = vrot.lane.b32.xlu2 %v6536_v36, %s6076_s24 }
0x1858   : >> { %4285 = vrot.lane.b32.xlu0 %v6538_v37, %s6076_s24  ;;  %4287 = vrot.lane.b32.xlu1 %v6540_v38, %s6076_s24 }
0x1859   : >> { %4289 = vrot.lane.b32.xlu2 %v6542_v39, %s6076_s24 }
0x1860   : >> { %4291 = vrot.lane.b32.xlu0 %v6544_v25, %s6076_s24  ;;  %4293 = vrot.lane.b32.xlu1 %v6546_v28, %s6076_s24 }
0x1861   : >> { %4295 = vrot.lane.b32.xlu2 %v6548_v42, %s6076_s24 }
0x1868   : >> { %4297 = vrot.lane.b32.xlu0 %v6550_v44, %s6076_s24  ;;  %4299 = vrot.lane.b32.xlu1 %v6552_v48, %s6076_s24 }
0x1869   : >> { %4301 = vrot.lane.b32.xlu2 %v6554_v49, %s6076_s24 }
0x1870   : >> { %4303 = vrot.lane.b32.xlu0 %v6556_v26, %s6076_s24 }
0x18a3   : >> { %v4282_v18 = vpop.permute.xlu2 %4281 }
0x18a4   : >> { %v4326_v20 = vmul.f32 %v7914_v5, %v4282_v18 }
0x18a6   : >> { %v4342_v9 = vadd.f32 %v4326_v20, %v4309_v17 }
0x18a8   : >> { %4358 = vst [vmem:[#allocation3 + $0x50] sm:$0xff] %v4342_v9 }
0x18ab   : >> { %v4284_v22 = vpop.permute.xlu2 %4283 }
0x18ac   : >> { %v4327_v41 = vmul.f32 %v7914_v5, %v4284_v22  ;;  %v4311_v22 = vld [vmem:[#allocation3 + $0x8] sm:$0xff] }
0x18ae   : >> { %v4343_v56 = vadd.f32 %v4327_v41, %v4310_v40 }
0x18b0   : >> { %4359 = vst [vmem:[#allocation3 + $0x68] sm:$0xff] %v4343_v56  ;;  %v4312_v56 = vld [vmem:[#allocation3 + $0x48] sm:$0xff] }
0x18b3   : >> { %v4290_v52 = vpop.permute.xlu2 %4289 }
0x18b4   : >> { %v4330_v27 = vmul.f32 %v7914_v5, %v4290_v52 }
0x18b6   : >> { %v4346_v57 = vadd.f32 %v4330_v27, %v4313_v29 }
0x18b8   : >> { %4362 = vst [vmem:[#allocation3 + $0x40] sm:$0xff] %v4346_v57 }
0x18ba   : >> { %v4274_v60 = vpop.permute.xlu0 %4273  ;;  %v4278_v54 = vpop.permute.xlu1 %4277 }
0x18bb   : >> { %v4322_v7 = vmul.f32 %v7914_v5, %v4274_v60  ;;  %v4324_v47 = vmul.f32 %v7914_v5, %v4278_v54  ;;  %v4296_v30 = vpop.permute.xlu2 %4295  ;;  %v4314_v60 = vld [vmem:[#allocation3 + $0x20] sm:$0xff]  ;;  %v4315_v54 = vld [vmem:[#allocation3 + $0x10] sm:$0xff] }
0x18bc   : >> { %v4333_v63 = vmul.f32 %v7914_v5, %v4296_v30 }
0x18bd   : >> { %v4338_v2 = vadd.f32 %v4322_v7, %v4305_v58  ;;  %v4340_v0 = vadd.f32 %v4324_v47, %v4307_v19 }
0x18be   : >> { %v4349_v3 = vadd.f32 %v4333_v63, %v4316_v62 }
0x18bf   : >> { %4354 = vst [vmem:[#allocation3 + $0x30] sm:$0xff] %v4338_v2  ;;  %v4317_v2 = vld [vmem:[#allocation3 + $0x60] sm:$0xff] }
0x18c0   : >> { %4356 = vst [vmem:[#allocation3 + $0x58] sm:$0xff] %v4340_v0 }
0x18c1   : >> { %4365 = vst [vmem:[#allocation3 + $0x38] sm:$0xff] %v4349_v3  ;;  %v4318_v3 = vld [vmem:[#allocation3 + $0x70] sm:$0xff] }
0x18c2   : >> { %v4276_v13 = vpop.permute.xlu0 %4275  ;;  %v4280_v35 = vpop.permute.xlu1 %4279 }
0x18c3   : >> { %v4323_v15 = vmul.f32 %v7914_v5, %v4276_v13  ;;  %v4325_v16 = vmul.f32 %v7914_v5, %v4280_v35  ;;  %v4302_v17 = vpop.permute.xlu2 %4301 }
0x18c4   : >> { %v4336_v18 = vmul.f32 %v7914_v5, %v4302_v17 }
0x18c5   : >> { %v4339_v20 = vadd.f32 %v4323_v15, %v4306_v10  ;;  %v4341_v9 = vadd.f32 %v4325_v16, %v4308_v8  ;;  %v4320_v16 = vld [vmem:[#allocation3 + $0x28] sm:$0xff] }
0x18c6   : >> { %v4352_v40 = vadd.f32 %v4336_v18, %v4319_v50 }
0x18c7   : >> { %4355 = vst [vmem:[#allocation3] sm:$0xff] %v4339_v20 }
0x18c8   : >> { %4357 = vst [vmem:[#allocation3 + $0x18] sm:$0xff] %v4341_v9 }
0x18c9   : >> { %4368 = vst [vmem:[#allocation3 + $0x78] sm:$0xff] %v4352_v40 }
0x18ca   : >> { %v4286_v41 = vpop.permute.xlu0 %4285  ;;  %v4288_v29 = vpop.permute.xlu1 %4287 }
0x18cb   : >> { %v4328_v52 = vmul.f32 %v7914_v5, %v4286_v41  ;;  %v4329_v27 = vmul.f32 %v7914_v5, %v4288_v29 }
0x18cd   : >> { %v4344_v57 = vadd.f32 %v4328_v52, %v4311_v22  ;;  %v4345_v58 = vadd.f32 %v4329_v27, %v4312_v56 }
0x18cf   : >> { %4360 = vst [vmem:[#allocation3 + $0x8] sm:$0xff] %v4344_v57 }
0x18d0   : >> { %4361 = vst [vmem:[#allocation3 + $0x48] sm:$0xff] %v4345_v58 }
0x18d2   : >> { %v4292_v19 = vpop.permute.xlu0 %4291  ;;  %v4294_v7 = vpop.permute.xlu1 %4293 }
0x18d3   : >> { %v4331_v47 = vmul.f32 %v7914_v5, %v4292_v19  ;;  %v4332_v62 = vmul.f32 %v7914_v5, %v4294_v7 }
0x18d5   : >> { %v4347_v30 = vadd.f32 %v4331_v47, %v4314_v60  ;;  %v4348_v63 = vadd.f32 %v4332_v62, %v4315_v54 }
0x18d7   : >> { %4363 = vst [vmem:[#allocation3 + $0x20] sm:$0xff] %v4347_v30 }
0x18d8   : >> { %4364 = vst [vmem:[#allocation3 + $0x10] sm:$0xff] %v4348_v63 }
0x18da   : >> { %v4298_v0 = vpop.permute.xlu0 %4297  ;;  %v4300_v10 = vpop.permute.xlu1 %4299 }
0x18db   : >> { %v4334_v13 = vmul.f32 %v7914_v5, %v4298_v0  ;;  %v4335_v8 = vmul.f32 %v7914_v5, %v4300_v10 }
0x18dd   : >> { %v4350_v35 = vadd.f32 %v4334_v13, %v4317_v2  ;;  %v4351_v15 = vadd.f32 %v4335_v8, %v4318_v3 }
0x18df   : >> { %4366 = vst [vmem:[#allocation3 + $0x60] sm:$0xff] %v4350_v35 }
0x18e0   : >> { %4367 = vst [vmem:[#allocation3 + $0x70] sm:$0xff] %v4351_v15 }
0x18e2   : >> { %v4304_v50 = vpop.permute.xlu0 %4303 }
0x18e3   : >> { %v4337_v17 = vmul.f32 %v7914_v5, %v4304_v50 }
0x18e5   : >> { %v4353_v18 = vadd.f32 %v4337_v17, %v4320_v16 }
0x18e7   : >> { %4369 = vst [vmem:[#allocation3 + $0x28] sm:$0xff] %v4353_v18 }
0x18e8 PF: >> { %4372 = sbr.rel (%p5821_p7) target bundleno = 6541 (0x198d), region = 211  ;;  %s6077_s28 = smov (!%p5821_p7), 115  }
0x18e9   : >> { %s4373_s29 = sadd.s32 (!%p5821_p7), 13, %s6530_s26 }
0x18ea   : >> { %s4374_s30 = sld [smem:[#allocation6 + %s4373_s29]] (!%p5821_p7) }
0x18ed   : >> { %4375 = vrot.lane.b32.xlu0 %v6523_v23, %s6077_s28  ;;  %4379 = vrot.lane.b32.xlu1 %v6527_v33, %s6077_s28  ;;  %v4411_v20 = vld [vmem:[#allocation3 + $0x50] sm:$0xff]  ;;  %v4412_v41 = vld [vmem:[#allocation3 + $0x68] sm:$0xff]  ;;  %v4415_v27 = vld [vmem:[#allocation3 + $0x40] sm:$0xff] }
0x18ee   : >> { %4383 = vrot.lane.b32.xlu2 %v6534_v11, %s6077_s28  ;;  %v4407_v19 = vld [vmem:[#allocation3 + $0x30] sm:$0xff]  ;;  %v4409_v7 = vld [vmem:[#allocation3 + $0x58] sm:$0xff]  ;;  %v4408_v8 = vld [vmem:[#allocation3] sm:$0xff] }
0x18ef   : >> { %v4418_v63 = vld [vmem:[#allocation3 + $0x38] sm:$0xff] }
0x18f0   : >> { %v7951_v5 = vstv %s4374_s30  ;;  %v4410_v15 = vld [vmem:[#allocation3 + $0x18] sm:$0xff] }
0x18f1   : >> { %v4421_v18 = vld [vmem:[#allocation3 + $0x78] sm:$0xff] }
0x18f5   : >> { %4377 = vrot.lane.b32.xlu0 %v6525_v32, %s6077_s28  ;;  %4381 = vrot.lane.b32.xlu1 %v6532_v24, %s6077_s28 }
0x18f6   : >> { %4385 = vrot.lane.b32.xlu2 %v6536_v36, %s6077_s28 }
0x18fd   : >> { %4387 = vrot.lane.b32.xlu0 %v6538_v37, %s6077_s28  ;;  %4389 = vrot.lane.b32.xlu1 %v6540_v38, %s6077_s28 }
0x18fe   : >> { %4391 = vrot.lane.b32.xlu2 %v6542_v39, %s6077_s28 }
0x1905   : >> { %4393 = vrot.lane.b32.xlu0 %v6544_v25, %s6077_s28  ;;  %4395 = vrot.lane.b32.xlu1 %v6546_v28, %s6077_s28 }
0x1906   : >> { %4397 = vrot.lane.b32.xlu2 %v6548_v42, %s6077_s28 }
0x190d   : >> { %4399 = vrot.lane.b32.xlu0 %v6550_v44, %s6077_s28  ;;  %4401 = vrot.lane.b32.xlu1 %v6552_v48, %s6077_s28 }
0x190e   : >> { %4403 = vrot.lane.b32.xlu2 %v6554_v49, %s6077_s28 }
0x1915   : >> { %4405 = vrot.lane.b32.xlu0 %v6556_v26, %s6077_s28 }
0x1948   : >> { %v4384_v9 = vpop.permute.xlu2 %4383 }
0x1949   : >> { %v4428_v40 = vmul.f32 %v7951_v5, %v4384_v9 }
0x194b   : >> { %v4444_v22 = vadd.f32 %v4428_v40, %v4411_v20 }
0x194d   : >> { %4460 = vst [vmem:[#allocation3 + $0x50] sm:$0xff] %v4444_v22 }
0x1950   : >> { %v4386_v56 = vpop.permute.xlu2 %4385 }
0x1951   : >> { %v4429_v29 = vmul.f32 %v7951_v5, %v4386_v56  ;;  %v4413_v56 = vld [vmem:[#allocation3 + $0x8] sm:$0xff] }
0x1953   : >> { %v4445_v52 = vadd.f32 %v4429_v29, %v4412_v41 }
0x1955   : >> { %4461 = vst [vmem:[#allocation3 + $0x68] sm:$0xff] %v4445_v52  ;;  %v4414_v52 = vld [vmem:[#allocation3 + $0x48] sm:$0xff] }
0x1958   : >> { %v4392_v57 = vpop.permute.xlu2 %4391 }
0x1959   : >> { %v4432_v58 = vmul.f32 %v7951_v5, %v4392_v57 }
0x195b   : >> { %v4448_v60 = vadd.f32 %v4432_v58, %v4415_v27 }
0x195d   : >> { %4464 = vst [vmem:[#allocation3 + $0x40] sm:$0xff] %v4448_v60 }
0x195f   : >> { %v4376_v54 = vpop.permute.xlu0 %4375  ;;  %v4380_v47 = vpop.permute.xlu1 %4379 }
0x1960   : >> { %v4424_v62 = vmul.f32 %v7951_v5, %v4376_v54  ;;  %v4426_v30 = vmul.f32 %v7951_v5, %v4380_v47  ;;  %v4398_v2 = vpop.permute.xlu2 %4397  ;;  %v4416_v54 = vld [vmem:[#allocation3 + $0x20] sm:$0xff]  ;;  %v4417_v47 = vld [vmem:[#allocation3 + $0x10] sm:$0xff] }
0x1961   : >> { %v4435_v0 = vmul.f32 %v7951_v5, %v4398_v2 }
0x1962   : >> { %v4440_v3 = vadd.f32 %v4424_v62, %v4407_v19  ;;  %v4442_v10 = vadd.f32 %v4426_v30, %v4409_v7 }
0x1963   : >> { %v4451_v13 = vadd.f32 %v4435_v0, %v4418_v63 }
0x1964   : >> { %4456 = vst [vmem:[#allocation3 + $0x30] sm:$0xff] %v4440_v3  ;;  %v4419_v3 = vld [vmem:[#allocation3 + $0x60] sm:$0xff] }
0x1965   : >> { %4458 = vst [vmem:[#allocation3 + $0x58] sm:$0xff] %v4442_v10 }
0x1966   : >> { %4467 = vst [vmem:[#allocation3 + $0x38] sm:$0xff] %v4451_v13  ;;  %v4420_v13 = vld [vmem:[#allocation3 + $0x70] sm:$0xff] }
0x1967   : >> { %v4378_v35 = vpop.permute.xlu0 %4377  ;;  %v4382_v16 = vpop.permute.xlu1 %4381 }
0x1968   : >> { %v4425_v50 = vmul.f32 %v7951_v5, %v4378_v35  ;;  %v4427_v17 = vmul.f32 %v7951_v5, %v4382_v16  ;;  %v4404_v20 = vpop.permute.xlu2 %4403 }
0x1969   : >> { %v4438_v9 = vmul.f32 %v7951_v5, %v4404_v20 }
0x196a   : >> { %v4441_v40 = vadd.f32 %v4425_v50, %v4408_v8  ;;  %v4443_v22 = vadd.f32 %v4427_v17, %v4410_v15  ;;  %v4422_v17 = vld [vmem:[#allocation3 + $0x28] sm:$0xff] }
0x196b   : >> { %v4454_v41 = vadd.f32 %v4438_v9, %v4421_v18 }
0x196c   : >> { %4457 = vst [vmem:[#allocation3] sm:$0xff] %v4441_v40 }
0x196d   : >> { %4459 = vst [vmem:[#allocation3 + $0x18] sm:$0xff] %v4443_v22 }
0x196e   : >> { %4470 = vst [vmem:[#allocation3 + $0x78] sm:$0xff] %v4454_v41 }
0x196f   : >> { %v4388_v29 = vpop.permute.xlu0 %4387  ;;  %v4390_v27 = vpop.permute.xlu1 %4389 }
0x1970   : >> { %v4430_v57 = vmul.f32 %v7951_v5, %v4388_v29  ;;  %v4431_v58 = vmul.f32 %v7951_v5, %v4390_v27 }
0x1972   : >> { %v4446_v60 = vadd.f32 %v4430_v57, %v4413_v56  ;;  %v4447_v19 = vadd.f32 %v4431_v58, %v4414_v52 }
0x1974   : >> { %4462 = vst [vmem:[#allocation3 + $0x8] sm:$0xff] %v4446_v60 }
0x1975   : >> { %4463 = vst [vmem:[#allocation3 + $0x48] sm:$0xff] %v4447_v19 }
0x1977   : >> { %v4394_v7 = vpop.permute.xlu0 %4393  ;;  %v4396_v62 = vpop.permute.xlu1 %4395 }
0x1978   : >> { %v4433_v30 = vmul.f32 %v7951_v5, %v4394_v7  ;;  %v4434_v63 = vmul.f32 %v7951_v5, %v4396_v62 }
0x197a   : >> { %v4449_v2 = vadd.f32 %v4433_v30, %v4416_v54  ;;  %v4450_v0 = vadd.f32 %v4434_v63, %v4417_v47 }
0x197c   : >> { %4465 = vst [vmem:[#allocation3 + $0x20] sm:$0xff] %v4449_v2 }
0x197d   : >> { %4466 = vst [vmem:[#allocation3 + $0x10] sm:$0xff] %v4450_v0 }
0x197f   : >> { %v4400_v10 = vpop.permute.xlu0 %4399  ;;  %v4402_v8 = vpop.permute.xlu1 %4401 }
0x1980   : >> { %v4436_v35 = vmul.f32 %v7951_v5, %v4400_v10  ;;  %v4437_v15 = vmul.f32 %v7951_v5, %v4402_v8 }
0x1982   : >> { %v4452_v16 = vadd.f32 %v4436_v35, %v4419_v3  ;;  %v4453_v50 = vadd.f32 %v4437_v15, %v4420_v13 }
0x1984   : >> { %4468 = vst [vmem:[#allocation3 + $0x60] sm:$0xff] %v4452_v16 }
0x1985   : >> { %4469 = vst [vmem:[#allocation3 + $0x70] sm:$0xff] %v4453_v50 }
0x1987   : >> { %v4406_v18 = vpop.permute.xlu0 %4405 }
0x1988   : >> { %v4439_v20 = vmul.f32 %v7951_v5, %v4406_v18 }
0x198a   : >> { %v4455_v9 = vadd.f32 %v4439_v20, %v4422_v17 }
0x198c   : >> { %4471 = vst [vmem:[#allocation3 + $0x28] sm:$0xff] %v4455_v9 }
0x198d PF: >> { %p8518_p10 = scmp.lt.s32.totalorder %s6023_s15, 14 }
0x198e   : >> { %s6078_s5 = smov (!%p8518_p10), 114   ;;  %s4475_s6 = sadd.s32 (!%p8518_p10), 14, %s6530_s26 }
0x198f   : >> { %4474 = sbr.rel (%p8518_p10) target bundleno = 6708 (0x1a34), region = 215  ;;  %s4476_s7 = sld [smem:[#allocation6 + %s4475_s6]] (!%p8518_p10) }
0x1994   : >> { %4477 = vrot.lane.b32.xlu0 %v6523_v23, %s6078_s5  ;;  %4481 = vrot.lane.b32.xlu1 %v6527_v33, %s6078_s5  ;;  %v4513_v40 = vld [vmem:[#allocation3 + $0x50] sm:$0xff]  ;;  %v4514_v29 = vld [vmem:[#allocation3 + $0x68] sm:$0xff]  ;;  %v4517_v58 = vld [vmem:[#allocation3 + $0x40] sm:$0xff] }
0x1995   : >> { %4485 = vrot.lane.b32.xlu2 %v6534_v11, %s6078_s5  ;;  %v7988_v5 = vstv %s4476_s7  ;;  %v4509_v7 = vld [vmem:[#allocation3 + $0x30] sm:$0xff]  ;;  %v4511_v62 = vld [vmem:[#allocation3 + $0x58] sm:$0xff]  ;;  %v4510_v15 = vld [vmem:[#allocation3] sm:$0xff] }
0x1996   : >> { %v4520_v0 = vld [vmem:[#allocation3 + $0x38] sm:$0xff] }
0x1997   : >> { %v4512_v50 = vld [vmem:[#allocation3 + $0x18] sm:$0xff] }
0x1998   : >> { %v4523_v9 = vld [vmem:[#allocation3 + $0x78] sm:$0xff] }
0x199c   : >> { %4479 = vrot.lane.b32.xlu0 %v6525_v32, %s6078_s5  ;;  %4483 = vrot.lane.b32.xlu1 %v6532_v24, %s6078_s5 }
0x199d   : >> { %4487 = vrot.lane.b32.xlu2 %v6536_v36, %s6078_s5 }
0x19a4   : >> { %4489 = vrot.lane.b32.xlu0 %v6538_v37, %s6078_s5  ;;  %4491 = vrot.lane.b32.xlu1 %v6540_v38, %s6078_s5 }
0x19a5   : >> { %4493 = vrot.lane.b32.xlu2 %v6542_v39, %s6078_s5 }
0x19ac   : >> { %4495 = vrot.lane.b32.xlu0 %v6544_v25, %s6078_s5  ;;  %4497 = vrot.lane.b32.xlu1 %v6546_v28, %s6078_s5 }
0x19ad   : >> { %4499 = vrot.lane.b32.xlu2 %v6548_v42, %s6078_s5 }
0x19b4   : >> { %4501 = vrot.lane.b32.xlu0 %v6550_v44, %s6078_s5  ;;  %4503 = vrot.lane.b32.xlu1 %v6552_v48, %s6078_s5 }
0x19b5   : >> { %4505 = vrot.lane.b32.xlu2 %v6554_v49, %s6078_s5 }
0x19bc   : >> { %4507 = vrot.lane.b32.xlu0 %v6556_v26, %s6078_s5 }
0x19ef   : >> { %v4486_v22 = vpop.permute.xlu2 %4485 }
0x19f0   : >> { %v4530_v41 = vmul.f32 %v7988_v5, %v4486_v22 }
0x19f2   : >> { %v4546_v56 = vadd.f32 %v4530_v41, %v4513_v40 }
0x19f4   : >> { %4562 = vst [vmem:[#allocation3 + $0x50] sm:$0xff] %v4546_v56 }
0x19f7   : >> { %v4488_v52 = vpop.permute.xlu2 %4487 }
0x19f8   : >> { %v4531_v27 = vmul.f32 %v7988_v5, %v4488_v52  ;;  %v4515_v52 = vld [vmem:[#allocation3 + $0x8] sm:$0xff] }
0x19fa   : >> { %v4547_v57 = vadd.f32 %v4531_v27, %v4514_v29 }
0x19fc   : >> { %4563 = vst [vmem:[#allocation3 + $0x68] sm:$0xff] %v4547_v57  ;;  %v4516_v57 = vld [vmem:[#allocation3 + $0x48] sm:$0xff] }
0x19ff   : >> { %v4494_v60 = vpop.permute.xlu2 %4493 }
0x1a00   : >> { %v4534_v19 = vmul.f32 %v7988_v5, %v4494_v60 }
0x1a02   : >> { %v4550_v54 = vadd.f32 %v4534_v19, %v4517_v58 }
0x1a04   : >> { %4566 = vst [vmem:[#allocation3 + $0x40] sm:$0xff] %v4550_v54 }
0x1a06   : >> { %v4478_v47 = vpop.permute.xlu0 %4477  ;;  %v4482_v30 = vpop.permute.xlu1 %4481 }
0x1a07   : >> { %v4526_v63 = vmul.f32 %v7988_v5, %v4478_v47  ;;  %v4528_v2 = vmul.f32 %v7988_v5, %v4482_v30  ;;  %v4500_v3 = vpop.permute.xlu2 %4499  ;;  %v4518_v47 = vld [vmem:[#allocation3 + $0x20] sm:$0xff]  ;;  %v4519_v30 = vld [vmem:[#allocation3 + $0x10] sm:$0xff] }
0x1a08   : >> { %v4537_v10 = vmul.f32 %v7988_v5, %v4500_v3 }
0x1a09   : >> { %v4542_v13 = vadd.f32 %v4526_v63, %v4509_v7  ;;  %v4544_v8 = vadd.f32 %v4528_v2, %v4511_v62 }
0x1a0a   : >> { %v4553_v35 = vadd.f32 %v4537_v10, %v4520_v0 }
0x1a0b   : >> { %4558 = vst [vmem:[#allocation3 + $0x30] sm:$0xff] %v4542_v13  ;;  %v4521_v13 = vld [vmem:[#allocation3 + $0x60] sm:$0xff] }
0x1a0c   : >> { %4560 = vst [vmem:[#allocation3 + $0x58] sm:$0xff] %v4544_v8 }
0x1a0d   : >> { %4569 = vst [vmem:[#allocation3 + $0x38] sm:$0xff] %v4553_v35  ;;  %v4522_v35 = vld [vmem:[#allocation3 + $0x70] sm:$0xff] }
0x1a0e   : >> { %v4480_v16 = vpop.permute.xlu0 %4479  ;;  %v4484_v17 = vpop.permute.xlu1 %4483 }
0x1a0f   : >> { %v4527_v18 = vmul.f32 %v7988_v5, %v4480_v16  ;;  %v4529_v20 = vmul.f32 %v7988_v5, %v4484_v17  ;;  %v4506_v40 = vpop.permute.xlu2 %4505 }
0x1a10   : >> { %v4540_v22 = vmul.f32 %v7988_v5, %v4506_v40 }
0x1a11   : >> { %v4543_v41 = vadd.f32 %v4527_v18, %v4510_v15  ;;  %v4545_v56 = vadd.f32 %v4529_v20, %v4512_v50  ;;  %v4524_v20 = vld [vmem:[#allocation3 + $0x28] sm:$0xff] }
0x1a12   : >> { %v4556_v29 = vadd.f32 %v4540_v22, %v4523_v9 }
0x1a13   : >> { %4559 = vst [vmem:[#allocation3] sm:$0xff] %v4543_v41 }
0x1a14   : >> { %4561 = vst [vmem:[#allocation3 + $0x18] sm:$0xff] %v4545_v56 }
0x1a15   : >> { %4572 = vst [vmem:[#allocation3 + $0x78] sm:$0xff] %v4556_v29 }
0x1a16   : >> { %v4490_v27 = vpop.permute.xlu0 %4489  ;;  %v4492_v58 = vpop.permute.xlu1 %4491 }
0x1a17   : >> { %v4532_v60 = vmul.f32 %v7988_v5, %v4490_v27  ;;  %v4533_v19 = vmul.f32 %v7988_v5, %v4492_v58 }
0x1a19   : >> { %v4548_v54 = vadd.f32 %v4532_v60, %v4515_v52  ;;  %v4549_v7 = vadd.f32 %v4533_v19, %v4516_v57 }
0x1a1b   : >> { %4564 = vst [vmem:[#allocation3 + $0x8] sm:$0xff] %v4548_v54 }
0x1a1c   : >> { %4565 = vst [vmem:[#allocation3 + $0x48] sm:$0xff] %v4549_v7 }
0x1a1e   : >> { %v4496_v62 = vpop.permute.xlu0 %4495  ;;  %v4498_v63 = vpop.permute.xlu1 %4497 }
0x1a1f   : >> { %v4535_v2 = vmul.f32 %v7988_v5, %v4496_v62  ;;  %v4536_v0 = vmul.f32 %v7988_v5, %v4498_v63 }
0x1a21   : >> { %v4551_v3 = vadd.f32 %v4535_v2, %v4518_v47  ;;  %v4552_v10 = vadd.f32 %v4536_v0, %v4519_v30 }
0x1a23   : >> { %4567 = vst [vmem:[#allocation3 + $0x20] sm:$0xff] %v4551_v3 }
0x1a24   : >> { %4568 = vst [vmem:[#allocation3 + $0x10] sm:$0xff] %v4552_v10 }
0x1a26   : >> { %v4502_v8 = vpop.permute.xlu0 %4501  ;;  %v4504_v15 = vpop.permute.xlu1 %4503 }
0x1a27   : >> { %v4538_v16 = vmul.f32 %v7988_v5, %v4502_v8  ;;  %v4539_v50 = vmul.f32 %v7988_v5, %v4504_v15 }
0x1a29   : >> { %v4554_v17 = vadd.f32 %v4538_v16, %v4521_v13  ;;  %v4555_v18 = vadd.f32 %v4539_v50, %v4522_v35 }
0x1a2b   : >> { %4570 = vst [vmem:[#allocation3 + $0x60] sm:$0xff] %v4554_v17 }
0x1a2c   : >> { %4571 = vst [vmem:[#allocation3 + $0x70] sm:$0xff] %v4555_v18 }
0x1a2e   : >> { %v4508_v9 = vpop.permute.xlu0 %4507 }
0x1a2f   : >> { %v4541_v40 = vmul.f32 %v7988_v5, %v4508_v9 }
0x1a31   : >> { %v4557_v22 = vadd.f32 %v4541_v40, %v4524_v20 }
0x1a33   : >> { %4573 = vst [vmem:[#allocation3 + $0x28] sm:$0xff] %v4557_v22 }
0x1a34 PF: >> { %p8519_p11 = scmp.lt.s32.totalorder %s6023_s15, 15 }
0x1a35   : >> { %s6079_s8 = smov (!%p8519_p11), 113   ;;  %s4577_s9 = sadd.s32 (!%p8519_p11), 15, %s6530_s26 }
0x1a36   : >> { %4576 = sbr.rel (%p8519_p11) target bundleno = 6875 (0x1adb), region = 219  ;;  %s4578_s10 = sld [smem:[#allocation6 + %s4577_s9]] (!%p8519_p11) }
0x1a3b   : >> { %4579 = vrot.lane.b32.xlu0 %v6523_v23, %s6079_s8  ;;  %4583 = vrot.lane.b32.xlu1 %v6527_v33, %s6079_s8  ;;  %v4615_v41 = vld [vmem:[#allocation3 + $0x50] sm:$0xff]  ;;  %v4616_v27 = vld [vmem:[#allocation3 + $0x68] sm:$0xff]  ;;  %v4619_v19 = vld [vmem:[#allocation3 + $0x40] sm:$0xff] }
0x1a3c   : >> { %4587 = vrot.lane.b32.xlu2 %v6534_v11, %s6079_s8  ;;  %v8025_v5 = vstv %s4578_s10  ;;  %v4611_v62 = vld [vmem:[#allocation3 + $0x30] sm:$0xff]  ;;  %v4613_v63 = vld [vmem:[#allocation3 + $0x58] sm:$0xff]  ;;  %v4612_v50 = vld [vmem:[#allocation3] sm:$0xff] }
0x1a3d   : >> { %v4622_v10 = vld [vmem:[#allocation3 + $0x38] sm:$0xff] }
0x1a3e   : >> { %v4614_v18 = vld [vmem:[#allocation3 + $0x18] sm:$0xff] }
0x1a3f   : >> { %v4625_v22 = vld [vmem:[#allocation3 + $0x78] sm:$0xff] }
0x1a43   : >> { %4581 = vrot.lane.b32.xlu0 %v6525_v32, %s6079_s8  ;;  %4585 = vrot.lane.b32.xlu1 %v6532_v24, %s6079_s8 }
0x1a44   : >> { %4589 = vrot.lane.b32.xlu2 %v6536_v36, %s6079_s8 }
0x1a4b   : >> { %4591 = vrot.lane.b32.xlu0 %v6538_v37, %s6079_s8  ;;  %4593 = vrot.lane.b32.xlu1 %v6540_v38, %s6079_s8 }
0x1a4c   : >> { %4595 = vrot.lane.b32.xlu2 %v6542_v39, %s6079_s8 }
0x1a53   : >> { %4597 = vrot.lane.b32.xlu0 %v6544_v25, %s6079_s8  ;;  %4599 = vrot.lane.b32.xlu1 %v6546_v28, %s6079_s8 }
0x1a54   : >> { %4601 = vrot.lane.b32.xlu2 %v6548_v42, %s6079_s8 }
0x1a5b   : >> { %4603 = vrot.lane.b32.xlu0 %v6550_v44, %s6079_s8  ;;  %4605 = vrot.lane.b32.xlu1 %v6552_v48, %s6079_s8 }
0x1a5c   : >> { %4607 = vrot.lane.b32.xlu2 %v6554_v49, %s6079_s8 }
0x1a63   : >> { %4609 = vrot.lane.b32.xlu0 %v6556_v26, %s6079_s8 }
0x1a96   : >> { %v4588_v56 = vpop.permute.xlu2 %4587 }
0x1a97   : >> { %v4632_v29 = vmul.f32 %v8025_v5, %v4588_v56 }
0x1a99   : >> { %v4648_v52 = vadd.f32 %v4632_v29, %v4615_v41 }
0x1a9b   : >> { %4664 = vst [vmem:[#allocation3 + $0x50] sm:$0xff] %v4648_v52 }
0x1a9e   : >> { %v4590_v57 = vpop.permute.xlu2 %4589 }
0x1a9f   : >> { %v4633_v58 = vmul.f32 %v8025_v5, %v4590_v57  ;;  %v4617_v57 = vld [vmem:[#allocation3 + $0x8] sm:$0xff] }
0x1aa1   : >> { %v4649_v60 = vadd.f32 %v4633_v58, %v4616_v27 }
0x1aa3   : >> { %4665 = vst [vmem:[#allocation3 + $0x68] sm:$0xff] %v4649_v60  ;;  %v4618_v60 = vld [vmem:[#allocation3 + $0x48] sm:$0xff] }
0x1aa6   : >> { %v4596_v54 = vpop.permute.xlu2 %4595 }
0x1aa7   : >> { %v4636_v7 = vmul.f32 %v8025_v5, %v4596_v54 }
0x1aa9   : >> { %v4652_v47 = vadd.f32 %v4636_v7, %v4619_v19 }
0x1aab   : >> { %4668 = vst [vmem:[#allocation3 + $0x40] sm:$0xff] %v4652_v47 }
0x1aad   : >> { %v4580_v30 = vpop.permute.xlu0 %4579  ;;  %v4584_v2 = vpop.permute.xlu1 %4583 }
0x1aae   : >> { %v4628_v0 = vmul.f32 %v8025_v5, %v4580_v30  ;;  %v4630_v3 = vmul.f32 %v8025_v5, %v4584_v2  ;;  %v4602_v13 = vpop.permute.xlu2 %4601  ;;  %v4620_v30 = vld [vmem:[#allocation3 + $0x20] sm:$0xff]  ;;  %v4621_v2 = vld [vmem:[#allocation3 + $0x10] sm:$0xff] }
0x1aaf   : >> { %v4639_v8 = vmul.f32 %v8025_v5, %v4602_v13 }
0x1ab0   : >> { %v4644_v35 = vadd.f32 %v4628_v0, %v4611_v62  ;;  %v4646_v15 = vadd.f32 %v4630_v3, %v4613_v63 }
0x1ab1   : >> { %v4655_v16 = vadd.f32 %v4639_v8, %v4622_v10 }
0x1ab2   : >> { %4660 = vst [vmem:[#allocation3 + $0x30] sm:$0xff] %v4644_v35  ;;  %v4623_v35 = vld [vmem:[#allocation3 + $0x60] sm:$0xff] }
0x1ab3   : >> { %4662 = vst [vmem:[#allocation3 + $0x58] sm:$0xff] %v4646_v15 }
0x1ab4   : >> { %4671 = vst [vmem:[#allocation3 + $0x38] sm:$0xff] %v4655_v16  ;;  %v4624_v16 = vld [vmem:[#allocation3 + $0x70] sm:$0xff] }
0x1ab5   : >> { %v4582_v17 = vpop.permute.xlu0 %4581  ;;  %v4586_v20 = vpop.permute.xlu1 %4585 }
0x1ab6   : >> { %v4629_v9 = vmul.f32 %v8025_v5, %v4582_v17  ;;  %v4631_v40 = vmul.f32 %v8025_v5, %v4586_v20  ;;  %v4608_v41 = vpop.permute.xlu2 %4607 }
0x1ab7   : >> { %v4642_v56 = vmul.f32 %v8025_v5, %v4608_v41 }
0x1ab8   : >> { %v4645_v29 = vadd.f32 %v4629_v9, %v4612_v50  ;;  %v4647_v52 = vadd.f32 %v4631_v40, %v4614_v18  ;;  %v4626_v40 = vld [vmem:[#allocation3 + $0x28] sm:$0xff] }
0x1ab9   : >> { %v4658_v27 = vadd.f32 %v4642_v56, %v4625_v22 }
0x1aba   : >> { %4661 = vst [vmem:[#allocation3] sm:$0xff] %v4645_v29 }
0x1abb   : >> { %4663 = vst [vmem:[#allocation3 + $0x18] sm:$0xff] %v4647_v52 }
0x1abc   : >> { %4674 = vst [vmem:[#allocation3 + $0x78] sm:$0xff] %v4658_v27 }
0x1abd   : >> { %v4592_v58 = vpop.permute.xlu0 %4591  ;;  %v4594_v19 = vpop.permute.xlu1 %4593 }
0x1abe   : >> { %v4634_v54 = vmul.f32 %v8025_v5, %v4592_v58  ;;  %v4635_v7 = vmul.f32 %v8025_v5, %v4594_v19 }
0x1ac0   : >> { %v4650_v47 = vadd.f32 %v4634_v54, %v4617_v57  ;;  %v4651_v62 = vadd.f32 %v4635_v7, %v4618_v60 }
0x1ac2   : >> { %4666 = vst [vmem:[#allocation3 + $0x8] sm:$0xff] %v4650_v47 }
0x1ac3   : >> { %4667 = vst [vmem:[#allocation3 + $0x48] sm:$0xff] %v4651_v62 }
0x1ac5   : >> { %v4598_v63 = vpop.permute.xlu0 %4597  ;;  %v4600_v0 = vpop.permute.xlu1 %4599 }
0x1ac6   : >> { %v4637_v3 = vmul.f32 %v8025_v5, %v4598_v63  ;;  %v4638_v10 = vmul.f32 %v8025_v5, %v4600_v0 }
0x1ac8   : >> { %v4653_v13 = vadd.f32 %v4637_v3, %v4620_v30  ;;  %v4654_v8 = vadd.f32 %v4638_v10, %v4621_v2 }
0x1aca   : >> { %4669 = vst [vmem:[#allocation3 + $0x20] sm:$0xff] %v4653_v13 }
0x1acb   : >> { %4670 = vst [vmem:[#allocation3 + $0x10] sm:$0xff] %v4654_v8 }
0x1acd   : >> { %v4604_v15 = vpop.permute.xlu0 %4603  ;;  %v4606_v50 = vpop.permute.xlu1 %4605 }
0x1ace   : >> { %v4640_v17 = vmul.f32 %v8025_v5, %v4604_v15  ;;  %v4641_v18 = vmul.f32 %v8025_v5, %v4606_v50 }
0x1ad0   : >> { %v4656_v20 = vadd.f32 %v4640_v17, %v4623_v35  ;;  %v4657_v9 = vadd.f32 %v4641_v18, %v4624_v16 }
0x1ad2   : >> { %4672 = vst [vmem:[#allocation3 + $0x60] sm:$0xff] %v4656_v20 }
0x1ad3   : >> { %4673 = vst [vmem:[#allocation3 + $0x70] sm:$0xff] %v4657_v9 }
0x1ad5   : >> { %v4610_v22 = vpop.permute.xlu0 %4609 }
0x1ad6   : >> { %v4643_v41 = vmul.f32 %v8025_v5, %v4610_v22 }
0x1ad8   : >> { %v4659_v56 = vadd.f32 %v4643_v41, %v4626_v40 }
0x1ada   : >> { %4675 = vst [vmem:[#allocation3 + $0x28] sm:$0xff] %v4659_v56 }
0x1adb PF: >> { %p8520_p12 = scmp.lt.s32.totalorder %s6023_s15, 16 }
0x1adc   : >> { %s6080_s11 = smov (!%p8520_p12), 112   ;;  %s4679_s12 = sadd.s32 (!%p8520_p12), 16, %s6530_s26 }
0x1add   : >> { %4678 = sbr.rel (%p8520_p12) target bundleno = 7042 (0x1b82), region = 223  ;;  %s4680_s13 = sld [smem:[#allocation6 + %s4679_s12]] (!%p8520_p12) }
0x1ae2   : >> { %4681 = vrot.lane.b32.xlu0 %v6523_v23, %s6080_s11  ;;  %4685 = vrot.lane.b32.xlu1 %v6527_v33, %s6080_s11  ;;  %v4717_v29 = vld [vmem:[#allocation3 + $0x50] sm:$0xff]  ;;  %v4718_v58 = vld [vmem:[#allocation3 + $0x68] sm:$0xff]  ;;  %v4721_v7 = vld [vmem:[#allocation3 + $0x40] sm:$0xff] }
0x1ae3   : >> { %4689 = vrot.lane.b32.xlu2 %v6534_v11, %s6080_s11  ;;  %v8062_v5 = vstv %s4680_s13  ;;  %v4713_v63 = vld [vmem:[#allocation3 + $0x30] sm:$0xff]  ;;  %v4715_v0 = vld [vmem:[#allocation3 + $0x58] sm:$0xff]  ;;  %v4714_v18 = vld [vmem:[#allocation3] sm:$0xff] }
0x1ae4   : >> { %v4724_v8 = vld [vmem:[#allocation3 + $0x38] sm:$0xff] }
0x1ae5   : >> { %v4716_v9 = vld [vmem:[#allocation3 + $0x18] sm:$0xff] }
0x1ae6   : >> { %v4727_v56 = vld [vmem:[#allocation3 + $0x78] sm:$0xff] }
0x1aea   : >> { %4683 = vrot.lane.b32.xlu0 %v6525_v32, %s6080_s11  ;;  %4687 = vrot.lane.b32.xlu1 %v6532_v24, %s6080_s11 }
0x1aeb   : >> { %4691 = vrot.lane.b32.xlu2 %v6536_v36, %s6080_s11 }
0x1af2   : >> { %4693 = vrot.lane.b32.xlu0 %v6538_v37, %s6080_s11  ;;  %4695 = vrot.lane.b32.xlu1 %v6540_v38, %s6080_s11 }
0x1af3   : >> { %4697 = vrot.lane.b32.xlu2 %v6542_v39, %s6080_s11 }
0x1afa   : >> { %4699 = vrot.lane.b32.xlu0 %v6544_v25, %s6080_s11  ;;  %4701 = vrot.lane.b32.xlu1 %v6546_v28, %s6080_s11 }
0x1afb   : >> { %4703 = vrot.lane.b32.xlu2 %v6548_v42, %s6080_s11 }
0x1b02   : >> { %4705 = vrot.lane.b32.xlu0 %v6550_v44, %s6080_s11  ;;  %4707 = vrot.lane.b32.xlu1 %v6552_v48, %s6080_s11 }
0x1b03   : >> { %4709 = vrot.lane.b32.xlu2 %v6554_v49, %s6080_s11 }
0x1b0a   : >> { %4711 = vrot.lane.b32.xlu0 %v6556_v26, %s6080_s11 }
0x1b3d   : >> { %v4690_v52 = vpop.permute.xlu2 %4689 }
0x1b3e   : >> { %v4734_v27 = vmul.f32 %v8062_v5, %v4690_v52 }
0x1b40   : >> { %v4750_v57 = vadd.f32 %v4734_v27, %v4717_v29 }
0x1b42   : >> { %4766 = vst [vmem:[#allocation3 + $0x50] sm:$0xff] %v4750_v57 }
0x1b45   : >> { %v4692_v60 = vpop.permute.xlu2 %4691 }
0x1b46   : >> { %v4735_v19 = vmul.f32 %v8062_v5, %v4692_v60  ;;  %v4719_v60 = vld [vmem:[#allocation3 + $0x8] sm:$0xff] }
0x1b48   : >> { %v4751_v54 = vadd.f32 %v4735_v19, %v4718_v58 }
0x1b4a   : >> { %4767 = vst [vmem:[#allocation3 + $0x68] sm:$0xff] %v4751_v54  ;;  %v4720_v54 = vld [vmem:[#allocation3 + $0x48] sm:$0xff] }
0x1b4d   : >> { %v4698_v47 = vpop.permute.xlu2 %4697 }
0x1b4e   : >> { %v4738_v62 = vmul.f32 %v8062_v5, %v4698_v47 }
0x1b50   : >> { %v4754_v30 = vadd.f32 %v4738_v62, %v4721_v7 }
0x1b52   : >> { %4770 = vst [vmem:[#allocation3 + $0x40] sm:$0xff] %v4754_v30 }
0x1b54   : >> { %v4682_v2 = vpop.permute.xlu0 %4681  ;;  %v4686_v3 = vpop.permute.xlu1 %4685 }
0x1b55   : >> { %v4730_v10 = vmul.f32 %v8062_v5, %v4682_v2  ;;  %v4732_v13 = vmul.f32 %v8062_v5, %v4686_v3  ;;  %v4704_v35 = vpop.permute.xlu2 %4703  ;;  %v4722_v2 = vld [vmem:[#allocation3 + $0x20] sm:$0xff]  ;;  %v4723_v3 = vld [vmem:[#allocation3 + $0x10] sm:$0xff] }
0x1b56   : >> { %v4741_v15 = vmul.f32 %v8062_v5, %v4704_v35 }
0x1b57   : >> { %v4746_v16 = vadd.f32 %v4730_v10, %v4713_v63  ;;  %v4748_v50 = vadd.f32 %v4732_v13, %v4715_v0 }
0x1b58   : >> { %v4757_v17 = vadd.f32 %v4741_v15, %v4724_v8 }
0x1b59   : >> { %4762 = vst [vmem:[#allocation3 + $0x30] sm:$0xff] %v4746_v16  ;;  %v4725_v16 = vld [vmem:[#allocation3 + $0x60] sm:$0xff] }
0x1b5a   : >> { %4764 = vst [vmem:[#allocation3 + $0x58] sm:$0xff] %v4748_v50 }
0x1b5b   : >> { %4773 = vst [vmem:[#allocation3 + $0x38] sm:$0xff] %v4757_v17  ;;  %v4726_v17 = vld [vmem:[#allocation3 + $0x70] sm:$0xff] }
0x1b5c   : >> { %v4684_v20 = vpop.permute.xlu0 %4683  ;;  %v4688_v40 = vpop.permute.xlu1 %4687 }
0x1b5d   : >> { %v4731_v22 = vmul.f32 %v8062_v5, %v4684_v20  ;;  %v4733_v41 = vmul.f32 %v8062_v5, %v4688_v40  ;;  %v4710_v29 = vpop.permute.xlu2 %4709 }
0x1b5e   : >> { %v4744_v52 = vmul.f32 %v8062_v5, %v4710_v29 }
0x1b5f   : >> { %v4747_v27 = vadd.f32 %v4731_v22, %v4714_v18  ;;  %v4749_v57 = vadd.f32 %v4733_v41, %v4716_v9  ;;  %v4728_v41 = vld [vmem:[#allocation3 + $0x28] sm:$0xff] }
0x1b60   : >> { %v4760_v58 = vadd.f32 %v4744_v52, %v4727_v56 }
0x1b61   : >> { %4763 = vst [vmem:[#allocation3] sm:$0xff] %v4747_v27 }
0x1b62   : >> { %4765 = vst [vmem:[#allocation3 + $0x18] sm:$0xff] %v4749_v57 }
0x1b63   : >> { %4776 = vst [vmem:[#allocation3 + $0x78] sm:$0xff] %v4760_v58 }
0x1b64   : >> { %v4694_v19 = vpop.permute.xlu0 %4693  ;;  %v4696_v7 = vpop.permute.xlu1 %4695 }
0x1b65   : >> { %v4736_v47 = vmul.f32 %v8062_v5, %v4694_v19  ;;  %v4737_v62 = vmul.f32 %v8062_v5, %v4696_v7 }
0x1b67   : >> { %v4752_v30 = vadd.f32 %v4736_v47, %v4719_v60  ;;  %v4753_v63 = vadd.f32 %v4737_v62, %v4720_v54 }
0x1b69   : >> { %4768 = vst [vmem:[#allocation3 + $0x8] sm:$0xff] %v4752_v30 }
0x1b6a   : >> { %4769 = vst [vmem:[#allocation3 + $0x48] sm:$0xff] %v4753_v63 }
0x1b6c   : >> { %v4700_v0 = vpop.permute.xlu0 %4699  ;;  %v4702_v10 = vpop.permute.xlu1 %4701 }
0x1b6d   : >> { %v4739_v13 = vmul.f32 %v8062_v5, %v4700_v0  ;;  %v4740_v8 = vmul.f32 %v8062_v5, %v4702_v10 }
0x1b6f   : >> { %v4755_v35 = vadd.f32 %v4739_v13, %v4722_v2  ;;  %v4756_v15 = vadd.f32 %v4740_v8, %v4723_v3 }
0x1b71   : >> { %4771 = vst [vmem:[#allocation3 + $0x20] sm:$0xff] %v4755_v35 }
0x1b72   : >> { %4772 = vst [vmem:[#allocation3 + $0x10] sm:$0xff] %v4756_v15 }
0x1b74   : >> { %v4706_v50 = vpop.permute.xlu0 %4705  ;;  %v4708_v18 = vpop.permute.xlu1 %4707 }
0x1b75   : >> { %v4742_v20 = vmul.f32 %v8062_v5, %v4706_v50  ;;  %v4743_v9 = vmul.f32 %v8062_v5, %v4708_v18 }
0x1b77   : >> { %v4758_v40 = vadd.f32 %v4742_v20, %v4725_v16  ;;  %v4759_v22 = vadd.f32 %v4743_v9, %v4726_v17 }
0x1b79   : >> { %4774 = vst [vmem:[#allocation3 + $0x60] sm:$0xff] %v4758_v40 }
0x1b7a   : >> { %4775 = vst [vmem:[#allocation3 + $0x70] sm:$0xff] %v4759_v22 }
0x1b7c   : >> { %v4712_v56 = vpop.permute.xlu0 %4711 }
0x1b7d   : >> { %v4745_v29 = vmul.f32 %v8062_v5, %v4712_v56 }
0x1b7f   : >> { %v4761_v52 = vadd.f32 %v4745_v29, %v4728_v41 }
0x1b81   : >> { %4777 = vst [vmem:[#allocation3 + $0x28] sm:$0xff] %v4761_v52 }
0x1b82 PF: >> { %p8521_p13 = scmp.lt.s32.totalorder %s6023_s15, 17 }
0x1b83   : >> { %s6081_s21 = smov (!%p8521_p13), 111   ;;  %s4781_s22 = sadd.s32 (!%p8521_p13), 17, %s6530_s26 }
0x1b84   : >> { %4780 = sbr.rel (%p8521_p13) target bundleno = 7209 (0x1c29), region = 227  ;;  %s4782_s23 = sld [smem:[#allocation6 + %s4781_s22]] (!%p8521_p13) }
0x1b89   : >> { %4783 = vrot.lane.b32.xlu0 %v6523_v23, %s6081_s21  ;;  %4787 = vrot.lane.b32.xlu1 %v6527_v33, %s6081_s21  ;;  %v4819_v27 = vld [vmem:[#allocation3 + $0x50] sm:$0xff]  ;;  %v4820_v19 = vld [vmem:[#allocation3 + $0x68] sm:$0xff]  ;;  %v4823_v62 = vld [vmem:[#allocation3 + $0x40] sm:$0xff] }
0x1b8a   : >> { %4791 = vrot.lane.b32.xlu2 %v6534_v11, %s6081_s21  ;;  %v8099_v5 = vstv %s4782_s23  ;;  %v4815_v0 = vld [vmem:[#allocation3 + $0x30] sm:$0xff]  ;;  %v4817_v10 = vld [vmem:[#allocation3 + $0x58] sm:$0xff]  ;;  %v4816_v9 = vld [vmem:[#allocation3] sm:$0xff] }
0x1b8b   : >> { %v4826_v15 = vld [vmem:[#allocation3 + $0x38] sm:$0xff] }
0x1b8c   : >> { %v4818_v22 = vld [vmem:[#allocation3 + $0x18] sm:$0xff] }
0x1b8d   : >> { %v4829_v52 = vld [vmem:[#allocation3 + $0x78] sm:$0xff] }
0x1b91   : >> { %4785 = vrot.lane.b32.xlu0 %v6525_v32, %s6081_s21  ;;  %4789 = vrot.lane.b32.xlu1 %v6532_v24, %s6081_s21 }
0x1b92   : >> { %4793 = vrot.lane.b32.xlu2 %v6536_v36, %s6081_s21 }
0x1b99   : >> { %4795 = vrot.lane.b32.xlu0 %v6538_v37, %s6081_s21  ;;  %4797 = vrot.lane.b32.xlu1 %v6540_v38, %s6081_s21 }
0x1b9a   : >> { %4799 = vrot.lane.b32.xlu2 %v6542_v39, %s6081_s21 }
0x1ba1   : >> { %4801 = vrot.lane.b32.xlu0 %v6544_v25, %s6081_s21  ;;  %4803 = vrot.lane.b32.xlu1 %v6546_v28, %s6081_s21 }
0x1ba2   : >> { %4805 = vrot.lane.b32.xlu2 %v6548_v42, %s6081_s21 }
0x1ba9   : >> { %4807 = vrot.lane.b32.xlu0 %v6550_v44, %s6081_s21  ;;  %4809 = vrot.lane.b32.xlu1 %v6552_v48, %s6081_s21 }
0x1baa   : >> { %4811 = vrot.lane.b32.xlu2 %v6554_v49, %s6081_s21 }
0x1bb1   : >> { %4813 = vrot.lane.b32.xlu0 %v6556_v26, %s6081_s21 }
0x1be4   : >> { %v4792_v57 = vpop.permute.xlu2 %4791 }
0x1be5   : >> { %v4836_v58 = vmul.f32 %v8099_v5, %v4792_v57 }
0x1be7   : >> { %v4852_v60 = vadd.f32 %v4836_v58, %v4819_v27 }
0x1be9   : >> { %4868 = vst [vmem:[#allocation3 + $0x50] sm:$0xff] %v4852_v60 }
0x1bec   : >> { %v4794_v54 = vpop.permute.xlu2 %4793 }
0x1bed   : >> { %v4837_v7 = vmul.f32 %v8099_v5, %v4794_v54  ;;  %v4821_v54 = vld [vmem:[#allocation3 + $0x8] sm:$0xff] }
0x1bef   : >> { %v4853_v47 = vadd.f32 %v4837_v7, %v4820_v19 }
0x1bf1   : >> { %4869 = vst [vmem:[#allocation3 + $0x68] sm:$0xff] %v4853_v47  ;;  %v4822_v47 = vld [vmem:[#allocation3 + $0x48] sm:$0xff] }
0x1bf4   : >> { %v4800_v30 = vpop.permute.xlu2 %4799 }
0x1bf5   : >> { %v4840_v63 = vmul.f32 %v8099_v5, %v4800_v30 }
0x1bf7   : >> { %v4856_v2 = vadd.f32 %v4840_v63, %v4823_v62 }
0x1bf9   : >> { %4872 = vst [vmem:[#allocation3 + $0x40] sm:$0xff] %v4856_v2 }
0x1bfb   : >> { %v4784_v3 = vpop.permute.xlu0 %4783  ;;  %v4788_v13 = vpop.permute.xlu1 %4787 }
0x1bfc   : >> { %v4832_v8 = vmul.f32 %v8099_v5, %v4784_v3  ;;  %v4834_v35 = vmul.f32 %v8099_v5, %v4788_v13  ;;  %v4806_v16 = vpop.permute.xlu2 %4805  ;;  %v4824_v3 = vld [vmem:[#allocation3 + $0x20] sm:$0xff]  ;;  %v4825_v13 = vld [vmem:[#allocation3 + $0x10] sm:$0xff] }
0x1bfd   : >> { %v4843_v50 = vmul.f32 %v8099_v5, %v4806_v16 }
0x1bfe   : >> { %v4848_v17 = vadd.f32 %v4832_v8, %v4815_v0  ;;  %v4850_v18 = vadd.f32 %v4834_v35, %v4817_v10 }
0x1bff   : >> { %v4859_v20 = vadd.f32 %v4843_v50, %v4826_v15 }
0x1c00   : >> { %4864 = vst [vmem:[#allocation3 + $0x30] sm:$0xff] %v4848_v17  ;;  %v4827_v17 = vld [vmem:[#allocation3 + $0x60] sm:$0xff] }
0x1c01   : >> { %4866 = vst [vmem:[#allocation3 + $0x58] sm:$0xff] %v4850_v18 }
0x1c02   : >> { %4875 = vst [vmem:[#allocation3 + $0x38] sm:$0xff] %v4859_v20  ;;  %v4828_v20 = vld [vmem:[#allocation3 + $0x70] sm:$0xff] }
0x1c03   : >> { %v4786_v40 = vpop.permute.xlu0 %4785  ;;  %v4790_v41 = vpop.permute.xlu1 %4789 }
0x1c04   : >> { %v4833_v56 = vmul.f32 %v8099_v5, %v4786_v40  ;;  %v4835_v29 = vmul.f32 %v8099_v5, %v4790_v41  ;;  %v4812_v27 = vpop.permute.xlu2 %4811 }
0x1c05   : >> { %v4846_v57 = vmul.f32 %v8099_v5, %v4812_v27 }
0x1c06   : >> { %v4849_v58 = vadd.f32 %v4833_v56, %v4816_v9  ;;  %v4851_v60 = vadd.f32 %v4835_v29, %v4818_v22  ;;  %v4830_v29 = vld [vmem:[#allocation3 + $0x28] sm:$0xff] }
0x1c07   : >> { %v4862_v19 = vadd.f32 %v4846_v57, %v4829_v52 }
0x1c08   : >> { %4865 = vst [vmem:[#allocation3] sm:$0xff] %v4849_v58 }
0x1c09   : >> { %4867 = vst [vmem:[#allocation3 + $0x18] sm:$0xff] %v4851_v60 }
0x1c0a   : >> { %4878 = vst [vmem:[#allocation3 + $0x78] sm:$0xff] %v4862_v19 }
0x1c0b   : >> { %v4796_v7 = vpop.permute.xlu0 %4795  ;;  %v4798_v62 = vpop.permute.xlu1 %4797 }
0x1c0c   : >> { %v4838_v30 = vmul.f32 %v8099_v5, %v4796_v7  ;;  %v4839_v63 = vmul.f32 %v8099_v5, %v4798_v62 }
0x1c0e   : >> { %v4854_v2 = vadd.f32 %v4838_v30, %v4821_v54  ;;  %v4855_v0 = vadd.f32 %v4839_v63, %v4822_v47 }
0x1c10   : >> { %4870 = vst [vmem:[#allocation3 + $0x8] sm:$0xff] %v4854_v2 }
0x1c11   : >> { %4871 = vst [vmem:[#allocation3 + $0x48] sm:$0xff] %v4855_v0 }
0x1c13   : >> { %v4802_v10 = vpop.permute.xlu0 %4801  ;;  %v4804_v8 = vpop.permute.xlu1 %4803 }
0x1c14   : >> { %v4841_v35 = vmul.f32 %v8099_v5, %v4802_v10  ;;  %v4842_v15 = vmul.f32 %v8099_v5, %v4804_v8 }
0x1c16   : >> { %v4857_v16 = vadd.f32 %v4841_v35, %v4824_v3  ;;  %v4858_v50 = vadd.f32 %v4842_v15, %v4825_v13 }
0x1c18   : >> { %4873 = vst [vmem:[#allocation3 + $0x20] sm:$0xff] %v4857_v16 }
0x1c19   : >> { %4874 = vst [vmem:[#allocation3 + $0x10] sm:$0xff] %v4858_v50 }
0x1c1b   : >> { %v4808_v18 = vpop.permute.xlu0 %4807  ;;  %v4810_v9 = vpop.permute.xlu1 %4809 }
0x1c1c   : >> { %v4844_v40 = vmul.f32 %v8099_v5, %v4808_v18  ;;  %v4845_v22 = vmul.f32 %v8099_v5, %v4810_v9 }
0x1c1e   : >> { %v4860_v41 = vadd.f32 %v4844_v40, %v4827_v17  ;;  %v4861_v56 = vadd.f32 %v4845_v22, %v4828_v20 }
0x1c20   : >> { %4876 = vst [vmem:[#allocation3 + $0x60] sm:$0xff] %v4860_v41 }
0x1c21   : >> { %4877 = vst [vmem:[#allocation3 + $0x70] sm:$0xff] %v4861_v56 }
0x1c23   : >> { %v4814_v52 = vpop.permute.xlu0 %4813 }
0x1c24   : >> { %v4847_v27 = vmul.f32 %v8099_v5, %v4814_v52 }
0x1c26   : >> { %v4863_v57 = vadd.f32 %v4847_v27, %v4830_v29 }
0x1c28   : >> { %4879 = vst [vmem:[#allocation3 + $0x28] sm:$0xff] %v4863_v57 }
0x1c29 PF: >> { %p8522_p0 = scmp.lt.s32.totalorder %s6023_s15, 18 }
0x1c2a   : >> { %s6082_s24 = smov (!%p8522_p0), 110   ;;  %s4883_s25 = sadd.s32 (!%p8522_p0), 18, %s6530_s26 }
0x1c2b   : >> { %4882 = sbr.rel (%p8522_p0) target bundleno = 7376 (0x1cd0), region = 231  ;;  %s4884_s27 = sld [smem:[#allocation6 + %s4883_s25]] (!%p8522_p0) }
0x1c30   : >> { %4885 = vrot.lane.b32.xlu0 %v6523_v23, %s6082_s24  ;;  %4889 = vrot.lane.b32.xlu1 %v6527_v33, %s6082_s24  ;;  %v4921_v58 = vld [vmem:[#allocation3 + $0x50] sm:$0xff]  ;;  %v4922_v7 = vld [vmem:[#allocation3 + $0x68] sm:$0xff]  ;;  %v4925_v63 = vld [vmem:[#allocation3 + $0x40] sm:$0xff] }
0x1c31   : >> { %4893 = vrot.lane.b32.xlu2 %v6534_v11, %s6082_s24  ;;  %v8136_v5 = vstv %s4884_s27  ;;  %v4917_v10 = vld [vmem:[#allocation3 + $0x30] sm:$0xff]  ;;  %v4919_v8 = vld [vmem:[#allocation3 + $0x58] sm:$0xff]  ;;  %v4918_v22 = vld [vmem:[#allocation3] sm:$0xff] }
0x1c32   : >> { %v4928_v50 = vld [vmem:[#allocation3 + $0x38] sm:$0xff] }
0x1c33   : >> { %v4920_v56 = vld [vmem:[#allocation3 + $0x18] sm:$0xff] }
0x1c34   : >> { %v4931_v57 = vld [vmem:[#allocation3 + $0x78] sm:$0xff] }
0x1c38   : >> { %4887 = vrot.lane.b32.xlu0 %v6525_v32, %s6082_s24  ;;  %4891 = vrot.lane.b32.xlu1 %v6532_v24, %s6082_s24 }
0x1c39   : >> { %4895 = vrot.lane.b32.xlu2 %v6536_v36, %s6082_s24 }
0x1c40   : >> { %4897 = vrot.lane.b32.xlu0 %v6538_v37, %s6082_s24  ;;  %4899 = vrot.lane.b32.xlu1 %v6540_v38, %s6082_s24 }
0x1c41   : >> { %4901 = vrot.lane.b32.xlu2 %v6542_v39, %s6082_s24 }
0x1c48   : >> { %4903 = vrot.lane.b32.xlu0 %v6544_v25, %s6082_s24  ;;  %4905 = vrot.lane.b32.xlu1 %v6546_v28, %s6082_s24 }
0x1c49   : >> { %4907 = vrot.lane.b32.xlu2 %v6548_v42, %s6082_s24 }
0x1c50   : >> { %4909 = vrot.lane.b32.xlu0 %v6550_v44, %s6082_s24  ;;  %4911 = vrot.lane.b32.xlu1 %v6552_v48, %s6082_s24 }
0x1c51   : >> { %4913 = vrot.lane.b32.xlu2 %v6554_v49, %s6082_s24 }
0x1c58   : >> { %4915 = vrot.lane.b32.xlu0 %v6556_v26, %s6082_s24 }
0x1c8b   : >> { %v4894_v60 = vpop.permute.xlu2 %4893 }
0x1c8c   : >> { %v4938_v19 = vmul.f32 %v8136_v5, %v4894_v60 }
0x1c8e   : >> { %v4954_v54 = vadd.f32 %v4938_v19, %v4921_v58 }
0x1c90   : >> { %4970 = vst [vmem:[#allocation3 + $0x50] sm:$0xff] %v4954_v54 }
0x1c93   : >> { %v4896_v47 = vpop.permute.xlu2 %4895 }
0x1c94   : >> { %v4939_v62 = vmul.f32 %v8136_v5, %v4896_v47  ;;  %v4923_v47 = vld [vmem:[#allocation3 + $0x8] sm:$0xff] }
0x1c96   : >> { %v4955_v30 = vadd.f32 %v4939_v62, %v4922_v7 }
0x1c98   : >> { %4971 = vst [vmem:[#allocation3 + $0x68] sm:$0xff] %v4955_v30  ;;  %v4924_v30 = vld [vmem:[#allocation3 + $0x48] sm:$0xff] }
0x1c9b   : >> { %v4902_v2 = vpop.permute.xlu2 %4901 }
0x1c9c   : >> { %v4942_v0 = vmul.f32 %v8136_v5, %v4902_v2 }
0x1c9e   : >> { %v4958_v3 = vadd.f32 %v4942_v0, %v4925_v63 }
0x1ca0   : >> { %4974 = vst [vmem:[#allocation3 + $0x40] sm:$0xff] %v4958_v3 }
0x1ca2   : >> { %v4886_v13 = vpop.permute.xlu0 %4885  ;;  %v4890_v35 = vpop.permute.xlu1 %4889 }
0x1ca3   : >> { %v4934_v15 = vmul.f32 %v8136_v5, %v4886_v13  ;;  %v4936_v16 = vmul.f32 %v8136_v5, %v4890_v35  ;;  %v4908_v17 = vpop.permute.xlu2 %4907  ;;  %v4926_v13 = vld [vmem:[#allocation3 + $0x20] sm:$0xff]  ;;  %v4927_v35 = vld [vmem:[#allocation3 + $0x10] sm:$0xff] }
0x1ca4   : >> { %v4945_v18 = vmul.f32 %v8136_v5, %v4908_v17 }
0x1ca5   : >> { %v4950_v20 = vadd.f32 %v4934_v15, %v4917_v10  ;;  %v4952_v9 = vadd.f32 %v4936_v16, %v4919_v8 }
0x1ca6   : >> { %v4961_v40 = vadd.f32 %v4945_v18, %v4928_v50 }
0x1ca7   : >> { %4966 = vst [vmem:[#allocation3 + $0x30] sm:$0xff] %v4950_v20  ;;  %v4929_v20 = vld [vmem:[#allocation3 + $0x60] sm:$0xff] }
0x1ca8   : >> { %4968 = vst [vmem:[#allocation3 + $0x58] sm:$0xff] %v4952_v9 }
0x1ca9   : >> { %4977 = vst [vmem:[#allocation3 + $0x38] sm:$0xff] %v4961_v40  ;;  %v4930_v40 = vld [vmem:[#allocation3 + $0x70] sm:$0xff] }
0x1caa   : >> { %v4888_v41 = vpop.permute.xlu0 %4887  ;;  %v4892_v29 = vpop.permute.xlu1 %4891 }
0x1cab   : >> { %v4935_v52 = vmul.f32 %v8136_v5, %v4888_v41  ;;  %v4937_v27 = vmul.f32 %v8136_v5, %v4892_v29  ;;  %v4914_v58 = vpop.permute.xlu2 %4913 }
0x1cac   : >> { %v4948_v60 = vmul.f32 %v8136_v5, %v4914_v58 }
0x1cad   : >> { %v4951_v19 = vadd.f32 %v4935_v52, %v4918_v22  ;;  %v4953_v54 = vadd.f32 %v4937_v27, %v4920_v56  ;;  %v4932_v27 = vld [vmem:[#allocation3 + $0x28] sm:$0xff] }
0x1cae   : >> { %v4964_v7 = vadd.f32 %v4948_v60, %v4931_v57 }
0x1caf   : >> { %4967 = vst [vmem:[#allocation3] sm:$0xff] %v4951_v19 }
0x1cb0   : >> { %4969 = vst [vmem:[#allocation3 + $0x18] sm:$0xff] %v4953_v54 }
0x1cb1   : >> { %4980 = vst [vmem:[#allocation3 + $0x78] sm:$0xff] %v4964_v7 }
0x1cb2   : >> { %v4898_v62 = vpop.permute.xlu0 %4897  ;;  %v4900_v63 = vpop.permute.xlu1 %4899 }
0x1cb3   : >> { %v4940_v2 = vmul.f32 %v8136_v5, %v4898_v62  ;;  %v4941_v0 = vmul.f32 %v8136_v5, %v4900_v63 }
0x1cb5   : >> { %v4956_v3 = vadd.f32 %v4940_v2, %v4923_v47  ;;  %v4957_v10 = vadd.f32 %v4941_v0, %v4924_v30 }
0x1cb7   : >> { %4972 = vst [vmem:[#allocation3 + $0x8] sm:$0xff] %v4956_v3 }
0x1cb8   : >> { %4973 = vst [vmem:[#allocation3 + $0x48] sm:$0xff] %v4957_v10 }
0x1cba   : >> { %v4904_v8 = vpop.permute.xlu0 %4903  ;;  %v4906_v15 = vpop.permute.xlu1 %4905 }
0x1cbb   : >> { %v4943_v16 = vmul.f32 %v8136_v5, %v4904_v8  ;;  %v4944_v50 = vmul.f32 %v8136_v5, %v4906_v15 }
0x1cbd   : >> { %v4959_v17 = vadd.f32 %v4943_v16, %v4926_v13  ;;  %v4960_v18 = vadd.f32 %v4944_v50, %v4927_v35 }
0x1cbf   : >> { %4975 = vst [vmem:[#allocation3 + $0x20] sm:$0xff] %v4959_v17 }
0x1cc0   : >> { %4976 = vst [vmem:[#allocation3 + $0x10] sm:$0xff] %v4960_v18 }
0x1cc2   : >> { %v4910_v9 = vpop.permute.xlu0 %4909  ;;  %v4912_v22 = vpop.permute.xlu1 %4911 }
0x1cc3   : >> { %v4946_v41 = vmul.f32 %v8136_v5, %v4910_v9  ;;  %v4947_v56 = vmul.f32 %v8136_v5, %v4912_v22 }
0x1cc5   : >> { %v4962_v29 = vadd.f32 %v4946_v41, %v4929_v20  ;;  %v4963_v52 = vadd.f32 %v4947_v56, %v4930_v40 }
0x1cc7   : >> { %4978 = vst [vmem:[#allocation3 + $0x60] sm:$0xff] %v4962_v29 }
0x1cc8   : >> { %4979 = vst [vmem:[#allocation3 + $0x70] sm:$0xff] %v4963_v52 }
0x1cca   : >> { %v4916_v57 = vpop.permute.xlu0 %4915 }
0x1ccb   : >> { %v4949_v58 = vmul.f32 %v8136_v5, %v4916_v57 }
0x1ccd   : >> { %v4965_v60 = vadd.f32 %v4949_v58, %v4932_v27 }
0x1ccf   : >> { %4981 = vst [vmem:[#allocation3 + $0x28] sm:$0xff] %v4965_v60 }
0x1cd0 PF: >> { %p8523_p1 = scmp.lt.s32.totalorder %s6023_s15, 19 }
0x1cd1   : >> { %s6083_s28 = smov (!%p8523_p1), 109   ;;  %s4985_s29 = sadd.s32 (!%p8523_p1), 19, %s6530_s26 }
0x1cd2   : >> { %4984 = sbr.rel (%p8523_p1) target bundleno = 7543 (0x1d77), region = 235  ;;  %s4986_s30 = sld [smem:[#allocation6 + %s4985_s29]] (!%p8523_p1) }
0x1cd7   : >> { %4987 = vrot.lane.b32.xlu0 %v6523_v23, %s6083_s28  ;;  %4991 = vrot.lane.b32.xlu1 %v6527_v33, %s6083_s28  ;;  %v5023_v19 = vld [vmem:[#allocation3 + $0x50] sm:$0xff]  ;;  %v5024_v62 = vld [vmem:[#allocation3 + $0x68] sm:$0xff]  ;;  %v5027_v0 = vld [vmem:[#allocation3 + $0x40] sm:$0xff] }
0x1cd8   : >> { %4995 = vrot.lane.b32.xlu2 %v6534_v11, %s6083_s28  ;;  %v8173_v5 = vstv %s4986_s30  ;;  %v5019_v8 = vld [vmem:[#allocation3 + $0x30] sm:$0xff]  ;;  %v5021_v15 = vld [vmem:[#allocation3 + $0x58] sm:$0xff]  ;;  %v5020_v56 = vld [vmem:[#allocation3] sm:$0xff] }
0x1cd9   : >> { %v5030_v18 = vld [vmem:[#allocation3 + $0x38] sm:$0xff] }
0x1cda   : >> { %v5022_v52 = vld [vmem:[#allocation3 + $0x18] sm:$0xff] }
0x1cdb   : >> { %v5033_v60 = vld [vmem:[#allocation3 + $0x78] sm:$0xff] }
0x1cdf   : >> { %4989 = vrot.lane.b32.xlu0 %v6525_v32, %s6083_s28  ;;  %4993 = vrot.lane.b32.xlu1 %v6532_v24, %s6083_s28 }
0x1ce0   : >> { %4997 = vrot.lane.b32.xlu2 %v6536_v36, %s6083_s28 }
0x1ce7   : >> { %4999 = vrot.lane.b32.xlu0 %v6538_v37, %s6083_s28  ;;  %5001 = vrot.lane.b32.xlu1 %v6540_v38, %s6083_s28 }
0x1ce8   : >> { %5003 = vrot.lane.b32.xlu2 %v6542_v39, %s6083_s28 }
0x1cef   : >> { %5005 = vrot.lane.b32.xlu0 %v6544_v25, %s6083_s28  ;;  %5007 = vrot.lane.b32.xlu1 %v6546_v28, %s6083_s28 }
0x1cf0   : >> { %5009 = vrot.lane.b32.xlu2 %v6548_v42, %s6083_s28 }
0x1cf7   : >> { %5011 = vrot.lane.b32.xlu0 %v6550_v44, %s6083_s28  ;;  %5013 = vrot.lane.b32.xlu1 %v6552_v48, %s6083_s28 }
0x1cf8   : >> { %5015 = vrot.lane.b32.xlu2 %v6554_v49, %s6083_s28 }
0x1cff   : >> { %5017 = vrot.lane.b32.xlu0 %v6556_v26, %s6083_s28 }
0x1d32   : >> { %v4996_v54 = vpop.permute.xlu2 %4995 }
0x1d33   : >> { %v5040_v7 = vmul.f32 %v8173_v5, %v4996_v54 }
0x1d35   : >> { %v5056_v47 = vadd.f32 %v5040_v7, %v5023_v19 }
0x1d37   : >> { %5072 = vst [vmem:[#allocation3 + $0x50] sm:$0xff] %v5056_v47 }
0x1d3a   : >> { %v4998_v30 = vpop.permute.xlu2 %4997 }
0x1d3b   : >> { %v5041_v63 = vmul.f32 %v8173_v5, %v4998_v30  ;;  %v5025_v30 = vld [vmem:[#allocation3 + $0x8] sm:$0xff] }
0x1d3d   : >> { %v5057_v2 = vadd.f32 %v5041_v63, %v5024_v62 }
0x1d3f   : >> { %5073 = vst [vmem:[#allocation3 + $0x68] sm:$0xff] %v5057_v2  ;;  %v5026_v2 = vld [vmem:[#allocation3 + $0x48] sm:$0xff] }
0x1d42   : >> { %v5004_v3 = vpop.permute.xlu2 %5003 }
0x1d43   : >> { %v5044_v10 = vmul.f32 %v8173_v5, %v5004_v3 }
0x1d45   : >> { %v5060_v13 = vadd.f32 %v5044_v10, %v5027_v0 }
0x1d47   : >> { %5076 = vst [vmem:[#allocation3 + $0x40] sm:$0xff] %v5060_v13 }
0x1d49   : >> { %v4988_v35 = vpop.permute.xlu0 %4987  ;;  %v4992_v16 = vpop.permute.xlu1 %4991 }
0x1d4a   : >> { %v5036_v50 = vmul.f32 %v8173_v5, %v4988_v35  ;;  %v5038_v17 = vmul.f32 %v8173_v5, %v4992_v16  ;;  %v5010_v20 = vpop.permute.xlu2 %5009  ;;  %v5028_v35 = vld [vmem:[#allocation3 + $0x20] sm:$0xff]  ;;  %v5029_v16 = vld [vmem:[#allocation3 + $0x10] sm:$0xff] }
0x1d4b   : >> { %v5047_v9 = vmul.f32 %v8173_v5, %v5010_v20 }
0x1d4c   : >> { %v5052_v40 = vadd.f32 %v5036_v50, %v5019_v8  ;;  %v5054_v22 = vadd.f32 %v5038_v17, %v5021_v15 }
0x1d4d   : >> { %v5063_v41 = vadd.f32 %v5047_v9, %v5030_v18 }
0x1d4e   : >> { %5068 = vst [vmem:[#allocation3 + $0x30] sm:$0xff] %v5052_v40  ;;  %v5031_v40 = vld [vmem:[#allocation3 + $0x60] sm:$0xff] }
0x1d4f   : >> { %5070 = vst [vmem:[#allocation3 + $0x58] sm:$0xff] %v5054_v22 }
0x1d50   : >> { %5079 = vst [vmem:[#allocation3 + $0x38] sm:$0xff] %v5063_v41  ;;  %v5032_v41 = vld [vmem:[#allocation3 + $0x70] sm:$0xff] }
0x1d51   : >> { %v4990_v29 = vpop.permute.xlu0 %4989  ;;  %v4994_v27 = vpop.permute.xlu1 %4993 }
0x1d52   : >> { %v5037_v57 = vmul.f32 %v8173_v5, %v4990_v29  ;;  %v5039_v58 = vmul.f32 %v8173_v5, %v4994_v27  ;;  %v5016_v19 = vpop.permute.xlu2 %5015 }
0x1d53   : >> { %v5050_v54 = vmul.f32 %v8173_v5, %v5016_v19 }
0x1d54   : >> { %v5053_v7 = vadd.f32 %v5037_v57, %v5020_v56  ;;  %v5055_v47 = vadd.f32 %v5039_v58, %v5022_v52  ;;  %v5034_v58 = vld [vmem:[#allocation3 + $0x28] sm:$0xff] }
0x1d55   : >> { %v5066_v62 = vadd.f32 %v5050_v54, %v5033_v60 }
0x1d56   : >> { %5069 = vst [vmem:[#allocation3] sm:$0xff] %v5053_v7 }
0x1d57   : >> { %5071 = vst [vmem:[#allocation3 + $0x18] sm:$0xff] %v5055_v47 }
0x1d58   : >> { %5082 = vst [vmem:[#allocation3 + $0x78] sm:$0xff] %v5066_v62 }
0x1d59   : >> { %v5000_v63 = vpop.permute.xlu0 %4999  ;;  %v5002_v0 = vpop.permute.xlu1 %5001 }
0x1d5a   : >> { %v5042_v3 = vmul.f32 %v8173_v5, %v5000_v63  ;;  %v5043_v10 = vmul.f32 %v8173_v5, %v5002_v0 }
0x1d5c   : >> { %v5058_v13 = vadd.f32 %v5042_v3, %v5025_v30  ;;  %v5059_v8 = vadd.f32 %v5043_v10, %v5026_v2 }
0x1d5e   : >> { %5074 = vst [vmem:[#allocation3 + $0x8] sm:$0xff] %v5058_v13 }
0x1d5f   : >> { %5075 = vst [vmem:[#allocation3 + $0x48] sm:$0xff] %v5059_v8 }
0x1d61   : >> { %v5006_v15 = vpop.permute.xlu0 %5005  ;;  %v5008_v50 = vpop.permute.xlu1 %5007 }
0x1d62   : >> { %v5045_v17 = vmul.f32 %v8173_v5, %v5006_v15  ;;  %v5046_v18 = vmul.f32 %v8173_v5, %v5008_v50 }
0x1d64   : >> { %v5061_v20 = vadd.f32 %v5045_v17, %v5028_v35  ;;  %v5062_v9 = vadd.f32 %v5046_v18, %v5029_v16 }
0x1d66   : >> { %5077 = vst [vmem:[#allocation3 + $0x20] sm:$0xff] %v5061_v20 }
0x1d67   : >> { %5078 = vst [vmem:[#allocation3 + $0x10] sm:$0xff] %v5062_v9 }
0x1d69   : >> { %v5012_v22 = vpop.permute.xlu0 %5011  ;;  %v5014_v56 = vpop.permute.xlu1 %5013 }
0x1d6a   : >> { %v5048_v29 = vmul.f32 %v8173_v5, %v5012_v22  ;;  %v5049_v52 = vmul.f32 %v8173_v5, %v5014_v56 }
0x1d6c   : >> { %v5064_v27 = vadd.f32 %v5048_v29, %v5031_v40  ;;  %v5065_v57 = vadd.f32 %v5049_v52, %v5032_v41 }
0x1d6e   : >> { %5080 = vst [vmem:[#allocation3 + $0x60] sm:$0xff] %v5064_v27 }
0x1d6f   : >> { %5081 = vst [vmem:[#allocation3 + $0x70] sm:$0xff] %v5065_v57 }
0x1d71   : >> { %v5018_v60 = vpop.permute.xlu0 %5017 }
0x1d72   : >> { %v5051_v19 = vmul.f32 %v8173_v5, %v5018_v60 }
0x1d74   : >> { %v5067_v54 = vadd.f32 %v5051_v19, %v5034_v58 }
0x1d76   : >> { %5083 = vst [vmem:[#allocation3 + $0x28] sm:$0xff] %v5067_v54 }
0x1d77 PF: >> { %p8524_p2 = scmp.lt.s32.totalorder %s6023_s15, 20 }
0x1d78   : >> { %s6084_s5 = smov (!%p8524_p2), 108   ;;  %s5087_s6 = sadd.s32 (!%p8524_p2), 20, %s6530_s26 }
0x1d79   : >> { %5086 = sbr.rel (%p8524_p2) target bundleno = 7710 (0x1e1e), region = 239  ;;  %s5088_s7 = sld [smem:[#allocation6 + %s5087_s6]] (!%p8524_p2) }
0x1d7e   : >> { %5089 = vrot.lane.b32.xlu0 %v6523_v23, %s6084_s5  ;;  %5093 = vrot.lane.b32.xlu1 %v6527_v33, %s6084_s5  ;;  %v5125_v7 = vld [vmem:[#allocation3 + $0x50] sm:$0xff]  ;;  %v5126_v63 = vld [vmem:[#allocation3 + $0x68] sm:$0xff]  ;;  %v5129_v10 = vld [vmem:[#allocation3 + $0x40] sm:$0xff] }
0x1d7f   : >> { %5097 = vrot.lane.b32.xlu2 %v6534_v11, %s6084_s5  ;;  %v8210_v5 = vstv %s5088_s7  ;;  %v5121_v15 = vld [vmem:[#allocation3 + $0x30] sm:$0xff]  ;;  %v5123_v50 = vld [vmem:[#allocation3 + $0x58] sm:$0xff]  ;;  %v5122_v52 = vld [vmem:[#allocation3] sm:$0xff] }
0x1d80   : >> { %v5132_v9 = vld [vmem:[#allocation3 + $0x38] sm:$0xff] }
0x1d81   : >> { %v5124_v57 = vld [vmem:[#allocation3 + $0x18] sm:$0xff] }
0x1d82   : >> { %v5135_v54 = vld [vmem:[#allocation3 + $0x78] sm:$0xff] }
0x1d86   : >> { %5091 = vrot.lane.b32.xlu0 %v6525_v32, %s6084_s5  ;;  %5095 = vrot.lane.b32.xlu1 %v6532_v24, %s6084_s5 }
0x1d87   : >> { %5099 = vrot.lane.b32.xlu2 %v6536_v36, %s6084_s5 }
0x1d8e   : >> { %5101 = vrot.lane.b32.xlu0 %v6538_v37, %s6084_s5  ;;  %5103 = vrot.lane.b32.xlu1 %v6540_v38, %s6084_s5 }
0x1d8f   : >> { %5105 = vrot.lane.b32.xlu2 %v6542_v39, %s6084_s5 }
0x1d96   : >> { %5107 = vrot.lane.b32.xlu0 %v6544_v25, %s6084_s5  ;;  %5109 = vrot.lane.b32.xlu1 %v6546_v28, %s6084_s5 }
0x1d97   : >> { %5111 = vrot.lane.b32.xlu2 %v6548_v42, %s6084_s5 }
0x1d9e   : >> { %5113 = vrot.lane.b32.xlu0 %v6550_v44, %s6084_s5  ;;  %5115 = vrot.lane.b32.xlu1 %v6552_v48, %s6084_s5 }
0x1d9f   : >> { %5117 = vrot.lane.b32.xlu2 %v6554_v49, %s6084_s5 }
0x1da6   : >> { %5119 = vrot.lane.b32.xlu0 %v6556_v26, %s6084_s5 }
0x1dd9   : >> { %v5098_v47 = vpop.permute.xlu2 %5097 }
0x1dda   : >> { %v5142_v62 = vmul.f32 %v8210_v5, %v5098_v47 }
0x1ddc   : >> { %v5158_v30 = vadd.f32 %v5142_v62, %v5125_v7 }
0x1dde   : >> { %5174 = vst [vmem:[#allocation3 + $0x50] sm:$0xff] %v5158_v30 }
0x1de1   : >> { %v5100_v2 = vpop.permute.xlu2 %5099 }
0x1de2   : >> { %v5143_v0 = vmul.f32 %v8210_v5, %v5100_v2  ;;  %v5127_v2 = vld [vmem:[#allocation3 + $0x8] sm:$0xff] }
0x1de4   : >> { %v5159_v3 = vadd.f32 %v5143_v0, %v5126_v63 }
0x1de6   : >> { %5175 = vst [vmem:[#allocation3 + $0x68] sm:$0xff] %v5159_v3  ;;  %v5128_v3 = vld [vmem:[#allocation3 + $0x48] sm:$0xff] }
0x1de9   : >> { %v5106_v13 = vpop.permute.xlu2 %5105 }
0x1dea   : >> { %v5146_v8 = vmul.f32 %v8210_v5, %v5106_v13 }
0x1dec   : >> { %v5162_v35 = vadd.f32 %v5146_v8, %v5129_v10 }
0x1dee   : >> { %5178 = vst [vmem:[#allocation3 + $0x40] sm:$0xff] %v5162_v35 }
0x1df0   : >> { %v5090_v16 = vpop.permute.xlu0 %5089  ;;  %v5094_v17 = vpop.permute.xlu1 %5093 }
0x1df1   : >> { %v5138_v18 = vmul.f32 %v8210_v5, %v5090_v16  ;;  %v5140_v20 = vmul.f32 %v8210_v5, %v5094_v17  ;;  %v5112_v40 = vpop.permute.xlu2 %5111  ;;  %v5130_v16 = vld [vmem:[#allocation3 + $0x20] sm:$0xff]  ;;  %v5131_v17 = vld [vmem:[#allocation3 + $0x10] sm:$0xff] }
0x1df2   : >> { %v5149_v22 = vmul.f32 %v8210_v5, %v5112_v40 }
0x1df3   : >> { %v5154_v41 = vadd.f32 %v5138_v18, %v5121_v15  ;;  %v5156_v56 = vadd.f32 %v5140_v20, %v5123_v50 }
0x1df4   : >> { %v5165_v29 = vadd.f32 %v5149_v22, %v5132_v9 }
0x1df5   : >> { %5170 = vst [vmem:[#allocation3 + $0x30] sm:$0xff] %v5154_v41  ;;  %v5133_v41 = vld [vmem:[#allocation3 + $0x60] sm:$0xff] }
0x1df6   : >> { %5172 = vst [vmem:[#allocation3 + $0x58] sm:$0xff] %v5156_v56 }
0x1df7   : >> { %5181 = vst [vmem:[#allocation3 + $0x38] sm:$0xff] %v5165_v29  ;;  %v5134_v29 = vld [vmem:[#allocation3 + $0x70] sm:$0xff] }
0x1df8   : >> { %v5092_v27 = vpop.permute.xlu0 %5091  ;;  %v5096_v58 = vpop.permute.xlu1 %5095 }
0x1df9   : >> { %v5139_v60 = vmul.f32 %v8210_v5, %v5092_v27  ;;  %v5141_v19 = vmul.f32 %v8210_v5, %v5096_v58  ;;  %v5118_v7 = vpop.permute.xlu2 %5117 }
0x1dfa   : >> { %v5152_v47 = vmul.f32 %v8210_v5, %v5118_v7 }
0x1dfb   : >> { %v5155_v62 = vadd.f32 %v5139_v60, %v5122_v52  ;;  %v5157_v30 = vadd.f32 %v5141_v19, %v5124_v57  ;;  %v5136_v19 = vld [vmem:[#allocation3 + $0x28] sm:$0xff] }
0x1dfc   : >> { %v5168_v63 = vadd.f32 %v5152_v47, %v5135_v54 }
0x1dfd   : >> { %5171 = vst [vmem:[#allocation3] sm:$0xff] %v5155_v62 }
0x1dfe   : >> { %5173 = vst [vmem:[#allocation3 + $0x18] sm:$0xff] %v5157_v30 }
0x1dff   : >> { %5184 = vst [vmem:[#allocation3 + $0x78] sm:$0xff] %v5168_v63 }
0x1e00   : >> { %v5102_v0 = vpop.permute.xlu0 %5101  ;;  %v5104_v10 = vpop.permute.xlu1 %5103 }
0x1e01   : >> { %v5144_v13 = vmul.f32 %v8210_v5, %v5102_v0  ;;  %v5145_v8 = vmul.f32 %v8210_v5, %v5104_v10 }
0x1e03   : >> { %v5160_v35 = vadd.f32 %v5144_v13, %v5127_v2  ;;  %v5161_v15 = vadd.f32 %v5145_v8, %v5128_v3 }
0x1e05   : >> { %5176 = vst [vmem:[#allocation3 + $0x8] sm:$0xff] %v5160_v35 }
0x1e06   : >> { %5177 = vst [vmem:[#allocation3 + $0x48] sm:$0xff] %v5161_v15 }
0x1e08   : >> { %v5108_v50 = vpop.permute.xlu0 %5107  ;;  %v5110_v18 = vpop.permute.xlu1 %5109 }
0x1e09   : >> { %v5147_v20 = vmul.f32 %v8210_v5, %v5108_v50  ;;  %v5148_v9 = vmul.f32 %v8210_v5, %v5110_v18 }
0x1e0b   : >> { %v5163_v40 = vadd.f32 %v5147_v20, %v5130_v16  ;;  %v5164_v22 = vadd.f32 %v5148_v9, %v5131_v17 }
0x1e0d   : >> { %5179 = vst [vmem:[#allocation3 + $0x20] sm:$0xff] %v5163_v40 }
0x1e0e   : >> { %5180 = vst [vmem:[#allocation3 + $0x10] sm:$0xff] %v5164_v22 }
0x1e10   : >> { %v5114_v56 = vpop.permute.xlu0 %5113  ;;  %v5116_v52 = vpop.permute.xlu1 %5115 }
0x1e11   : >> { %v5150_v27 = vmul.f32 %v8210_v5, %v5114_v56  ;;  %v5151_v57 = vmul.f32 %v8210_v5, %v5116_v52 }
0x1e13   : >> { %v5166_v58 = vadd.f32 %v5150_v27, %v5133_v41  ;;  %v5167_v60 = vadd.f32 %v5151_v57, %v5134_v29 }
0x1e15   : >> { %5182 = vst [vmem:[#allocation3 + $0x60] sm:$0xff] %v5166_v58 }
0x1e16   : >> { %5183 = vst [vmem:[#allocation3 + $0x70] sm:$0xff] %v5167_v60 }
0x1e18   : >> { %v5120_v54 = vpop.permute.xlu0 %5119 }
0x1e19   : >> { %v5153_v7 = vmul.f32 %v8210_v5, %v5120_v54 }
0x1e1b   : >> { %v5169_v47 = vadd.f32 %v5153_v7, %v5136_v19 }
0x1e1d   : >> { %5185 = vst [vmem:[#allocation3 + $0x28] sm:$0xff] %v5169_v47 }
0x1e1e PF: >> { %p8525_p3 = scmp.lt.s32.totalorder %s6023_s15, 21 }
0x1e1f   : >> { %s6085_s8 = smov (!%p8525_p3), 107   ;;  %s5189_s9 = sadd.s32 (!%p8525_p3), 21, %s6530_s26 }
0x1e20   : >> { %5188 = sbr.rel (%p8525_p3) target bundleno = 7877 (0x1ec5), region = 243  ;;  %s5190_s10 = sld [smem:[#allocation6 + %s5189_s9]] (!%p8525_p3) }
0x1e25   : >> { %5191 = vrot.lane.b32.xlu0 %v6523_v23, %s6085_s8  ;;  %5195 = vrot.lane.b32.xlu1 %v6527_v33, %s6085_s8  ;;  %v5227_v62 = vld [vmem:[#allocation3 + $0x50] sm:$0xff]  ;;  %v5228_v0 = vld [vmem:[#allocation3 + $0x68] sm:$0xff]  ;;  %v5231_v8 = vld [vmem:[#allocation3 + $0x40] sm:$0xff] }
0x1e26   : >> { %5199 = vrot.lane.b32.xlu2 %v6534_v11, %s6085_s8  ;;  %v8247_v5 = vstv %s5190_s10  ;;  %v5223_v50 = vld [vmem:[#allocation3 + $0x30] sm:$0xff]  ;;  %v5225_v18 = vld [vmem:[#allocation3 + $0x58] sm:$0xff]  ;;  %v5224_v57 = vld [vmem:[#allocation3] sm:$0xff] }
0x1e27   : >> { %v5234_v22 = vld [vmem:[#allocation3 + $0x38] sm:$0xff] }
0x1e28   : >> { %v5226_v60 = vld [vmem:[#allocation3 + $0x18] sm:$0xff] }
0x1e29   : >> { %v5237_v47 = vld [vmem:[#allocation3 + $0x78] sm:$0xff] }
0x1e2d   : >> { %5193 = vrot.lane.b32.xlu0 %v6525_v32, %s6085_s8  ;;  %5197 = vrot.lane.b32.xlu1 %v6532_v24, %s6085_s8 }
0x1e2e   : >> { %5201 = vrot.lane.b32.xlu2 %v6536_v36, %s6085_s8 }
0x1e35   : >> { %5203 = vrot.lane.b32.xlu0 %v6538_v37, %s6085_s8  ;;  %5205 = vrot.lane.b32.xlu1 %v6540_v38, %s6085_s8 }
0x1e36   : >> { %5207 = vrot.lane.b32.xlu2 %v6542_v39, %s6085_s8 }
0x1e3d   : >> { %5209 = vrot.lane.b32.xlu0 %v6544_v25, %s6085_s8  ;;  %5211 = vrot.lane.b32.xlu1 %v6546_v28, %s6085_s8 }
0x1e3e   : >> { %5213 = vrot.lane.b32.xlu2 %v6548_v42, %s6085_s8 }
0x1e45   : >> { %5215 = vrot.lane.b32.xlu0 %v6550_v44, %s6085_s8  ;;  %5217 = vrot.lane.b32.xlu1 %v6552_v48, %s6085_s8 }
0x1e46   : >> { %5219 = vrot.lane.b32.xlu2 %v6554_v49, %s6085_s8 }
0x1e4d   : >> { %5221 = vrot.lane.b32.xlu0 %v6556_v26, %s6085_s8 }
0x1e80   : >> { %v5200_v30 = vpop.permute.xlu2 %5199 }
0x1e81   : >> { %v5244_v63 = vmul.f32 %v8247_v5, %v5200_v30 }
0x1e83   : >> { %v5260_v2 = vadd.f32 %v5244_v63, %v5227_v62 }
0x1e85   : >> { %5276 = vst [vmem:[#allocation3 + $0x50] sm:$0xff] %v5260_v2 }
0x1e88   : >> { %v5202_v3 = vpop.permute.xlu2 %5201 }
0x1e89   : >> { %v5245_v10 = vmul.f32 %v8247_v5, %v5202_v3  ;;  %v5229_v3 = vld [vmem:[#allocation3 + $0x8] sm:$0xff] }
0x1e8b   : >> { %v5261_v13 = vadd.f32 %v5245_v10, %v5228_v0 }
0x1e8d   : >> { %5277 = vst [vmem:[#allocation3 + $0x68] sm:$0xff] %v5261_v13  ;;  %v5230_v13 = vld [vmem:[#allocation3 + $0x48] sm:$0xff] }
0x1e90   : >> { %v5208_v35 = vpop.permute.xlu2 %5207 }
0x1e91   : >> { %v5248_v15 = vmul.f32 %v8247_v5, %v5208_v35 }
0x1e93   : >> { %v5264_v16 = vadd.f32 %v5248_v15, %v5231_v8 }
0x1e95   : >> { %5280 = vst [vmem:[#allocation3 + $0x40] sm:$0xff] %v5264_v16 }
0x1e97   : >> { %v5192_v17 = vpop.permute.xlu0 %5191  ;;  %v5196_v20 = vpop.permute.xlu1 %5195 }
0x1e98   : >> { %v5240_v9 = vmul.f32 %v8247_v5, %v5192_v17  ;;  %v5242_v40 = vmul.f32 %v8247_v5, %v5196_v20  ;;  %v5214_v41 = vpop.permute.xlu2 %5213  ;;  %v5232_v17 = vld [vmem:[#allocation3 + $0x20] sm:$0xff]  ;;  %v5233_v20 = vld [vmem:[#allocation3 + $0x10] sm:$0xff] }
0x1e99   : >> { %v5251_v56 = vmul.f32 %v8247_v5, %v5214_v41 }
0x1e9a   : >> { %v5256_v29 = vadd.f32 %v5240_v9, %v5223_v50  ;;  %v5258_v52 = vadd.f32 %v5242_v40, %v5225_v18 }
0x1e9b   : >> { %v5267_v27 = vadd.f32 %v5251_v56, %v5234_v22 }
0x1e9c   : >> { %5272 = vst [vmem:[#allocation3 + $0x30] sm:$0xff] %v5256_v29  ;;  %v5235_v29 = vld [vmem:[#allocation3 + $0x60] sm:$0xff] }
0x1e9d   : >> { %5274 = vst [vmem:[#allocation3 + $0x58] sm:$0xff] %v5258_v52 }
0x1e9e   : >> { %5283 = vst [vmem:[#allocation3 + $0x38] sm:$0xff] %v5267_v27  ;;  %v5236_v27 = vld [vmem:[#allocation3 + $0x70] sm:$0xff] }
0x1e9f   : >> { %v5194_v58 = vpop.permute.xlu0 %5193  ;;  %v5198_v19 = vpop.permute.xlu1 %5197 }
0x1ea0   : >> { %v5241_v54 = vmul.f32 %v8247_v5, %v5194_v58  ;;  %v5243_v7 = vmul.f32 %v8247_v5, %v5198_v19  ;;  %v5220_v62 = vpop.permute.xlu2 %5219 }
0x1ea1   : >> { %v5254_v30 = vmul.f32 %v8247_v5, %v5220_v62 }
0x1ea2   : >> { %v5257_v63 = vadd.f32 %v5241_v54, %v5224_v57  ;;  %v5259_v2 = vadd.f32 %v5243_v7, %v5226_v60  ;;  %v5238_v7 = vld [vmem:[#allocation3 + $0x28] sm:$0xff] }
0x1ea3   : >> { %v5270_v0 = vadd.f32 %v5254_v30, %v5237_v47 }
0x1ea4   : >> { %5273 = vst [vmem:[#allocation3] sm:$0xff] %v5257_v63 }
0x1ea5   : >> { %5275 = vst [vmem:[#allocation3 + $0x18] sm:$0xff] %v5259_v2 }
0x1ea6   : >> { %5286 = vst [vmem:[#allocation3 + $0x78] sm:$0xff] %v5270_v0 }
0x1ea7   : >> { %v5204_v10 = vpop.permute.xlu0 %5203  ;;  %v5206_v8 = vpop.permute.xlu1 %5205 }
0x1ea8   : >> { %v5246_v35 = vmul.f32 %v8247_v5, %v5204_v10  ;;  %v5247_v15 = vmul.f32 %v8247_v5, %v5206_v8 }
0x1eaa   : >> { %v5262_v16 = vadd.f32 %v5246_v35, %v5229_v3  ;;  %v5263_v50 = vadd.f32 %v5247_v15, %v5230_v13 }
0x1eac   : >> { %5278 = vst [vmem:[#allocation3 + $0x8] sm:$0xff] %v5262_v16 }
0x1ead   : >> { %5279 = vst [vmem:[#allocation3 + $0x48] sm:$0xff] %v5263_v50 }
0x1eaf   : >> { %v5210_v18 = vpop.permute.xlu0 %5209  ;;  %v5212_v9 = vpop.permute.xlu1 %5211 }
0x1eb0   : >> { %v5249_v40 = vmul.f32 %v8247_v5, %v5210_v18  ;;  %v5250_v22 = vmul.f32 %v8247_v5, %v5212_v9 }
0x1eb2   : >> { %v5265_v41 = vadd.f32 %v5249_v40, %v5232_v17  ;;  %v5266_v56 = vadd.f32 %v5250_v22, %v5233_v20 }
0x1eb4   : >> { %5281 = vst [vmem:[#allocation3 + $0x20] sm:$0xff] %v5265_v41 }
0x1eb5   : >> { %5282 = vst [vmem:[#allocation3 + $0x10] sm:$0xff] %v5266_v56 }
0x1eb7   : >> { %v5216_v52 = vpop.permute.xlu0 %5215  ;;  %v5218_v57 = vpop.permute.xlu1 %5217 }
0x1eb8   : >> { %v5252_v58 = vmul.f32 %v8247_v5, %v5216_v52  ;;  %v5253_v60 = vmul.f32 %v8247_v5, %v5218_v57 }
0x1eba   : >> { %v5268_v19 = vadd.f32 %v5252_v58, %v5235_v29  ;;  %v5269_v54 = vadd.f32 %v5253_v60, %v5236_v27 }
0x1ebc   : >> { %5284 = vst [vmem:[#allocation3 + $0x60] sm:$0xff] %v5268_v19 }
0x1ebd   : >> { %5285 = vst [vmem:[#allocation3 + $0x70] sm:$0xff] %v5269_v54 }
0x1ebf   : >> { %v5222_v47 = vpop.permute.xlu0 %5221 }
0x1ec0   : >> { %v5255_v62 = vmul.f32 %v8247_v5, %v5222_v47 }
0x1ec2   : >> { %v5271_v30 = vadd.f32 %v5255_v62, %v5238_v7 }
0x1ec4   : >> { %5287 = vst [vmem:[#allocation3 + $0x28] sm:$0xff] %v5271_v30 }
0x1ec5 PF: >> { %p8526_p4 = scmp.lt.s32.totalorder %s6023_s15, 22 }
0x1ec6   : >> { %s6086_s11 = smov (!%p8526_p4), 106   ;;  %s5291_s12 = sadd.s32 (!%p8526_p4), 22, %s6530_s26 }
0x1ec7   : >> { %5290 = sbr.rel (%p8526_p4) target bundleno = 8044 (0x1f6c), region = 247  ;;  %s5292_s13 = sld [smem:[#allocation6 + %s5291_s12]] (!%p8526_p4) }
0x1ecc   : >> { %5293 = vrot.lane.b32.xlu0 %v6523_v23, %s6086_s11  ;;  %5297 = vrot.lane.b32.xlu1 %v6527_v33, %s6086_s11  ;;  %v5329_v63 = vld [vmem:[#allocation3 + $0x50] sm:$0xff]  ;;  %v5330_v10 = vld [vmem:[#allocation3 + $0x68] sm:$0xff]  ;;  %v5333_v15 = vld [vmem:[#allocation3 + $0x40] sm:$0xff] }
0x1ecd   : >> { %5301 = vrot.lane.b32.xlu2 %v6534_v11, %s6086_s11  ;;  %v8284_v5 = vstv %s5292_s13  ;;  %v5325_v18 = vld [vmem:[#allocation3 + $0x30] sm:$0xff]  ;;  %v5327_v9 = vld [vmem:[#allocation3 + $0x58] sm:$0xff]  ;;  %v5326_v60 = vld [vmem:[#allocation3] sm:$0xff] }
0x1ece   : >> { %v5336_v56 = vld [vmem:[#allocation3 + $0x38] sm:$0xff] }
0x1ecf   : >> { %v5328_v54 = vld [vmem:[#allocation3 + $0x18] sm:$0xff] }
0x1ed0   : >> { %v5339_v30 = vld [vmem:[#allocation3 + $0x78] sm:$0xff] }
0x1ed4   : >> { %5295 = vrot.lane.b32.xlu0 %v6525_v32, %s6086_s11  ;;  %5299 = vrot.lane.b32.xlu1 %v6532_v24, %s6086_s11 }
0x1ed5   : >> { %5303 = vrot.lane.b32.xlu2 %v6536_v36, %s6086_s11 }
0x1edc   : >> { %5305 = vrot.lane.b32.xlu0 %v6538_v37, %s6086_s11  ;;  %5307 = vrot.lane.b32.xlu1 %v6540_v38, %s6086_s11 }
0x1edd   : >> { %5309 = vrot.lane.b32.xlu2 %v6542_v39, %s6086_s11 }
0x1ee4   : >> { %5311 = vrot.lane.b32.xlu0 %v6544_v25, %s6086_s11  ;;  %5313 = vrot.lane.b32.xlu1 %v6546_v28, %s6086_s11 }
0x1ee5   : >> { %5315 = vrot.lane.b32.xlu2 %v6548_v42, %s6086_s11 }
0x1eec   : >> { %5317 = vrot.lane.b32.xlu0 %v6550_v44, %s6086_s11  ;;  %5319 = vrot.lane.b32.xlu1 %v6552_v48, %s6086_s11 }
0x1eed   : >> { %5321 = vrot.lane.b32.xlu2 %v6554_v49, %s6086_s11 }
0x1ef4   : >> { %5323 = vrot.lane.b32.xlu0 %v6556_v26, %s6086_s11 }
0x1f27   : >> { %v5302_v2 = vpop.permute.xlu2 %5301 }
0x1f28   : >> { %v5346_v0 = vmul.f32 %v8284_v5, %v5302_v2 }
0x1f2a   : >> { %v5362_v3 = vadd.f32 %v5346_v0, %v5329_v63 }
0x1f2c   : >> { %5378 = vst [vmem:[#allocation3 + $0x50] sm:$0xff] %v5362_v3 }
0x1f2f   : >> { %v5304_v13 = vpop.permute.xlu2 %5303 }
0x1f30   : >> { %v5347_v8 = vmul.f32 %v8284_v5, %v5304_v13  ;;  %v5331_v13 = vld [vmem:[#allocation3 + $0x8] sm:$0xff] }
0x1f32   : >> { %v5363_v35 = vadd.f32 %v5347_v8, %v5330_v10 }
0x1f34   : >> { %5379 = vst [vmem:[#allocation3 + $0x68] sm:$0xff] %v5363_v35  ;;  %v5332_v35 = vld [vmem:[#allocation3 + $0x48] sm:$0xff] }
0x1f37   : >> { %v5310_v16 = vpop.permute.xlu2 %5309 }
0x1f38   : >> { %v5350_v50 = vmul.f32 %v8284_v5, %v5310_v16 }
0x1f3a   : >> { %v5366_v17 = vadd.f32 %v5350_v50, %v5333_v15 }
0x1f3c   : >> { %5382 = vst [vmem:[#allocation3 + $0x40] sm:$0xff] %v5366_v17 }
0x1f3e   : >> { %v5294_v20 = vpop.permute.xlu0 %5293  ;;  %v5298_v40 = vpop.permute.xlu1 %5297 }
0x1f3f   : >> { %v5342_v22 = vmul.f32 %v8284_v5, %v5294_v20  ;;  %v5344_v41 = vmul.f32 %v8284_v5, %v5298_v40  ;;  %v5316_v29 = vpop.permute.xlu2 %5315  ;;  %v5334_v20 = vld [vmem:[#allocation3 + $0x20] sm:$0xff]  ;;  %v5335_v40 = vld [vmem:[#allocation3 + $0x10] sm:$0xff] }
0x1f40   : >> { %v5353_v52 = vmul.f32 %v8284_v5, %v5316_v29 }
0x1f41   : >> { %v5358_v27 = vadd.f32 %v5342_v22, %v5325_v18  ;;  %v5360_v57 = vadd.f32 %v5344_v41, %v5327_v9 }
0x1f42   : >> { %v5369_v58 = vadd.f32 %v5353_v52, %v5336_v56 }
0x1f43   : >> { %5374 = vst [vmem:[#allocation3 + $0x30] sm:$0xff] %v5358_v27  ;;  %v5337_v27 = vld [vmem:[#allocation3 + $0x60] sm:$0xff] }
0x1f44   : >> { %5376 = vst [vmem:[#allocation3 + $0x58] sm:$0xff] %v5360_v57 }
0x1f45   : >> { %5385 = vst [vmem:[#allocation3 + $0x38] sm:$0xff] %v5369_v58  ;;  %v5338_v58 = vld [vmem:[#allocation3 + $0x70] sm:$0xff] }
0x1f46   : >> { %v5296_v19 = vpop.permute.xlu0 %5295  ;;  %v5300_v7 = vpop.permute.xlu1 %5299 }
0x1f47   : >> { %v5343_v47 = vmul.f32 %v8284_v5, %v5296_v19  ;;  %v5345_v62 = vmul.f32 %v8284_v5, %v5300_v7  ;;  %v5322_v63 = vpop.permute.xlu2 %5321 }
0x1f48   : >> { %v5356_v2 = vmul.f32 %v8284_v5, %v5322_v63 }
0x1f49   : >> { %v5359_v0 = vadd.f32 %v5343_v47, %v5326_v60  ;;  %v5361_v3 = vadd.f32 %v5345_v62, %v5328_v54  ;;  %v5340_v62 = vld [vmem:[#allocation3 + $0x28] sm:$0xff] }
0x1f4a   : >> { %v5372_v10 = vadd.f32 %v5356_v2, %v5339_v30 }
0x1f4b   : >> { %5375 = vst [vmem:[#allocation3] sm:$0xff] %v5359_v0 }
0x1f4c   : >> { %5377 = vst [vmem:[#allocation3 + $0x18] sm:$0xff] %v5361_v3 }
0x1f4d   : >> { %5388 = vst [vmem:[#allocation3 + $0x78] sm:$0xff] %v5372_v10 }
0x1f4e   : >> { %v5306_v8 = vpop.permute.xlu0 %5305  ;;  %v5308_v15 = vpop.permute.xlu1 %5307 }
0x1f4f   : >> { %v5348_v16 = vmul.f32 %v8284_v5, %v5306_v8  ;;  %v5349_v50 = vmul.f32 %v8284_v5, %v5308_v15 }
0x1f51   : >> { %v5364_v17 = vadd.f32 %v5348_v16, %v5331_v13  ;;  %v5365_v18 = vadd.f32 %v5349_v50, %v5332_v35 }
0x1f53   : >> { %5380 = vst [vmem:[#allocation3 + $0x8] sm:$0xff] %v5364_v17 }
0x1f54   : >> { %5381 = vst [vmem:[#allocation3 + $0x48] sm:$0xff] %v5365_v18 }
0x1f56   : >> { %v5312_v9 = vpop.permute.xlu0 %5311  ;;  %v5314_v22 = vpop.permute.xlu1 %5313 }
0x1f57   : >> { %v5351_v41 = vmul.f32 %v8284_v5, %v5312_v9  ;;  %v5352_v56 = vmul.f32 %v8284_v5, %v5314_v22 }
0x1f59   : >> { %v5367_v29 = vadd.f32 %v5351_v41, %v5334_v20  ;;  %v5368_v52 = vadd.f32 %v5352_v56, %v5335_v40 }
0x1f5b   : >> { %5383 = vst [vmem:[#allocation3 + $0x20] sm:$0xff] %v5367_v29 }
0x1f5c   : >> { %5384 = vst [vmem:[#allocation3 + $0x10] sm:$0xff] %v5368_v52 }
0x1f5e   : >> { %v5318_v57 = vpop.permute.xlu0 %5317  ;;  %v5320_v60 = vpop.permute.xlu1 %5319 }
0x1f5f   : >> { %v5354_v19 = vmul.f32 %v8284_v5, %v5318_v57  ;;  %v5355_v54 = vmul.f32 %v8284_v5, %v5320_v60 }
0x1f61   : >> { %v5370_v7 = vadd.f32 %v5354_v19, %v5337_v27  ;;  %v5371_v47 = vadd.f32 %v5355_v54, %v5338_v58 }
0x1f63   : >> { %5386 = vst [vmem:[#allocation3 + $0x60] sm:$0xff] %v5370_v7 }
0x1f64   : >> { %5387 = vst [vmem:[#allocation3 + $0x70] sm:$0xff] %v5371_v47 }
0x1f66   : >> { %v5324_v30 = vpop.permute.xlu0 %5323 }
0x1f67   : >> { %v5357_v63 = vmul.f32 %v8284_v5, %v5324_v30 }
0x1f69   : >> { %v5373_v2 = vadd.f32 %v5357_v63, %v5340_v62 }
0x1f6b   : >> { %5389 = vst [vmem:[#allocation3 + $0x28] sm:$0xff] %v5373_v2 }
0x1f6c PF: >> { %p8527_p5 = scmp.lt.s32.totalorder %s6023_s15, 23 }
0x1f6d   : >> { %s6087_s21 = smov (!%p8527_p5), 105   ;;  %s5393_s22 = sadd.s32 (!%p8527_p5), 23, %s6530_s26 }
0x1f6e   : >> { %5392 = sbr.rel (%p8527_p5) target bundleno = 8211 (0x2013), region = 251  ;;  %s5394_s23 = sld [smem:[#allocation6 + %s5393_s22]] (!%p8527_p5) }
0x1f73   : >> { %5395 = vrot.lane.b32.xlu0 %v6523_v23, %s6087_s21  ;;  %5399 = vrot.lane.b32.xlu1 %v6527_v33, %s6087_s21  ;;  %v5431_v0 = vld [vmem:[#allocation3 + $0x50] sm:$0xff]  ;;  %v5432_v8 = vld [vmem:[#allocation3 + $0x68] sm:$0xff]  ;;  %v5435_v50 = vld [vmem:[#allocation3 + $0x40] sm:$0xff] }
0x1f74   : >> { %5403 = vrot.lane.b32.xlu2 %v6534_v11, %s6087_s21  ;;  %v8321_v5 = vstv %s5394_s23  ;;  %v5427_v9 = vld [vmem:[#allocation3 + $0x30] sm:$0xff]  ;;  %v5429_v22 = vld [vmem:[#allocation3 + $0x58] sm:$0xff]  ;;  %v5428_v54 = vld [vmem:[#allocation3] sm:$0xff] }
0x1f75   : >> { %v5438_v52 = vld [vmem:[#allocation3 + $0x38] sm:$0xff] }
0x1f76   : >> { %v5430_v47 = vld [vmem:[#allocation3 + $0x18] sm:$0xff] }
0x1f77   : >> { %v5441_v2 = vld [vmem:[#allocation3 + $0x78] sm:$0xff] }
0x1f7b   : >> { %5397 = vrot.lane.b32.xlu0 %v6525_v32, %s6087_s21  ;;  %5401 = vrot.lane.b32.xlu1 %v6532_v24, %s6087_s21 }
0x1f7c   : >> { %5405 = vrot.lane.b32.xlu2 %v6536_v36, %s6087_s21 }
0x1f83   : >> { %5407 = vrot.lane.b32.xlu0 %v6538_v37, %s6087_s21  ;;  %5409 = vrot.lane.b32.xlu1 %v6540_v38, %s6087_s21 }
0x1f84   : >> { %5411 = vrot.lane.b32.xlu2 %v6542_v39, %s6087_s21 }
0x1f8b   : >> { %5413 = vrot.lane.b32.xlu0 %v6544_v25, %s6087_s21  ;;  %5415 = vrot.lane.b32.xlu1 %v6546_v28, %s6087_s21 }
0x1f8c   : >> { %5417 = vrot.lane.b32.xlu2 %v6548_v42, %s6087_s21 }
0x1f93   : >> { %5419 = vrot.lane.b32.xlu0 %v6550_v44, %s6087_s21  ;;  %5421 = vrot.lane.b32.xlu1 %v6552_v48, %s6087_s21 }
0x1f94   : >> { %5423 = vrot.lane.b32.xlu2 %v6554_v49, %s6087_s21 }
0x1f9b   : >> { %5425 = vrot.lane.b32.xlu0 %v6556_v26, %s6087_s21 }
0x1fce   : >> { %v5404_v3 = vpop.permute.xlu2 %5403 }
0x1fcf   : >> { %v5448_v10 = vmul.f32 %v8321_v5, %v5404_v3 }
0x1fd1   : >> { %v5464_v13 = vadd.f32 %v5448_v10, %v5431_v0 }
0x1fd3   : >> { %5480 = vst [vmem:[#allocation3 + $0x50] sm:$0xff] %v5464_v13 }
0x1fd6   : >> { %v5406_v35 = vpop.permute.xlu2 %5405 }
0x1fd7   : >> { %v5449_v15 = vmul.f32 %v8321_v5, %v5406_v35  ;;  %v5433_v35 = vld [vmem:[#allocation3 + $0x8] sm:$0xff] }
0x1fd9   : >> { %v5465_v16 = vadd.f32 %v5449_v15, %v5432_v8 }
0x1fdb   : >> { %5481 = vst [vmem:[#allocation3 + $0x68] sm:$0xff] %v5465_v16  ;;  %v5434_v16 = vld [vmem:[#allocation3 + $0x48] sm:$0xff] }
0x1fde   : >> { %v5412_v17 = vpop.permute.xlu2 %5411 }
0x1fdf   : >> { %v5452_v18 = vmul.f32 %v8321_v5, %v5412_v17 }
0x1fe1   : >> { %v5468_v20 = vadd.f32 %v5452_v18, %v5435_v50 }
0x1fe3   : >> { %5484 = vst [vmem:[#allocation3 + $0x40] sm:$0xff] %v5468_v20 }
0x1fe5   : >> { %v5396_v40 = vpop.permute.xlu0 %5395  ;;  %v5400_v41 = vpop.permute.xlu1 %5399 }
0x1fe6   : >> { %v5444_v56 = vmul.f32 %v8321_v5, %v5396_v40  ;;  %v5446_v29 = vmul.f32 %v8321_v5, %v5400_v41  ;;  %v5418_v27 = vpop.permute.xlu2 %5417  ;;  %v5436_v40 = vld [vmem:[#allocation3 + $0x20] sm:$0xff]  ;;  %v5437_v41 = vld [vmem:[#allocation3 + $0x10] sm:$0xff] }
0x1fe7   : >> { %v5455_v57 = vmul.f32 %v8321_v5, %v5418_v27 }
0x1fe8   : >> { %v5460_v58 = vadd.f32 %v5444_v56, %v5427_v9  ;;  %v5462_v60 = vadd.f32 %v5446_v29, %v5429_v22 }
0x1fe9   : >> { %v5471_v19 = vadd.f32 %v5455_v57, %v5438_v52 }
0x1fea   : >> { %5476 = vst [vmem:[#allocation3 + $0x30] sm:$0xff] %v5460_v58  ;;  %v5439_v58 = vld [vmem:[#allocation3 + $0x60] sm:$0xff] }
0x1feb   : >> { %5478 = vst [vmem:[#allocation3 + $0x58] sm:$0xff] %v5462_v60 }
0x1fec   : >> { %5487 = vst [vmem:[#allocation3 + $0x38] sm:$0xff] %v5471_v19  ;;  %v5440_v19 = vld [vmem:[#allocation3 + $0x70] sm:$0xff] }
0x1fed   : >> { %v5398_v7 = vpop.permute.xlu0 %5397  ;;  %v5402_v62 = vpop.permute.xlu1 %5401 }
0x1fee   : >> { %v5445_v30 = vmul.f32 %v8321_v5, %v5398_v7  ;;  %v5447_v63 = vmul.f32 %v8321_v5, %v5402_v62  ;;  %v5424_v0 = vpop.permute.xlu2 %5423 }
0x1fef   : >> { %v5458_v3 = vmul.f32 %v8321_v5, %v5424_v0 }
0x1ff0   : >> { %v5461_v10 = vadd.f32 %v5445_v30, %v5428_v54  ;;  %v5463_v13 = vadd.f32 %v5447_v63, %v5430_v47  ;;  %v5442_v63 = vld [vmem:[#allocation3 + $0x28] sm:$0xff] }
0x1ff1   : >> { %v5474_v8 = vadd.f32 %v5458_v3, %v5441_v2 }
0x1ff2   : >> { %5477 = vst [vmem:[#allocation3] sm:$0xff] %v5461_v10 }
0x1ff3   : >> { %5479 = vst [vmem:[#allocation3 + $0x18] sm:$0xff] %v5463_v13 }
0x1ff4   : >> { %5490 = vst [vmem:[#allocation3 + $0x78] sm:$0xff] %v5474_v8 }
0x1ff5   : >> { %v5408_v15 = vpop.permute.xlu0 %5407  ;;  %v5410_v50 = vpop.permute.xlu1 %5409 }
0x1ff6   : >> { %v5450_v17 = vmul.f32 %v8321_v5, %v5408_v15  ;;  %v5451_v18 = vmul.f32 %v8321_v5, %v5410_v50 }
0x1ff8   : >> { %v5466_v20 = vadd.f32 %v5450_v17, %v5433_v35  ;;  %v5467_v9 = vadd.f32 %v5451_v18, %v5434_v16 }
0x1ffa   : >> { %5482 = vst [vmem:[#allocation3 + $0x8] sm:$0xff] %v5466_v20 }
0x1ffb   : >> { %5483 = vst [vmem:[#allocation3 + $0x48] sm:$0xff] %v5467_v9 }
0x1ffd   : >> { %v5414_v22 = vpop.permute.xlu0 %5413  ;;  %v5416_v56 = vpop.permute.xlu1 %5415 }
0x1ffe   : >> { %v5453_v29 = vmul.f32 %v8321_v5, %v5414_v22  ;;  %v5454_v52 = vmul.f32 %v8321_v5, %v5416_v56 }
0x2000   : >> { %v5469_v27 = vadd.f32 %v5453_v29, %v5436_v40  ;;  %v5470_v57 = vadd.f32 %v5454_v52, %v5437_v41 }
0x2002   : >> { %5485 = vst [vmem:[#allocation3 + $0x20] sm:$0xff] %v5469_v27 }
0x2003   : >> { %5486 = vst [vmem:[#allocation3 + $0x10] sm:$0xff] %v5470_v57 }
0x2005   : >> { %v5420_v60 = vpop.permute.xlu0 %5419  ;;  %v5422_v54 = vpop.permute.xlu1 %5421 }
0x2006   : >> { %v5456_v7 = vmul.f32 %v8321_v5, %v5420_v60  ;;  %v5457_v47 = vmul.f32 %v8321_v5, %v5422_v54 }
0x2008   : >> { %v5472_v62 = vadd.f32 %v5456_v7, %v5439_v58  ;;  %v5473_v30 = vadd.f32 %v5457_v47, %v5440_v19 }
0x200a   : >> { %5488 = vst [vmem:[#allocation3 + $0x60] sm:$0xff] %v5472_v62 }
0x200b   : >> { %5489 = vst [vmem:[#allocation3 + $0x70] sm:$0xff] %v5473_v30 }
0x200d   : >> { %v5426_v2 = vpop.permute.xlu0 %5425 }
0x200e   : >> { %v5459_v0 = vmul.f32 %v8321_v5, %v5426_v2 }
0x2010   : >> { %v5475_v3 = vadd.f32 %v5459_v0, %v5442_v63 }
0x2012   : >> { %5491 = vst [vmem:[#allocation3 + $0x28] sm:$0xff] %v5475_v3 }
0x2013 PF: >> { %p8528_p6 = scmp.lt.s32.totalorder %s6023_s15, 24 }
0x2014   : >> { %s6088_s24 = smov (!%p8528_p6), 104   ;;  %s5495_s25 = sadd.s32 (!%p8528_p6), 24, %s6530_s26 }
0x2015   : >> { %5494 = sbr.rel (%p8528_p6) target bundleno = 8378 (0x20ba), region = 255  ;;  %s5496_s27 = sld [smem:[#allocation6 + %s5495_s25]] (!%p8528_p6) }
0x201a   : >> { %5497 = vrot.lane.b32.xlu0 %v6523_v23, %s6088_s24  ;;  %5501 = vrot.lane.b32.xlu1 %v6527_v33, %s6088_s24  ;;  %v5540_v8 = vld [vmem:[#allocation3 + $0x38] sm:$0xff]  ;;  %v5530_v18 = vld [vmem:[#allocation3] sm:$0xff]  ;;  %v5535_v60 = vld [vmem:[#allocation3 + $0x8] sm:$0xff] }
0x201b   : >> { %5505 = vrot.lane.b32.xlu2 %v6534_v11, %s6088_s24  ;;  %v8358_v23 = vstv %s5496_s27  ;;  %v5532_v9 = vld [vmem:[#allocation3 + $0x18] sm:$0xff]  ;;  %v5536_v54 = vld [vmem:[#allocation3 + $0x48] sm:$0xff]  ;;  %v5538_v2 = vld [vmem:[#allocation3 + $0x20] sm:$0xff] }
0x201c   : >> { %v5543_v56 = vld [vmem:[#allocation3 + $0x78] sm:$0xff]  ;;  %v5539_v3 = vld [vmem:[#allocation3 + $0x10] sm:$0xff] }
0x2022   : >> { %5499 = vrot.lane.b32.xlu0 %v6525_v32, %s6088_s24  ;;  %5503 = vrot.lane.b32.xlu1 %v6532_v24, %s6088_s24  ;;  %v5533_v32 = vld [vmem:[#allocation3 + $0x50] sm:$0xff] }
0x2023   : >> { %5507 = vrot.lane.b32.xlu2 %v6536_v36, %s6088_s24  ;;  %v5534_v36 = vld [vmem:[#allocation3 + $0x68] sm:$0xff] }
0x202a   : >> { %5509 = vrot.lane.b32.xlu0 %v6538_v37, %s6088_s24  ;;  %5511 = vrot.lane.b32.xlu1 %v6540_v38, %s6088_s24 }
0x202b   : >> { %5513 = vrot.lane.b32.xlu2 %v6542_v39, %s6088_s24 }
0x2032   : >> { %5515 = vrot.lane.b32.xlu0 %v6544_v25, %s6088_s24  ;;  %5517 = vrot.lane.b32.xlu1 %v6546_v28, %s6088_s24  ;;  %v5537_v25 = vld [vmem:[#allocation3 + $0x40] sm:$0xff] }
0x2033   : >> { %5519 = vrot.lane.b32.xlu2 %v6548_v42, %s6088_s24 }
0x203a   : >> { %5521 = vrot.lane.b32.xlu0 %v6550_v44, %s6088_s24  ;;  %5523 = vrot.lane.b32.xlu1 %v6552_v48, %s6088_s24  ;;  %v5529_v48 = vld [vmem:[#allocation3 + $0x30] sm:$0xff] }
0x203b   : >> { %5525 = vrot.lane.b32.xlu2 %v6554_v49, %s6088_s24 }
0x2042   : >> { %5527 = vrot.lane.b32.xlu0 %v6556_v26, %s6088_s24  ;;  %v5531_v26 = vld [vmem:[#allocation3 + $0x58] sm:$0xff] }
0x2075   : >> { %v5506_v33 = vpop.permute.xlu2 %5505 }
0x2076   : >> { %v5550_v24 = vmul.f32 %v8358_v23, %v5506_v33 }
0x2078   : >> { %v5566_v11 = vadd.f32 %v5550_v24, %v5533_v32 }
0x207a   : >> { %5582 = vst [vmem:[#allocation3 + $0x50] sm:$0xff] %v5566_v11 }
0x207d   : >> { %v5508_v37 = vpop.permute.xlu2 %5507 }
0x207e   : >> { %v5551_v38 = vmul.f32 %v8358_v23, %v5508_v37  ;;  %v5541_v37 = vld [vmem:[#allocation3 + $0x60] sm:$0xff] }
0x2080   : >> { %v5567_v39 = vadd.f32 %v5551_v38, %v5534_v36 }
0x2082   : >> { %5583 = vst [vmem:[#allocation3 + $0x68] sm:$0xff] %v5567_v39  ;;  %v5542_v39 = vld [vmem:[#allocation3 + $0x70] sm:$0xff] }
0x2085   : >> { %v5514_v28 = vpop.permute.xlu2 %5513 }
0x2086   : >> { %v5554_v42 = vmul.f32 %v8358_v23, %v5514_v28 }
0x2088   : >> { %v5570_v44 = vadd.f32 %v5554_v42, %v5537_v25 }
0x208a   : >> { %5586 = vst [vmem:[#allocation3 + $0x40] sm:$0xff] %v5570_v44 }
0x208c   : >> { %v5498_v49 = vpop.permute.xlu0 %5497  ;;  %v5502_v5 = vpop.permute.xlu1 %5501 }
0x208d   : >> { %v5546_v10 = vmul.f32 %v8358_v23, %v5498_v49  ;;  %v5548_v13 = vmul.f32 %v8358_v23, %v5502_v5  ;;  %v5520_v35 = vpop.permute.xlu2 %5519  ;;  %v5544_v49 = vld [vmem:[#allocation3 + $0x28] sm:$0xff] }
0x208e   : >> { %v5557_v15 = vmul.f32 %v8358_v23, %v5520_v35 }
0x208f   : >> { %v5562_v16 = vadd.f32 %v5546_v10, %v5529_v48  ;;  %v5564_v50 = vadd.f32 %v5548_v13, %v5531_v26 }
0x2090   : >> { %v5573_v17 = vadd.f32 %v5557_v15, %v5540_v8 }
0x2091   : >> { %5578 = vst [vmem:[#allocation3 + $0x30] sm:$0xff] %v5562_v16 }
0x2092   : >> { %5580 = vst [vmem:[#allocation3 + $0x58] sm:$0xff] %v5564_v50 }
0x2093   : >> { %5589 = vst [vmem:[#allocation3 + $0x38] sm:$0xff] %v5573_v17 }
0x2094   : >> { %v5500_v20 = vpop.permute.xlu0 %5499  ;;  %v5504_v40 = vpop.permute.xlu1 %5503 }
0x2095   : >> { %v5547_v22 = vmul.f32 %v8358_v23, %v5500_v20  ;;  %v5549_v41 = vmul.f32 %v8358_v23, %v5504_v40  ;;  %v5526_v29 = vpop.permute.xlu2 %5525 }
0x2096   : >> { %v5560_v52 = vmul.f32 %v8358_v23, %v5526_v29 }
0x2097   : >> { %v5563_v27 = vadd.f32 %v5547_v22, %v5530_v18  ;;  %v5565_v57 = vadd.f32 %v5549_v41, %v5532_v9 }
0x2098   : >> { %v5576_v58 = vadd.f32 %v5560_v52, %v5543_v56 }
0x2099   : >> { %5579 = vst [vmem:[#allocation3] sm:$0xff] %v5563_v27 }
0x209a   : >> { %5581 = vst [vmem:[#allocation3 + $0x18] sm:$0xff] %v5565_v57 }
0x209b   : >> { %5592 = vst [vmem:[#allocation3 + $0x78] sm:$0xff] %v5576_v58 }
0x209c   : >> { %v5510_v19 = vpop.permute.xlu0 %5509  ;;  %v5512_v7 = vpop.permute.xlu1 %5511 }
0x209d   : >> { %v5552_v47 = vmul.f32 %v8358_v23, %v5510_v19  ;;  %v5553_v62 = vmul.f32 %v8358_v23, %v5512_v7 }
0x209f   : >> { %v5568_v30 = vadd.f32 %v5552_v47, %v5535_v60  ;;  %v5569_v63 = vadd.f32 %v5553_v62, %v5536_v54 }
0x20a1   : >> { %5584 = vst [vmem:[#allocation3 + $0x8] sm:$0xff] %v5568_v30 }
0x20a2   : >> { %5585 = vst [vmem:[#allocation3 + $0x48] sm:$0xff] %v5569_v63 }
0x20a4   : >> { %v5516_v0 = vpop.permute.xlu0 %5515  ;;  %v5518_v32 = vpop.permute.xlu1 %5517 }
0x20a5   : >> { %v5555_v33 = vmul.f32 %v8358_v23, %v5516_v0  ;;  %v5556_v24 = vmul.f32 %v8358_v23, %v5518_v32 }
0x20a7   : >> { %v5571_v11 = vadd.f32 %v5555_v33, %v5538_v2  ;;  %v5572_v36 = vadd.f32 %v5556_v24, %v5539_v3 }
0x20a9   : >> { %5587 = vst [vmem:[#allocation3 + $0x20] sm:$0xff] %v5571_v11 }
0x20aa   : >> { %5588 = vst [vmem:[#allocation3 + $0x10] sm:$0xff] %v5572_v36 }
0x20ac   : >> { %v5522_v38 = vpop.permute.xlu0 %5521  ;;  %v5524_v25 = vpop.permute.xlu1 %5523 }
0x20ad   : >> { %v5558_v28 = vmul.f32 %v8358_v23, %v5522_v38  ;;  %v5559_v42 = vmul.f32 %v8358_v23, %v5524_v25 }
0x20af   : >> { %v5574_v44 = vadd.f32 %v5558_v28, %v5541_v37  ;;  %v5575_v48 = vadd.f32 %v5559_v42, %v5542_v39 }
0x20b1   : >> { %5590 = vst [vmem:[#allocation3 + $0x60] sm:$0xff] %v5574_v44 }
0x20b2   : >> { %5591 = vst [vmem:[#allocation3 + $0x70] sm:$0xff] %v5575_v48 }
0x20b4   : >> { %v5528_v26 = vpop.permute.xlu0 %5527 }
0x20b5   : >> { %v5561_v5 = vmul.f32 %v8358_v23, %v5528_v26 }
0x20b7   : >> { %v5577_v10 = vadd.f32 %v5561_v5, %v5544_v49 }
0x20b9   : >> { %5593 = vst [vmem:[#allocation3 + $0x28] sm:$0xff] %v5577_v10 }
0x20ba PF: >> { %s578_s20 = sadd.s32 1, %s6035_s20  }
0x20bb   : >> { %p577_p7 = scmp.ge.s32.totalorder %s578_s20, %s6510_s18 }
0x20bd   : > { %580 = sbr.rel (!%p577_p7) target bundleno = 358 (0x166), region = 291 }
0x20c2 PF: > { %v5594_v13 = vld [vmem:[%s8505_s4] sm:$0xff]  ;;  %v5610_v8 = vld [vmem:[#allocation3 + $0x30] sm:$0xff]  ;;  %v5595_v23 = vld [vmem:[%s8505_s4 + $0x8] sm:$0xff] }
0x20c3   : > { %v5626_v35 = vmul.f32 %v5610_v8, %v6431_v45  ;;  %v5611_v15 = vld [vmem:[#allocation3] sm:$0xff]  ;;  %v5596_v16 = vld [vmem:[%s8505_s4 + $0x10] sm:$0xff]  ;;  %v5612_v50 = vld [vmem:[#allocation3 + $0x58] sm:$0xff] }
0x20c4   : > { %v5627_v17 = vmul.f32 %v5611_v15, %v6433_v46  ;;  %v5628_v18 = vmul.f32 %v5612_v50, %v6439_v53  ;;  %v5597_v20 = vld [vmem:[%s8505_s4 + $0x18] sm:$0xff]  ;;  %v5598_v40 = vld [vmem:[%s8505_s4 + $0x20] sm:$0xff]  ;;  %v5614_v41 = vld [vmem:[#allocation3 + $0x50] sm:$0xff] }
0x20c5   : > { %v5613_v9 = vld [vmem:[#allocation3 + $0x18] sm:$0xff]  ;;  %v5642_v45 = vadd.f32 %v5626_v35, %v5594_v13  ;;  %v5599_v56 = vld [vmem:[%s8505_s4 + $0x28] sm:$0xff]  ;;  %v5630_v52 = vmul.f32 %v5614_v41, %v6451_v4  ;;  %v5600_v57 = vld [vmem:[%s8505_s4 + $0x30] sm:$0xff] }
0x20c6   : > { %v5629_v22 = vmul.f32 %v5613_v9, %v6444_v61  ;;  %v5615_v46 = vld [vmem:[#allocation3 + $0x68] sm:$0xff]  ;;  %v5643_v29 = vadd.f32 %v5627_v17, %v5595_v23  ;;  %v5644_v53 = vadd.f32 %v5628_v18, %v5596_v16  ;;  %v5601_v19 = vld [vmem:[%s8505_s4 + $0x38] sm:$0xff]  ;;  %v5618_v4 = vld [vmem:[#allocation3 + $0x40] sm:$0xff] }
0x20c7   : > { %v5631_v27 = vmul.f32 %v5615_v46, %v6457_v14  ;;  %v5616_v58 = vld [vmem:[#allocation3 + $0x8] sm:$0xff]  ;;  %5658 = vst [vmem:[%s8505_s4] sm:$0xff] %v5642_v45  ;;  %v5646_v14 = vadd.f32 %v5630_v52, %v5598_v40  ;;  %v5602_v62 = vld [vmem:[%s8505_s4 + $0x40] sm:$0xff]  ;;  %v5620_v3 = vld [vmem:[#allocation3 + $0x10] sm:$0xff] }
0x20c8   : > { %v5645_v61 = vadd.f32 %v5629_v22, %v5597_v20  ;;  %v5632_v60 = vmul.f32 %v5616_v58, %v6463_v21  ;;  %v5617_v54 = vld [vmem:[#allocation3 + $0x48] sm:$0xff]  ;;  %5659 = vst [vmem:[%s8505_s4 + $0x8] sm:$0xff] %v5643_v29  ;;  %v5634_v21 = vmul.f32 %v5618_v4, %v6476_v43  ;;  %v5619_v30 = vld [vmem:[#allocation3 + $0x20] sm:$0xff]  ;;  %v5604_v43 = vld [vmem:[%s8505_s4 + $0x50] sm:$0xff]  ;;  %v5636_v33 = vmul.f32 %v5620_v3, %v6486_v59 }
0x20c9   : > { %v5647_v7 = vadd.f32 %v5631_v27, %v5599_v56  ;;  %v5633_v47 = vmul.f32 %v5617_v54, %v6469_v34  ;;  %5660 = vst [vmem:[%s8505_s4 + $0x10] sm:$0xff] %v5644_v53  ;;  %v5603_v2 = vld [vmem:[%s8505_s4 + $0x48] sm:$0xff]  ;;  %v5635_v0 = vmul.f32 %v5619_v30, %v6483_v51  ;;  %v5621_v34 = vld [vmem:[#allocation3 + $0x38] sm:$0xff]  ;;  %v5622_v11 = vld [vmem:[#allocation3 + $0x60] sm:$0xff] }
0x20ca   : > { %v5648_v63 = vadd.f32 %v5632_v60, %v5600_v57  ;;  %5661 = vst [vmem:[%s8505_s4 + $0x18] sm:$0xff] %v5645_v61  ;;  %v5637_v24 = vmul.f32 %v5621_v34, %v6489_v55  ;;  %v5650_v51 = vadd.f32 %v5634_v21, %v5602_v62  ;;  %v5605_v36 = vld [vmem:[%s8505_s4 + $0x58] sm:$0xff]  ;;  %v5638_v37 = vmul.f32 %v5622_v11, %v6492_v1  ;;  %v5623_v38 = vld [vmem:[#allocation3 + $0x70] sm:$0xff]  ;;  %v5606_v55 = vld [vmem:[%s8505_s4 + $0x60] sm:$0xff] }
0x20cb   : > { %v5649_v32 = vadd.f32 %v5633_v47, %v5601_v19  ;;  %5662 = vst [vmem:[%s8505_s4 + $0x20] sm:$0xff] %v5646_v14  ;;  %v5624_v39 = vld [vmem:[#allocation3 + $0x78] sm:$0xff]  ;;  %v5651_v59 = vadd.f32 %v5635_v0, %v5603_v2  ;;  %v5639_v25 = vmul.f32 %v5623_v38, %v6495_v31  ;;  %v5625_v28 = vld [vmem:[#allocation3 + $0x28] sm:$0xff]  ;;  %v5652_v42 = vadd.f32 %v5636_v33, %v5604_v43  ;;  %v5608_v31 = vld [vmem:[%s8505_s4 + $0x70] sm:$0xff] }
0x20cc   : > { %5663 = vst [vmem:[%s8505_s4 + $0x28] sm:$0xff] %v5647_v7  ;;  %v5607_v1 = vld [vmem:[%s8505_s4 + $0x68] sm:$0xff]  ;;  %v5640_v44 = vmul.f32 %v5624_v39, %v6498_v6  ;;  %v5653_v48 = vadd.f32 %v5637_v24, %v5605_v36  ;;  %v5641_v49 = vmul.f32 %v5625_v28, %v6501_v12  ;;  %v5654_v26 = vadd.f32 %v5638_v37, %v5606_v55  ;;  %v5609_v6 = vld [vmem:[%s8505_s4 + $0x78] sm:$0xff] }
0x20cd   : > { %5664 = vst [vmem:[%s8505_s4 + $0x30] sm:$0xff] %v5648_v63  ;;  %v5655_v5 = vadd.f32 %v5639_v25, %v5607_v1 }
0x20ce   : > { %5665 = vst [vmem:[%s8505_s4 + $0x38] sm:$0xff] %v5649_v32  ;;  %v5656_v10 = vadd.f32 %v5640_v44, %v5608_v31  ;;  %v5657_v12 = vadd.f32 %v5641_v49, %v5609_v6 }
0x20cf   : > { %5666 = vst [vmem:[%s8505_s4 + $0x40] sm:$0xff] %v5650_v51 }
0x20d0   : > { %5667 = vst [vmem:[%s8505_s4 + $0x48] sm:$0xff] %v5651_v59 }
0x20d1   : > { %5668 = vst [vmem:[%s8505_s4 + $0x50] sm:$0xff] %v5652_v42 }
0x20d2   : > { %5669 = vst [vmem:[%s8505_s4 + $0x58] sm:$0xff] %v5653_v48 }
0x20d3   : > { %5670 = vst [vmem:[%s8505_s4 + $0x60] sm:$0xff] %v5654_v26 }
0x20d4   : > { %5671 = vst [vmem:[%s8505_s4 + $0x68] sm:$0xff] %v5655_v5 }
0x20d5   : > { %5672 = vst [vmem:[%s8505_s4 + $0x70] sm:$0xff] %v5656_v10 }
0x20d6   : > { %5673 = vst [vmem:[%s8505_s4 + $0x78] sm:$0xff] %v5657_v12 }
0x20d7 PF: > { %s16_s17 = sadd.s32 1, %s6031_s17   ;;  %s8529_s15 = smov %s6027_s16 }
0x20d8   : > { %p13_p8 = scmp.ge.s32.totalorder %s16_s17, 27   ;;  %s8530_s16 = smov %s8532_s19 }
0x20da   :  { %15 = sbr.rel (!%p13_p8) target bundleno = 3 (0x3), region = 302 }
0x20df   :  { %5693 = vsyncpa [#allocation5], 1 }
0x20e0   :  { %5695 = vsyncpa [#allocation5 + $0x1], 1 }
0x20e1   :  { %5696 = vsyncpa [#allocation7], 1 }

</bundles_post_ra>
